<compile_context>
chip_gen: v7x
topology: tpu7x:2x2x1
jax: 0.10.0
libtpu: 0.0.40
codegen_flags: <defaults>
</compile_context>

<pallas_src>
import jax
import jax.numpy as jnp
from jax.experimental import pallas as pl
from jax.experimental.pallas import tpu as pltpu

# ----------------------------- config -------------------------------------
B = 2           # batch
C = 3           # image channels
IMG = 16        # image H = W
PATCH = 8       # patch size -> 2x2 = 4 patches
NP_ = (IMG // PATCH) ** 2
DV = 32         # vision hidden
HV = 4          # vision heads
NQ = 8          # number of Q-Former query tokens
DQ = 32         # Q-Former hidden
HQ = 4
DT = 32         # T5 d_model
HT = 4
FF = 64         # feed-forward dim (all blocks)
V = 64          # vocab size
LT = 8          # question token length
LD_FULL = 5     # "Short Answer:" decoder prefix length (last token dropped)
LD = LD_FULL - 1
LE = NQ + LT    # T5 encoder length ([query embeds ; question embeds])

F32 = jnp.float32
VMEM = pl.BlockSpec(memory_space=pltpu.MemorySpace.VMEM)

# ----------------------- in-kernel math helpers ----------------------------
# All helpers operate on plain jnp values (2-D [rows, features]) inside the
# fused kernels; every constant they close over is a Python scalar.

def _ln(x, g, b, eps):
    mu = jnp.mean(x, axis=-1, keepdims=True)
    var = jnp.mean((x - mu) ** 2, axis=-1, keepdims=True)
    return (x - mu) * jax.lax.rsqrt(var + eps) * g + b


def _rms(x, g, eps):
    var = jnp.mean(x * x, axis=-1, keepdims=True)
    return x * jax.lax.rsqrt(var + eps) * g


def _softmax(s):
    m = jnp.max(s, axis=-1, keepdims=True)
    e = jnp.exp(s - m)
    return e / jnp.sum(e, axis=-1, keepdims=True)


def _qkT(a, b):
    # a: [m, d], b: [n, d] -> [m, n] (contract last dims; no explicit transpose)
    return jax.lax.dot_general(a, b, (((1,), (1,)), ((), ())),
                               preferred_element_type=jnp.float32)


def _attend(q, k, v, wo, bo, *, num_heads, scale, batch, lq, lk, causal):
    """Multi-head attention core on 2-D activations.

    q: [batch*lq, d]; k, v: [batch*lk, d].  All batch*head matmuls are
    statically unrolled inside the single kernel invocation.
    """
    d = q.shape[-1]
    dh = d // num_heads
    if causal:
        qi = jax.lax.broadcasted_iota(jnp.int32, (lq, lk), 0)
        ki = jax.lax.broadcasted_iota(jnp.int32, (lq, lk), 1)
        neg = jnp.where(ki <= qi, 0.0, -1e30).astype(jnp.float32)
    rows = []
    for bi in range(batch):
        qb = q[bi * lq:(bi + 1) * lq, :]
        kb = k[bi * lk:(bi + 1) * lk, :]
        vb = v[bi * lk:(bi + 1) * lk, :]
        heads = []
        for h in range(num_heads):
            hsl = slice(h * dh, (h + 1) * dh)
            s = _qkT(qb[:, hsl], kb[:, hsl]) * scale
            if causal:
                s = s + neg
            p = _softmax(s)
            heads.append(jnp.dot(p, vb[:, hsl],
                                 preferred_element_type=jnp.float32))
        rows.append(jnp.concatenate(heads, axis=-1))
    o = jnp.concatenate(rows, axis=0)                       # [batch*lq, d]
    return jnp.dot(o, wo, preferred_element_type=jnp.float32) + bo


def _self_attn(x, wqkv, bqkv, wo, bo, *, num_heads, scale, batch, l,
               causal=False):
    # Fused QKV projection: wqkv is [d, 3d] -> one lane-dense matmul.
    d = x.shape[-1]
    qkv = jnp.dot(x, wqkv, preferred_element_type=jnp.float32) + bqkv
    return _attend(qkv[:, :d], qkv[:, d:2 * d], qkv[:, 2 * d:], wo, bo,
                   num_heads=num_heads, scale=scale, batch=batch,
                   lq=l, lk=l, causal=causal)


def _cross_attn(xq, xkv, wq, bq, wkv, bkv, wo, bo, *, num_heads, scale,
                batch, lq, lk):
    # Fused KV projection: wkv is [d_kv_in, 2d].
    d = wq.shape[-1]
    q = jnp.dot(xq, wq, preferred_element_type=jnp.float32) + bq
    kv = jnp.dot(xkv, wkv, preferred_element_type=jnp.float32) + bkv
    return _attend(q, kv[:, :d], kv[:, d:], wo, bo, num_heads=num_heads,
                   scale=scale, batch=batch, lq=lq, lk=lk, causal=False)


def _ffn_gelu(x, w1, b1, w2, b2):
    # TODO(synk): HF ViT / Q-Former use exact erf GELU; tanh approximation used
    # here (erf lowering on Mosaic is not guaranteed).
    h = jax.nn.gelu(jnp.dot(x, w1, preferred_element_type=jnp.float32) + b1)
    return jnp.dot(h, w2, preferred_element_type=jnp.float32) + b2


def _t5_ffn(x, wi, wo):
    # T5 gated-GELU FFN; wi is the fused [d, 2*FF] (wi_0 | wi_1) weight.
    h2 = jnp.dot(x, wi, preferred_element_type=jnp.float32)
    ff = wi.shape[1] // 2
    h = jax.nn.gelu(h2[:, :ff]) * h2[:, ff:]
    return jnp.dot(h, wo, preferred_element_type=jnp.float32)


def _argmax_rows(x):
    n = x.shape[-1]
    m = jnp.max(x, axis=-1, keepdims=True)
    idx = jax.lax.broadcasted_iota(jnp.int32, x.shape, x.ndim - 1)
    cand = jnp.where(x == m, idx, n)
    return jnp.min(cand, axis=-1, keepdims=True)

# ----------------------------- fused kernels --------------------------------

def vision_kernel(patches, pw, pb, pos, ln1g, ln1b, wqkv, bqkv, wo, bo,
                  ln2g, ln2b, fc1w, fc1b, fc2w, fc2b, lnfg, lnfb, out_ref):
    """ViT-style pre-LN vision block: patch embed + pos + MHA + FFN + final LN."""
    scale = (DV // HV) ** -0.5
    eps = 1e-5
    x = jnp.dot(patches[...], pw[...], preferred_element_type=jnp.float32) + pb[...]
    x = x + jnp.concatenate([pos[...]] * B, axis=0)          # pos over batch
    h = _ln(x, ln1g[...], ln1b[...], eps)
    x = x + _self_attn(h, wqkv[...], bqkv[...], wo[...], bo[...],
                       num_heads=HV, scale=scale, batch=B, l=NP_)
    h = _ln(x, ln2g[...], ln2b[...], eps)
    x = x + _ffn_gelu(h, fc1w[...], fc1b[...], fc2w[...], fc2b[...])
    out_ref[...] = _ln(x, lnfg[...], lnfb[...], eps)


def qformer_kernel(img, qtok, ln1g, ln1b, sa_wqkv, sa_bqkv, sa_wo, sa_bo,
                   ln2g, ln2b, ca_wq, ca_bq, ca_wkv, ca_bkv, ca_wo, ca_bo,
                   ln3g, ln3b, fc1w, fc1b, fc2w, fc2b, lnfg, lnfb,
                   projw, projb, out_ref):
    """Q-Former block: self-attn over queries, cross-attn to image, FFN, proj."""
    scale = (DQ // HQ) ** -0.5
    eps = 1e-12
    image_embeds = img[...]                                   # [B*NP_, DV]
    q = jnp.concatenate([qtok[...]] * B, axis=0)              # [B*NQ, DQ]
    h = _ln(q, ln1g[...], ln1b[...], eps)
    q = q + _self_attn(h, sa_wqkv[...], sa_bqkv[...], sa_wo[...], sa_bo[...],
                       num_heads=HQ, scale=scale, batch=B, l=NQ)
    h = _ln(q, ln2g[...], ln2b[...], eps)
    q = q + _cross_attn(h, image_embeds, ca_wq[...], ca_bq[...],
                        ca_wkv[...], ca_bkv[...], ca_wo[...], ca_bo[...],
                        num_heads=HQ, scale=scale, batch=B, lq=NQ, lk=NP_)
    h = _ln(q, ln3g[...], ln3b[...], eps)
    q = q + _ffn_gelu(h, fc1w[...], fc1b[...], fc2w[...], fc2b[...])
    q = _ln(q, lnfg[...], lnfb[...], eps)
    out_ref[...] = (jnp.dot(q, projw[...], preferred_element_type=jnp.float32)
                    + projb[...])                             # language proj


def t5_kernel(enc_in, dec_in,
              e_ln1, e_wqkv, e_bqkv, e_wo, e_bo, e_ln2, e_wi, e_wff, e_lnf,
              d_ln1, d_wqkv, d_bqkv, d_wo, d_bo, d_ln2,
              d_cwq, d_cbq, d_cwkv, d_cbkv, d_cwo, d_cbo,
              d_ln3, d_wi, d_wff, d_lnf, lm_w, lm_b, tok_ref):
    """T5 encoder + decoder ("Short Answer:" prefix) + LM head + greedy argmax."""
    eps = 1e-6
    # TODO(synk): T5 relative-position bias and encoder padding masks omitted.
    enc = enc_in[...]                                         # [B*LE, DT]
    h = _rms(enc, e_ln1[...], eps)
    enc = enc + _self_attn(h, e_wqkv[...], e_bqkv[...], e_wo[...], e_bo[...],
                           num_heads=HT, scale=1.0, batch=B, l=LE)
    h = _rms(enc, e_ln2[...], eps)
    enc = enc + _t5_ffn(h, e_wi[...], e_wff[...])
    enc = _rms(enc, e_lnf[...], eps)

    dec = dec_in[...]                                         # [B*LD, DT]
    h = _rms(dec, d_ln1[...], eps)
    dec = dec + _self_attn(h, d_wqkv[...], d_bqkv[...], d_wo[...], d_bo[...],
                           num_heads=HT, scale=1.0, batch=B, l=LD, causal=True)
    h = _rms(dec, d_ln2[...], eps)
    dec = dec + _cross_attn(h, enc, d_cwq[...], d_cbq[...],
                            d_cwkv[...], d_cbkv[...], d_cwo[...], d_cbo[...],
                            num_heads=HT, scale=1.0, batch=B, lq=LD, lk=LE)
    h = _rms(dec, d_ln3[...], eps)
    dec = dec + _t5_ffn(h, d_wi[...], d_wff[...])
    dec = _rms(dec, d_lnf[...], eps)

    # Only the last decoder token per batch element feeds the LM head.
    last = jnp.concatenate(
        [dec[(bi + 1) * LD - 1:(bi + 1) * LD, :] for bi in range(B)], axis=0)
    logits = jnp.dot(last, lm_w[...], preferred_element_type=jnp.float32) + lm_b[...]
    # TODO(synk): beam search (num_beams) has no clean Pallas equivalent; greedy.
    tok_ref[...] = _argmax_rows(logits)

# ----------------------------- pallas_call wrappers --------------------------

def run_vision(patches, p):
    args = (patches, p["patch_w"], p["patch_b"], p["pos"],
            p["ln1_g"], p["ln1_b"], p["wqkv"], p["bqkv"], p["wo"], p["bo"],
            p["ln2_g"], p["ln2_b"], p["fc1_w"], p["fc1_b"],
            p["fc2_w"], p["fc2_b"], p["lnf_g"], p["lnf_b"])
    return pl.pallas_call(
        vision_kernel,
        out_shape=jax.ShapeDtypeStruct((B * NP_, DV), F32),
        in_specs=[VMEM] * len(args),
        out_specs=VMEM,
    )(*args)


def run_qformer(image_embeds, p):
    args = (image_embeds, p["query_tokens"],
            p["ln1_g"], p["ln1_b"],
            p["sa_wqkv"], p["sa_bqkv"], p["sa_wo"], p["sa_bo"],
            p["ln2_g"], p["ln2_b"],
            p["ca_wq"], p["ca_bq"], p["ca_wkv"], p["ca_bkv"],
            p["ca_wo"], p["ca_bo"],
            p["ln3_g"], p["ln3_b"],
            p["fc1_w"], p["fc1_b"], p["fc2_w"], p["fc2_b"],
            p["lnf_g"], p["lnf_b"], p["proj_w"], p["proj_b"])
    return pl.pallas_call(
        qformer_kernel,
        out_shape=jax.ShapeDtypeStruct((B * NQ, DT), F32),
        in_specs=[VMEM] * len(args),
        out_specs=VMEM,
    )(*args)


def run_t5(enc_in, dec_in, p):
    args = (enc_in, dec_in,
            p["e_ln1"], p["e_wqkv"], p["e_bqkv"], p["e_wo"], p["e_bo"],
            p["e_ln2"], p["e_wi"], p["e_wff"], p["e_lnf"],
            p["d_ln1"], p["d_wqkv"], p["d_bqkv"], p["d_wo"], p["d_bo"],
            p["d_ln2"], p["d_cwq"], p["d_cbq"], p["d_cwkv"], p["d_cbkv"],
            p["d_cwo"], p["d_cbo"], p["d_ln3"], p["d_wi"], p["d_wff"],
            p["d_lnf"], p["lm_w"], p["lm_b"])
    return pl.pallas_call(
        t5_kernel,
        out_shape=jax.ShapeDtypeStruct((B, 1), jnp.int32),
        in_specs=[VMEM] * len(args),
        out_specs=VMEM,
    )(*args)

# ----------------------------- model glue ------------------------------------

@jax.jit
def blip2_generate(pixel_values, input_ids, decoder_input_ids, params):
    """One-step greedy generate (max_new_tokens=1), mirroring Blip2 generate()."""
    b = pixel_values.shape[0]
    # Patch extraction from NCHW pixel values (layout plumbing, outside kernels).
    x = pixel_values.reshape(b, C, IMG // PATCH, PATCH, IMG // PATCH, PATCH)
    patches = x.transpose(0, 2, 4, 1, 3, 5).reshape(b * NP_, C * PATCH * PATCH)

    image_embeds = run_vision(patches, params["vision"])          # [B*NP_, DV]
    q_proj = run_qformer(image_embeds, params["qformer"])         # [B*NQ, DT]

    tok_emb = params["t5"]["tok_emb"]
    txt = tok_emb[input_ids]                                      # [B, LT, DT]
    enc_in = jnp.concatenate([q_proj.reshape(b, NQ, DT), txt], axis=1)
    enc_in = enc_in.reshape(b * LE, DT)
    dec_in = tok_emb[decoder_input_ids].reshape(b * LD, DT)

    return run_t5(enc_in, dec_in, params["t5"])                   # [B, 1] int32

# ----------------------------- params ---------------------------------------

def init_params(key):
    keys = iter(jax.random.split(key, 64))

    def w(shape, s=0.02):
        return jax.random.normal(next(keys), shape, F32) * s

    ones_row = lambda d: jnp.ones((1, d), F32)
    zeros_row = lambda d: jnp.zeros((1, d), F32)

    vision = dict(
        patch_w=w((C * PATCH * PATCH, DV)), patch_b=zeros_row(DV),
        pos=w((NP_, DV)),
        ln1_g=ones_row(DV), ln1_b=zeros_row(DV),
        wqkv=w((DV, 3 * DV)), bqkv=zeros_row(3 * DV),      # fused Q|K|V
        wo=w((DV, DV)), bo=zeros_row(DV),
        ln2_g=ones_row(DV), ln2_b=zeros_row(DV),
        fc1_w=w((DV, FF)), fc1_b=zeros_row(FF),
        fc2_w=w((FF, DV)), fc2_b=zeros_row(DV),
        lnf_g=ones_row(DV), lnf_b=zeros_row(DV),
    )
    qformer = dict(
        query_tokens=w((NQ, DQ)),
        ln1_g=ones_row(DQ), ln1_b=zeros_row(DQ),
        sa_wqkv=w((DQ, 3 * DQ)), sa_bqkv=zeros_row(3 * DQ),
        sa_wo=w((DQ, DQ)), sa_bo=zeros_row(DQ),
        ln2_g=ones_row(DQ), ln2_b=zeros_row(DQ),
        ca_wq=w((DQ, DQ)), ca_bq=zeros_row(DQ),
        ca_wkv=w((DV, 2 * DQ)), ca_bkv=zeros_row(2 * DQ),  # fused K|V
        ca_wo=w((DQ, DQ)), ca_bo=zeros_row(DQ),
        ln3_g=ones_row(DQ), ln3_b=zeros_row(DQ),
        fc1_w=w((DQ, FF)), fc1_b=zeros_row(FF),
        fc2_w=w((FF, DQ)), fc2_b=zeros_row(DQ),
        lnf_g=ones_row(DQ), lnf_b=zeros_row(DQ),
        proj_w=w((DQ, DT)), proj_b=zeros_row(DT),
    )
    t5 = dict(
        tok_emb=w((V, DT)),
        e_ln1=ones_row(DT),
        e_wqkv=w((DT, 3 * DT)), e_bqkv=zeros_row(3 * DT),
        e_wo=w((DT, DT)), e_bo=zeros_row(DT),
        e_ln2=ones_row(DT),
        e_wi=w((DT, 2 * FF)), e_wff=w((FF, DT)),           # fused wi_0|wi_1
        e_lnf=ones_row(DT),
        d_ln1=ones_row(DT),
        d_wqkv=w((DT, 3 * DT)), d_bqkv=zeros_row(3 * DT),
        d_wo=w((DT, DT)), d_bo=zeros_row(DT),
        d_ln2=ones_row(DT),
        d_cwq=w((DT, DT)), d_cbq=zeros_row(DT),
        d_cwkv=w((DT, 2 * DT)), d_cbkv=zeros_row(2 * DT),
        d_cwo=w((DT, DT)), d_cbo=zeros_row(DT),
        d_ln3=ones_row(DT),
        d_wi=w((DT, 2 * FF)), d_wff=w((FF, DT)),
        d_lnf=ones_row(DT),
        lm_w=w((DT, V)), lm_b=zeros_row(V),
    )
    return dict(vision=vision, qformer=qformer, t5=t5)

# ----------------------------- main -----------------------------------------

if __name__ == "__main__":
    key = jax.random.PRNGKey(0)
    kp, kimg, ktok = jax.random.split(key, 3)
    params = init_params(kp)

    # NCHW pixel values like PyTorch (post resize/center-crop).
    pixel_values = jax.random.normal(kimg, (B, C, IMG, IMG), F32)
    # "Question: ..." token ids (synthetic tokenizer output, padded to longest).
    input_ids = jax.random.randint(ktok, (B, LT), 0, V, dtype=jnp.int32)
    # "Short Answer:" decoder prefix; drop last token like the reference code.
    dec_full = jnp.tile(jnp.arange(5, 5 + LD_FULL, dtype=jnp.int32)[None, :], (B, 1))
    decoder_input_ids = dec_full[:, :-1]

    tokens = blip2_generate(pixel_values, input_ids, decoder_input_ids, params)
    jax.block_until_ready(tokens)
    assert tokens.shape == (B, 1) and tokens.dtype == jnp.int32
    print("KERNEL_OK")
</pallas_src>

<mosaic_0001>
module attributes {stable_mosaic.version = 11 : i64} {
  func.func @vision_kernel(%arg0: memref<8x192xf32, #tpu.memory_space<vmem>>, %arg1: memref<192x32xf32, #tpu.memory_space<vmem>>, %arg2: memref<1x32xf32, #tpu.memory_space<vmem>>, %arg3: memref<4x32xf32, #tpu.memory_space<vmem>>, %arg4: memref<1x32xf32, #tpu.memory_space<vmem>>, %arg5: memref<1x32xf32, #tpu.memory_space<vmem>>, %arg6: memref<32x96xf32, #tpu.memory_space<vmem>>, %arg7: memref<1x96xf32, #tpu.memory_space<vmem>>, %arg8: memref<32x32xf32, #tpu.memory_space<vmem>>, %arg9: memref<1x32xf32, #tpu.memory_space<vmem>>, %arg10: memref<1x32xf32, #tpu.memory_space<vmem>>, %arg11: memref<1x32xf32, #tpu.memory_space<vmem>>, %arg12: memref<32x64xf32, #tpu.memory_space<vmem>>, %arg13: memref<1x64xf32, #tpu.memory_space<vmem>>, %arg14: memref<64x32xf32, #tpu.memory_space<vmem>>, %arg15: memref<1x32xf32, #tpu.memory_space<vmem>>, %arg16: memref<1x32xf32, #tpu.memory_space<vmem>>, %arg17: memref<1x32xf32, #tpu.memory_space<vmem>>, %arg18: memref<8x32xf32, #tpu.memory_space<vmem>>) attributes {dimension_semantics = [], scalar_prefetch = 0 : i64, scratch_operands = 0 : i64, tpu.core_type = #tpu.core_type<tc>} {
    %c0 = arith.constant 0 : index
    %c0_0 = arith.constant 0 : index
    %0 = vector.load %arg0[%c0, %c0_0] : memref<8x192xf32, #tpu.memory_space<vmem>>, vector<8x192xf32>
    %c0_1 = arith.constant 0 : index
    %c0_2 = arith.constant 0 : index
    %1 = vector.load %arg1[%c0_1, %c0_2] : memref<192x32xf32, #tpu.memory_space<vmem>>, vector<192x32xf32>
    %cst = arith.constant dense<0.000000e+00> : vector<8x32xf32>
    %2 = tpu.matmul %0, %1, %cst {dimension_numbers = #tpu.dot_dimension_numbers<[1], [0], [0], [1], [0, 0, 1, 1], [], []>} : vector<8x192xf32>, vector<192x32xf32>, vector<8x32xf32> -> vector<8x32xf32>
    %c0_3 = arith.constant 0 : index
    %c0_4 = arith.constant 0 : index
    %3 = vector.load %arg2[%c0_3, %c0_4] : memref<1x32xf32, #tpu.memory_space<vmem>>, vector<1x32xf32>
    %4 = vector.broadcast %3 : vector<1x32xf32> to vector<8x32xf32>
    %5 = arith.addf %2, %4 : vector<8x32xf32>
    %c0_5 = arith.constant 0 : index
    %c0_6 = arith.constant 0 : index
    %6 = vector.load %arg3[%c0_5, %c0_6] : memref<4x32xf32, #tpu.memory_space<vmem>>, vector<4x32xf32>
    %7 = tpu.concatenate %6, %6 in 0 : vector<4x32xf32>, vector<4x32xf32> -> vector<8x32xf32>
    %8 = arith.addf %5, %7 : vector<8x32xf32>
    %c0_7 = arith.constant 0 : index
    %c0_8 = arith.constant 0 : index
    %9 = vector.load %arg4[%c0_7, %c0_8] : memref<1x32xf32, #tpu.memory_space<vmem>>, vector<1x32xf32>
    %c0_9 = arith.constant 0 : index
    %c0_10 = arith.constant 0 : index
    %10 = vector.load %arg5[%c0_9, %c0_10] : memref<1x32xf32, #tpu.memory_space<vmem>>, vector<1x32xf32>
    %cst_11 = arith.constant dense<0.000000e+00> : vector<8xf32>
    %11 = vector.multi_reduction <add>, %8, %cst_11 [1] : vector<8x32xf32> to vector<8xf32>
    %12 = vector.shape_cast %11 : vector<8xf32> to vector<8x1xf32>
    %cst_12 = arith.constant 3.200000e+01 : f32
    %13 = vector.broadcast %cst_12 : f32 to vector<8x1xf32>
    %14 = arith.divf %12, %13 : vector<8x1xf32>
    %15 = vector.broadcast %14 : vector<8x1xf32> to vector<8x32xf32>
    %16 = arith.subf %8, %15 : vector<8x32xf32>
    %17 = arith.mulf %16, %16 : vector<8x32xf32>
    %cst_13 = arith.constant dense<0.000000e+00> : vector<8xf32>
    %18 = vector.multi_reduction <add>, %17, %cst_13 [1] : vector<8x32xf32> to vector<8xf32>
    %19 = vector.shape_cast %18 : vector<8xf32> to vector<8x1xf32>
    %cst_14 = arith.constant 3.200000e+01 : f32
    %20 = vector.broadcast %cst_14 : f32 to vector<8x1xf32>
    %21 = arith.divf %19, %20 : vector<8x1xf32>
    %22 = vector.broadcast %14 : vector<8x1xf32> to vector<8x32xf32>
    %23 = arith.subf %8, %22 : vector<8x32xf32>
    %cst_15 = arith.constant 9.99999974E-6 : f32
    %24 = vector.broadcast %cst_15 : f32 to vector<8x1xf32>
    %25 = arith.addf %21, %24 : vector<8x1xf32>
    %26 = math.rsqrt %25 : vector<8x1xf32>
    %27 = vector.broadcast %26 : vector<8x1xf32> to vector<8x32xf32>
    %28 = arith.mulf %23, %27 : vector<8x32xf32>
    %29 = vector.broadcast %9 : vector<1x32xf32> to vector<8x32xf32>
    %30 = arith.mulf %28, %29 : vector<8x32xf32>
    %31 = vector.broadcast %10 : vector<1x32xf32> to vector<8x32xf32>
    %32 = arith.addf %30, %31 : vector<8x32xf32>
    %c0_16 = arith.constant 0 : index
    %c0_17 = arith.constant 0 : index
    %33 = vector.load %arg6[%c0_16, %c0_17] : memref<32x96xf32, #tpu.memory_space<vmem>>, vector<32x96xf32>
    %c0_18 = arith.constant 0 : index
    %c0_19 = arith.constant 0 : index
    %34 = vector.load %arg7[%c0_18, %c0_19] : memref<1x96xf32, #tpu.memory_space<vmem>>, vector<1x96xf32>
    %c0_20 = arith.constant 0 : index
    %c0_21 = arith.constant 0 : index
    %35 = vector.load %arg8[%c0_20, %c0_21] : memref<32x32xf32, #tpu.memory_space<vmem>>, vector<32x32xf32>
    %c0_22 = arith.constant 0 : index
    %c0_23 = arith.constant 0 : index
    %36 = vector.load %arg9[%c0_22, %c0_23] : memref<1x32xf32, #tpu.memory_space<vmem>>, vector<1x32xf32>
    %cst_24 = arith.constant dense<0.000000e+00> : vector<8x96xf32>
    %37 = tpu.matmul %32, %33, %cst_24 {dimension_numbers = #tpu.dot_dimension_numbers<[1], [0], [0], [1], [0, 0, 1, 1], [], []>} : vector<8x32xf32>, vector<32x96xf32>, vector<8x96xf32> -> vector<8x96xf32>
    %38 = vector.broadcast %34 : vector<1x96xf32> to vector<8x96xf32>
    %39 = arith.addf %37, %38 : vector<8x96xf32>
    %40 = vector.extract_strided_slice %39 {offsets = [0, 0], sizes = [8, 32], strides = [1, 1]} : vector<8x96xf32> to vector<8x32xf32>
    %41 = vector.extract_strided_slice %39 {offsets = [0, 32], sizes = [8, 32], strides = [1, 1]} : vector<8x96xf32> to vector<8x32xf32>
    %42 = vector.extract_strided_slice %39 {offsets = [0, 64], sizes = [8, 32], strides = [1, 1]} : vector<8x96xf32> to vector<8x32xf32>
    %43 = vector.extract_strided_slice %40 {offsets = [0, 0], sizes = [4, 32], strides = [1, 1]} : vector<8x32xf32> to vector<4x32xf32>
    %44 = vector.extract_strided_slice %41 {offsets = [0, 0], sizes = [4, 32], strides = [1, 1]} : vector<8x32xf32> to vector<4x32xf32>
    %45 = vector.extract_strided_slice %42 {offsets = [0, 0], sizes = [4, 32], strides = [1, 1]} : vector<8x32xf32> to vector<4x32xf32>
    %46 = vector.extract_strided_slice %43 {offsets = [0, 0], sizes = [4, 8], strides = [1, 1]} : vector<4x32xf32> to vector<4x8xf32>
    %47 = vector.extract_strided_slice %44 {offsets = [0, 0], sizes = [4, 8], strides = [1, 1]} : vector<4x32xf32> to vector<4x8xf32>
    %cst_25 = arith.constant dense<0.000000e+00> : vector<4x4xf32>
    %48 = tpu.matmul %46, %47, %cst_25 {dimension_numbers = #tpu.dot_dimension_numbers<[1], [1], [0], [0], [0, 0, 1, 0], [], []>} : vector<4x8xf32>, vector<4x8xf32>, vector<4x4xf32> -> vector<4x4xf32>
    %cst_26 = arith.constant 0.353553385 : f32
    %49 = vector.broadcast %cst_26 : f32 to vector<4x4xf32>
    %50 = arith.mulf %48, %49 : vector<4x4xf32>
    %cst_27 = arith.constant dense<0xFF800000> : vector<4xf32>
    %51 = vector.multi_reduction <maximumf>, %50, %cst_27 [1] : vector<4x4xf32> to vector<4xf32>
    %52 = vector.shape_cast %51 : vector<4xf32> to vector<4x1xf32>
    %53 = vector.broadcast %52 : vector<4x1xf32> to vector<4x4xf32>
    %54 = arith.subf %50, %53 : vector<4x4xf32>
    %55 = math.exp %54 : vector<4x4xf32>
    %cst_28 = arith.constant dense<0.000000e+00> : vector<4xf32>
    %56 = vector.multi_reduction <add>, %55, %cst_28 [1] : vector<4x4xf32> to vector<4xf32>
    %57 = vector.shape_cast %56 : vector<4xf32> to vector<4x1xf32>
    %58 = vector.broadcast %57 : vector<4x1xf32> to vector<4x4xf32>
    %59 = arith.divf %55, %58 : vector<4x4xf32>
    %60 = vector.extract_strided_slice %45 {offsets = [0, 0], sizes = [4, 8], strides = [1, 1]} : vector<4x32xf32> to vector<4x8xf32>
    %cst_29 = arith.constant dense<0.000000e+00> : vector<4x8xf32>
    %61 = tpu.matmul %59, %60, %cst_29 {dimension_numbers = #tpu.dot_dimension_numbers<[1], [0], [0], [1], [0, 0, 1, 1], [], []>} : vector<4x4xf32>, vector<4x8xf32>, vector<4x8xf32> -> vector<4x8xf32>
    %62 = vector.extract_strided_slice %43 {offsets = [0, 8], sizes = [4, 8], strides = [1, 1]} : vector<4x32xf32> to vector<4x8xf32>
    %63 = vector.extract_strided_slice %44 {offsets = [0, 8], sizes = [4, 8], strides = [1, 1]} : vector<4x32xf32> to vector<4x8xf32>
    %cst_30 = arith.constant dense<0.000000e+00> : vector<4x4xf32>
    %64 = tpu.matmul %62, %63, %cst_30 {dimension_numbers = #tpu.dot_dimension_numbers<[1], [1], [0], [0], [0, 0, 1, 0], [], []>} : vector<4x8xf32>, vector<4x8xf32>, vector<4x4xf32> -> vector<4x4xf32>
    %cst_31 = arith.constant 0.353553385 : f32
    %65 = vector.broadcast %cst_31 : f32 to vector<4x4xf32>
    %66 = arith.mulf %64, %65 : vector<4x4xf32>
    %cst_32 = arith.constant dense<0xFF800000> : vector<4xf32>
    %67 = vector.multi_reduction <maximumf>, %66, %cst_32 [1] : vector<4x4xf32> to vector<4xf32>
    %68 = vector.shape_cast %67 : vector<4xf32> to vector<4x1xf32>
    %69 = vector.broadcast %68 : vector<4x1xf32> to vector<4x4xf32>
    %70 = arith.subf %66, %69 : vector<4x4xf32>
    %71 = math.exp %70 : vector<4x4xf32>
    %cst_33 = arith.constant dense<0.000000e+00> : vector<4xf32>
    %72 = vector.multi_reduction <add>, %71, %cst_33 [1] : vector<4x4xf32> to vector<4xf32>
    %73 = vector.shape_cast %72 : vector<4xf32> to vector<4x1xf32>
    %74 = vector.broadcast %73 : vector<4x1xf32> to vector<4x4xf32>
    %75 = arith.divf %71, %74 : vector<4x4xf32>
    %76 = vector.extract_strided_slice %45 {offsets = [0, 8], sizes = [4, 8], strides = [1, 1]} : vector<4x32xf32> to vector<4x8xf32>
    %cst_34 = arith.constant dense<0.000000e+00> : vector<4x8xf32>
    %77 = tpu.matmul %75, %76, %cst_34 {dimension_numbers = #tpu.dot_dimension_numbers<[1], [0], [0], [1], [0, 0, 1, 1], [], []>} : vector<4x4xf32>, vector<4x8xf32>, vector<4x8xf32> -> vector<4x8xf32>
    %78 = vector.extract_strided_slice %43 {offsets = [0, 16], sizes = [4, 8], strides = [1, 1]} : vector<4x32xf32> to vector<4x8xf32>
    %79 = vector.extract_strided_slice %44 {offsets = [0, 16], sizes = [4, 8], strides = [1, 1]} : vector<4x32xf32> to vector<4x8xf32>
    %cst_35 = arith.constant dense<0.000000e+00> : vector<4x4xf32>
    %80 = tpu.matmul %78, %79, %cst_35 {dimension_numbers = #tpu.dot_dimension_numbers<[1], [1], [0], [0], [0, 0, 1, 0], [], []>} : vector<4x8xf32>, vector<4x8xf32>, vector<4x4xf32> -> vector<4x4xf32>
    %cst_36 = arith.constant 0.353553385 : f32
    %81 = vector.broadcast %cst_36 : f32 to vector<4x4xf32>
    %82 = arith.mulf %80, %81 : vector<4x4xf32>
    %cst_37 = arith.constant dense<0xFF800000> : vector<4xf32>
    %83 = vector.multi_reduction <maximumf>, %82, %cst_37 [1] : vector<4x4xf32> to vector<4xf32>
    %84 = vector.shape_cast %83 : vector<4xf32> to vector<4x1xf32>
    %85 = vector.broadcast %84 : vector<4x1xf32> to vector<4x4xf32>
    %86 = arith.subf %82, %85 : vector<4x4xf32>
    %87 = math.exp %86 : vector<4x4xf32>
    %cst_38 = arith.constant dense<0.000000e+00> : vector<4xf32>
    %88 = vector.multi_reduction <add>, %87, %cst_38 [1] : vector<4x4xf32> to vector<4xf32>
    %89 = vector.shape_cast %88 : vector<4xf32> to vector<4x1xf32>
    %90 = vector.broadcast %89 : vector<4x1xf32> to vector<4x4xf32>
    %91 = arith.divf %87, %90 : vector<4x4xf32>
    %92 = vector.extract_strided_slice %45 {offsets = [0, 16], sizes = [4, 8], strides = [1, 1]} : vector<4x32xf32> to vector<4x8xf32>
    %cst_39 = arith.constant dense<0.000000e+00> : vector<4x8xf32>
    %93 = tpu.matmul %91, %92, %cst_39 {dimension_numbers = #tpu.dot_dimension_numbers<[1], [0], [0], [1], [0, 0, 1, 1], [], []>} : vector<4x4xf32>, vector<4x8xf32>, vector<4x8xf32> -> vector<4x8xf32>
    %94 = vector.extract_strided_slice %43 {offsets = [0, 24], sizes = [4, 8], strides = [1, 1]} : vector<4x32xf32> to vector<4x8xf32>
    %95 = vector.extract_strided_slice %44 {offsets = [0, 24], sizes = [4, 8], strides = [1, 1]} : vector<4x32xf32> to vector<4x8xf32>
    %cst_40 = arith.constant dense<0.000000e+00> : vector<4x4xf32>
    %96 = tpu.matmul %94, %95, %cst_40 {dimension_numbers = #tpu.dot_dimension_numbers<[1], [1], [0], [0], [0, 0, 1, 0], [], []>} : vector<4x8xf32>, vector<4x8xf32>, vector<4x4xf32> -> vector<4x4xf32>
    %cst_41 = arith.constant 0.353553385 : f32
    %97 = vector.broadcast %cst_41 : f32 to vector<4x4xf32>
    %98 = arith.mulf %96, %97 : vector<4x4xf32>
    %cst_42 = arith.constant dense<0xFF800000> : vector<4xf32>
    %99 = vector.multi_reduction <maximumf>, %98, %cst_42 [1] : vector<4x4xf32> to vector<4xf32>
    %100 = vector.shape_cast %99 : vector<4xf32> to vector<4x1xf32>
    %101 = vector.broadcast %100 : vector<4x1xf32> to vector<4x4xf32>
    %102 = arith.subf %98, %101 : vector<4x4xf32>
    %103 = math.exp %102 : vector<4x4xf32>
    %cst_43 = arith.constant dense<0.000000e+00> : vector<4xf32>
    %104 = vector.multi_reduction <add>, %103, %cst_43 [1] : vector<4x4xf32> to vector<4xf32>
    %105 = vector.shape_cast %104 : vector<4xf32> to vector<4x1xf32>
    %106 = vector.broadcast %105 : vector<4x1xf32> to vector<4x4xf32>
    %107 = arith.divf %103, %106 : vector<4x4xf32>
    %108 = vector.extract_strided_slice %45 {offsets = [0, 24], sizes = [4, 8], strides = [1, 1]} : vector<4x32xf32> to vector<4x8xf32>
    %cst_44 = arith.constant dense<0.000000e+00> : vector<4x8xf32>
    %109 = tpu.matmul %107, %108, %cst_44 {dimension_numbers = #tpu.dot_dimension_numbers<[1], [0], [0], [1], [0, 0, 1, 1], [], []>} : vector<4x4xf32>, vector<4x8xf32>, vector<4x8xf32> -> vector<4x8xf32>
    %110 = tpu.concatenate %61, %77, %93, %109 in 1 : vector<4x8xf32>, vector<4x8xf32>, vector<4x8xf32>, vector<4x8xf32> -> vector<4x32xf32>
    %111 = vector.extract_strided_slice %40 {offsets = [4, 0], sizes = [4, 32], strides = [1, 1]} : vector<8x32xf32> to vector<4x32xf32>
    %112 = vector.extract_strided_slice %41 {offsets = [4, 0], sizes = [4, 32], strides = [1, 1]} : vector<8x32xf32> to vector<4x32xf32>
    %113 = vector.extract_strided_slice %42 {offsets = [4, 0], sizes = [4, 32], strides = [1, 1]} : vector<8x32xf32> to vector<4x32xf32>
    %114 = vector.extract_strided_slice %111 {offsets = [0, 0], sizes = [4, 8], strides = [1, 1]} : vector<4x32xf32> to vector<4x8xf32>
    %115 = vector.extract_strided_slice %112 {offsets = [0, 0], sizes = [4, 8], strides = [1, 1]} : vector<4x32xf32> to vector<4x8xf32>
    %cst_45 = arith.constant dense<0.000000e+00> : vector<4x4xf32>
    %116 = tpu.matmul %114, %115, %cst_45 {dimension_numbers = #tpu.dot_dimension_numbers<[1], [1], [0], [0], [0, 0, 1, 0], [], []>} : vector<4x8xf32>, vector<4x8xf32>, vector<4x4xf32> -> vector<4x4xf32>
    %cst_46 = arith.constant 0.353553385 : f32
    %117 = vector.broadcast %cst_46 : f32 to vector<4x4xf32>
    %118 = arith.mulf %116, %117 : vector<4x4xf32>
    %cst_47 = arith.constant dense<0xFF800000> : vector<4xf32>
    %119 = vector.multi_reduction <maximumf>, %118, %cst_47 [1] : vector<4x4xf32> to vector<4xf32>
    %120 = vector.shape_cast %119 : vector<4xf32> to vector<4x1xf32>
    %121 = vector.broadcast %120 : vector<4x1xf32> to vector<4x4xf32>
    %122 = arith.subf %118, %121 : vector<4x4xf32>
    %123 = math.exp %122 : vector<4x4xf32>
    %cst_48 = arith.constant dense<0.000000e+00> : vector<4xf32>
    %124 = vector.multi_reduction <add>, %123, %cst_48 [1] : vector<4x4xf32> to vector<4xf32>
    %125 = vector.shape_cast %124 : vector<4xf32> to vector<4x1xf32>
    %126 = vector.broadcast %125 : vector<4x1xf32> to vector<4x4xf32>
    %127 = arith.divf %123, %126 : vector<4x4xf32>
    %128 = vector.extract_strided_slice %113 {offsets = [0, 0], sizes = [4, 8], strides = [1, 1]} : vector<4x32xf32> to vector<4x8xf32>
    %cst_49 = arith.constant dense<0.000000e+00> : vector<4x8xf32>
    %129 = tpu.matmul %127, %128, %cst_49 {dimension_numbers = #tpu.dot_dimension_numbers<[1], [0], [0], [1], [0, 0, 1, 1], [], []>} : vector<4x4xf32>, vector<4x8xf32>, vector<4x8xf32> -> vector<4x8xf32>
    %130 = vector.extract_strided_slice %111 {offsets = [0, 8], sizes = [4, 8], strides = [1, 1]} : vector<4x32xf32> to vector<4x8xf32>
    %131 = vector.extract_strided_slice %112 {offsets = [0, 8], sizes = [4, 8], strides = [1, 1]} : vector<4x32xf32> to vector<4x8xf32>
    %cst_50 = arith.constant dense<0.000000e+00> : vector<4x4xf32>
    %132 = tpu.matmul %130, %131, %cst_50 {dimension_numbers = #tpu.dot_dimension_numbers<[1], [1], [0], [0], [0, 0, 1, 0], [], []>} : vector<4x8xf32>, vector<4x8xf32>, vector<4x4xf32> -> vector<4x4xf32>
    %cst_51 = arith.constant 0.353553385 : f32
    %133 = vector.broadcast %cst_51 : f32 to vector<4x4xf32>
    %134 = arith.mulf %132, %133 : vector<4x4xf32>
    %cst_52 = arith.constant dense<0xFF800000> : vector<4xf32>
    %135 = vector.multi_reduction <maximumf>, %134, %cst_52 [1] : vector<4x4xf32> to vector<4xf32>
    %136 = vector.shape_cast %135 : vector<4xf32> to vector<4x1xf32>
    %137 = vector.broadcast %136 : vector<4x1xf32> to vector<4x4xf32>
    %138 = arith.subf %134, %137 : vector<4x4xf32>
    %139 = math.exp %138 : vector<4x4xf32>
    %cst_53 = arith.constant dense<0.000000e+00> : vector<4xf32>
    %140 = vector.multi_reduction <add>, %139, %cst_53 [1] : vector<4x4xf32> to vector<4xf32>
    %141 = vector.shape_cast %140 : vector<4xf32> to vector<4x1xf32>
    %142 = vector.broadcast %141 : vector<4x1xf32> to vector<4x4xf32>
    %143 = arith.divf %139, %142 : vector<4x4xf32>
    %144 = vector.extract_strided_slice %113 {offsets = [0, 8], sizes = [4, 8], strides = [1, 1]} : vector<4x32xf32> to vector<4x8xf32>
    %cst_54 = arith.constant dense<0.000000e+00> : vector<4x8xf32>
    %145 = tpu.matmul %143, %144, %cst_54 {dimension_numbers = #tpu.dot_dimension_numbers<[1], [0], [0], [1], [0, 0, 1, 1], [], []>} : vector<4x4xf32>, vector<4x8xf32>, vector<4x8xf32> -> vector<4x8xf32>
    %146 = vector.extract_strided_slice %111 {offsets = [0, 16], sizes = [4, 8], strides = [1, 1]} : vector<4x32xf32> to vector<4x8xf32>
    %147 = vector.extract_strided_slice %112 {offsets = [0, 16], sizes = [4, 8], strides = [1, 1]} : vector<4x32xf32> to vector<4x8xf32>
    %cst_55 = arith.constant dense<0.000000e+00> : vector<4x4xf32>
    %148 = tpu.matmul %146, %147, %cst_55 {dimension_numbers = #tpu.dot_dimension_numbers<[1], [1], [0], [0], [0, 0, 1, 0], [], []>} : vector<4x8xf32>, vector<4x8xf32>, vector<4x4xf32> -> vector<4x4xf32>
    %cst_56 = arith.constant 0.353553385 : f32
    %149 = vector.broadcast %cst_56 : f32 to vector<4x4xf32>
    %150 = arith.mulf %148, %149 : vector<4x4xf32>
    %cst_57 = arith.constant dense<0xFF800000> : vector<4xf32>
    %151 = vector.multi_reduction <maximumf>, %150, %cst_57 [1] : vector<4x4xf32> to vector<4xf32>
    %152 = vector.shape_cast %151 : vector<4xf32> to vector<4x1xf32>
    %153 = vector.broadcast %152 : vector<4x1xf32> to vector<4x4xf32>
    %154 = arith.subf %150, %153 : vector<4x4xf32>
    %155 = math.exp %154 : vector<4x4xf32>
    %cst_58 = arith.constant dense<0.000000e+00> : vector<4xf32>
    %156 = vector.multi_reduction <add>, %155, %cst_58 [1] : vector<4x4xf32> to vector<4xf32>
    %157 = vector.shape_cast %156 : vector<4xf32> to vector<4x1xf32>
    %158 = vector.broadcast %157 : vector<4x1xf32> to vector<4x4xf32>
    %159 = arith.divf %155, %158 : vector<4x4xf32>
    %160 = vector.extract_strided_slice %113 {offsets = [0, 16], sizes = [4, 8], strides = [1, 1]} : vector<4x32xf32> to vector<4x8xf32>
    %cst_59 = arith.constant dense<0.000000e+00> : vector<4x8xf32>
    %161 = tpu.matmul %159, %160, %cst_59 {dimension_numbers = #tpu.dot_dimension_numbers<[1], [0], [0], [1], [0, 0, 1, 1], [], []>} : vector<4x4xf32>, vector<4x8xf32>, vector<4x8xf32> -> vector<4x8xf32>
    %162 = vector.extract_strided_slice %111 {offsets = [0, 24], sizes = [4, 8], strides = [1, 1]} : vector<4x32xf32> to vector<4x8xf32>
    %163 = vector.extract_strided_slice %112 {offsets = [0, 24], sizes = [4, 8], strides = [1, 1]} : vector<4x32xf32> to vector<4x8xf32>
    %cst_60 = arith.constant dense<0.000000e+00> : vector<4x4xf32>
    %164 = tpu.matmul %162, %163, %cst_60 {dimension_numbers = #tpu.dot_dimension_numbers<[1], [1], [0], [0], [0, 0, 1, 0], [], []>} : vector<4x8xf32>, vector<4x8xf32>, vector<4x4xf32> -> vector<4x4xf32>
    %cst_61 = arith.constant 0.353553385 : f32
    %165 = vector.broadcast %cst_61 : f32 to vector<4x4xf32>
    %166 = arith.mulf %164, %165 : vector<4x4xf32>
    %cst_62 = arith.constant dense<0xFF800000> : vector<4xf32>
    %167 = vector.multi_reduction <maximumf>, %166, %cst_62 [1] : vector<4x4xf32> to vector<4xf32>
    %168 = vector.shape_cast %167 : vector<4xf32> to vector<4x1xf32>
    %169 = vector.broadcast %168 : vector<4x1xf32> to vector<4x4xf32>
    %170 = arith.subf %166, %169 : vector<4x4xf32>
    %171 = math.exp %170 : vector<4x4xf32>
    %cst_63 = arith.constant dense<0.000000e+00> : vector<4xf32>
    %172 = vector.multi_reduction <add>, %171, %cst_63 [1] : vector<4x4xf32> to vector<4xf32>
    %173 = vector.shape_cast %172 : vector<4xf32> to vector<4x1xf32>
    %174 = vector.broadcast %173 : vector<4x1xf32> to vector<4x4xf32>
    %175 = arith.divf %171, %174 : vector<4x4xf32>
    %176 = vector.extract_strided_slice %113 {offsets = [0, 24], sizes = [4, 8], strides = [1, 1]} : vector<4x32xf32> to vector<4x8xf32>
    %cst_64 = arith.constant dense<0.000000e+00> : vector<4x8xf32>
    %177 = tpu.matmul %175, %176, %cst_64 {dimension_numbers = #tpu.dot_dimension_numbers<[1], [0], [0], [1], [0, 0, 1, 1], [], []>} : vector<4x4xf32>, vector<4x8xf32>, vector<4x8xf32> -> vector<4x8xf32>
    %178 = tpu.concatenate %129, %145, %161, %177 in 1 : vector<4x8xf32>, vector<4x8xf32>, vector<4x8xf32>, vector<4x8xf32> -> vector<4x32xf32>
    %179 = tpu.concatenate %110, %178 in 0 : vector<4x32xf32>, vector<4x32xf32> -> vector<8x32xf32>
    %cst_65 = arith.constant dense<0.000000e+00> : vector<8x32xf32>
    %180 = tpu.matmul %179, %35, %cst_65 {dimension_numbers = #tpu.dot_dimension_numbers<[1], [0], [0], [1], [0, 0, 1, 1], [], []>} : vector<8x32xf32>, vector<32x32xf32>, vector<8x32xf32> -> vector<8x32xf32>
    %181 = vector.broadcast %36 : vector<1x32xf32> to vector<8x32xf32>
    %182 = arith.addf %180, %181 : vector<8x32xf32>
    %183 = arith.addf %8, %182 : vector<8x32xf32>
    %c0_66 = arith.constant 0 : index
    %c0_67 = arith.constant 0 : index
    %184 = vector.load %arg10[%c0_66, %c0_67] : memref<1x32xf32, #tpu.memory_space<vmem>>, vector<1x32xf32>
    %c0_68 = arith.constant 0 : index
    %c0_69 = arith.constant 0 : index
    %185 = vector.load %arg11[%c0_68, %c0_69] : memref<1x32xf32, #tpu.memory_space<vmem>>, vector<1x32xf32>
    %cst_70 = arith.constant dense<0.000000e+00> : vector<8xf32>
    %186 = vector.multi_reduction <add>, %183, %cst_70 [1] : vector<8x32xf32> to vector<8xf32>
    %187 = vector.shape_cast %186 : vector<8xf32> to vector<8x1xf32>
    %cst_71 = arith.constant 3.200000e+01 : f32
    %188 = vector.broadcast %cst_71 : f32 to vector<8x1xf32>
    %189 = arith.divf %187, %188 : vector<8x1xf32>
    %190 = vector.broadcast %189 : vector<8x1xf32> to vector<8x32xf32>
    %191 = arith.subf %183, %190 : vector<8x32xf32>
    %192 = arith.mulf %191, %191 : vector<8x32xf32>
    %cst_72 = arith.constant dense<0.000000e+00> : vector<8xf32>
    %193 = vector.multi_reduction <add>, %192, %cst_72 [1] : vector<8x32xf32> to vector<8xf32>
    %194 = vector.shape_cast %193 : vector<8xf32> to vector<8x1xf32>
    %cst_73 = arith.constant 3.200000e+01 : f32
    %195 = vector.broadcast %cst_73 : f32 to vector<8x1xf32>
    %196 = arith.divf %194, %195 : vector<8x1xf32>
    %197 = vector.broadcast %189 : vector<8x1xf32> to vector<8x32xf32>
    %198 = arith.subf %183, %197 : vector<8x32xf32>
    %cst_74 = arith.constant 9.99999974E-6 : f32
    %199 = vector.broadcast %cst_74 : f32 to vector<8x1xf32>
    %200 = arith.addf %196, %199 : vector<8x1xf32>
    %201 = math.rsqrt %200 : vector<8x1xf32>
    %202 = vector.broadcast %201 : vector<8x1xf32> to vector<8x32xf32>
    %203 = arith.mulf %198, %202 : vector<8x32xf32>
    %204 = vector.broadcast %184 : vector<1x32xf32> to vector<8x32xf32>
    %205 = arith.mulf %203, %204 : vector<8x32xf32>
    %206 = vector.broadcast %185 : vector<1x32xf32> to vector<8x32xf32>
    %207 = arith.addf %205, %206 : vector<8x32xf32>
    %c0_75 = arith.constant 0 : index
    %c0_76 = arith.constant 0 : index
    %208 = vector.load %arg12[%c0_75, %c0_76] : memref<32x64xf32, #tpu.memory_space<vmem>>, vector<32x64xf32>
    %c0_77 = arith.constant 0 : index
    %c0_78 = arith.constant 0 : index
    %209 = vector.load %arg13[%c0_77, %c0_78] : memref<1x64xf32, #tpu.memory_space<vmem>>, vector<1x64xf32>
    %c0_79 = arith.constant 0 : index
    %c0_80 = arith.constant 0 : index
    %210 = vector.load %arg14[%c0_79, %c0_80] : memref<64x32xf32, #tpu.memory_space<vmem>>, vector<64x32xf32>
    %c0_81 = arith.constant 0 : index
    %c0_82 = arith.constant 0 : index
    %211 = vector.load %arg15[%c0_81, %c0_82] : memref<1x32xf32, #tpu.memory_space<vmem>>, vector<1x32xf32>
    %cst_83 = arith.constant dense<0.000000e+00> : vector<8x64xf32>
    %212 = tpu.matmul %207, %208, %cst_83 {dimension_numbers = #tpu.dot_dimension_numbers<[1], [0], [0], [1], [0, 0, 1, 1], [], []>} : vector<8x32xf32>, vector<32x64xf32>, vector<8x64xf32> -> vector<8x64xf32>
    %213 = vector.broadcast %209 : vector<1x64xf32> to vector<8x64xf32>
    %214 = arith.addf %212, %213 : vector<8x64xf32>
    %215 = arith.mulf %214, %214 : vector<8x64xf32>
    %216 = arith.mulf %214, %215 : vector<8x64xf32>
    %cst_84 = arith.constant 4.471500e-02 : f32
    %217 = vector.broadcast %cst_84 : f32 to vector<8x64xf32>
    %218 = arith.mulf %217, %216 : vector<8x64xf32>
    %219 = arith.addf %214, %218 : vector<8x64xf32>
    %cst_85 = arith.constant 0.797884583 : f32
    %220 = vector.broadcast %cst_85 : f32 to vector<8x64xf32>
    %221 = arith.mulf %220, %219 : vector<8x64xf32>
    %222 = math.tanh %221 : vector<8x64xf32>
    %cst_86 = arith.constant 1.000000e+00 : f32
    %223 = vector.broadcast %cst_86 : f32 to vector<8x64xf32>
    %224 = arith.addf %223, %222 : vector<8x64xf32>
    %cst_87 = arith.constant 5.000000e-01 : f32
    %225 = vector.broadcast %cst_87 : f32 to vector<8x64xf32>
    %226 = arith.mulf %225, %224 : vector<8x64xf32>
    %227 = arith.mulf %214, %226 : vector<8x64xf32>
    %cst_88 = arith.constant dense<0.000000e+00> : vector<8x32xf32>
    %228 = tpu.matmul %227, %210, %cst_88 {dimension_numbers = #tpu.dot_dimension_numbers<[1], [0], [0], [1], [0, 0, 1, 1], [], []>} : vector<8x64xf32>, vector<64x32xf32>, vector<8x32xf32> -> vector<8x32xf32>
    %229 = vector.broadcast %211 : vector<1x32xf32> to vector<8x32xf32>
    %230 = arith.addf %228, %229 : vector<8x32xf32>
    %231 = arith.addf %183, %230 : vector<8x32xf32>
    %c0_89 = arith.constant 0 : index
    %c0_90 = arith.constant 0 : index
    %232 = vector.load %arg16[%c0_89, %c0_90] : memref<1x32xf32, #tpu.memory_space<vmem>>, vector<1x32xf32>
    %c0_91 = arith.constant 0 : index
    %c0_92 = arith.constant 0 : index
    %233 = vector.load %arg17[%c0_91, %c0_92] : memref<1x32xf32, #tpu.memory_space<vmem>>, vector<1x32xf32>
    %cst_93 = arith.constant dense<0.000000e+00> : vector<8xf32>
    %234 = vector.multi_reduction <add>, %231, %cst_93 [1] : vector<8x32xf32> to vector<8xf32>
    %235 = vector.shape_cast %234 : vector<8xf32> to vector<8x1xf32>
    %cst_94 = arith.constant 3.200000e+01 : f32
    %236 = vector.broadcast %cst_94 : f32 to vector<8x1xf32>
    %237 = arith.divf %235, %236 : vector<8x1xf32>
    %238 = vector.broadcast %237 : vector<8x1xf32> to vector<8x32xf32>
    %239 = arith.subf %231, %238 : vector<8x32xf32>
    %240 = arith.mulf %239, %239 : vector<8x32xf32>
    %cst_95 = arith.constant dense<0.000000e+00> : vector<8xf32>
    %241 = vector.multi_reduction <add>, %240, %cst_95 [1] : vector<8x32xf32> to vector<8xf32>
    %242 = vector.shape_cast %241 : vector<8xf32> to vector<8x1xf32>
    %cst_96 = arith.constant 3.200000e+01 : f32
    %243 = vector.broadcast %cst_96 : f32 to vector<8x1xf32>
    %244 = arith.divf %242, %243 : vector<8x1xf32>
    %245 = vector.broadcast %237 : vector<8x1xf32> to vector<8x32xf32>
    %246 = arith.subf %231, %245 : vector<8x32xf32>
    %cst_97 = arith.constant 9.99999974E-6 : f32
    %247 = vector.broadcast %cst_97 : f32 to vector<8x1xf32>
    %248 = arith.addf %244, %247 : vector<8x1xf32>
    %249 = math.rsqrt %248 : vector<8x1xf32>
    %250 = vector.broadcast %249 : vector<8x1xf32> to vector<8x32xf32>
    %251 = arith.mulf %246, %250 : vector<8x32xf32>
    %252 = vector.broadcast %232 : vector<1x32xf32> to vector<8x32xf32>
    %253 = arith.mulf %251, %252 : vector<8x32xf32>
    %254 = vector.broadcast %233 : vector<1x32xf32> to vector<8x32xf32>
    %255 = arith.addf %253, %254 : vector<8x32xf32>
    %c0_98 = arith.constant 0 : index
    %c0_99 = arith.constant 0 : index
    %256 = vector.load %arg18[%c0_98, %c0_99] : memref<8x32xf32, #tpu.memory_space<vmem>>, vector<8x32xf32>
    tpu.vector_store %arg18[%c0_98, %c0_99], %255 {strides = array<i32>} : memref<8x32xf32, #tpu.memory_space<vmem>>, vector<8x32xf32>,
    return
  }
}

module attributes {stable_mosaic.version = 11 : i64} {
  func.func @qformer_kernel(%arg0: memref<8x32xf32, #tpu.memory_space<vmem>>, %arg1: memref<8x32xf32, #tpu.memory_space<vmem>>, %arg2: memref<1x32xf32, #tpu.memory_space<vmem>>, %arg3: memref<1x32xf32, #tpu.memory_space<vmem>>, %arg4: memref<32x96xf32, #tpu.memory_space<vmem>>, %arg5: memref<1x96xf32, #tpu.memory_space<vmem>>, %arg6: memref<32x32xf32, #tpu.memory_space<vmem>>, %arg7: memref<1x32xf32, #tpu.memory_space<vmem>>, %arg8: memref<1x32xf32, #tpu.memory_space<vmem>>, %arg9: memref<1x32xf32, #tpu.memory_space<vmem>>, %arg10: memref<32x32xf32, #tpu.memory_space<vmem>>, %arg11: memref<1x32xf32, #tpu.memory_space<vmem>>, %arg12: memref<32x64xf32, #tpu.memory_space<vmem>>, %arg13: memref<1x64xf32, #tpu.memory_space<vmem>>, %arg14: memref<32x32xf32, #tpu.memory_space<vmem>>, %arg15: memref<1x32xf32, #tpu.memory_space<vmem>>, %arg16: memref<1x32xf32, #tpu.memory_space<vmem>>, %arg17: memref<1x32xf32, #tpu.memory_space<vmem>>, %arg18: memref<32x64xf32, #tpu.memory_space<vmem>>, %arg19: memref<1x64xf32, #tpu.memory_space<vmem>>, %arg20: memref<64x32xf32, #tpu.memory_space<vmem>>, %arg21: memref<1x32xf32, #tpu.memory_space<vmem>>, %arg22: memref<1x32xf32, #tpu.memory_space<vmem>>, %arg23: memref<1x32xf32, #tpu.memory_space<vmem>>, %arg24: memref<32x32xf32, #tpu.memory_space<vmem>>, %arg25: memref<1x32xf32, #tpu.memory_space<vmem>>, %arg26: memref<16x32xf32, #tpu.memory_space<vmem>>) attributes {dimension_semantics = [], scalar_prefetch = 0 : i64, scratch_operands = 0 : i64, tpu.core_type = #tpu.core_type<tc>} {
    %c0 = arith.constant 0 : index
    %c0_0 = arith.constant 0 : index
    %0 = vector.load %arg0[%c0, %c0_0] : memref<8x32xf32, #tpu.memory_space<vmem>>, vector<8x32xf32>
    %c0_1 = arith.constant 0 : index
    %c0_2 = arith.constant 0 : index
    %1 = vector.load %arg1[%c0_1, %c0_2] : memref<8x32xf32, #tpu.memory_space<vmem>>, vector<8x32xf32>
    %2 = tpu.concatenate %1, %1 in 0 : vector<8x32xf32>, vector<8x32xf32> -> vector<16x32xf32>
    %c0_3 = arith.constant 0 : index
    %c0_4 = arith.constant 0 : index
    %3 = vector.load %arg2[%c0_3, %c0_4] : memref<1x32xf32, #tpu.memory_space<vmem>>, vector<1x32xf32>
    %c0_5 = arith.constant 0 : index
    %c0_6 = arith.constant 0 : index
    %4 = vector.load %arg3[%c0_5, %c0_6] : memref<1x32xf32, #tpu.memory_space<vmem>>, vector<1x32xf32>
    %cst = arith.constant dense<0.000000e+00> : vector<16xf32>
    %5 = vector.multi_reduction <add>, %2, %cst [1] : vector<16x32xf32> to vector<16xf32>
    %6 = vector.shape_cast %5 : vector<16xf32> to vector<16x1xf32>
    %cst_7 = arith.constant 3.200000e+01 : f32
    %7 = vector.broadcast %cst_7 : f32 to vector<16x1xf32>
    %8 = arith.divf %6, %7 : vector<16x1xf32>
    %9 = vector.broadcast %8 : vector<16x1xf32> to vector<16x32xf32>
    %10 = arith.subf %2, %9 : vector<16x32xf32>
    %11 = arith.mulf %10, %10 : vector<16x32xf32>
    %cst_8 = arith.constant dense<0.000000e+00> : vector<16xf32>
    %12 = vector.multi_reduction <add>, %11, %cst_8 [1] : vector<16x32xf32> to vector<16xf32>
    %13 = vector.shape_cast %12 : vector<16xf32> to vector<16x1xf32>
    %cst_9 = arith.constant 3.200000e+01 : f32
    %14 = vector.broadcast %cst_9 : f32 to vector<16x1xf32>
    %15 = arith.divf %13, %14 : vector<16x1xf32>
    %16 = vector.broadcast %8 : vector<16x1xf32> to vector<16x32xf32>
    %17 = arith.subf %2, %16 : vector<16x32xf32>
    %cst_10 = arith.constant 9.99999996E-13 : f32
    %18 = vector.broadcast %cst_10 : f32 to vector<16x1xf32>
    %19 = arith.addf %15, %18 : vector<16x1xf32>
    %20 = math.rsqrt %19 : vector<16x1xf32>
    %21 = vector.broadcast %20 : vector<16x1xf32> to vector<16x32xf32>
    %22 = arith.mulf %17, %21 : vector<16x32xf32>
    %23 = vector.broadcast %3 : vector<1x32xf32> to vector<16x32xf32>
    %24 = arith.mulf %22, %23 : vector<16x32xf32>
    %25 = vector.broadcast %4 : vector<1x32xf32> to vector<16x32xf32>
    %26 = arith.addf %24, %25 : vector<16x32xf32>
    %c0_11 = arith.constant 0 : index
    %c0_12 = arith.constant 0 : index
    %27 = vector.load %arg4[%c0_11, %c0_12] : memref<32x96xf32, #tpu.memory_space<vmem>>, vector<32x96xf32>
    %c0_13 = arith.constant 0 : index
    %c0_14 = arith.constant 0 : index
    %28 = vector.load %arg5[%c0_13, %c0_14] : memref<1x96xf32, #tpu.memory_space<vmem>>, vector<1x96xf32>
    %c0_15 = arith.constant 0 : index
    %c0_16 = arith.constant 0 : index
    %29 = vector.load %arg6[%c0_15, %c0_16] : memref<32x32xf32, #tpu.memory_space<vmem>>, vector<32x32xf32>
    %c0_17 = arith.constant 0 : index
    %c0_18 = arith.constant 0 : index
    %30 = vector.load %arg7[%c0_17, %c0_18] : memref<1x32xf32, #tpu.memory_space<vmem>>, vector<1x32xf32>
    %cst_19 = arith.constant dense<0.000000e+00> : vector<16x96xf32>
    %31 = tpu.matmul %26, %27, %cst_19 {dimension_numbers = #tpu.dot_dimension_numbers<[1], [0], [0], [1], [0, 0, 1, 1], [], []>} : vector<16x32xf32>, vector<32x96xf32>, vector<16x96xf32> -> vector<16x96xf32>
    %32 = vector.broadcast %28 : vector<1x96xf32> to vector<16x96xf32>
    %33 = arith.addf %31, %32 : vector<16x96xf32>
    %34 = vector.extract_strided_slice %33 {offsets = [0, 0], sizes = [16, 32], strides = [1, 1]} : vector<16x96xf32> to vector<16x32xf32>
    %35 = vector.extract_strided_slice %33 {offsets = [0, 32], sizes = [16, 32], strides = [1, 1]} : vector<16x96xf32> to vector<16x32xf32>
    %36 = vector.extract_strided_slice %33 {offsets = [0, 64], sizes = [16, 32], strides = [1, 1]} : vector<16x96xf32> to vector<16x32xf32>
    %37 = vector.extract_strided_slice %34 {offsets = [0, 0], sizes = [8, 32], strides = [1, 1]} : vector<16x32xf32> to vector<8x32xf32>
    %38 = vector.extract_strided_slice %35 {offsets = [0, 0], sizes = [8, 32], strides = [1, 1]} : vector<16x32xf32> to vector<8x32xf32>
    %39 = vector.extract_strided_slice %36 {offsets = [0, 0], sizes = [8, 32], strides = [1, 1]} : vector<16x32xf32> to vector<8x32xf32>
    %40 = vector.extract_strided_slice %37 {offsets = [0, 0], sizes = [8, 8], strides = [1, 1]} : vector<8x32xf32> to vector<8x8xf32>
    %41 = vector.extract_strided_slice %38 {offsets = [0, 0], sizes = [8, 8], strides = [1, 1]} : vector<8x32xf32> to vector<8x8xf32>
    %cst_20 = arith.constant dense<0.000000e+00> : vector<8x8xf32>
    %42 = tpu.matmul %40, %41, %cst_20 {dimension_numbers = #tpu.dot_dimension_numbers<[1], [1], [0], [0], [0, 0, 1, 0], [], []>} : vector<8x8xf32>, vector<8x8xf32>, vector<8x8xf32> -> vector<8x8xf32>
    %cst_21 = arith.constant 0.353553385 : f32
    %43 = vector.broadcast %cst_21 : f32 to vector<8x8xf32>
    %44 = arith.mulf %42, %43 : vector<8x8xf32>
    %cst_22 = arith.constant dense<0xFF800000> : vector<8xf32>
    %45 = vector.multi_reduction <maximumf>, %44, %cst_22 [1] : vector<8x8xf32> to vector<8xf32>
    %46 = vector.shape_cast %45 : vector<8xf32> to vector<8x1xf32>
    %47 = vector.broadcast %46 : vector<8x1xf32> to vector<8x8xf32>
    %48 = arith.subf %44, %47 : vector<8x8xf32>
    %49 = math.exp %48 : vector<8x8xf32>
    %cst_23 = arith.constant dense<0.000000e+00> : vector<8xf32>
    %50 = vector.multi_reduction <add>, %49, %cst_23 [1] : vector<8x8xf32> to vector<8xf32>
    %51 = vector.shape_cast %50 : vector<8xf32> to vector<8x1xf32>
    %52 = vector.broadcast %51 : vector<8x1xf32> to vector<8x8xf32>
    %53 = arith.divf %49, %52 : vector<8x8xf32>
    %54 = vector.extract_strided_slice %39 {offsets = [0, 0], sizes = [8, 8], strides = [1, 1]} : vector<8x32xf32> to vector<8x8xf32>
    %cst_24 = arith.constant dense<0.000000e+00> : vector<8x8xf32>
    %55 = tpu.matmul %53, %54, %cst_24 {dimension_numbers = #tpu.dot_dimension_numbers<[1], [0], [0], [1], [0, 0, 1, 1], [], []>} : vector<8x8xf32>, vector<8x8xf32>, vector<8x8xf32> -> vector<8x8xf32>
    %56 = vector.extract_strided_slice %37 {offsets = [0, 8], sizes = [8, 8], strides = [1, 1]} : vector<8x32xf32> to vector<8x8xf32>
    %57 = vector.extract_strided_slice %38 {offsets = [0, 8], sizes = [8, 8], strides = [1, 1]} : vector<8x32xf32> to vector<8x8xf32>
    %cst_25 = arith.constant dense<0.000000e+00> : vector<8x8xf32>
    %58 = tpu.matmul %56, %57, %cst_25 {dimension_numbers = #tpu.dot_dimension_numbers<[1], [1], [0], [0], [0, 0, 1, 0], [], []>} : vector<8x8xf32>, vector<8x8xf32>, vector<8x8xf32> -> vector<8x8xf32>
    %cst_26 = arith.constant 0.353553385 : f32
    %59 = vector.broadcast %cst_26 : f32 to vector<8x8xf32>
    %60 = arith.mulf %58, %59 : vector<8x8xf32>
    %cst_27 = arith.constant dense<0xFF800000> : vector<8xf32>
    %61 = vector.multi_reduction <maximumf>, %60, %cst_27 [1] : vector<8x8xf32> to vector<8xf32>
    %62 = vector.shape_cast %61 : vector<8xf32> to vector<8x1xf32>
    %63 = vector.broadcast %62 : vector<8x1xf32> to vector<8x8xf32>
    %64 = arith.subf %60, %63 : vector<8x8xf32>
    %65 = math.exp %64 : vector<8x8xf32>
    %cst_28 = arith.constant dense<0.000000e+00> : vector<8xf32>
    %66 = vector.multi_reduction <add>, %65, %cst_28 [1] : vector<8x8xf32> to vector<8xf32>
    %67 = vector.shape_cast %66 : vector<8xf32> to vector<8x1xf32>
    %68 = vector.broadcast %67 : vector<8x1xf32> to vector<8x8xf32>
    %69 = arith.divf %65, %68 : vector<8x8xf32>
    %70 = vector.extract_strided_slice %39 {offsets = [0, 8], sizes = [8, 8], strides = [1, 1]} : vector<8x32xf32> to vector<8x8xf32>
    %cst_29 = arith.constant dense<0.000000e+00> : vector<8x8xf32>
    %71 = tpu.matmul %69, %70, %cst_29 {dimension_numbers = #tpu.dot_dimension_numbers<[1], [0], [0], [1], [0, 0, 1, 1], [], []>} : vector<8x8xf32>, vector<8x8xf32>, vector<8x8xf32> -> vector<8x8xf32>
    %72 = vector.extract_strided_slice %37 {offsets = [0, 16], sizes = [8, 8], strides = [1, 1]} : vector<8x32xf32> to vector<8x8xf32>
    %73 = vector.extract_strided_slice %38 {offsets = [0, 16], sizes = [8, 8], strides = [1, 1]} : vector<8x32xf32> to vector<8x8xf32>
    %cst_30 = arith.constant dense<0.000000e+00> : vector<8x8xf32>
    %74 = tpu.matmul %72, %73, %cst_30 {dimension_numbers = #tpu.dot_dimension_numbers<[1], [1], [0], [0], [0, 0, 1, 0], [], []>} : vector<8x8xf32>, vector<8x8xf32>, vector<8x8xf32> -> vector<8x8xf32>
    %cst_31 = arith.constant 0.353553385 : f32
    %75 = vector.broadcast %cst_31 : f32 to vector<8x8xf32>
    %76 = arith.mulf %74, %75 : vector<8x8xf32>
    %cst_32 = arith.constant dense<0xFF800000> : vector<8xf32>
    %77 = vector.multi_reduction <maximumf>, %76, %cst_32 [1] : vector<8x8xf32> to vector<8xf32>
    %78 = vector.shape_cast %77 : vector<8xf32> to vector<8x1xf32>
    %79 = vector.broadcast %78 : vector<8x1xf32> to vector<8x8xf32>
    %80 = arith.subf %76, %79 : vector<8x8xf32>
    %81 = math.exp %80 : vector<8x8xf32>
    %cst_33 = arith.constant dense<0.000000e+00> : vector<8xf32>
    %82 = vector.multi_reduction <add>, %81, %cst_33 [1] : vector<8x8xf32> to vector<8xf32>
    %83 = vector.shape_cast %82 : vector<8xf32> to vector<8x1xf32>
    %84 = vector.broadcast %83 : vector<8x1xf32> to vector<8x8xf32>
    %85 = arith.divf %81, %84 : vector<8x8xf32>
    %86 = vector.extract_strided_slice %39 {offsets = [0, 16], sizes = [8, 8], strides = [1, 1]} : vector<8x32xf32> to vector<8x8xf32>
    %cst_34 = arith.constant dense<0.000000e+00> : vector<8x8xf32>
    %87 = tpu.matmul %85, %86, %cst_34 {dimension_numbers = #tpu.dot_dimension_numbers<[1], [0], [0], [1], [0, 0, 1, 1], [], []>} : vector<8x8xf32>, vector<8x8xf32>, vector<8x8xf32> -> vector<8x8xf32>
    %88 = vector.extract_strided_slice %37 {offsets = [0, 24], sizes = [8, 8], strides = [1, 1]} : vector<8x32xf32> to vector<8x8xf32>
    %89 = vector.extract_strided_slice %38 {offsets = [0, 24], sizes = [8, 8], strides = [1, 1]} : vector<8x32xf32> to vector<8x8xf32>
    %cst_35 = arith.constant dense<0.000000e+00> : vector<8x8xf32>
    %90 = tpu.matmul %88, %89, %cst_35 {dimension_numbers = #tpu.dot_dimension_numbers<[1], [1], [0], [0], [0, 0, 1, 0], [], []>} : vector<8x8xf32>, vector<8x8xf32>, vector<8x8xf32> -> vector<8x8xf32>
    %cst_36 = arith.constant 0.353553385 : f32
    %91 = vector.broadcast %cst_36 : f32 to vector<8x8xf32>
    %92 = arith.mulf %90, %91 : vector<8x8xf32>
    %cst_37 = arith.constant dense<0xFF800000> : vector<8xf32>
    %93 = vector.multi_reduction <maximumf>, %92, %cst_37 [1] : vector<8x8xf32> to vector<8xf32>
    %94 = vector.shape_cast %93 : vector<8xf32> to vector<8x1xf32>
    %95 = vector.broadcast %94 : vector<8x1xf32> to vector<8x8xf32>
    %96 = arith.subf %92, %95 : vector<8x8xf32>
    %97 = math.exp %96 : vector<8x8xf32>
    %cst_38 = arith.constant dense<0.000000e+00> : vector<8xf32>
    %98 = vector.multi_reduction <add>, %97, %cst_38 [1] : vector<8x8xf32> to vector<8xf32>
    %99 = vector.shape_cast %98 : vector<8xf32> to vector<8x1xf32>
    %100 = vector.broadcast %99 : vector<8x1xf32> to vector<8x8xf32>
    %101 = arith.divf %97, %100 : vector<8x8xf32>
    %102 = vector.extract_strided_slice %39 {offsets = [0, 24], sizes = [8, 8], strides = [1, 1]} : vector<8x32xf32> to vector<8x8xf32>
    %cst_39 = arith.constant dense<0.000000e+00> : vector<8x8xf32>
    %103 = tpu.matmul %101, %102, %cst_39 {dimension_numbers = #tpu.dot_dimension_numbers<[1], [0], [0], [1], [0, 0, 1, 1], [], []>} : vector<8x8xf32>, vector<8x8xf32>, vector<8x8xf32> -> vector<8x8xf32>
    %104 = tpu.concatenate %55, %71, %87, %103 in 1 : vector<8x8xf32>, vector<8x8xf32>, vector<8x8xf32>, vector<8x8xf32> -> vector<8x32xf32>
    %105 = vector.extract_strided_slice %34 {offsets = [8, 0], sizes = [8, 32], strides = [1, 1]} : vector<16x32xf32> to vector<8x32xf32>
    %106 = vector.extract_strided_slice %35 {offsets = [8, 0], sizes = [8, 32], strides = [1, 1]} : vector<16x32xf32> to vector<8x32xf32>
    %107 = vector.extract_strided_slice %36 {offsets = [8, 0], sizes = [8, 32], strides = [1, 1]} : vector<16x32xf32> to vector<8x32xf32>
    %108 = vector.extract_strided_slice %105 {offsets = [0, 0], sizes = [8, 8], strides = [1, 1]} : vector<8x32xf32> to vector<8x8xf32>
    %109 = vector.extract_strided_slice %106 {offsets = [0, 0], sizes = [8, 8], strides = [1, 1]} : vector<8x32xf32> to vector<8x8xf32>
    %cst_40 = arith.constant dense<0.000000e+00> : vector<8x8xf32>
    %110 = tpu.matmul %108, %109, %cst_40 {dimension_numbers = #tpu.dot_dimension_numbers<[1], [1], [0], [0], [0, 0, 1, 0], [], []>} : vector<8x8xf32>, vector<8x8xf32>, vector<8x8xf32> -> vector<8x8xf32>
    %cst_41 = arith.constant 0.353553385 : f32
    %111 = vector.broadcast %cst_41 : f32 to vector<8x8xf32>
    %112 = arith.mulf %110, %111 : vector<8x8xf32>
    %cst_42 = arith.constant dense<0xFF800000> : vector<8xf32>
    %113 = vector.multi_reduction <maximumf>, %112, %cst_42 [1] : vector<8x8xf32> to vector<8xf32>
    %114 = vector.shape_cast %113 : vector<8xf32> to vector<8x1xf32>
    %115 = vector.broadcast %114 : vector<8x1xf32> to vector<8x8xf32>
    %116 = arith.subf %112, %115 : vector<8x8xf32>
    %117 = math.exp %116 : vector<8x8xf32>
    %cst_43 = arith.constant dense<0.000000e+00> : vector<8xf32>
    %118 = vector.multi_reduction <add>, %117, %cst_43 [1] : vector<8x8xf32> to vector<8xf32>
    %119 = vector.shape_cast %118 : vector<8xf32> to vector<8x1xf32>
    %120 = vector.broadcast %119 : vector<8x1xf32> to vector<8x8xf32>
    %121 = arith.divf %117, %120 : vector<8x8xf32>
    %122 = vector.extract_strided_slice %107 {offsets = [0, 0], sizes = [8, 8], strides = [1, 1]} : vector<8x32xf32> to vector<8x8xf32>
    %cst_44 = arith.constant dense<0.000000e+00> : vector<8x8xf32>
    %123 = tpu.matmul %121, %122, %cst_44 {dimension_numbers = #tpu.dot_dimension_numbers<[1], [0], [0], [1], [0, 0, 1, 1], [], []>} : vector<8x8xf32>, vector<8x8xf32>, vector<8x8xf32> -> vector<8x8xf32>
    %124 = vector.extract_strided_slice %105 {offsets = [0, 8], sizes = [8, 8], strides = [1, 1]} : vector<8x32xf32> to vector<8x8xf32>
    %125 = vector.extract_strided_slice %106 {offsets = [0, 8], sizes = [8, 8], strides = [1, 1]} : vector<8x32xf32> to vector<8x8xf32>
    %cst_45 = arith.constant dense<0.000000e+00> : vector<8x8xf32>
    %126 = tpu.matmul %124, %125, %cst_45 {dimension_numbers = #tpu.dot_dimension_numbers<[1], [1], [0], [0], [0, 0, 1, 0], [], []>} : vector<8x8xf32>, vector<8x8xf32>, vector<8x8xf32> -> vector<8x8xf32>
    %cst_46 = arith.constant 0.353553385 : f32
    %127 = vector.broadcast %cst_46 : f32 to vector<8x8xf32>
    %128 = arith.mulf %126, %127 : vector<8x8xf32>
    %cst_47 = arith.constant dense<0xFF800000> : vector<8xf32>
    %129 = vector.multi_reduction <maximumf>, %128, %cst_47 [1] : vector<8x8xf32> to vector<8xf32>
    %130 = vector.shape_cast %129 : vector<8xf32> to vector<8x1xf32>
    %131 = vector.broadcast %130 : vector<8x1xf32> to vector<8x8xf32>
    %132 = arith.subf %128, %131 : vector<8x8xf32>
    %133 = math.exp %132 : vector<8x8xf32>
    %cst_48 = arith.constant dense<0.000000e+00> : vector<8xf32>
    %134 = vector.multi_reduction <add>, %133, %cst_48 [1] : vector<8x8xf32> to vector<8xf32>
    %135 = vector.shape_cast %134 : vector<8xf32> to vector<8x1xf32>
    %136 = vector.broadcast %135 : vector<8x1xf32> to vector<8x8xf32>
    %137 = arith.divf %133, %136 : vector<8x8xf32>
    %138 = vector.extract_strided_slice %107 {offsets = [0, 8], sizes = [8, 8], strides = [1, 1]} : vector<8x32xf32> to vector<8x8xf32>
    %cst_49 = arith.constant dense<0.000000e+00> : vector<8x8xf32>
    %139 = tpu.matmul %137, %138, %cst_49 {dimension_numbers = #tpu.dot_dimension_numbers<[1], [0], [0], [1], [0, 0, 1, 1], [], []>} : vector<8x8xf32>, vector<8x8xf32>, vector<8x8xf32> -> vector<8x8xf32>
    %140 = vector.extract_strided_slice %105 {offsets = [0, 16], sizes = [8, 8], strides = [1, 1]} : vector<8x32xf32> to vector<8x8xf32>
    %141 = vector.extract_strided_slice %106 {offsets = [0, 16], sizes = [8, 8], strides = [1, 1]} : vector<8x32xf32> to vector<8x8xf32>
    %cst_50 = arith.constant dense<0.000000e+00> : vector<8x8xf32>
    %142 = tpu.matmul %140, %141, %cst_50 {dimension_numbers = #tpu.dot_dimension_numbers<[1], [1], [0], [0], [0, 0, 1, 0], [], []>} : vector<8x8xf32>, vector<8x8xf32>, vector<8x8xf32> -> vector<8x8xf32>
    %cst_51 = arith.constant 0.353553385 : f32
    %143 = vector.broadcast %cst_51 : f32 to vector<8x8xf32>
    %144 = arith.mulf %142, %143 : vector<8x8xf32>
    %cst_52 = arith.constant dense<0xFF800000> : vector<8xf32>
    %145 = vector.multi_reduction <maximumf>, %144, %cst_52 [1] : vector<8x8xf32> to vector<8xf32>
    %146 = vector.shape_cast %145 : vector<8xf32> to vector<8x1xf32>
    %147 = vector.broadcast %146 : vector<8x1xf32> to vector<8x8xf32>
    %148 = arith.subf %144, %147 : vector<8x8xf32>
    %149 = math.exp %148 : vector<8x8xf32>
    %cst_53 = arith.constant dense<0.000000e+00> : vector<8xf32>
    %150 = vector.multi_reduction <add>, %149, %cst_53 [1] : vector<8x8xf32> to vector<8xf32>
    %151 = vector.shape_cast %150 : vector<8xf32> to vector<8x1xf32>
    %152 = vector.broadcast %151 : vector<8x1xf32> to vector<8x8xf32>
    %153 = arith.divf %149, %152 : vector<8x8xf32>
    %154 = vector.extract_strided_slice %107 {offsets = [0, 16], sizes = [8, 8], strides = [1, 1]} : vector<8x32xf32> to vector<8x8xf32>
    %cst_54 = arith.constant dense<0.000000e+00> : vector<8x8xf32>
    %155 = tpu.matmul %153, %154, %cst_54 {dimension_numbers = #tpu.dot_dimension_numbers<[1], [0], [0], [1], [0, 0, 1, 1], [], []>} : vector<8x8xf32>, vector<8x8xf32>, vector<8x8xf32> -> vector<8x8xf32>
    %156 = vector.extract_strided_slice %105 {offsets = [0, 24], sizes = [8, 8], strides = [1, 1]} : vector<8x32xf32> to vector<8x8xf32>
    %157 = vector.extract_strided_slice %106 {offsets = [0, 24], sizes = [8, 8], strides = [1, 1]} : vector<8x32xf32> to vector<8x8xf32>
    %cst_55 = arith.constant dense<0.000000e+00> : vector<8x8xf32>
    %158 = tpu.matmul %156, %157, %cst_55 {dimension_numbers = #tpu.dot_dimension_numbers<[1], [1], [0], [0], [0, 0, 1, 0], [], []>} : vector<8x8xf32>, vector<8x8xf32>, vector<8x8xf32> -> vector<8x8xf32>
    %cst_56 = arith.constant 0.353553385 : f32
    %159 = vector.broadcast %cst_56 : f32 to vector<8x8xf32>
    %160 = arith.mulf %158, %159 : vector<8x8xf32>
    %cst_57 = arith.constant dense<0xFF800000> : vector<8xf32>
    %161 = vector.multi_reduction <maximumf>, %160, %cst_57 [1] : vector<8x8xf32> to vector<8xf32>
    %162 = vector.shape_cast %161 : vector<8xf32> to vector<8x1xf32>
    %163 = vector.broadcast %162 : vector<8x1xf32> to vector<8x8xf32>
    %164 = arith.subf %160, %163 : vector<8x8xf32>
    %165 = math.exp %164 : vector<8x8xf32>
    %cst_58 = arith.constant dense<0.000000e+00> : vector<8xf32>
    %166 = vector.multi_reduction <add>, %165, %cst_58 [1] : vector<8x8xf32> to vector<8xf32>
    %167 = vector.shape_cast %166 : vector<8xf32> to vector<8x1xf32>
    %168 = vector.broadcast %167 : vector<8x1xf32> to vector<8x8xf32>
    %169 = arith.divf %165, %168 : vector<8x8xf32>
    %170 = vector.extract_strided_slice %107 {offsets = [0, 24], sizes = [8, 8], strides = [1, 1]} : vector<8x32xf32> to vector<8x8xf32>
    %cst_59 = arith.constant dense<0.000000e+00> : vector<8x8xf32>
    %171 = tpu.matmul %169, %170, %cst_59 {dimension_numbers = #tpu.dot_dimension_numbers<[1], [0], [0], [1], [0, 0, 1, 1], [], []>} : vector<8x8xf32>, vector<8x8xf32>, vector<8x8xf32> -> vector<8x8xf32>
    %172 = tpu.concatenate %123, %139, %155, %171 in 1 : vector<8x8xf32>, vector<8x8xf32>, vector<8x8xf32>, vector<8x8xf32> -> vector<8x32xf32>
    %173 = tpu.concatenate %104, %172 in 0 : vector<8x32xf32>, vector<8x32xf32> -> vector<16x32xf32>
    %cst_60 = arith.constant dense<0.000000e+00> : vector<16x32xf32>
    %174 = tpu.matmul %173, %29, %cst_60 {dimension_numbers = #tpu.dot_dimension_numbers<[1], [0], [0], [1], [0, 0, 1, 1], [], []>} : vector<16x32xf32>, vector<32x32xf32>, vector<16x32xf32> -> vector<16x32xf32>
    %175 = vector.broadcast %30 : vector<1x32xf32> to vector<16x32xf32>
    %176 = arith.addf %174, %175 : vector<16x32xf32>
    %177 = arith.addf %2, %176 : vector<16x32xf32>
    %c0_61 = arith.constant 0 : index
    %c0_62 = arith.constant 0 : index
    %178 = vector.load %arg8[%c0_61, %c0_62] : memref<1x32xf32, #tpu.memory_space<vmem>>, vector<1x32xf32>
    %c0_63 = arith.constant 0 : index
    %c0_64 = arith.constant 0 : index
    %179 = vector.load %arg9[%c0_63, %c0_64] : memref<1x32xf32, #tpu.memory_space<vmem>>, vector<1x32xf32>
    %cst_65 = arith.constant dense<0.000000e+00> : vector<16xf32>
    %180 = vector.multi_reduction <add>, %177, %cst_65 [1] : vector<16x32xf32> to vector<16xf32>
    %181 = vector.shape_cast %180 : vector<16xf32> to vector<16x1xf32>
    %cst_66 = arith.constant 3.200000e+01 : f32
    %182 = vector.broadcast %cst_66 : f32 to vector<16x1xf32>
    %183 = arith.divf %181, %182 : vector<16x1xf32>
    %184 = vector.broadcast %183 : vector<16x1xf32> to vector<16x32xf32>
    %185 = arith.subf %177, %184 : vector<16x32xf32>
    %186 = arith.mulf %185, %185 : vector<16x32xf32>
    %cst_67 = arith.constant dense<0.000000e+00> : vector<16xf32>
    %187 = vector.multi_reduction <add>, %186, %cst_67 [1] : vector<16x32xf32> to vector<16xf32>
    %188 = vector.shape_cast %187 : vector<16xf32> to vector<16x1xf32>
    %cst_68 = arith.constant 3.200000e+01 : f32
    %189 = vector.broadcast %cst_68 : f32 to vector<16x1xf32>
    %190 = arith.divf %188, %189 : vector<16x1xf32>
    %191 = vector.broadcast %183 : vector<16x1xf32> to vector<16x32xf32>
    %192 = arith.subf %177, %191 : vector<16x32xf32>
    %cst_69 = arith.constant 9.99999996E-13 : f32
    %193 = vector.broadcast %cst_69 : f32 to vector<16x1xf32>
    %194 = arith.addf %190, %193 : vector<16x1xf32>
    %195 = math.rsqrt %194 : vector<16x1xf32>
    %196 = vector.broadcast %195 : vector<16x1xf32> to vector<16x32xf32>
    %197 = arith.mulf %192, %196 : vector<16x32xf32>
    %198 = vector.broadcast %178 : vector<1x32xf32> to vector<16x32xf32>
    %199 = arith.mulf %197, %198 : vector<16x32xf32>
    %200 = vector.broadcast %179 : vector<1x32xf32> to vector<16x32xf32>
    %201 = arith.addf %199, %200 : vector<16x32xf32>
    %c0_70 = arith.constant 0 : index
    %c0_71 = arith.constant 0 : index
    %202 = vector.load %arg10[%c0_70, %c0_71] : memref<32x32xf32, #tpu.memory_space<vmem>>, vector<32x32xf32>
    %c0_72 = arith.constant 0 : index
    %c0_73 = arith.constant 0 : index
    %203 = vector.load %arg11[%c0_72, %c0_73] : memref<1x32xf32, #tpu.memory_space<vmem>>, vector<1x32xf32>
    %c0_74 = arith.constant 0 : index
    %c0_75 = arith.constant 0 : index
    %204 = vector.load %arg12[%c0_74, %c0_75] : memref<32x64xf32, #tpu.memory_space<vmem>>, vector<32x64xf32>
    %c0_76 = arith.constant 0 : index
    %c0_77 = arith.constant 0 : index
    %205 = vector.load %arg13[%c0_76, %c0_77] : memref<1x64xf32, #tpu.memory_space<vmem>>, vector<1x64xf32>
    %c0_78 = arith.constant 0 : index
    %c0_79 = arith.constant 0 : index
    %206 = vector.load %arg14[%c0_78, %c0_79] : memref<32x32xf32, #tpu.memory_space<vmem>>, vector<32x32xf32>
    %c0_80 = arith.constant 0 : index
    %c0_81 = arith.constant 0 : index
    %207 = vector.load %arg15[%c0_80, %c0_81] : memref<1x32xf32, #tpu.memory_space<vmem>>, vector<1x32xf32>
    %cst_82 = arith.constant dense<0.000000e+00> : vector<16x32xf32>
    %208 = tpu.matmul %201, %202, %cst_82 {dimension_numbers = #tpu.dot_dimension_numbers<[1], [0], [0], [1], [0, 0, 1, 1], [], []>} : vector<16x32xf32>, vector<32x32xf32>, vector<16x32xf32> -> vector<16x32xf32>
    %209 = vector.broadcast %203 : vector<1x32xf32> to vector<16x32xf32>
    %210 = arith.addf %208, %209 : vector<16x32xf32>
    %cst_83 = arith.constant dense<0.000000e+00> : vector<8x64xf32>
    %211 = tpu.matmul %0, %204, %cst_83 {dimension_numbers = #tpu.dot_dimension_numbers<[1], [0], [0], [1], [0, 0, 1, 1], [], []>} : vector<8x32xf32>, vector<32x64xf32>, vector<8x64xf32> -> vector<8x64xf32>
    %212 = vector.broadcast %205 : vector<1x64xf32> to vector<8x64xf32>
    %213 = arith.addf %211, %212 : vector<8x64xf32>
    %214 = vector.extract_strided_slice %213 {offsets = [0, 0], sizes = [8, 32], strides = [1, 1]} : vector<8x64xf32> to vector<8x32xf32>
    %215 = vector.extract_strided_slice %213 {offsets = [0, 32], sizes = [8, 32], strides = [1, 1]} : vector<8x64xf32> to vector<8x32xf32>
    %216 = vector.extract_strided_slice %210 {offsets = [0, 0], sizes = [8, 32], strides = [1, 1]} : vector<16x32xf32> to vector<8x32xf32>
    %217 = vector.extract_strided_slice %214 {offsets = [0, 0], sizes = [4, 32], strides = [1, 1]} : vector<8x32xf32> to vector<4x32xf32>
    %218 = vector.extract_strided_slice %215 {offsets = [0, 0], sizes = [4, 32], strides = [1, 1]} : vector<8x32xf32> to vector<4x32xf32>
    %219 = vector.extract_strided_slice %216 {offsets = [0, 0], sizes = [8, 8], strides = [1, 1]} : vector<8x32xf32> to vector<8x8xf32>
    %220 = vector.extract_strided_slice %217 {offsets = [0, 0], sizes = [4, 8], strides = [1, 1]} : vector<4x32xf32> to vector<4x8xf32>
    %cst_84 = arith.constant dense<0.000000e+00> : vector<8x4xf32>
    %221 = tpu.matmul %219, %220, %cst_84 {dimension_numbers = #tpu.dot_dimension_numbers<[1], [1], [0], [0], [0, 0, 1, 0], [], []>} : vector<8x8xf32>, vector<4x8xf32>, vector<8x4xf32> -> vector<8x4xf32>
    %cst_85 = arith.constant 0.353553385 : f32
    %222 = vector.broadcast %cst_85 : f32 to vector<8x4xf32>
    %223 = arith.mulf %221, %222 : vector<8x4xf32>
    %cst_86 = arith.constant dense<0xFF800000> : vector<8xf32>
    %224 = vector.multi_reduction <maximumf>, %223, %cst_86 [1] : vector<8x4xf32> to vector<8xf32>
    %225 = vector.shape_cast %224 : vector<8xf32> to vector<8x1xf32>
    %226 = vector.broadcast %225 : vector<8x1xf32> to vector<8x4xf32>
    %227 = arith.subf %223, %226 : vector<8x4xf32>
    %228 = math.exp %227 : vector<8x4xf32>
    %cst_87 = arith.constant dense<0.000000e+00> : vector<8xf32>
    %229 = vector.multi_reduction <add>, %228, %cst_87 [1] : vector<8x4xf32> to vector<8xf32>
    %230 = vector.shape_cast %229 : vector<8xf32> to vector<8x1xf32>
    %231 = vector.broadcast %230 : vector<8x1xf32> to vector<8x4xf32>
    %232 = arith.divf %228, %231 : vector<8x4xf32>
    %233 = vector.extract_strided_slice %218 {offsets = [0, 0], sizes = [4, 8], strides = [1, 1]} : vector<4x32xf32> to vector<4x8xf32>
    %cst_88 = arith.constant dense<0.000000e+00> : vector<8x8xf32>
    %234 = tpu.matmul %232, %233, %cst_88 {dimension_numbers = #tpu.dot_dimension_numbers<[1], [0], [0], [1], [0, 0, 1, 1], [], []>} : vector<8x4xf32>, vector<4x8xf32>, vector<8x8xf32> -> vector<8x8xf32>
    %235 = vector.extract_strided_slice %216 {offsets = [0, 8], sizes = [8, 8], strides = [1, 1]} : vector<8x32xf32> to vector<8x8xf32>
    %236 = vector.extract_strided_slice %217 {offsets = [0, 8], sizes = [4, 8], strides = [1, 1]} : vector<4x32xf32> to vector<4x8xf32>
    %cst_89 = arith.constant dense<0.000000e+00> : vector<8x4xf32>
    %237 = tpu.matmul %235, %236, %cst_89 {dimension_numbers = #tpu.dot_dimension_numbers<[1], [1], [0], [0], [0, 0, 1, 0], [], []>} : vector<8x8xf32>, vector<4x8xf32>, vector<8x4xf32> -> vector<8x4xf32>
    %cst_90 = arith.constant 0.353553385 : f32
    %238 = vector.broadcast %cst_90 : f32 to vector<8x4xf32>
    %239 = arith.mulf %237, %238 : vector<8x4xf32>
    %cst_91 = arith.constant dense<0xFF800000> : vector<8xf32>
    %240 = vector.multi_reduction <maximumf>, %239, %cst_91 [1] : vector<8x4xf32> to vector<8xf32>
    %241 = vector.shape_cast %240 : vector<8xf32> to vector<8x1xf32>
    %242 = vector.broadcast %241 : vector<8x1xf32> to vector<8x4xf32>
    %243 = arith.subf %239, %242 : vector<8x4xf32>
    %244 = math.exp %243 : vector<8x4xf32>
    %cst_92 = arith.constant dense<0.000000e+00> : vector<8xf32>
    %245 = vector.multi_reduction <add>, %244, %cst_92 [1] : vector<8x4xf32> to vector<8xf32>
    %246 = vector.shape_cast %245 : vector<8xf32> to vector<8x1xf32>
    %247 = vector.broadcast %246 : vector<8x1xf32> to vector<8x4xf32>
    %248 = arith.divf %244, %247 : vector<8x4xf32>
    %249 = vector.extract_strided_slice %218 {offsets = [0, 8], sizes = [4, 8], strides = [1, 1]} : vector<4x32xf32> to vector<4x8xf32>
    %cst_93 = arith.constant dense<0.000000e+00> : vector<8x8xf32>
    %250 = tpu.matmul %248, %249, %cst_93 {dimension_numbers = #tpu.dot_dimension_numbers<[1], [0], [0], [1], [0, 0, 1, 1], [], []>} : vector<8x4xf32>, vector<4x8xf32>, vector<8x8xf32> -> vector<8x8xf32>
    %251 = vector.extract_strided_slice %216 {offsets = [0, 16], sizes = [8, 8], strides = [1, 1]} : vector<8x32xf32> to vector<8x8xf32>
    %252 = vector.extract_strided_slice %217 {offsets = [0, 16], sizes = [4, 8], strides = [1, 1]} : vector<4x32xf32> to vector<4x8xf32>
    %cst_94 = arith.constant dense<0.000000e+00> : vector<8x4xf32>
    %253 = tpu.matmul %251, %252, %cst_94 {dimension_numbers = #tpu.dot_dimension_numbers<[1], [1], [0], [0], [0, 0, 1, 0], [], []>} : vector<8x8xf32>, vector<4x8xf32>, vector<8x4xf32> -> vector<8x4xf32>
    %cst_95 = arith.constant 0.353553385 : f32
    %254 = vector.broadcast %cst_95 : f32 to vector<8x4xf32>
    %255 = arith.mulf %253, %254 : vector<8x4xf32>
    %cst_96 = arith.constant dense<0xFF800000> : vector<8xf32>
    %256 = vector.multi_reduction <maximumf>, %255, %cst_96 [1] : vector<8x4xf32> to vector<8xf32>
    %257 = vector.shape_cast %256 : vector<8xf32> to vector<8x1xf32>
    %258 = vector.broadcast %257 : vector<8x1xf32> to vector<8x4xf32>
    %259 = arith.subf %255, %258 : vector<8x4xf32>
    %260 = math.exp %259 : vector<8x4xf32>
    %cst_97 = arith.constant dense<0.000000e+00> : vector<8xf32>
    %261 = vector.multi_reduction <add>, %260, %cst_97 [1] : vector<8x4xf32> to vector<8xf32>
    %262 = vector.shape_cast %261 : vector<8xf32> to vector<8x1xf32>
    %263 = vector.broadcast %262 : vector<8x1xf32> to vector<8x4xf32>
    %264 = arith.divf %260, %263 : vector<8x4xf32>
    %265 = vector.extract_strided_slice %218 {offsets = [0, 16], sizes = [4, 8], strides = [1, 1]} : vector<4x32xf32> to vector<4x8xf32>
    %cst_98 = arith.constant dense<0.000000e+00> : vector<8x8xf32>
    %266 = tpu.matmul %264, %265, %cst_98 {dimension_numbers = #tpu.dot_dimension_numbers<[1], [0], [0], [1], [0, 0, 1, 1], [], []>} : vector<8x4xf32>, vector<4x8xf32>, vector<8x8xf32> -> vector<8x8xf32>
    %267 = vector.extract_strided_slice %216 {offsets = [0, 24], sizes = [8, 8], strides = [1, 1]} : vector<8x32xf32> to vector<8x8xf32>
    %268 = vector.extract_strided_slice %217 {offsets = [0, 24], sizes = [4, 8], strides = [1, 1]} : vector<4x32xf32> to vector<4x8xf32>
    %cst_99 = arith.constant dense<0.000000e+00> : vector<8x4xf32>
    %269 = tpu.matmul %267, %268, %cst_99 {dimension_numbers = #tpu.dot_dimension_numbers<[1], [1], [0], [0], [0, 0, 1, 0], [], []>} : vector<8x8xf32>, vector<4x8xf32>, vector<8x4xf32> -> vector<8x4xf32>
    %cst_100 = arith.constant 0.353553385 : f32
    %270 = vector.broadcast %cst_100 : f32 to vector<8x4xf32>
    %271 = arith.mulf %269, %270 : vector<8x4xf32>
    %cst_101 = arith.constant dense<0xFF800000> : vector<8xf32>
    %272 = vector.multi_reduction <maximumf>, %271, %cst_101 [1] : vector<8x4xf32> to vector<8xf32>
    %273 = vector.shape_cast %272 : vector<8xf32> to vector<8x1xf32>
    %274 = vector.broadcast %273 : vector<8x1xf32> to vector<8x4xf32>
    %275 = arith.subf %271, %274 : vector<8x4xf32>
    %276 = math.exp %275 : vector<8x4xf32>
    %cst_102 = arith.constant dense<0.000000e+00> : vector<8xf32>
    %277 = vector.multi_reduction <add>, %276, %cst_102 [1] : vector<8x4xf32> to vector<8xf32>
    %278 = vector.shape_cast %277 : vector<8xf32> to vector<8x1xf32>
    %279 = vector.broadcast %278 : vector<8x1xf32> to vector<8x4xf32>
    %280 = arith.divf %276, %279 : vector<8x4xf32>
    %281 = vector.extract_strided_slice %218 {offsets = [0, 24], sizes = [4, 8], strides = [1, 1]} : vector<4x32xf32> to vector<4x8xf32>
    %cst_103 = arith.constant dense<0.000000e+00> : vector<8x8xf32>
    %282 = tpu.matmul %280, %281, %cst_103 {dimension_numbers = #tpu.dot_dimension_numbers<[1], [0], [0], [1], [0, 0, 1, 1], [], []>} : vector<8x4xf32>, vector<4x8xf32>, vector<8x8xf32> -> vector<8x8xf32>
    %283 = tpu.concatenate %234, %250, %266, %282 in 1 : vector<8x8xf32>, vector<8x8xf32>, vector<8x8xf32>, vector<8x8xf32> -> vector<8x32xf32>
    %284 = vector.extract_strided_slice %210 {offsets = [8, 0], sizes = [8, 32], strides = [1, 1]} : vector<16x32xf32> to vector<8x32xf32>
    %285 = vector.extract_strided_slice %214 {offsets = [4, 0], sizes = [4, 32], strides = [1, 1]} : vector<8x32xf32> to vector<4x32xf32>
    %286 = vector.extract_strided_slice %215 {offsets = [4, 0], sizes = [4, 32], strides = [1, 1]} : vector<8x32xf32> to vector<4x32xf32>
    %287 = vector.extract_strided_slice %284 {offsets = [0, 0], sizes = [8, 8], strides = [1, 1]} : vector<8x32xf32> to vector<8x8xf32>
    %288 = vector.extract_strided_slice %285 {offsets = [0, 0], sizes = [4, 8], strides = [1, 1]} : vector<4x32xf32> to vector<4x8xf32>
    %cst_104 = arith.constant dense<0.000000e+00> : vector<8x4xf32>
    %289 = tpu.matmul %287, %288, %cst_104 {dimension_numbers = #tpu.dot_dimension_numbers<[1], [1], [0], [0], [0, 0, 1, 0], [], []>} : vector<8x8xf32>, vector<4x8xf32>, vector<8x4xf32> -> vector<8x4xf32>
    %cst_105 = arith.constant 0.353553385 : f32
    %290 = vector.broadcast %cst_105 : f32 to vector<8x4xf32>
    %291 = arith.mulf %289, %290 : vector<8x4xf32>
    %cst_106 = arith.constant dense<0xFF800000> : vector<8xf32>
    %292 = vector.multi_reduction <maximumf>, %291, %cst_106 [1] : vector<8x4xf32> to vector<8xf32>
    %293 = vector.shape_cast %292 : vector<8xf32> to vector<8x1xf32>
    %294 = vector.broadcast %293 : vector<8x1xf32> to vector<8x4xf32>
    %295 = arith.subf %291, %294 : vector<8x4xf32>
    %296 = math.exp %295 : vector<8x4xf32>
    %cst_107 = arith.constant dense<0.000000e+00> : vector<8xf32>
    %297 = vector.multi_reduction <add>, %296, %cst_107 [1] : vector<8x4xf32> to vector<8xf32>
    %298 = vector.shape_cast %297 : vector<8xf32> to vector<8x1xf32>
    %299 = vector.broadcast %298 : vector<8x1xf32> to vector<8x4xf32>
    %300 = arith.divf %296, %299 : vector<8x4xf32>
    %301 = vector.extract_strided_slice %286 {offsets = [0, 0], sizes = [4, 8], strides = [1, 1]} : vector<4x32xf32> to vector<4x8xf32>
    %cst_108 = arith.constant dense<0.000000e+00> : vector<8x8xf32>
    %302 = tpu.matmul %300, %301, %cst_108 {dimension_numbers = #tpu.dot_dimension_numbers<[1], [0], [0], [1], [0, 0, 1, 1], [], []>} : vector<8x4xf32>, vector<4x8xf32>, vector<8x8xf32> -> vector<8x8xf32>
    %303 = vector.extract_strided_slice %284 {offsets = [0, 8], sizes = [8, 8], strides = [1, 1]} : vector<8x32xf32> to vector<8x8xf32>
    %304 = vector.extract_strided_slice %285 {offsets = [0, 8], sizes = [4, 8], strides = [1, 1]} : vector<4x32xf32> to vector<4x8xf32>
    %cst_109 = arith.constant dense<0.000000e+00> : vector<8x4xf32>
    %305 = tpu.matmul %303, %304, %cst_109 {dimension_numbers = #tpu.dot_dimension_numbers<[1], [1], [0], [0], [0, 0, 1, 0], [], []>} : vector<8x8xf32>, vector<4x8xf32>, vector<8x4xf32> -> vector<8x4xf32>
    %cst_110 = arith.constant 0.353553385 : f32
    %306 = vector.broadcast %cst_110 : f32 to vector<8x4xf32>
    %307 = arith.mulf %305, %306 : vector<8x4xf32>
    %cst_111 = arith.constant dense<0xFF800000> : vector<8xf32>
    %308 = vector.multi_reduction <maximumf>, %307, %cst_111 [1] : vector<8x4xf32> to vector<8xf32>
    %309 = vector.shape_cast %308 : vector<8xf32> to vector<8x1xf32>
    %310 = vector.broadcast %309 : vector<8x1xf32> to vector<8x4xf32>
    %311 = arith.subf %307, %310 : vector<8x4xf32>
    %312 = math.exp %311 : vector<8x4xf32>
    %cst_112 = arith.constant dense<0.000000e+00> : vector<8xf32>
    %313 = vector.multi_reduction <add>, %312, %cst_112 [1] : vector<8x4xf32> to vector<8xf32>
    %314 = vector.shape_cast %313 : vector<8xf32> to vector<8x1xf32>
    %315 = vector.broadcast %314 : vector<8x1xf32> to vector<8x4xf32>
    %316 = arith.divf %312, %315 : vector<8x4xf32>
    %317 = vector.extract_strided_slice %286 {offsets = [0, 8], sizes = [4, 8], strides = [1, 1]} : vector<4x32xf32> to vector<4x8xf32>
    %cst_113 = arith.constant dense<0.000000e+00> : vector<8x8xf32>
    %318 = tpu.matmul %316, %317, %cst_113 {dimension_numbers = #tpu.dot_dimension_numbers<[1], [0], [0], [1], [0, 0, 1, 1], [], []>} : vector<8x4xf32>, vector<4x8xf32>, vector<8x8xf32> -> vector<8x8xf32>
    %319 = vector.extract_strided_slice %284 {offsets = [0, 16], sizes = [8, 8], strides = [1, 1]} : vector<8x32xf32> to vector<8x8xf32>
    %320 = vector.extract_strided_slice %285 {offsets = [0, 16], sizes = [4, 8], strides = [1, 1]} : vector<4x32xf32> to vector<4x8xf32>
    %cst_114 = arith.constant dense<0.000000e+00> : vector<8x4xf32>
    %321 = tpu.matmul %319, %320, %cst_114 {dimension_numbers = #tpu.dot_dimension_numbers<[1], [1], [0], [0], [0, 0, 1, 0], [], []>} : vector<8x8xf32>, vector<4x8xf32>, vector<8x4xf32> -> vector<8x4xf32>
    %cst_115 = arith.constant 0.353553385 : f32
    %322 = vector.broadcast %cst_115 : f32 to vector<8x4xf32>
    %323 = arith.mulf %321, %322 : vector<8x4xf32>
    %cst_116 = arith.constant dense<0xFF800000> : vector<8xf32>
    %324 = vector.multi_reduction <maximumf>, %323, %cst_116 [1] : vector<8x4xf32> to vector<8xf32>
    %325 = vector.shape_cast %324 : vector<8xf32> to vector<8x1xf32>
    %326 = vector.broadcast %325 : vector<8x1xf32> to vector<8x4xf32>
    %327 = arith.subf %323, %326 : vector<8x4xf32>
    %328 = math.exp %327 : vector<8x4xf32>
    %cst_117 = arith.constant dense<0.000000e+00> : vector<8xf32>
    %329 = vector.multi_reduction <add>, %328, %cst_117 [1] : vector<8x4xf32> to vector<8xf32>
    %330 = vector.shape_cast %329 : vector<8xf32> to vector<8x1xf32>
    %331 = vector.broadcast %330 : vector<8x1xf32> to vector<8x4xf32>
    %332 = arith.divf %328, %331 : vector<8x4xf32>
    %333 = vector.extract_strided_slice %286 {offsets = [0, 16], sizes = [4, 8], strides = [1, 1]} : vector<4x32xf32> to vector<4x8xf32>
    %cst_118 = arith.constant dense<0.000000e+00> : vector<8x8xf32>
    %334 = tpu.matmul %332, %333, %cst_118 {dimension_numbers = #tpu.dot_dimension_numbers<[1], [0], [0], [1], [0, 0, 1, 1], [], []>} : vector<8x4xf32>, vector<4x8xf32>, vector<8x8xf32> -> vector<8x8xf32>
    %335 = vector.extract_strided_slice %284 {offsets = [0, 24], sizes = [8, 8], strides = [1, 1]} : vector<8x32xf32> to vector<8x8xf32>
    %336 = vector.extract_strided_slice %285 {offsets = [0, 24], sizes = [4, 8], strides = [1, 1]} : vector<4x32xf32> to vector<4x8xf32>
    %cst_119 = arith.constant dense<0.000000e+00> : vector<8x4xf32>
    %337 = tpu.matmul %335, %336, %cst_119 {dimension_numbers = #tpu.dot_dimension_numbers<[1], [1], [0], [0], [0, 0, 1, 0], [], []>} : vector<8x8xf32>, vector<4x8xf32>, vector<8x4xf32> -> vector<8x4xf32>
    %cst_120 = arith.constant 0.353553385 : f32
    %338 = vector.broadcast %cst_120 : f32 to vector<8x4xf32>
    %339 = arith.mulf %337, %338 : vector<8x4xf32>
    %cst_121 = arith.constant dense<0xFF800000> : vector<8xf32>
    %340 = vector.multi_reduction <maximumf>, %339, %cst_121 [1] : vector<8x4xf32> to vector<8xf32>
    %341 = vector.shape_cast %340 : vector<8xf32> to vector<8x1xf32>
    %342 = vector.broadcast %341 : vector<8x1xf32> to vector<8x4xf32>
    %343 = arith.subf %339, %342 : vector<8x4xf32>
    %344 = math.exp %343 : vector<8x4xf32>
    %cst_122 = arith.constant dense<0.000000e+00> : vector<8xf32>
    %345 = vector.multi_reduction <add>, %344, %cst_122 [1] : vector<8x4xf32> to vector<8xf32>
    %346 = vector.shape_cast %345 : vector<8xf32> to vector<8x1xf32>
    %347 = vector.broadcast %346 : vector<8x1xf32> to vector<8x4xf32>
    %348 = arith.divf %344, %347 : vector<8x4xf32>
    %349 = vector.extract_strided_slice %286 {offsets = [0, 24], sizes = [4, 8], strides = [1, 1]} : vector<4x32xf32> to vector<4x8xf32>
    %cst_123 = arith.constant dense<0.000000e+00> : vector<8x8xf32>
    %350 = tpu.matmul %348, %349, %cst_123 {dimension_numbers = #tpu.dot_dimension_numbers<[1], [0], [0], [1], [0, 0, 1, 1], [], []>} : vector<8x4xf32>, vector<4x8xf32>, vector<8x8xf32> -> vector<8x8xf32>
    %351 = tpu.concatenate %302, %318, %334, %350 in 1 : vector<8x8xf32>, vector<8x8xf32>, vector<8x8xf32>, vector<8x8xf32> -> vector<8x32xf32>
    %352 = tpu.concatenate %283, %351 in 0 : vector<8x32xf32>, vector<8x32xf32> -> vector<16x32xf32>
    %cst_124 = arith.constant dense<0.000000e+00> : vector<16x32xf32>
    %353 = tpu.matmul %352, %206, %cst_124 {dimension_numbers = #tpu.dot_dimension_numbers<[1], [0], [0], [1], [0, 0, 1, 1], [], []>} : vector<16x32xf32>, vector<32x32xf32>, vector<16x32xf32> -> vector<16x32xf32>
    %354 = vector.broadcast %207 : vector<1x32xf32> to vector<16x32xf32>
    %355 = arith.addf %353, %354 : vector<16x32xf32>
    %356 = arith.addf %177, %355 : vector<16x32xf32>
    %c0_125 = arith.constant 0 : index
    %c0_126 = arith.constant 0 : index
    %357 = vector.load %arg16[%c0_125, %c0_126] : memref<1x32xf32, #tpu.memory_space<vmem>>, vector<1x32xf32>
    %c0_127 = arith.constant 0 : index
    %c0_128 = arith.constant 0 : index
    %358 = vector.load %arg17[%c0_127, %c0_128] : memref<1x32xf32, #tpu.memory_space<vmem>>, vector<1x32xf32>
    %cst_129 = arith.constant dense<0.000000e+00> : vector<16xf32>
    %359 = vector.multi_reduction <add>, %356, %cst_129 [1] : vector<16x32xf32> to vector<16xf32>
    %360 = vector.shape_cast %359 : vector<16xf32> to vector<16x1xf32>
    %cst_130 = arith.constant 3.200000e+01 : f32
    %361 = vector.broadcast %cst_130 : f32 to vector<16x1xf32>
    %362 = arith.divf %360, %361 : vector<16x1xf32>
    %363 = vector.broadcast %362 : vector<16x1xf32> to vector<16x32xf32>
    %364 = arith.subf %356, %363 : vector<16x32xf32>
    %365 = arith.mulf %364, %364 : vector<16x32xf32>
    %cst_131 = arith.constant dense<0.000000e+00> : vector<16xf32>
    %366 = vector.multi_reduction <add>, %365, %cst_131 [1] : vector<16x32xf32> to vector<16xf32>
    %367 = vector.shape_cast %366 : vector<16xf32> to vector<16x1xf32>
    %cst_132 = arith.constant 3.200000e+01 : f32
    %368 = vector.broadcast %cst_132 : f32 to vector<16x1xf32>
    %369 = arith.divf %367, %368 : vector<16x1xf32>
    %370 = vector.broadcast %362 : vector<16x1xf32> to vector<16x32xf32>
    %371 = arith.subf %356, %370 : vector<16x32xf32>
    %cst_133 = arith.constant 9.99999996E-13 : f32
    %372 = vector.broadcast %cst_133 : f32 to vector<16x1xf32>
    %373 = arith.addf %369, %372 : vector<16x1xf32>
    %374 = math.rsqrt %373 : vector<16x1xf32>
    %375 = vector.broadcast %374 : vector<16x1xf32> to vector<16x32xf32>
    %376 = arith.mulf %371, %375 : vector<16x32xf32>
    %377 = vector.broadcast %357 : vector<1x32xf32> to vector<16x32xf32>
    %378 = arith.mulf %376, %377 : vector<16x32xf32>
    %379 = vector.broadcast %358 : vector<1x32xf32> to vector<16x32xf32>
    %380 = arith.addf %378, %379 : vector<16x32xf32>
    %c0_134 = arith.constant 0 : index
    %c0_135 = arith.constant 0 : index
    %381 = vector.load %arg18[%c0_134, %c0_135] : memref<32x64xf32, #tpu.memory_space<vmem>>, vector<32x64xf32>
    %c0_136 = arith.constant 0 : index
    %c0_137 = arith.constant 0 : index
    %382 = vector.load %arg19[%c0_136, %c0_137] : memref<1x64xf32, #tpu.memory_space<vmem>>, vector<1x64xf32>
    %c0_138 = arith.constant 0 : index
    %c0_139 = arith.constant 0 : index
    %383 = vector.load %arg20[%c0_138, %c0_139] : memref<64x32xf32, #tpu.memory_space<vmem>>, vector<64x32xf32>
    %c0_140 = arith.constant 0 : index
    %c0_141 = arith.constant 0 : index
    %384 = vector.load %arg21[%c0_140, %c0_141] : memref<1x32xf32, #tpu.memory_space<vmem>>, vector<1x32xf32>
    %cst_142 = arith.constant dense<0.000000e+00> : vector<16x64xf32>
    %385 = tpu.matmul %380, %381, %cst_142 {dimension_numbers = #tpu.dot_dimension_numbers<[1], [0], [0], [1], [0, 0, 1, 1], [], []>} : vector<16x32xf32>, vector<32x64xf32>, vector<16x64xf32> -> vector<16x64xf32>
    %386 = vector.broadcast %382 : vector<1x64xf32> to vector<16x64xf32>
    %387 = arith.addf %385, %386 : vector<16x64xf32>
    %388 = arith.mulf %387, %387 : vector<16x64xf32>
    %389 = arith.mulf %387, %388 : vector<16x64xf32>
    %cst_143 = arith.constant 4.471500e-02 : f32
    %390 = vector.broadcast %cst_143 : f32 to vector<16x64xf32>
    %391 = arith.mulf %390, %389 : vector<16x64xf32>
    %392 = arith.addf %387, %391 : vector<16x64xf32>
    %cst_144 = arith.constant 0.797884583 : f32
    %393 = vector.broadcast %cst_144 : f32 to vector<16x64xf32>
    %394 = arith.mulf %393, %392 : vector<16x64xf32>
    %395 = math.tanh %394 : vector<16x64xf32>
    %cst_145 = arith.constant 1.000000e+00 : f32
    %396 = vector.broadcast %cst_145 : f32 to vector<16x64xf32>
    %397 = arith.addf %396, %395 : vector<16x64xf32>
    %cst_146 = arith.constant 5.000000e-01 : f32
    %398 = vector.broadcast %cst_146 : f32 to vector<16x64xf32>
    %399 = arith.mulf %398, %397 : vector<16x64xf32>
    %400 = arith.mulf %387, %399 : vector<16x64xf32>
    %cst_147 = arith.constant dense<0.000000e+00> : vector<16x32xf32>
    %401 = tpu.matmul %400, %383, %cst_147 {dimension_numbers = #tpu.dot_dimension_numbers<[1], [0], [0], [1], [0, 0, 1, 1], [], []>} : vector<16x64xf32>, vector<64x32xf32>, vector<16x32xf32> -> vector<16x32xf32>
    %402 = vector.broadcast %384 : vector<1x32xf32> to vector<16x32xf32>
    %403 = arith.addf %401, %402 : vector<16x32xf32>
    %404 = arith.addf %356, %403 : vector<16x32xf32>
    %c0_148 = arith.constant 0 : index
    %c0_149 = arith.constant 0 : index
    %405 = vector.load %arg22[%c0_148, %c0_149] : memref<1x32xf32, #tpu.memory_space<vmem>>, vector<1x32xf32>
    %c0_150 = arith.constant 0 : index
    %c0_151 = arith.constant 0 : index
    %406 = vector.load %arg23[%c0_150, %c0_151] : memref<1x32xf32, #tpu.memory_space<vmem>>, vector<1x32xf32>
    %cst_152 = arith.constant dense<0.000000e+00> : vector<16xf32>
    %407 = vector.multi_reduction <add>, %404, %cst_152 [1] : vector<16x32xf32> to vector<16xf32>
    %408 = vector.shape_cast %407 : vector<16xf32> to vector<16x1xf32>
    %cst_153 = arith.constant 3.200000e+01 : f32
    %409 = vector.broadcast %cst_153 : f32 to vector<16x1xf32>
    %410 = arith.divf %408, %409 : vector<16x1xf32>
    %411 = vector.broadcast %410 : vector<16x1xf32> to vector<16x32xf32>
    %412 = arith.subf %404, %411 : vector<16x32xf32>
    %413 = arith.mulf %412, %412 : vector<16x32xf32>
    %cst_154 = arith.constant dense<0.000000e+00> : vector<16xf32>
    %414 = vector.multi_reduction <add>, %413, %cst_154 [1] : vector<16x32xf32> to vector<16xf32>
    %415 = vector.shape_cast %414 : vector<16xf32> to vector<16x1xf32>
    %cst_155 = arith.constant 3.200000e+01 : f32
    %416 = vector.broadcast %cst_155 : f32 to vector<16x1xf32>
    %417 = arith.divf %415, %416 : vector<16x1xf32>
    %418 = vector.broadcast %410 : vector<16x1xf32> to vector<16x32xf32>
    %419 = arith.subf %404, %418 : vector<16x32xf32>
    %cst_156 = arith.constant 9.99999996E-13 : f32
    %420 = vector.broadcast %cst_156 : f32 to vector<16x1xf32>
    %421 = arith.addf %417, %420 : vector<16x1xf32>
    %422 = math.rsqrt %421 : vector<16x1xf32>
    %423 = vector.broadcast %422 : vector<16x1xf32> to vector<16x32xf32>
    %424 = arith.mulf %419, %423 : vector<16x32xf32>
    %425 = vector.broadcast %405 : vector<1x32xf32> to vector<16x32xf32>
    %426 = arith.mulf %424, %425 : vector<16x32xf32>
    %427 = vector.broadcast %406 : vector<1x32xf32> to vector<16x32xf32>
    %428 = arith.addf %426, %427 : vector<16x32xf32>
    %c0_157 = arith.constant 0 : index
    %c0_158 = arith.constant 0 : index
    %429 = vector.load %arg24[%c0_157, %c0_158] : memref<32x32xf32, #tpu.memory_space<vmem>>, vector<32x32xf32>
    %cst_159 = arith.constant dense<0.000000e+00> : vector<16x32xf32>
    %430 = tpu.matmul %428, %429, %cst_159 {dimension_numbers = #tpu.dot_dimension_numbers<[1], [0], [0], [1], [0, 0, 1, 1], [], []>} : vector<16x32xf32>, vector<32x32xf32>, vector<16x32xf32> -> vector<16x32xf32>
    %c0_160 = arith.constant 0 : index
    %c0_161 = arith.constant 0 : index
    %431 = vector.load %arg25[%c0_160, %c0_161] : memref<1x32xf32, #tpu.memory_space<vmem>>, vector<1x32xf32>
    %432 = vector.broadcast %431 : vector<1x32xf32> to vector<16x32xf32>
    %433 = arith.addf %430, %432 : vector<16x32xf32>
    %c0_162 = arith.constant 0 : index
    %c0_163 = arith.constant 0 : index
    %434 = vector.load %arg26[%c0_162, %c0_163] : memref<16x32xf32, #tpu.memory_space<vmem>>, vector<16x32xf32>
    tpu.vector_store %arg26[%c0_162, %c0_163], %433 {strides = array<i32>} : memref<16x32xf32, #tpu.memory_space<vmem>>, vector<16x32xf32>,
    return
  }
}

module attributes {stable_mosaic.version = 11 : i64} {
  func.func @t5_kernel(%arg0: memref<32x32xf32, #tpu.memory_space<vmem>>, %arg1: memref<8x32xf32, #tpu.memory_space<vmem>>, %arg2: memref<1x32xf32, #tpu.memory_space<vmem>>, %arg3: memref<32x96xf32, #tpu.memory_space<vmem>>, %arg4: memref<1x96xf32, #tpu.memory_space<vmem>>, %arg5: memref<32x32xf32, #tpu.memory_space<vmem>>, %arg6: memref<1x32xf32, #tpu.memory_space<vmem>>, %arg7: memref<1x32xf32, #tpu.memory_space<vmem>>, %arg8: memref<32x128xf32, #tpu.memory_space<vmem>>, %arg9: memref<64x32xf32, #tpu.memory_space<vmem>>, %arg10: memref<1x32xf32, #tpu.memory_space<vmem>>, %arg11: memref<1x32xf32, #tpu.memory_space<vmem>>, %arg12: memref<32x96xf32, #tpu.memory_space<vmem>>, %arg13: memref<1x96xf32, #tpu.memory_space<vmem>>, %arg14: memref<32x32xf32, #tpu.memory_space<vmem>>, %arg15: memref<1x32xf32, #tpu.memory_space<vmem>>, %arg16: memref<1x32xf32, #tpu.memory_space<vmem>>, %arg17: memref<32x32xf32, #tpu.memory_space<vmem>>, %arg18: memref<1x32xf32, #tpu.memory_space<vmem>>, %arg19: memref<32x64xf32, #tpu.memory_space<vmem>>, %arg20: memref<1x64xf32, #tpu.memory_space<vmem>>, %arg21: memref<32x32xf32, #tpu.memory_space<vmem>>, %arg22: memref<1x32xf32, #tpu.memory_space<vmem>>, %arg23: memref<1x32xf32, #tpu.memory_space<vmem>>, %arg24: memref<32x128xf32, #tpu.memory_space<vmem>>, %arg25: memref<64x32xf32, #tpu.memory_space<vmem>>, %arg26: memref<1x32xf32, #tpu.memory_space<vmem>>, %arg27: memref<32x64xf32, #tpu.memory_space<vmem>>, %arg28: memref<1x64xf32, #tpu.memory_space<vmem>>, %arg29: memref<2x1xi32, #tpu.memory_space<vmem>>) attributes {dimension_semantics = [], scalar_prefetch = 0 : i64, scratch_operands = 0 : i64, tpu.core_type = #tpu.core_type<tc>} {
    %c0 = arith.constant 0 : index
    %c0_0 = arith.constant 0 : index
    %0 = vector.load %arg0[%c0, %c0_0] : memref<32x32xf32, #tpu.memory_space<vmem>>, vector<32x32xf32>
    %c0_1 = arith.constant 0 : index
    %c0_2 = arith.constant 0 : index
    %1 = vector.load %arg2[%c0_1, %c0_2] : memref<1x32xf32, #tpu.memory_space<vmem>>, vector<1x32xf32>
    %2 = arith.mulf %0, %0 : vector<32x32xf32>
    %cst = arith.constant dense<0.000000e+00> : vector<32xf32>
    %3 = vector.multi_reduction <add>, %2, %cst [1] : vector<32x32xf32> to vector<32xf32>
    %4 = vector.shape_cast %3 : vector<32xf32> to vector<32x1xf32>
    %cst_3 = arith.constant 3.200000e+01 : f32
    %5 = vector.broadcast %cst_3 : f32 to vector<32x1xf32>
    %6 = arith.divf %4, %5 : vector<32x1xf32>
    %cst_4 = arith.constant 9.99999997E-7 : f32
    %7 = vector.broadcast %cst_4 : f32 to vector<32x1xf32>
    %8 = arith.addf %6, %7 : vector<32x1xf32>
    %9 = math.rsqrt %8 : vector<32x1xf32>
    %10 = vector.broadcast %9 : vector<32x1xf32> to vector<32x32xf32>
    %11 = arith.mulf %0, %10 : vector<32x32xf32>
    %12 = vector.broadcast %1 : vector<1x32xf32> to vector<32x32xf32>
    %13 = arith.mulf %11, %12 : vector<32x32xf32>
    %c0_5 = arith.constant 0 : index
    %c0_6 = arith.constant 0 : index
    %14 = vector.load %arg3[%c0_5, %c0_6] : memref<32x96xf32, #tpu.memory_space<vmem>>, vector<32x96xf32>
    %c0_7 = arith.constant 0 : index
    %c0_8 = arith.constant 0 : index
    %15 = vector.load %arg4[%c0_7, %c0_8] : memref<1x96xf32, #tpu.memory_space<vmem>>, vector<1x96xf32>
    %c0_9 = arith.constant 0 : index
    %c0_10 = arith.constant 0 : index
    %16 = vector.load %arg5[%c0_9, %c0_10] : memref<32x32xf32, #tpu.memory_space<vmem>>, vector<32x32xf32>
    %c0_11 = arith.constant 0 : index
    %c0_12 = arith.constant 0 : index
    %17 = vector.load %arg6[%c0_11, %c0_12] : memref<1x32xf32, #tpu.memory_space<vmem>>, vector<1x32xf32>
    %cst_13 = arith.constant dense<0.000000e+00> : vector<32x96xf32>
    %18 = tpu.matmul %13, %14, %cst_13 {dimension_numbers = #tpu.dot_dimension_numbers<[1], [0], [0], [1], [0, 0, 1, 1], [], []>} : vector<32x32xf32>, vector<32x96xf32>, vector<32x96xf32> -> vector<32x96xf32>
    %19 = vector.broadcast %15 : vector<1x96xf32> to vector<32x96xf32>
    %20 = arith.addf %18, %19 : vector<32x96xf32>
    %21 = vector.extract_strided_slice %20 {offsets = [0, 0], sizes = [32, 32], strides = [1, 1]} : vector<32x96xf32> to vector<32x32xf32>
    %22 = vector.extract_strided_slice %20 {offsets = [0, 32], sizes = [32, 32], strides = [1, 1]} : vector<32x96xf32> to vector<32x32xf32>
    %23 = vector.extract_strided_slice %20 {offsets = [0, 64], sizes = [32, 32], strides = [1, 1]} : vector<32x96xf32> to vector<32x32xf32>
    %24 = vector.extract_strided_slice %21 {offsets = [0, 0], sizes = [16, 32], strides = [1, 1]} : vector<32x32xf32> to vector<16x32xf32>
    %25 = vector.extract_strided_slice %22 {offsets = [0, 0], sizes = [16, 32], strides = [1, 1]} : vector<32x32xf32> to vector<16x32xf32>
    %26 = vector.extract_strided_slice %23 {offsets = [0, 0], sizes = [16, 32], strides = [1, 1]} : vector<32x32xf32> to vector<16x32xf32>
    %27 = vector.extract_strided_slice %24 {offsets = [0, 0], sizes = [16, 8], strides = [1, 1]} : vector<16x32xf32> to vector<16x8xf32>
    %28 = vector.extract_strided_slice %25 {offsets = [0, 0], sizes = [16, 8], strides = [1, 1]} : vector<16x32xf32> to vector<16x8xf32>
    %cst_14 = arith.constant dense<0.000000e+00> : vector<16x16xf32>
    %29 = tpu.matmul %27, %28, %cst_14 {dimension_numbers = #tpu.dot_dimension_numbers<[1], [1], [0], [0], [0, 0, 1, 0], [], []>} : vector<16x8xf32>, vector<16x8xf32>, vector<16x16xf32> -> vector<16x16xf32>
    %cst_15 = arith.constant 1.000000e+00 : f32
    %30 = vector.broadcast %cst_15 : f32 to vector<16x16xf32>
    %31 = arith.mulf %29, %30 : vector<16x16xf32>
    %cst_16 = arith.constant dense<0xFF800000> : vector<16xf32>
    %32 = vector.multi_reduction <maximumf>, %31, %cst_16 [1] : vector<16x16xf32> to vector<16xf32>
    %33 = vector.shape_cast %32 : vector<16xf32> to vector<16x1xf32>
    %34 = vector.broadcast %33 : vector<16x1xf32> to vector<16x16xf32>
    %35 = arith.subf %31, %34 : vector<16x16xf32>
    %36 = math.exp %35 : vector<16x16xf32>
    %cst_17 = arith.constant dense<0.000000e+00> : vector<16xf32>
    %37 = vector.multi_reduction <add>, %36, %cst_17 [1] : vector<16x16xf32> to vector<16xf32>
    %38 = vector.shape_cast %37 : vector<16xf32> to vector<16x1xf32>
    %39 = vector.broadcast %38 : vector<16x1xf32> to vector<16x16xf32>
    %40 = arith.divf %36, %39 : vector<16x16xf32>
    %41 = vector.extract_strided_slice %26 {offsets = [0, 0], sizes = [16, 8], strides = [1, 1]} : vector<16x32xf32> to vector<16x8xf32>
    %cst_18 = arith.constant dense<0.000000e+00> : vector<16x8xf32>
    %42 = tpu.matmul %40, %41, %cst_18 {dimension_numbers = #tpu.dot_dimension_numbers<[1], [0], [0], [1], [0, 0, 1, 1], [], []>} : vector<16x16xf32>, vector<16x8xf32>, vector<16x8xf32> -> vector<16x8xf32>
    %43 = vector.extract_strided_slice %24 {offsets = [0, 8], sizes = [16, 8], strides = [1, 1]} : vector<16x32xf32> to vector<16x8xf32>
    %44 = vector.extract_strided_slice %25 {offsets = [0, 8], sizes = [16, 8], strides = [1, 1]} : vector<16x32xf32> to vector<16x8xf32>
    %cst_19 = arith.constant dense<0.000000e+00> : vector<16x16xf32>
    %45 = tpu.matmul %43, %44, %cst_19 {dimension_numbers = #tpu.dot_dimension_numbers<[1], [1], [0], [0], [0, 0, 1, 0], [], []>} : vector<16x8xf32>, vector<16x8xf32>, vector<16x16xf32> -> vector<16x16xf32>
    %cst_20 = arith.constant 1.000000e+00 : f32
    %46 = vector.broadcast %cst_20 : f32 to vector<16x16xf32>
    %47 = arith.mulf %45, %46 : vector<16x16xf32>
    %cst_21 = arith.constant dense<0xFF800000> : vector<16xf32>
    %48 = vector.multi_reduction <maximumf>, %47, %cst_21 [1] : vector<16x16xf32> to vector<16xf32>
    %49 = vector.shape_cast %48 : vector<16xf32> to vector<16x1xf32>
    %50 = vector.broadcast %49 : vector<16x1xf32> to vector<16x16xf32>
    %51 = arith.subf %47, %50 : vector<16x16xf32>
    %52 = math.exp %51 : vector<16x16xf32>
    %cst_22 = arith.constant dense<0.000000e+00> : vector<16xf32>
    %53 = vector.multi_reduction <add>, %52, %cst_22 [1] : vector<16x16xf32> to vector<16xf32>
    %54 = vector.shape_cast %53 : vector<16xf32> to vector<16x1xf32>
    %55 = vector.broadcast %54 : vector<16x1xf32> to vector<16x16xf32>
    %56 = arith.divf %52, %55 : vector<16x16xf32>
    %57 = vector.extract_strided_slice %26 {offsets = [0, 8], sizes = [16, 8], strides = [1, 1]} : vector<16x32xf32> to vector<16x8xf32>
    %cst_23 = arith.constant dense<0.000000e+00> : vector<16x8xf32>
    %58 = tpu.matmul %56, %57, %cst_23 {dimension_numbers = #tpu.dot_dimension_numbers<[1], [0], [0], [1], [0, 0, 1, 1], [], []>} : vector<16x16xf32>, vector<16x8xf32>, vector<16x8xf32> -> vector<16x8xf32>
    %59 = vector.extract_strided_slice %24 {offsets = [0, 16], sizes = [16, 8], strides = [1, 1]} : vector<16x32xf32> to vector<16x8xf32>
    %60 = vector.extract_strided_slice %25 {offsets = [0, 16], sizes = [16, 8], strides = [1, 1]} : vector<16x32xf32> to vector<16x8xf32>
    %cst_24 = arith.constant dense<0.000000e+00> : vector<16x16xf32>
    %61 = tpu.matmul %59, %60, %cst_24 {dimension_numbers = #tpu.dot_dimension_numbers<[1], [1], [0], [0], [0, 0, 1, 0], [], []>} : vector<16x8xf32>, vector<16x8xf32>, vector<16x16xf32> -> vector<16x16xf32>
    %cst_25 = arith.constant 1.000000e+00 : f32
    %62 = vector.broadcast %cst_25 : f32 to vector<16x16xf32>
    %63 = arith.mulf %61, %62 : vector<16x16xf32>
    %cst_26 = arith.constant dense<0xFF800000> : vector<16xf32>
    %64 = vector.multi_reduction <maximumf>, %63, %cst_26 [1] : vector<16x16xf32> to vector<16xf32>
    %65 = vector.shape_cast %64 : vector<16xf32> to vector<16x1xf32>
    %66 = vector.broadcast %65 : vector<16x1xf32> to vector<16x16xf32>
    %67 = arith.subf %63, %66 : vector<16x16xf32>
    %68 = math.exp %67 : vector<16x16xf32>
    %cst_27 = arith.constant dense<0.000000e+00> : vector<16xf32>
    %69 = vector.multi_reduction <add>, %68, %cst_27 [1] : vector<16x16xf32> to vector<16xf32>
    %70 = vector.shape_cast %69 : vector<16xf32> to vector<16x1xf32>
    %71 = vector.broadcast %70 : vector<16x1xf32> to vector<16x16xf32>
    %72 = arith.divf %68, %71 : vector<16x16xf32>
    %73 = vector.extract_strided_slice %26 {offsets = [0, 16], sizes = [16, 8], strides = [1, 1]} : vector<16x32xf32> to vector<16x8xf32>
    %cst_28 = arith.constant dense<0.000000e+00> : vector<16x8xf32>
    %74 = tpu.matmul %72, %73, %cst_28 {dimension_numbers = #tpu.dot_dimension_numbers<[1], [0], [0], [1], [0, 0, 1, 1], [], []>} : vector<16x16xf32>, vector<16x8xf32>, vector<16x8xf32> -> vector<16x8xf32>
    %75 = vector.extract_strided_slice %24 {offsets = [0, 24], sizes = [16, 8], strides = [1, 1]} : vector<16x32xf32> to vector<16x8xf32>
    %76 = vector.extract_strided_slice %25 {offsets = [0, 24], sizes = [16, 8], strides = [1, 1]} : vector<16x32xf32> to vector<16x8xf32>
    %cst_29 = arith.constant dense<0.000000e+00> : vector<16x16xf32>
    %77 = tpu.matmul %75, %76, %cst_29 {dimension_numbers = #tpu.dot_dimension_numbers<[1], [1], [0], [0], [0, 0, 1, 0], [], []>} : vector<16x8xf32>, vector<16x8xf32>, vector<16x16xf32> -> vector<16x16xf32>
    %cst_30 = arith.constant 1.000000e+00 : f32
    %78 = vector.broadcast %cst_30 : f32 to vector<16x16xf32>
    %79 = arith.mulf %77, %78 : vector<16x16xf32>
    %cst_31 = arith.constant dense<0xFF800000> : vector<16xf32>
    %80 = vector.multi_reduction <maximumf>, %79, %cst_31 [1] : vector<16x16xf32> to vector<16xf32>
    %81 = vector.shape_cast %80 : vector<16xf32> to vector<16x1xf32>
    %82 = vector.broadcast %81 : vector<16x1xf32> to vector<16x16xf32>
    %83 = arith.subf %79, %82 : vector<16x16xf32>
    %84 = math.exp %83 : vector<16x16xf32>
    %cst_32 = arith.constant dense<0.000000e+00> : vector<16xf32>
    %85 = vector.multi_reduction <add>, %84, %cst_32 [1] : vector<16x16xf32> to vector<16xf32>
    %86 = vector.shape_cast %85 : vector<16xf32> to vector<16x1xf32>
    %87 = vector.broadcast %86 : vector<16x1xf32> to vector<16x16xf32>
    %88 = arith.divf %84, %87 : vector<16x16xf32>
    %89 = vector.extract_strided_slice %26 {offsets = [0, 24], sizes = [16, 8], strides = [1, 1]} : vector<16x32xf32> to vector<16x8xf32>
    %cst_33 = arith.constant dense<0.000000e+00> : vector<16x8xf32>
    %90 = tpu.matmul %88, %89, %cst_33 {dimension_numbers = #tpu.dot_dimension_numbers<[1], [0], [0], [1], [0, 0, 1, 1], [], []>} : vector<16x16xf32>, vector<16x8xf32>, vector<16x8xf32> -> vector<16x8xf32>
    %91 = tpu.concatenate %42, %58, %74, %90 in 1 : vector<16x8xf32>, vector<16x8xf32>, vector<16x8xf32>, vector<16x8xf32> -> vector<16x32xf32>
    %92 = vector.extract_strided_slice %21 {offsets = [16, 0], sizes = [16, 32], strides = [1, 1]} : vector<32x32xf32> to vector<16x32xf32>
    %93 = vector.extract_strided_slice %22 {offsets = [16, 0], sizes = [16, 32], strides = [1, 1]} : vector<32x32xf32> to vector<16x32xf32>
    %94 = vector.extract_strided_slice %23 {offsets = [16, 0], sizes = [16, 32], strides = [1, 1]} : vector<32x32xf32> to vector<16x32xf32>
    %95 = vector.extract_strided_slice %92 {offsets = [0, 0], sizes = [16, 8], strides = [1, 1]} : vector<16x32xf32> to vector<16x8xf32>
    %96 = vector.extract_strided_slice %93 {offsets = [0, 0], sizes = [16, 8], strides = [1, 1]} : vector<16x32xf32> to vector<16x8xf32>
    %cst_34 = arith.constant dense<0.000000e+00> : vector<16x16xf32>
    %97 = tpu.matmul %95, %96, %cst_34 {dimension_numbers = #tpu.dot_dimension_numbers<[1], [1], [0], [0], [0, 0, 1, 0], [], []>} : vector<16x8xf32>, vector<16x8xf32>, vector<16x16xf32> -> vector<16x16xf32>
    %cst_35 = arith.constant 1.000000e+00 : f32
    %98 = vector.broadcast %cst_35 : f32 to vector<16x16xf32>
    %99 = arith.mulf %97, %98 : vector<16x16xf32>
    %cst_36 = arith.constant dense<0xFF800000> : vector<16xf32>
    %100 = vector.multi_reduction <maximumf>, %99, %cst_36 [1] : vector<16x16xf32> to vector<16xf32>
    %101 = vector.shape_cast %100 : vector<16xf32> to vector<16x1xf32>
    %102 = vector.broadcast %101 : vector<16x1xf32> to vector<16x16xf32>
    %103 = arith.subf %99, %102 : vector<16x16xf32>
    %104 = math.exp %103 : vector<16x16xf32>
    %cst_37 = arith.constant dense<0.000000e+00> : vector<16xf32>
    %105 = vector.multi_reduction <add>, %104, %cst_37 [1] : vector<16x16xf32> to vector<16xf32>
    %106 = vector.shape_cast %105 : vector<16xf32> to vector<16x1xf32>
    %107 = vector.broadcast %106 : vector<16x1xf32> to vector<16x16xf32>
    %108 = arith.divf %104, %107 : vector<16x16xf32>
    %109 = vector.extract_strided_slice %94 {offsets = [0, 0], sizes = [16, 8], strides = [1, 1]} : vector<16x32xf32> to vector<16x8xf32>
    %cst_38 = arith.constant dense<0.000000e+00> : vector<16x8xf32>
    %110 = tpu.matmul %108, %109, %cst_38 {dimension_numbers = #tpu.dot_dimension_numbers<[1], [0], [0], [1], [0, 0, 1, 1], [], []>} : vector<16x16xf32>, vector<16x8xf32>, vector<16x8xf32> -> vector<16x8xf32>
    %111 = vector.extract_strided_slice %92 {offsets = [0, 8], sizes = [16, 8], strides = [1, 1]} : vector<16x32xf32> to vector<16x8xf32>
    %112 = vector.extract_strided_slice %93 {offsets = [0, 8], sizes = [16, 8], strides = [1, 1]} : vector<16x32xf32> to vector<16x8xf32>
    %cst_39 = arith.constant dense<0.000000e+00> : vector<16x16xf32>
    %113 = tpu.matmul %111, %112, %cst_39 {dimension_numbers = #tpu.dot_dimension_numbers<[1], [1], [0], [0], [0, 0, 1, 0], [], []>} : vector<16x8xf32>, vector<16x8xf32>, vector<16x16xf32> -> vector<16x16xf32>
    %cst_40 = arith.constant 1.000000e+00 : f32
    %114 = vector.broadcast %cst_40 : f32 to vector<16x16xf32>
    %115 = arith.mulf %113, %114 : vector<16x16xf32>
    %cst_41 = arith.constant dense<0xFF800000> : vector<16xf32>
    %116 = vector.multi_reduction <maximumf>, %115, %cst_41 [1] : vector<16x16xf32> to vector<16xf32>
    %117 = vector.shape_cast %116 : vector<16xf32> to vector<16x1xf32>
    %118 = vector.broadcast %117 : vector<16x1xf32> to vector<16x16xf32>
    %119 = arith.subf %115, %118 : vector<16x16xf32>
    %120 = math.exp %119 : vector<16x16xf32>
    %cst_42 = arith.constant dense<0.000000e+00> : vector<16xf32>
    %121 = vector.multi_reduction <add>, %120, %cst_42 [1] : vector<16x16xf32> to vector<16xf32>
    %122 = vector.shape_cast %121 : vector<16xf32> to vector<16x1xf32>
    %123 = vector.broadcast %122 : vector<16x1xf32> to vector<16x16xf32>
    %124 = arith.divf %120, %123 : vector<16x16xf32>
    %125 = vector.extract_strided_slice %94 {offsets = [0, 8], sizes = [16, 8], strides = [1, 1]} : vector<16x32xf32> to vector<16x8xf32>
    %cst_43 = arith.constant dense<0.000000e+00> : vector<16x8xf32>
    %126 = tpu.matmul %124, %125, %cst_43 {dimension_numbers = #tpu.dot_dimension_numbers<[1], [0], [0], [1], [0, 0, 1, 1], [], []>} : vector<16x16xf32>, vector<16x8xf32>, vector<16x8xf32> -> vector<16x8xf32>
    %127 = vector.extract_strided_slice %92 {offsets = [0, 16], sizes = [16, 8], strides = [1, 1]} : vector<16x32xf32> to vector<16x8xf32>
    %128 = vector.extract_strided_slice %93 {offsets = [0, 16], sizes = [16, 8], strides = [1, 1]} : vector<16x32xf32> to vector<16x8xf32>
    %cst_44 = arith.constant dense<0.000000e+00> : vector<16x16xf32>
    %129 = tpu.matmul %127, %128, %cst_44 {dimension_numbers = #tpu.dot_dimension_numbers<[1], [1], [0], [0], [0, 0, 1, 0], [], []>} : vector<16x8xf32>, vector<16x8xf32>, vector<16x16xf32> -> vector<16x16xf32>
    %cst_45 = arith.constant 1.000000e+00 : f32
    %130 = vector.broadcast %cst_45 : f32 to vector<16x16xf32>
    %131 = arith.mulf %129, %130 : vector<16x16xf32>
    %cst_46 = arith.constant dense<0xFF800000> : vector<16xf32>
    %132 = vector.multi_reduction <maximumf>, %131, %cst_46 [1] : vector<16x16xf32> to vector<16xf32>
    %133 = vector.shape_cast %132 : vector<16xf32> to vector<16x1xf32>
    %134 = vector.broadcast %133 : vector<16x1xf32> to vector<16x16xf32>
    %135 = arith.subf %131, %134 : vector<16x16xf32>
    %136 = math.exp %135 : vector<16x16xf32>
    %cst_47 = arith.constant dense<0.000000e+00> : vector<16xf32>
    %137 = vector.multi_reduction <add>, %136, %cst_47 [1] : vector<16x16xf32> to vector<16xf32>
    %138 = vector.shape_cast %137 : vector<16xf32> to vector<16x1xf32>
    %139 = vector.broadcast %138 : vector<16x1xf32> to vector<16x16xf32>
    %140 = arith.divf %136, %139 : vector<16x16xf32>
    %141 = vector.extract_strided_slice %94 {offsets = [0, 16], sizes = [16, 8], strides = [1, 1]} : vector<16x32xf32> to vector<16x8xf32>
    %cst_48 = arith.constant dense<0.000000e+00> : vector<16x8xf32>
    %142 = tpu.matmul %140, %141, %cst_48 {dimension_numbers = #tpu.dot_dimension_numbers<[1], [0], [0], [1], [0, 0, 1, 1], [], []>} : vector<16x16xf32>, vector<16x8xf32>, vector<16x8xf32> -> vector<16x8xf32>
    %143 = vector.extract_strided_slice %92 {offsets = [0, 24], sizes = [16, 8], strides = [1, 1]} : vector<16x32xf32> to vector<16x8xf32>
    %144 = vector.extract_strided_slice %93 {offsets = [0, 24], sizes = [16, 8], strides = [1, 1]} : vector<16x32xf32> to vector<16x8xf32>
    %cst_49 = arith.constant dense<0.000000e+00> : vector<16x16xf32>
    %145 = tpu.matmul %143, %144, %cst_49 {dimension_numbers = #tpu.dot_dimension_numbers<[1], [1], [0], [0], [0, 0, 1, 0], [], []>} : vector<16x8xf32>, vector<16x8xf32>, vector<16x16xf32> -> vector<16x16xf32>
    %cst_50 = arith.constant 1.000000e+00 : f32
    %146 = vector.broadcast %cst_50 : f32 to vector<16x16xf32>
    %147 = arith.mulf %145, %146 : vector<16x16xf32>
    %cst_51 = arith.constant dense<0xFF800000> : vector<16xf32>
    %148 = vector.multi_reduction <maximumf>, %147, %cst_51 [1] : vector<16x16xf32> to vector<16xf32>
    %149 = vector.shape_cast %148 : vector<16xf32> to vector<16x1xf32>
    %150 = vector.broadcast %149 : vector<16x1xf32> to vector<16x16xf32>
    %151 = arith.subf %147, %150 : vector<16x16xf32>
    %152 = math.exp %151 : vector<16x16xf32>
    %cst_52 = arith.constant dense<0.000000e+00> : vector<16xf32>
    %153 = vector.multi_reduction <add>, %152, %cst_52 [1] : vector<16x16xf32> to vector<16xf32>
    %154 = vector.shape_cast %153 : vector<16xf32> to vector<16x1xf32>
    %155 = vector.broadcast %154 : vector<16x1xf32> to vector<16x16xf32>
    %156 = arith.divf %152, %155 : vector<16x16xf32>
    %157 = vector.extract_strided_slice %94 {offsets = [0, 24], sizes = [16, 8], strides = [1, 1]} : vector<16x32xf32> to vector<16x8xf32>
    %cst_53 = arith.constant dense<0.000000e+00> : vector<16x8xf32>
    %158 = tpu.matmul %156, %157, %cst_53 {dimension_numbers = #tpu.dot_dimension_numbers<[1], [0], [0], [1], [0, 0, 1, 1], [], []>} : vector<16x16xf32>, vector<16x8xf32>, vector<16x8xf32> -> vector<16x8xf32>
    %159 = tpu.concatenate %110, %126, %142, %158 in 1 : vector<16x8xf32>, vector<16x8xf32>, vector<16x8xf32>, vector<16x8xf32> -> vector<16x32xf32>
    %160 = tpu.concatenate %91, %159 in 0 : vector<16x32xf32>, vector<16x32xf32> -> vector<32x32xf32>
    %cst_54 = arith.constant dense<0.000000e+00> : vector<32x32xf32>
    %161 = tpu.matmul %160, %16, %cst_54 {dimension_numbers = #tpu.dot_dimension_numbers<[1], [0], [0], [1], [0, 0, 1, 1], [], []>} : vector<32x32xf32>, vector<32x32xf32>, vector<32x32xf32> -> vector<32x32xf32>
    %162 = vector.broadcast %17 : vector<1x32xf32> to vector<32x32xf32>
    %163 = arith.addf %161, %162 : vector<32x32xf32>
    %164 = arith.addf %0, %163 : vector<32x32xf32>
    %c0_55 = arith.constant 0 : index
    %c0_56 = arith.constant 0 : index
    %165 = vector.load %arg7[%c0_55, %c0_56] : memref<1x32xf32, #tpu.memory_space<vmem>>, vector<1x32xf32>
    %166 = arith.mulf %164, %164 : vector<32x32xf32>
    %cst_57 = arith.constant dense<0.000000e+00> : vector<32xf32>
    %167 = vector.multi_reduction <add>, %166, %cst_57 [1] : vector<32x32xf32> to vector<32xf32>
    %168 = vector.shape_cast %167 : vector<32xf32> to vector<32x1xf32>
    %cst_58 = arith.constant 3.200000e+01 : f32
    %169 = vector.broadcast %cst_58 : f32 to vector<32x1xf32>
    %170 = arith.divf %168, %169 : vector<32x1xf32>
    %cst_59 = arith.constant 9.99999997E-7 : f32
    %171 = vector.broadcast %cst_59 : f32 to vector<32x1xf32>
    %172 = arith.addf %170, %171 : vector<32x1xf32>
    %173 = math.rsqrt %172 : vector<32x1xf32>
    %174 = vector.broadcast %173 : vector<32x1xf32> to vector<32x32xf32>
    %175 = arith.mulf %164, %174 : vector<32x32xf32>
    %176 = vector.broadcast %165 : vector<1x32xf32> to vector<32x32xf32>
    %177 = arith.mulf %175, %176 : vector<32x32xf32>
    %c0_60 = arith.constant 0 : index
    %c0_61 = arith.constant 0 : index
    %178 = vector.load %arg8[%c0_60, %c0_61] : memref<32x128xf32, #tpu.memory_space<vmem>>, vector<32x128xf32>
    %c0_62 = arith.constant 0 : index
    %c0_63 = arith.constant 0 : index
    %179 = vector.load %arg9[%c0_62, %c0_63] : memref<64x32xf32, #tpu.memory_space<vmem>>, vector<64x32xf32>
    %cst_64 = arith.constant dense<0.000000e+00> : vector<32x128xf32>
    %180 = tpu.matmul %177, %178, %cst_64 {dimension_numbers = #tpu.dot_dimension_numbers<[1], [0], [0], [1], [0, 0, 1, 1], [], []>} : vector<32x32xf32>, vector<32x128xf32>, vector<32x128xf32> -> vector<32x128xf32>
    %181 = vector.extract_strided_slice %180 {offsets = [0, 0], sizes = [32, 64], strides = [1, 1]} : vector<32x128xf32> to vector<32x64xf32>
    %182 = arith.mulf %181, %181 : vector<32x64xf32>
    %183 = arith.mulf %181, %182 : vector<32x64xf32>
    %cst_65 = arith.constant 4.471500e-02 : f32
    %184 = vector.broadcast %cst_65 : f32 to vector<32x64xf32>
    %185 = arith.mulf %184, %183 : vector<32x64xf32>
    %186 = arith.addf %181, %185 : vector<32x64xf32>
    %cst_66 = arith.constant 0.797884583 : f32
    %187 = vector.broadcast %cst_66 : f32 to vector<32x64xf32>
    %188 = arith.mulf %187, %186 : vector<32x64xf32>
    %189 = math.tanh %188 : vector<32x64xf32>
    %cst_67 = arith.constant 1.000000e+00 : f32
    %190 = vector.broadcast %cst_67 : f32 to vector<32x64xf32>
    %191 = arith.addf %190, %189 : vector<32x64xf32>
    %cst_68 = arith.constant 5.000000e-01 : f32
    %192 = vector.broadcast %cst_68 : f32 to vector<32x64xf32>
    %193 = arith.mulf %192, %191 : vector<32x64xf32>
    %194 = arith.mulf %181, %193 : vector<32x64xf32>
    %195 = vector.extract_strided_slice %180 {offsets = [0, 64], sizes = [32, 64], strides = [1, 1]} : vector<32x128xf32> to vector<32x64xf32>
    %196 = arith.mulf %194, %195 : vector<32x64xf32>
    %cst_69 = arith.constant dense<0.000000e+00> : vector<32x32xf32>
    %197 = tpu.matmul %196, %179, %cst_69 {dimension_numbers = #tpu.dot_dimension_numbers<[1], [0], [0], [1], [0, 0, 1, 1], [], []>} : vector<32x64xf32>, vector<64x32xf32>, vector<32x32xf32> -> vector<32x32xf32>
    %198 = arith.addf %164, %197 : vector<32x32xf32>
    %c0_70 = arith.constant 0 : index
    %c0_71 = arith.constant 0 : index
    %199 = vector.load %arg10[%c0_70, %c0_71] : memref<1x32xf32, #tpu.memory_space<vmem>>, vector<1x32xf32>
    %200 = arith.mulf %198, %198 : vector<32x32xf32>
    %cst_72 = arith.constant dense<0.000000e+00> : vector<32xf32>
    %201 = vector.multi_reduction <add>, %200, %cst_72 [1] : vector<32x32xf32> to vector<32xf32>
    %202 = vector.shape_cast %201 : vector<32xf32> to vector<32x1xf32>
    %cst_73 = arith.constant 3.200000e+01 : f32
    %203 = vector.broadcast %cst_73 : f32 to vector<32x1xf32>
    %204 = arith.divf %202, %203 : vector<32x1xf32>
    %cst_74 = arith.constant 9.99999997E-7 : f32
    %205 = vector.broadcast %cst_74 : f32 to vector<32x1xf32>
    %206 = arith.addf %204, %205 : vector<32x1xf32>
    %207 = math.rsqrt %206 : vector<32x1xf32>
    %208 = vector.broadcast %207 : vector<32x1xf32> to vector<32x32xf32>
    %209 = arith.mulf %198, %208 : vector<32x32xf32>
    %210 = vector.broadcast %199 : vector<1x32xf32> to vector<32x32xf32>
    %211 = arith.mulf %209, %210 : vector<32x32xf32>
    %c0_75 = arith.constant 0 : index
    %c0_76 = arith.constant 0 : index
    %212 = vector.load %arg1[%c0_75, %c0_76] : memref<8x32xf32, #tpu.memory_space<vmem>>, vector<8x32xf32>
    %c0_77 = arith.constant 0 : index
    %c0_78 = arith.constant 0 : index
    %213 = vector.load %arg11[%c0_77, %c0_78] : memref<1x32xf32, #tpu.memory_space<vmem>>, vector<1x32xf32>
    %214 = arith.mulf %212, %212 : vector<8x32xf32>
    %cst_79 = arith.constant dense<0.000000e+00> : vector<8xf32>
    %215 = vector.multi_reduction <add>, %214, %cst_79 [1] : vector<8x32xf32> to vector<8xf32>
    %216 = vector.shape_cast %215 : vector<8xf32> to vector<8x1xf32>
    %cst_80 = arith.constant 3.200000e+01 : f32
    %217 = vector.broadcast %cst_80 : f32 to vector<8x1xf32>
    %218 = arith.divf %216, %217 : vector<8x1xf32>
    %cst_81 = arith.constant 9.99999997E-7 : f32
    %219 = vector.broadcast %cst_81 : f32 to vector<8x1xf32>
    %220 = arith.addf %218, %219 : vector<8x1xf32>
    %221 = math.rsqrt %220 : vector<8x1xf32>
    %222 = vector.broadcast %221 : vector<8x1xf32> to vector<8x32xf32>
    %223 = arith.mulf %212, %222 : vector<8x32xf32>
    %224 = vector.broadcast %213 : vector<1x32xf32> to vector<8x32xf32>
    %225 = arith.mulf %223, %224 : vector<8x32xf32>
    %c0_82 = arith.constant 0 : index
    %c0_83 = arith.constant 0 : index
    %226 = vector.load %arg12[%c0_82, %c0_83] : memref<32x96xf32, #tpu.memory_space<vmem>>, vector<32x96xf32>
    %c0_84 = arith.constant 0 : index
    %c0_85 = arith.constant 0 : index
    %227 = vector.load %arg13[%c0_84, %c0_85] : memref<1x96xf32, #tpu.memory_space<vmem>>, vector<1x96xf32>
    %c0_86 = arith.constant 0 : index
    %c0_87 = arith.constant 0 : index
    %228 = vector.load %arg14[%c0_86, %c0_87] : memref<32x32xf32, #tpu.memory_space<vmem>>, vector<32x32xf32>
    %c0_88 = arith.constant 0 : index
    %c0_89 = arith.constant 0 : index
    %229 = vector.load %arg15[%c0_88, %c0_89] : memref<1x32xf32, #tpu.memory_space<vmem>>, vector<1x32xf32>
    %cst_90 = arith.constant dense<0.000000e+00> : vector<8x96xf32>
    %230 = tpu.matmul %225, %226, %cst_90 {dimension_numbers = #tpu.dot_dimension_numbers<[1], [0], [0], [1], [0, 0, 1, 1], [], []>} : vector<8x32xf32>, vector<32x96xf32>, vector<8x96xf32> -> vector<8x96xf32>
    %231 = vector.broadcast %227 : vector<1x96xf32> to vector<8x96xf32>
    %232 = arith.addf %230, %231 : vector<8x96xf32>
    %233 = vector.extract_strided_slice %232 {offsets = [0, 0], sizes = [8, 32], strides = [1, 1]} : vector<8x96xf32> to vector<8x32xf32>
    %234 = vector.extract_strided_slice %232 {offsets = [0, 32], sizes = [8, 32], strides = [1, 1]} : vector<8x96xf32> to vector<8x32xf32>
    %235 = vector.extract_strided_slice %232 {offsets = [0, 64], sizes = [8, 32], strides = [1, 1]} : vector<8x96xf32> to vector<8x32xf32>
    %236 = tpu.iota {dimensions = array<i32: 0>} : vector<4x4xi32>
    %237 = tpu.iota {dimensions = array<i32: 1>} : vector<4x4xi32>
    %238 = arith.cmpi sle, %237, %236 : vector<4x4xi32>
    %cst_91 = arith.constant 0.000000e+00 : f32
    %cst_92 = arith.constant -1.000000e+30 : f32
    %239 = vector.broadcast %cst_91 : f32 to vector<4x4xf32>
    %240 = vector.broadcast %cst_92 : f32 to vector<4x4xf32>
    %241 = arith.select %238, %239, %240 : vector<4x4xi1>, vector<4x4xf32>
    %242 = vector.extract_strided_slice %233 {offsets = [0, 0], sizes = [4, 32], strides = [1, 1]} : vector<8x32xf32> to vector<4x32xf32>
    %243 = vector.extract_strided_slice %234 {offsets = [0, 0], sizes = [4, 32], strides = [1, 1]} : vector<8x32xf32> to vector<4x32xf32>
    %244 = vector.extract_strided_slice %235 {offsets = [0, 0], sizes = [4, 32], strides = [1, 1]} : vector<8x32xf32> to vector<4x32xf32>
    %245 = vector.extract_strided_slice %242 {offsets = [0, 0], sizes = [4, 8], strides = [1, 1]} : vector<4x32xf32> to vector<4x8xf32>
    %246 = vector.extract_strided_slice %243 {offsets = [0, 0], sizes = [4, 8], strides = [1, 1]} : vector<4x32xf32> to vector<4x8xf32>
    %cst_93 = arith.constant dense<0.000000e+00> : vector<4x4xf32>
    %247 = tpu.matmul %245, %246, %cst_93 {dimension_numbers = #tpu.dot_dimension_numbers<[1], [1], [0], [0], [0, 0, 1, 0], [], []>} : vector<4x8xf32>, vector<4x8xf32>, vector<4x4xf32> -> vector<4x4xf32>
    %cst_94 = arith.constant 1.000000e+00 : f32
    %248 = vector.broadcast %cst_94 : f32 to vector<4x4xf32>
    %249 = arith.mulf %247, %248 : vector<4x4xf32>
    %250 = arith.addf %249, %241 : vector<4x4xf32>
    %cst_95 = arith.constant dense<0xFF800000> : vector<4xf32>
    %251 = vector.multi_reduction <maximumf>, %250, %cst_95 [1] : vector<4x4xf32> to vector<4xf32>
    %252 = vector.shape_cast %251 : vector<4xf32> to vector<4x1xf32>
    %253 = vector.broadcast %252 : vector<4x1xf32> to vector<4x4xf32>
    %254 = arith.subf %250, %253 : vector<4x4xf32>
    %255 = math.exp %254 : vector<4x4xf32>
    %cst_96 = arith.constant dense<0.000000e+00> : vector<4xf32>
    %256 = vector.multi_reduction <add>, %255, %cst_96 [1] : vector<4x4xf32> to vector<4xf32>
    %257 = vector.shape_cast %256 : vector<4xf32> to vector<4x1xf32>
    %258 = vector.broadcast %257 : vector<4x1xf32> to vector<4x4xf32>
    %259 = arith.divf %255, %258 : vector<4x4xf32>
    %260 = vector.extract_strided_slice %244 {offsets = [0, 0], sizes = [4, 8], strides = [1, 1]} : vector<4x32xf32> to vector<4x8xf32>
    %cst_97 = arith.constant dense<0.000000e+00> : vector<4x8xf32>
    %261 = tpu.matmul %259, %260, %cst_97 {dimension_numbers = #tpu.dot_dimension_numbers<[1], [0], [0], [1], [0, 0, 1, 1], [], []>} : vector<4x4xf32>, vector<4x8xf32>, vector<4x8xf32> -> vector<4x8xf32>
    %262 = vector.extract_strided_slice %242 {offsets = [0, 8], sizes = [4, 8], strides = [1, 1]} : vector<4x32xf32> to vector<4x8xf32>
    %263 = vector.extract_strided_slice %243 {offsets = [0, 8], sizes = [4, 8], strides = [1, 1]} : vector<4x32xf32> to vector<4x8xf32>
    %cst_98 = arith.constant dense<0.000000e+00> : vector<4x4xf32>
    %264 = tpu.matmul %262, %263, %cst_98 {dimension_numbers = #tpu.dot_dimension_numbers<[1], [1], [0], [0], [0, 0, 1, 0], [], []>} : vector<4x8xf32>, vector<4x8xf32>, vector<4x4xf32> -> vector<4x4xf32>
    %cst_99 = arith.constant 1.000000e+00 : f32
    %265 = vector.broadcast %cst_99 : f32 to vector<4x4xf32>
    %266 = arith.mulf %264, %265 : vector<4x4xf32>
    %267 = arith.addf %266, %241 : vector<4x4xf32>
    %cst_100 = arith.constant dense<0xFF800000> : vector<4xf32>
    %268 = vector.multi_reduction <maximumf>, %267, %cst_100 [1] : vector<4x4xf32> to vector<4xf32>
    %269 = vector.shape_cast %268 : vector<4xf32> to vector<4x1xf32>
    %270 = vector.broadcast %269 : vector<4x1xf32> to vector<4x4xf32>
    %271 = arith.subf %267, %270 : vector<4x4xf32>
    %272 = math.exp %271 : vector<4x4xf32>
    %cst_101 = arith.constant dense<0.000000e+00> : vector<4xf32>
    %273 = vector.multi_reduction <add>, %272, %cst_101 [1] : vector<4x4xf32> to vector<4xf32>
    %274 = vector.shape_cast %273 : vector<4xf32> to vector<4x1xf32>
    %275 = vector.broadcast %274 : vector<4x1xf32> to vector<4x4xf32>
    %276 = arith.divf %272, %275 : vector<4x4xf32>
    %277 = vector.extract_strided_slice %244 {offsets = [0, 8], sizes = [4, 8], strides = [1, 1]} : vector<4x32xf32> to vector<4x8xf32>
    %cst_102 = arith.constant dense<0.000000e+00> : vector<4x8xf32>
    %278 = tpu.matmul %276, %277, %cst_102 {dimension_numbers = #tpu.dot_dimension_numbers<[1], [0], [0], [1], [0, 0, 1, 1], [], []>} : vector<4x4xf32>, vector<4x8xf32>, vector<4x8xf32> -> vector<4x8xf32>
    %279 = vector.extract_strided_slice %242 {offsets = [0, 16], sizes = [4, 8], strides = [1, 1]} : vector<4x32xf32> to vector<4x8xf32>
    %280 = vector.extract_strided_slice %243 {offsets = [0, 16], sizes = [4, 8], strides = [1, 1]} : vector<4x32xf32> to vector<4x8xf32>
    %cst_103 = arith.constant dense<0.000000e+00> : vector<4x4xf32>
    %281 = tpu.matmul %279, %280, %cst_103 {dimension_numbers = #tpu.dot_dimension_numbers<[1], [1], [0], [0], [0, 0, 1, 0], [], []>} : vector<4x8xf32>, vector<4x8xf32>, vector<4x4xf32> -> vector<4x4xf32>
    %cst_104 = arith.constant 1.000000e+00 : f32
    %282 = vector.broadcast %cst_104 : f32 to vector<4x4xf32>
    %283 = arith.mulf %281, %282 : vector<4x4xf32>
    %284 = arith.addf %283, %241 : vector<4x4xf32>
    %cst_105 = arith.constant dense<0xFF800000> : vector<4xf32>
    %285 = vector.multi_reduction <maximumf>, %284, %cst_105 [1] : vector<4x4xf32> to vector<4xf32>
    %286 = vector.shape_cast %285 : vector<4xf32> to vector<4x1xf32>
    %287 = vector.broadcast %286 : vector<4x1xf32> to vector<4x4xf32>
    %288 = arith.subf %284, %287 : vector<4x4xf32>
    %289 = math.exp %288 : vector<4x4xf32>
    %cst_106 = arith.constant dense<0.000000e+00> : vector<4xf32>
    %290 = vector.multi_reduction <add>, %289, %cst_106 [1] : vector<4x4xf32> to vector<4xf32>
    %291 = vector.shape_cast %290 : vector<4xf32> to vector<4x1xf32>
    %292 = vector.broadcast %291 : vector<4x1xf32> to vector<4x4xf32>
    %293 = arith.divf %289, %292 : vector<4x4xf32>
    %294 = vector.extract_strided_slice %244 {offsets = [0, 16], sizes = [4, 8], strides = [1, 1]} : vector<4x32xf32> to vector<4x8xf32>
    %cst_107 = arith.constant dense<0.000000e+00> : vector<4x8xf32>
    %295 = tpu.matmul %293, %294, %cst_107 {dimension_numbers = #tpu.dot_dimension_numbers<[1], [0], [0], [1], [0, 0, 1, 1], [], []>} : vector<4x4xf32>, vector<4x8xf32>, vector<4x8xf32> -> vector<4x8xf32>
    %296 = vector.extract_strided_slice %242 {offsets = [0, 24], sizes = [4, 8], strides = [1, 1]} : vector<4x32xf32> to vector<4x8xf32>
    %297 = vector.extract_strided_slice %243 {offsets = [0, 24], sizes = [4, 8], strides = [1, 1]} : vector<4x32xf32> to vector<4x8xf32>
    %cst_108 = arith.constant dense<0.000000e+00> : vector<4x4xf32>
    %298 = tpu.matmul %296, %297, %cst_108 {dimension_numbers = #tpu.dot_dimension_numbers<[1], [1], [0], [0], [0, 0, 1, 0], [], []>} : vector<4x8xf32>, vector<4x8xf32>, vector<4x4xf32> -> vector<4x4xf32>
    %cst_109 = arith.constant 1.000000e+00 : f32
    %299 = vector.broadcast %cst_109 : f32 to vector<4x4xf32>
    %300 = arith.mulf %298, %299 : vector<4x4xf32>
    %301 = arith.addf %300, %241 : vector<4x4xf32>
    %cst_110 = arith.constant dense<0xFF800000> : vector<4xf32>
    %302 = vector.multi_reduction <maximumf>, %301, %cst_110 [1] : vector<4x4xf32> to vector<4xf32>
    %303 = vector.shape_cast %302 : vector<4xf32> to vector<4x1xf32>
    %304 = vector.broadcast %303 : vector<4x1xf32> to vector<4x4xf32>
    %305 = arith.subf %301, %304 : vector<4x4xf32>
    %306 = math.exp %305 : vector<4x4xf32>
    %cst_111 = arith.constant dense<0.000000e+00> : vector<4xf32>
    %307 = vector.multi_reduction <add>, %306, %cst_111 [1] : vector<4x4xf32> to vector<4xf32>
    %308 = vector.shape_cast %307 : vector<4xf32> to vector<4x1xf32>
    %309 = vector.broadcast %308 : vector<4x1xf32> to vector<4x4xf32>
    %310 = arith.divf %306, %309 : vector<4x4xf32>
    %311 = vector.extract_strided_slice %244 {offsets = [0, 24], sizes = [4, 8], strides = [1, 1]} : vector<4x32xf32> to vector<4x8xf32>
    %cst_112 = arith.constant dense<0.000000e+00> : vector<4x8xf32>
    %312 = tpu.matmul %310, %311, %cst_112 {dimension_numbers = #tpu.dot_dimension_numbers<[1], [0], [0], [1], [0, 0, 1, 1], [], []>} : vector<4x4xf32>, vector<4x8xf32>, vector<4x8xf32> -> vector<4x8xf32>
    %313 = tpu.concatenate %261, %278, %295, %312 in 1 : vector<4x8xf32>, vector<4x8xf32>, vector<4x8xf32>, vector<4x8xf32> -> vector<4x32xf32>
    %314 = vector.extract_strided_slice %233 {offsets = [4, 0], sizes = [4, 32], strides = [1, 1]} : vector<8x32xf32> to vector<4x32xf32>
    %315 = vector.extract_strided_slice %234 {offsets = [4, 0], sizes = [4, 32], strides = [1, 1]} : vector<8x32xf32> to vector<4x32xf32>
    %316 = vector.extract_strided_slice %235 {offsets = [4, 0], sizes = [4, 32], strides = [1, 1]} : vector<8x32xf32> to vector<4x32xf32>
    %317 = vector.extract_strided_slice %314 {offsets = [0, 0], sizes = [4, 8], strides = [1, 1]} : vector<4x32xf32> to vector<4x8xf32>
    %318 = vector.extract_strided_slice %315 {offsets = [0, 0], sizes = [4, 8], strides = [1, 1]} : vector<4x32xf32> to vector<4x8xf32>
    %cst_113 = arith.constant dense<0.000000e+00> : vector<4x4xf32>
    %319 = tpu.matmul %317, %318, %cst_113 {dimension_numbers = #tpu.dot_dimension_numbers<[1], [1], [0], [0], [0, 0, 1, 0], [], []>} : vector<4x8xf32>, vector<4x8xf32>, vector<4x4xf32> -> vector<4x4xf32>
    %cst_114 = arith.constant 1.000000e+00 : f32
    %320 = vector.broadcast %cst_114 : f32 to vector<4x4xf32>
    %321 = arith.mulf %319, %320 : vector<4x4xf32>
    %322 = arith.addf %321, %241 : vector<4x4xf32>
    %cst_115 = arith.constant dense<0xFF800000> : vector<4xf32>
    %323 = vector.multi_reduction <maximumf>, %322, %cst_115 [1] : vector<4x4xf32> to vector<4xf32>
    %324 = vector.shape_cast %323 : vector<4xf32> to vector<4x1xf32>
    %325 = vector.broadcast %324 : vector<4x1xf32> to vector<4x4xf32>
    %326 = arith.subf %322, %325 : vector<4x4xf32>
    %327 = math.exp %326 : vector<4x4xf32>
    %cst_116 = arith.constant dense<0.000000e+00> : vector<4xf32>
    %328 = vector.multi_reduction <add>, %327, %cst_116 [1] : vector<4x4xf32> to vector<4xf32>
    %329 = vector.shape_cast %328 : vector<4xf32> to vector<4x1xf32>
    %330 = vector.broadcast %329 : vector<4x1xf32> to vector<4x4xf32>
    %331 = arith.divf %327, %330 : vector<4x4xf32>
    %332 = vector.extract_strided_slice %316 {offsets = [0, 0], sizes = [4, 8], strides = [1, 1]} : vector<4x32xf32> to vector<4x8xf32>
    %cst_117 = arith.constant dense<0.000000e+00> : vector<4x8xf32>
    %333 = tpu.matmul %331, %332, %cst_117 {dimension_numbers = #tpu.dot_dimension_numbers<[1], [0], [0], [1], [0, 0, 1, 1], [], []>} : vector<4x4xf32>, vector<4x8xf32>, vector<4x8xf32> -> vector<4x8xf32>
    %334 = vector.extract_strided_slice %314 {offsets = [0, 8], sizes = [4, 8], strides = [1, 1]} : vector<4x32xf32> to vector<4x8xf32>
    %335 = vector.extract_strided_slice %315 {offsets = [0, 8], sizes = [4, 8], strides = [1, 1]} : vector<4x32xf32> to vector<4x8xf32>
    %cst_118 = arith.constant dense<0.000000e+00> : vector<4x4xf32>
    %336 = tpu.matmul %334, %335, %cst_118 {dimension_numbers = #tpu.dot_dimension_numbers<[1], [1], [0], [0], [0, 0, 1, 0], [], []>} : vector<4x8xf32>, vector<4x8xf32>, vector<4x4xf32> -> vector<4x4xf32>
    %cst_119 = arith.constant 1.000000e+00 : f32
    %337 = vector.broadcast %cst_119 : f32 to vector<4x4xf32>
    %338 = arith.mulf %336, %337 : vector<4x4xf32>
    %339 = arith.addf %338, %241 : vector<4x4xf32>
    %cst_120 = arith.constant dense<0xFF800000> : vector<4xf32>
    %340 = vector.multi_reduction <maximumf>, %339, %cst_120 [1] : vector<4x4xf32> to vector<4xf32>
    %341 = vector.shape_cast %340 : vector<4xf32> to vector<4x1xf32>
    %342 = vector.broadcast %341 : vector<4x1xf32> to vector<4x4xf32>
    %343 = arith.subf %339, %342 : vector<4x4xf32>
    %344 = math.exp %343 : vector<4x4xf32>
    %cst_121 = arith.constant dense<0.000000e+00> : vector<4xf32>
    %345 = vector.multi_reduction <add>, %344, %cst_121 [1] : vector<4x4xf32> to vector<4xf32>
    %346 = vector.shape_cast %345 : vector<4xf32> to vector<4x1xf32>
    %347 = vector.broadcast %346 : vector<4x1xf32> to vector<4x4xf32>
    %348 = arith.divf %344, %347 : vector<4x4xf32>
    %349 = vector.extract_strided_slice %316 {offsets = [0, 8], sizes = [4, 8], strides = [1, 1]} : vector<4x32xf32> to vector<4x8xf32>
    %cst_122 = arith.constant dense<0.000000e+00> : vector<4x8xf32>
    %350 = tpu.matmul %348, %349, %cst_122 {dimension_numbers = #tpu.dot_dimension_numbers<[1], [0], [0], [1], [0, 0, 1, 1], [], []>} : vector<4x4xf32>, vector<4x8xf32>, vector<4x8xf32> -> vector<4x8xf32>
    %351 = vector.extract_strided_slice %314 {offsets = [0, 16], sizes = [4, 8], strides = [1, 1]} : vector<4x32xf32> to vector<4x8xf32>
    %352 = vector.extract_strided_slice %315 {offsets = [0, 16], sizes = [4, 8], strides = [1, 1]} : vector<4x32xf32> to vector<4x8xf32>
    %cst_123 = arith.constant dense<0.000000e+00> : vector<4x4xf32>
    %353 = tpu.matmul %351, %352, %cst_123 {dimension_numbers = #tpu.dot_dimension_numbers<[1], [1], [0], [0], [0, 0, 1, 0], [], []>} : vector<4x8xf32>, vector<4x8xf32>, vector<4x4xf32> -> vector<4x4xf32>
    %cst_124 = arith.constant 1.000000e+00 : f32
    %354 = vector.broadcast %cst_124 : f32 to vector<4x4xf32>
    %355 = arith.mulf %353, %354 : vector<4x4xf32>
    %356 = arith.addf %355, %241 : vector<4x4xf32>
    %cst_125 = arith.constant dense<0xFF800000> : vector<4xf32>
    %357 = vector.multi_reduction <maximumf>, %356, %cst_125 [1] : vector<4x4xf32> to vector<4xf32>
    %358 = vector.shape_cast %357 : vector<4xf32> to vector<4x1xf32>
    %359 = vector.broadcast %358 : vector<4x1xf32> to vector<4x4xf32>
    %360 = arith.subf %356, %359 : vector<4x4xf32>
    %361 = math.exp %360 : vector<4x4xf32>
    %cst_126 = arith.constant dense<0.000000e+00> : vector<4xf32>
    %362 = vector.multi_reduction <add>, %361, %cst_126 [1] : vector<4x4xf32> to vector<4xf32>
    %363 = vector.shape_cast %362 : vector<4xf32> to vector<4x1xf32>
    %364 = vector.broadcast %363 : vector<4x1xf32> to vector<4x4xf32>
    %365 = arith.divf %361, %364 : vector<4x4xf32>
    %366 = vector.extract_strided_slice %316 {offsets = [0, 16], sizes = [4, 8], strides = [1, 1]} : vector<4x32xf32> to vector<4x8xf32>
    %cst_127 = arith.constant dense<0.000000e+00> : vector<4x8xf32>
    %367 = tpu.matmul %365, %366, %cst_127 {dimension_numbers = #tpu.dot_dimension_numbers<[1], [0], [0], [1], [0, 0, 1, 1], [], []>} : vector<4x4xf32>, vector<4x8xf32>, vector<4x8xf32> -> vector<4x8xf32>
    %368 = vector.extract_strided_slice %314 {offsets = [0, 24], sizes = [4, 8], strides = [1, 1]} : vector<4x32xf32> to vector<4x8xf32>
    %369 = vector.extract_strided_slice %315 {offsets = [0, 24], sizes = [4, 8], strides = [1, 1]} : vector<4x32xf32> to vector<4x8xf32>
    %cst_128 = arith.constant dense<0.000000e+00> : vector<4x4xf32>
    %370 = tpu.matmul %368, %369, %cst_128 {dimension_numbers = #tpu.dot_dimension_numbers<[1], [1], [0], [0], [0, 0, 1, 0], [], []>} : vector<4x8xf32>, vector<4x8xf32>, vector<4x4xf32> -> vector<4x4xf32>
    %cst_129 = arith.constant 1.000000e+00 : f32
    %371 = vector.broadcast %cst_129 : f32 to vector<4x4xf32>
    %372 = arith.mulf %370, %371 : vector<4x4xf32>
    %373 = arith.addf %372, %241 : vector<4x4xf32>
    %cst_130 = arith.constant dense<0xFF800000> : vector<4xf32>
    %374 = vector.multi_reduction <maximumf>, %373, %cst_130 [1] : vector<4x4xf32> to vector<4xf32>
    %375 = vector.shape_cast %374 : vector<4xf32> to vector<4x1xf32>
    %376 = vector.broadcast %375 : vector<4x1xf32> to vector<4x4xf32>
    %377 = arith.subf %373, %376 : vector<4x4xf32>
    %378 = math.exp %377 : vector<4x4xf32>
    %cst_131 = arith.constant dense<0.000000e+00> : vector<4xf32>
    %379 = vector.multi_reduction <add>, %378, %cst_131 [1] : vector<4x4xf32> to vector<4xf32>
    %380 = vector.shape_cast %379 : vector<4xf32> to vector<4x1xf32>
    %381 = vector.broadcast %380 : vector<4x1xf32> to vector<4x4xf32>
    %382 = arith.divf %378, %381 : vector<4x4xf32>
    %383 = vector.extract_strided_slice %316 {offsets = [0, 24], sizes = [4, 8], strides = [1, 1]} : vector<4x32xf32> to vector<4x8xf32>
    %cst_132 = arith.constant dense<0.000000e+00> : vector<4x8xf32>
    %384 = tpu.matmul %382, %383, %cst_132 {dimension_numbers = #tpu.dot_dimension_numbers<[1], [0], [0], [1], [0, 0, 1, 1], [], []>} : vector<4x4xf32>, vector<4x8xf32>, vector<4x8xf32> -> vector<4x8xf32>
    %385 = tpu.concatenate %333, %350, %367, %384 in 1 : vector<4x8xf32>, vector<4x8xf32>, vector<4x8xf32>, vector<4x8xf32> -> vector<4x32xf32>
    %386 = tpu.concatenate %313, %385 in 0 : vector<4x32xf32>, vector<4x32xf32> -> vector<8x32xf32>
    %cst_133 = arith.constant dense<0.000000e+00> : vector<8x32xf32>
    %387 = tpu.matmul %386, %228, %cst_133 {dimension_numbers = #tpu.dot_dimension_numbers<[1], [0], [0], [1], [0, 0, 1, 1], [], []>} : vector<8x32xf32>, vector<32x32xf32>, vector<8x32xf32> -> vector<8x32xf32>
    %388 = vector.broadcast %229 : vector<1x32xf32> to vector<8x32xf32>
    %389 = arith.addf %387, %388 : vector<8x32xf32>
    %390 = arith.addf %212, %389 : vector<8x32xf32>
    %c0_134 = arith.constant 0 : index
    %c0_135 = arith.constant 0 : index
    %391 = vector.load %arg16[%c0_134, %c0_135] : memref<1x32xf32, #tpu.memory_space<vmem>>, vector<1x32xf32>
    %392 = arith.mulf %390, %390 : vector<8x32xf32>
    %cst_136 = arith.constant dense<0.000000e+00> : vector<8xf32>
    %393 = vector.multi_reduction <add>, %392, %cst_136 [1] : vector<8x32xf32> to vector<8xf32>
    %394 = vector.shape_cast %393 : vector<8xf32> to vector<8x1xf32>
    %cst_137 = arith.constant 3.200000e+01 : f32
    %395 = vector.broadcast %cst_137 : f32 to vector<8x1xf32>
    %396 = arith.divf %394, %395 : vector<8x1xf32>
    %cst_138 = arith.constant 9.99999997E-7 : f32
    %397 = vector.broadcast %cst_138 : f32 to vector<8x1xf32>
    %398 = arith.addf %396, %397 : vector<8x1xf32>
    %399 = math.rsqrt %398 : vector<8x1xf32>
    %400 = vector.broadcast %399 : vector<8x1xf32> to vector<8x32xf32>
    %401 = arith.mulf %390, %400 : vector<8x32xf32>
    %402 = vector.broadcast %391 : vector<1x32xf32> to vector<8x32xf32>
    %403 = arith.mulf %401, %402 : vector<8x32xf32>
    %c0_139 = arith.constant 0 : index
    %c0_140 = arith.constant 0 : index
    %404 = vector.load %arg17[%c0_139, %c0_140] : memref<32x32xf32, #tpu.memory_space<vmem>>, vector<32x32xf32>
    %c0_141 = arith.constant 0 : index
    %c0_142 = arith.constant 0 : index
    %405 = vector.load %arg18[%c0_141, %c0_142] : memref<1x32xf32, #tpu.memory_space<vmem>>, vector<1x32xf32>
    %c0_143 = arith.constant 0 : index
    %c0_144 = arith.constant 0 : index
    %406 = vector.load %arg19[%c0_143, %c0_144] : memref<32x64xf32, #tpu.memory_space<vmem>>, vector<32x64xf32>
    %c0_145 = arith.constant 0 : index
    %c0_146 = arith.constant 0 : index
    %407 = vector.load %arg20[%c0_145, %c0_146] : memref<1x64xf32, #tpu.memory_space<vmem>>, vector<1x64xf32>
    %c0_147 = arith.constant 0 : index
    %c0_148 = arith.constant 0 : index
    %408 = vector.load %arg21[%c0_147, %c0_148] : memref<32x32xf32, #tpu.memory_space<vmem>>, vector<32x32xf32>
    %c0_149 = arith.constant 0 : index
    %c0_150 = arith.constant 0 : index
    %409 = vector.load %arg22[%c0_149, %c0_150] : memref<1x32xf32, #tpu.memory_space<vmem>>, vector<1x32xf32>
    %cst_151 = arith.constant dense<0.000000e+00> : vector<8x32xf32>
    %410 = tpu.matmul %403, %404, %cst_151 {dimension_numbers = #tpu.dot_dimension_numbers<[1], [0], [0], [1], [0, 0, 1, 1], [], []>} : vector<8x32xf32>, vector<32x32xf32>, vector<8x32xf32> -> vector<8x32xf32>
    %411 = vector.broadcast %405 : vector<1x32xf32> to vector<8x32xf32>
    %412 = arith.addf %410, %411 : vector<8x32xf32>
    %cst_152 = arith.constant dense<0.000000e+00> : vector<32x64xf32>
    %413 = tpu.matmul %211, %406, %cst_152 {dimension_numbers = #tpu.dot_dimension_numbers<[1], [0], [0], [1], [0, 0, 1, 1], [], []>} : vector<32x32xf32>, vector<32x64xf32>, vector<32x64xf32> -> vector<32x64xf32>
    %414 = vector.broadcast %407 : vector<1x64xf32> to vector<32x64xf32>
    %415 = arith.addf %413, %414 : vector<32x64xf32>
    %416 = vector.extract_strided_slice %415 {offsets = [0, 0], sizes = [32, 32], strides = [1, 1]} : vector<32x64xf32> to vector<32x32xf32>
    %417 = vector.extract_strided_slice %415 {offsets = [0, 32], sizes = [32, 32], strides = [1, 1]} : vector<32x64xf32> to vector<32x32xf32>
    %418 = vector.extract_strided_slice %412 {offsets = [0, 0], sizes = [4, 32], strides = [1, 1]} : vector<8x32xf32> to vector<4x32xf32>
    %419 = vector.extract_strided_slice %416 {offsets = [0, 0], sizes = [16, 32], strides = [1, 1]} : vector<32x32xf32> to vector<16x32xf32>
    %420 = vector.extract_strided_slice %417 {offsets = [0, 0], sizes = [16, 32], strides = [1, 1]} : vector<32x32xf32> to vector<16x32xf32>
    %421 = vector.extract_strided_slice %418 {offsets = [0, 0], sizes = [4, 8], strides = [1, 1]} : vector<4x32xf32> to vector<4x8xf32>
    %422 = vector.extract_strided_slice %419 {offsets = [0, 0], sizes = [16, 8], strides = [1, 1]} : vector<16x32xf32> to vector<16x8xf32>
    %cst_153 = arith.constant dense<0.000000e+00> : vector<4x16xf32>
    %423 = tpu.matmul %421, %422, %cst_153 {dimension_numbers = #tpu.dot_dimension_numbers<[1], [1], [0], [0], [0, 0, 1, 0], [], []>} : vector<4x8xf32>, vector<16x8xf32>, vector<4x16xf32> -> vector<4x16xf32>
    %cst_154 = arith.constant 1.000000e+00 : f32
    %424 = vector.broadcast %cst_154 : f32 to vector<4x16xf32>
    %425 = arith.mulf %423, %424 : vector<4x16xf32>
    %cst_155 = arith.constant dense<0xFF800000> : vector<4xf32>
    %426 = vector.multi_reduction <maximumf>, %425, %cst_155 [1] : vector<4x16xf32> to vector<4xf32>
    %427 = vector.shape_cast %426 : vector<4xf32> to vector<4x1xf32>
    %428 = vector.broadcast %427 : vector<4x1xf32> to vector<4x16xf32>
    %429 = arith.subf %425, %428 : vector<4x16xf32>
    %430 = math.exp %429 : vector<4x16xf32>
    %cst_156 = arith.constant dense<0.000000e+00> : vector<4xf32>
    %431 = vector.multi_reduction <add>, %430, %cst_156 [1] : vector<4x16xf32> to vector<4xf32>
    %432 = vector.shape_cast %431 : vector<4xf32> to vector<4x1xf32>
    %433 = vector.broadcast %432 : vector<4x1xf32> to vector<4x16xf32>
    %434 = arith.divf %430, %433 : vector<4x16xf32>
    %435 = vector.extract_strided_slice %420 {offsets = [0, 0], sizes = [16, 8], strides = [1, 1]} : vector<16x32xf32> to vector<16x8xf32>
    %cst_157 = arith.constant dense<0.000000e+00> : vector<4x8xf32>
    %436 = tpu.matmul %434, %435, %cst_157 {dimension_numbers = #tpu.dot_dimension_numbers<[1], [0], [0], [1], [0, 0, 1, 1], [], []>} : vector<4x16xf32>, vector<16x8xf32>, vector<4x8xf32> -> vector<4x8xf32>
    %437 = vector.extract_strided_slice %418 {offsets = [0, 8], sizes = [4, 8], strides = [1, 1]} : vector<4x32xf32> to vector<4x8xf32>
    %438 = vector.extract_strided_slice %419 {offsets = [0, 8], sizes = [16, 8], strides = [1, 1]} : vector<16x32xf32> to vector<16x8xf32>
    %cst_158 = arith.constant dense<0.000000e+00> : vector<4x16xf32>
    %439 = tpu.matmul %437, %438, %cst_158 {dimension_numbers = #tpu.dot_dimension_numbers<[1], [1], [0], [0], [0, 0, 1, 0], [], []>} : vector<4x8xf32>, vector<16x8xf32>, vector<4x16xf32> -> vector<4x16xf32>
    %cst_159 = arith.constant 1.000000e+00 : f32
    %440 = vector.broadcast %cst_159 : f32 to vector<4x16xf32>
    %441 = arith.mulf %439, %440 : vector<4x16xf32>
    %cst_160 = arith.constant dense<0xFF800000> : vector<4xf32>
    %442 = vector.multi_reduction <maximumf>, %441, %cst_160 [1] : vector<4x16xf32> to vector<4xf32>
    %443 = vector.shape_cast %442 : vector<4xf32> to vector<4x1xf32>
    %444 = vector.broadcast %443 : vector<4x1xf32> to vector<4x16xf32>
    %445 = arith.subf %441, %444 : vector<4x16xf32>
    %446 = math.exp %445 : vector<4x16xf32>
    %cst_161 = arith.constant dense<0.000000e+00> : vector<4xf32>
    %447 = vector.multi_reduction <add>, %446, %cst_161 [1] : vector<4x16xf32> to vector<4xf32>
    %448 = vector.shape_cast %447 : vector<4xf32> to vector<4x1xf32>
    %449 = vector.broadcast %448 : vector<4x1xf32> to vector<4x16xf32>
    %450 = arith.divf %446, %449 : vector<4x16xf32>
    %451 = vector.extract_strided_slice %420 {offsets = [0, 8], sizes = [16, 8], strides = [1, 1]} : vector<16x32xf32> to vector<16x8xf32>
    %cst_162 = arith.constant dense<0.000000e+00> : vector<4x8xf32>
    %452 = tpu.matmul %450, %451, %cst_162 {dimension_numbers = #tpu.dot_dimension_numbers<[1], [0], [0], [1], [0, 0, 1, 1], [], []>} : vector<4x16xf32>, vector<16x8xf32>, vector<4x8xf32> -> vector<4x8xf32>
    %453 = vector.extract_strided_slice %418 {offsets = [0, 16], sizes = [4, 8], strides = [1, 1]} : vector<4x32xf32> to vector<4x8xf32>
    %454 = vector.extract_strided_slice %419 {offsets = [0, 16], sizes = [16, 8], strides = [1, 1]} : vector<16x32xf32> to vector<16x8xf32>
    %cst_163 = arith.constant dense<0.000000e+00> : vector<4x16xf32>
    %455 = tpu.matmul %453, %454, %cst_163 {dimension_numbers = #tpu.dot_dimension_numbers<[1], [1], [0], [0], [0, 0, 1, 0], [], []>} : vector<4x8xf32>, vector<16x8xf32>, vector<4x16xf32> -> vector<4x16xf32>
    %cst_164 = arith.constant 1.000000e+00 : f32
    %456 = vector.broadcast %cst_164 : f32 to vector<4x16xf32>
    %457 = arith.mulf %455, %456 : vector<4x16xf32>
    %cst_165 = arith.constant dense<0xFF800000> : vector<4xf32>
    %458 = vector.multi_reduction <maximumf>, %457, %cst_165 [1] : vector<4x16xf32> to vector<4xf32>
    %459 = vector.shape_cast %458 : vector<4xf32> to vector<4x1xf32>
    %460 = vector.broadcast %459 : vector<4x1xf32> to vector<4x16xf32>
    %461 = arith.subf %457, %460 : vector<4x16xf32>
    %462 = math.exp %461 : vector<4x16xf32>
    %cst_166 = arith.constant dense<0.000000e+00> : vector<4xf32>
    %463 = vector.multi_reduction <add>, %462, %cst_166 [1] : vector<4x16xf32> to vector<4xf32>
    %464 = vector.shape_cast %463 : vector<4xf32> to vector<4x1xf32>
    %465 = vector.broadcast %464 : vector<4x1xf32> to vector<4x16xf32>
    %466 = arith.divf %462, %465 : vector<4x16xf32>
    %467 = vector.extract_strided_slice %420 {offsets = [0, 16], sizes = [16, 8], strides = [1, 1]} : vector<16x32xf32> to vector<16x8xf32>
    %cst_167 = arith.constant dense<0.000000e+00> : vector<4x8xf32>
    %468 = tpu.matmul %466, %467, %cst_167 {dimension_numbers = #tpu.dot_dimension_numbers<[1], [0], [0], [1], [0, 0, 1, 1], [], []>} : vector<4x16xf32>, vector<16x8xf32>, vector<4x8xf32> -> vector<4x8xf32>
    %469 = vector.extract_strided_slice %418 {offsets = [0, 24], sizes = [4, 8], strides = [1, 1]} : vector<4x32xf32> to vector<4x8xf32>
    %470 = vector.extract_strided_slice %419 {offsets = [0, 24], sizes = [16, 8], strides = [1, 1]} : vector<16x32xf32> to vector<16x8xf32>
    %cst_168 = arith.constant dense<0.000000e+00> : vector<4x16xf32>
    %471 = tpu.matmul %469, %470, %cst_168 {dimension_numbers = #tpu.dot_dimension_numbers<[1], [1], [0], [0], [0, 0, 1, 0], [], []>} : vector<4x8xf32>, vector<16x8xf32>, vector<4x16xf32> -> vector<4x16xf32>
    %cst_169 = arith.constant 1.000000e+00 : f32
    %472 = vector.broadcast %cst_169 : f32 to vector<4x16xf32>
    %473 = arith.mulf %471, %472 : vector<4x16xf32>
    %cst_170 = arith.constant dense<0xFF800000> : vector<4xf32>
    %474 = vector.multi_reduction <maximumf>, %473, %cst_170 [1] : vector<4x16xf32> to vector<4xf32>
    %475 = vector.shape_cast %474 : vector<4xf32> to vector<4x1xf32>
    %476 = vector.broadcast %475 : vector<4x1xf32> to vector<4x16xf32>
    %477 = arith.subf %473, %476 : vector<4x16xf32>
    %478 = math.exp %477 : vector<4x16xf32>
    %cst_171 = arith.constant dense<0.000000e+00> : vector<4xf32>
    %479 = vector.multi_reduction <add>, %478, %cst_171 [1] : vector<4x16xf32> to vector<4xf32>
    %480 = vector.shape_cast %479 : vector<4xf32> to vector<4x1xf32>
    %481 = vector.broadcast %480 : vector<4x1xf32> to vector<4x16xf32>
    %482 = arith.divf %478, %481 : vector<4x16xf32>
    %483 = vector.extract_strided_slice %420 {offsets = [0, 24], sizes = [16, 8], strides = [1, 1]} : vector<16x32xf32> to vector<16x8xf32>
    %cst_172 = arith.constant dense<0.000000e+00> : vector<4x8xf32>
    %484 = tpu.matmul %482, %483, %cst_172 {dimension_numbers = #tpu.dot_dimension_numbers<[1], [0], [0], [1], [0, 0, 1, 1], [], []>} : vector<4x16xf32>, vector<16x8xf32>, vector<4x8xf32> -> vector<4x8xf32>
    %485 = tpu.concatenate %436, %452, %468, %484 in 1 : vector<4x8xf32>, vector<4x8xf32>, vector<4x8xf32>, vector<4x8xf32> -> vector<4x32xf32>
    %486 = vector.extract_strided_slice %412 {offsets = [4, 0], sizes = [4, 32], strides = [1, 1]} : vector<8x32xf32> to vector<4x32xf32>
    %487 = vector.extract_strided_slice %416 {offsets = [16, 0], sizes = [16, 32], strides = [1, 1]} : vector<32x32xf32> to vector<16x32xf32>
    %488 = vector.extract_strided_slice %417 {offsets = [16, 0], sizes = [16, 32], strides = [1, 1]} : vector<32x32xf32> to vector<16x32xf32>
    %489 = vector.extract_strided_slice %486 {offsets = [0, 0], sizes = [4, 8], strides = [1, 1]} : vector<4x32xf32> to vector<4x8xf32>
    %490 = vector.extract_strided_slice %487 {offsets = [0, 0], sizes = [16, 8], strides = [1, 1]} : vector<16x32xf32> to vector<16x8xf32>
    %cst_173 = arith.constant dense<0.000000e+00> : vector<4x16xf32>
    %491 = tpu.matmul %489, %490, %cst_173 {dimension_numbers = #tpu.dot_dimension_numbers<[1], [1], [0], [0], [0, 0, 1, 0], [], []>} : vector<4x8xf32>, vector<16x8xf32>, vector<4x16xf32> -> vector<4x16xf32>
    %cst_174 = arith.constant 1.000000e+00 : f32
    %492 = vector.broadcast %cst_174 : f32 to vector<4x16xf32>
    %493 = arith.mulf %491, %492 : vector<4x16xf32>
    %cst_175 = arith.constant dense<0xFF800000> : vector<4xf32>
    %494 = vector.multi_reduction <maximumf>, %493, %cst_175 [1] : vector<4x16xf32> to vector<4xf32>
    %495 = vector.shape_cast %494 : vector<4xf32> to vector<4x1xf32>
    %496 = vector.broadcast %495 : vector<4x1xf32> to vector<4x16xf32>
    %497 = arith.subf %493, %496 : vector<4x16xf32>
    %498 = math.exp %497 : vector<4x16xf32>
    %cst_176 = arith.constant dense<0.000000e+00> : vector<4xf32>
    %499 = vector.multi_reduction <add>, %498, %cst_176 [1] : vector<4x16xf32> to vector<4xf32>
    %500 = vector.shape_cast %499 : vector<4xf32> to vector<4x1xf32>
    %501 = vector.broadcast %500 : vector<4x1xf32> to vector<4x16xf32>
    %502 = arith.divf %498, %501 : vector<4x16xf32>
    %503 = vector.extract_strided_slice %488 {offsets = [0, 0], sizes = [16, 8], strides = [1, 1]} : vector<16x32xf32> to vector<16x8xf32>
    %cst_177 = arith.constant dense<0.000000e+00> : vector<4x8xf32>
    %504 = tpu.matmul %502, %503, %cst_177 {dimension_numbers = #tpu.dot_dimension_numbers<[1], [0], [0], [1], [0, 0, 1, 1], [], []>} : vector<4x16xf32>, vector<16x8xf32>, vector<4x8xf32> -> vector<4x8xf32>
    %505 = vector.extract_strided_slice %486 {offsets = [0, 8], sizes = [4, 8], strides = [1, 1]} : vector<4x32xf32> to vector<4x8xf32>
    %506 = vector.extract_strided_slice %487 {offsets = [0, 8], sizes = [16, 8], strides = [1, 1]} : vector<16x32xf32> to vector<16x8xf32>
    %cst_178 = arith.constant dense<0.000000e+00> : vector<4x16xf32>
    %507 = tpu.matmul %505, %506, %cst_178 {dimension_numbers = #tpu.dot_dimension_numbers<[1], [1], [0], [0], [0, 0, 1, 0], [], []>} : vector<4x8xf32>, vector<16x8xf32>, vector<4x16xf32> -> vector<4x16xf32>
    %cst_179 = arith.constant 1.000000e+00 : f32
    %508 = vector.broadcast %cst_179 : f32 to vector<4x16xf32>
    %509 = arith.mulf %507, %508 : vector<4x16xf32>
    %cst_180 = arith.constant dense<0xFF800000> : vector<4xf32>
    %510 = vector.multi_reduction <maximumf>, %509, %cst_180 [1] : vector<4x16xf32> to vector<4xf32>
    %511 = vector.shape_cast %510 : vector<4xf32> to vector<4x1xf32>
    %512 = vector.broadcast %511 : vector<4x1xf32> to vector<4x16xf32>
    %513 = arith.subf %509, %512 : vector<4x16xf32>
    %514 = math.exp %513 : vector<4x16xf32>
    %cst_181 = arith.constant dense<0.000000e+00> : vector<4xf32>
    %515 = vector.multi_reduction <add>, %514, %cst_181 [1] : vector<4x16xf32> to vector<4xf32>
    %516 = vector.shape_cast %515 : vector<4xf32> to vector<4x1xf32>
    %517 = vector.broadcast %516 : vector<4x1xf32> to vector<4x16xf32>
    %518 = arith.divf %514, %517 : vector<4x16xf32>
    %519 = vector.extract_strided_slice %488 {offsets = [0, 8], sizes = [16, 8], strides = [1, 1]} : vector<16x32xf32> to vector<16x8xf32>
    %cst_182 = arith.constant dense<0.000000e+00> : vector<4x8xf32>
    %520 = tpu.matmul %518, %519, %cst_182 {dimension_numbers = #tpu.dot_dimension_numbers<[1], [0], [0], [1], [0, 0, 1, 1], [], []>} : vector<4x16xf32>, vector<16x8xf32>, vector<4x8xf32> -> vector<4x8xf32>
    %521 = vector.extract_strided_slice %486 {offsets = [0, 16], sizes = [4, 8], strides = [1, 1]} : vector<4x32xf32> to vector<4x8xf32>
    %522 = vector.extract_strided_slice %487 {offsets = [0, 16], sizes = [16, 8], strides = [1, 1]} : vector<16x32xf32> to vector<16x8xf32>
    %cst_183 = arith.constant dense<0.000000e+00> : vector<4x16xf32>
    %523 = tpu.matmul %521, %522, %cst_183 {dimension_numbers = #tpu.dot_dimension_numbers<[1], [1], [0], [0], [0, 0, 1, 0], [], []>} : vector<4x8xf32>, vector<16x8xf32>, vector<4x16xf32> -> vector<4x16xf32>
    %cst_184 = arith.constant 1.000000e+00 : f32
    %524 = vector.broadcast %cst_184 : f32 to vector<4x16xf32>
    %525 = arith.mulf %523, %524 : vector<4x16xf32>
    %cst_185 = arith.constant dense<0xFF800000> : vector<4xf32>
    %526 = vector.multi_reduction <maximumf>, %525, %cst_185 [1] : vector<4x16xf32> to vector<4xf32>
    %527 = vector.shape_cast %526 : vector<4xf32> to vector<4x1xf32>
    %528 = vector.broadcast %527 : vector<4x1xf32> to vector<4x16xf32>
    %529 = arith.subf %525, %528 : vector<4x16xf32>
    %530 = math.exp %529 : vector<4x16xf32>
    %cst_186 = arith.constant dense<0.000000e+00> : vector<4xf32>
    %531 = vector.multi_reduction <add>, %530, %cst_186 [1] : vector<4x16xf32> to vector<4xf32>
    %532 = vector.shape_cast %531 : vector<4xf32> to vector<4x1xf32>
    %533 = vector.broadcast %532 : vector<4x1xf32> to vector<4x16xf32>
    %534 = arith.divf %530, %533 : vector<4x16xf32>
    %535 = vector.extract_strided_slice %488 {offsets = [0, 16], sizes = [16, 8], strides = [1, 1]} : vector<16x32xf32> to vector<16x8xf32>
    %cst_187 = arith.constant dense<0.000000e+00> : vector<4x8xf32>
    %536 = tpu.matmul %534, %535, %cst_187 {dimension_numbers = #tpu.dot_dimension_numbers<[1], [0], [0], [1], [0, 0, 1, 1], [], []>} : vector<4x16xf32>, vector<16x8xf32>, vector<4x8xf32> -> vector<4x8xf32>
    %537 = vector.extract_strided_slice %486 {offsets = [0, 24], sizes = [4, 8], strides = [1, 1]} : vector<4x32xf32> to vector<4x8xf32>
    %538 = vector.extract_strided_slice %487 {offsets = [0, 24], sizes = [16, 8], strides = [1, 1]} : vector<16x32xf32> to vector<16x8xf32>
    %cst_188 = arith.constant dense<0.000000e+00> : vector<4x16xf32>
    %539 = tpu.matmul %537, %538, %cst_188 {dimension_numbers = #tpu.dot_dimension_numbers<[1], [1], [0], [0], [0, 0, 1, 0], [], []>} : vector<4x8xf32>, vector<16x8xf32>, vector<4x16xf32> -> vector<4x16xf32>
    %cst_189 = arith.constant 1.000000e+00 : f32
    %540 = vector.broadcast %cst_189 : f32 to vector<4x16xf32>
    %541 = arith.mulf %539, %540 : vector<4x16xf32>
    %cst_190 = arith.constant dense<0xFF800000> : vector<4xf32>
    %542 = vector.multi_reduction <maximumf>, %541, %cst_190 [1] : vector<4x16xf32> to vector<4xf32>
    %543 = vector.shape_cast %542 : vector<4xf32> to vector<4x1xf32>
    %544 = vector.broadcast %543 : vector<4x1xf32> to vector<4x16xf32>
    %545 = arith.subf %541, %544 : vector<4x16xf32>
    %546 = math.exp %545 : vector<4x16xf32>
    %cst_191 = arith.constant dense<0.000000e+00> : vector<4xf32>
    %547 = vector.multi_reduction <add>, %546, %cst_191 [1] : vector<4x16xf32> to vector<4xf32>
    %548 = vector.shape_cast %547 : vector<4xf32> to vector<4x1xf32>
    %549 = vector.broadcast %548 : vector<4x1xf32> to vector<4x16xf32>
    %550 = arith.divf %546, %549 : vector<4x16xf32>
    %551 = vector.extract_strided_slice %488 {offsets = [0, 24], sizes = [16, 8], strides = [1, 1]} : vector<16x32xf32> to vector<16x8xf32>
    %cst_192 = arith.constant dense<0.000000e+00> : vector<4x8xf32>
    %552 = tpu.matmul %550, %551, %cst_192 {dimension_numbers = #tpu.dot_dimension_numbers<[1], [0], [0], [1], [0, 0, 1, 1], [], []>} : vector<4x16xf32>, vector<16x8xf32>, vector<4x8xf32> -> vector<4x8xf32>
    %553 = tpu.concatenate %504, %520, %536, %552 in 1 : vector<4x8xf32>, vector<4x8xf32>, vector<4x8xf32>, vector<4x8xf32> -> vector<4x32xf32>
    %554 = tpu.concatenate %485, %553 in 0 : vector<4x32xf32>, vector<4x32xf32> -> vector<8x32xf32>
    %cst_193 = arith.constant dense<0.000000e+00> : vector<8x32xf32>
    %555 = tpu.matmul %554, %408, %cst_193 {dimension_numbers = #tpu.dot_dimension_numbers<[1], [0], [0], [1], [0, 0, 1, 1], [], []>} : vector<8x32xf32>, vector<32x32xf32>, vector<8x32xf32> -> vector<8x32xf32>
    %556 = vector.broadcast %409 : vector<1x32xf32> to vector<8x32xf32>
    %557 = arith.addf %555, %556 : vector<8x32xf32>
    %558 = arith.addf %390, %557 : vector<8x32xf32>
    %c0_194 = arith.constant 0 : index
    %c0_195 = arith.constant 0 : index
    %559 = vector.load %arg23[%c0_194, %c0_195] : memref<1x32xf32, #tpu.memory_space<vmem>>, vector<1x32xf32>
    %560 = arith.mulf %558, %558 : vector<8x32xf32>
    %cst_196 = arith.constant dense<0.000000e+00> : vector<8xf32>
    %561 = vector.multi_reduction <add>, %560, %cst_196 [1] : vector<8x32xf32> to vector<8xf32>
    %562 = vector.shape_cast %561 : vector<8xf32> to vector<8x1xf32>
    %cst_197 = arith.constant 3.200000e+01 : f32
    %563 = vector.broadcast %cst_197 : f32 to vector<8x1xf32>
    %564 = arith.divf %562, %563 : vector<8x1xf32>
    %cst_198 = arith.constant 9.99999997E-7 : f32
    %565 = vector.broadcast %cst_198 : f32 to vector<8x1xf32>
    %566 = arith.addf %564, %565 : vector<8x1xf32>
    %567 = math.rsqrt %566 : vector<8x1xf32>
    %568 = vector.broadcast %567 : vector<8x1xf32> to vector<8x32xf32>
    %569 = arith.mulf %558, %568 : vector<8x32xf32>
    %570 = vector.broadcast %559 : vector<1x32xf32> to vector<8x32xf32>
    %571 = arith.mulf %569, %570 : vector<8x32xf32>
    %c0_199 = arith.constant 0 : index
    %c0_200 = arith.constant 0 : index
    %572 = vector.load %arg24[%c0_199, %c0_200] : memref<32x128xf32, #tpu.memory_space<vmem>>, vector<32x128xf32>
    %c0_201 = arith.constant 0 : index
    %c0_202 = arith.constant 0 : index
    %573 = vector.load %arg25[%c0_201, %c0_202] : memref<64x32xf32, #tpu.memory_space<vmem>>, vector<64x32xf32>
    %cst_203 = arith.constant dense<0.000000e+00> : vector<8x128xf32>
    %574 = tpu.matmul %571, %572, %cst_203 {dimension_numbers = #tpu.dot_dimension_numbers<[1], [0], [0], [1], [0, 0, 1, 1], [], []>} : vector<8x32xf32>, vector<32x128xf32>, vector<8x128xf32> -> vector<8x128xf32>
    %575 = vector.extract_strided_slice %574 {offsets = [0, 0], sizes = [8, 64], strides = [1, 1]} : vector<8x128xf32> to vector<8x64xf32>
    %576 = arith.mulf %575, %575 : vector<8x64xf32>
    %577 = arith.mulf %575, %576 : vector<8x64xf32>
    %cst_204 = arith.constant 4.471500e-02 : f32
    %578 = vector.broadcast %cst_204 : f32 to vector<8x64xf32>
    %579 = arith.mulf %578, %577 : vector<8x64xf32>
    %580 = arith.addf %575, %579 : vector<8x64xf32>
    %cst_205 = arith.constant 0.797884583 : f32
    %581 = vector.broadcast %cst_205 : f32 to vector<8x64xf32>
    %582 = arith.mulf %581, %580 : vector<8x64xf32>
    %583 = math.tanh %582 : vector<8x64xf32>
    %cst_206 = arith.constant 1.000000e+00 : f32
    %584 = vector.broadcast %cst_206 : f32 to vector<8x64xf32>
    %585 = arith.addf %584, %583 : vector<8x64xf32>
    %cst_207 = arith.constant 5.000000e-01 : f32
    %586 = vector.broadcast %cst_207 : f32 to vector<8x64xf32>
    %587 = arith.mulf %586, %585 : vector<8x64xf32>
    %588 = arith.mulf %575, %587 : vector<8x64xf32>
    %589 = vector.extract_strided_slice %574 {offsets = [0, 64], sizes = [8, 64], strides = [1, 1]} : vector<8x128xf32> to vector<8x64xf32>
    %590 = arith.mulf %588, %589 : vector<8x64xf32>
    %cst_208 = arith.constant dense<0.000000e+00> : vector<8x32xf32>
    %591 = tpu.matmul %590, %573, %cst_208 {dimension_numbers = #tpu.dot_dimension_numbers<[1], [0], [0], [1], [0, 0, 1, 1], [], []>} : vector<8x64xf32>, vector<64x32xf32>, vector<8x32xf32> -> vector<8x32xf32>
    %592 = arith.addf %558, %591 : vector<8x32xf32>
    %c0_209 = arith.constant 0 : index
    %c0_210 = arith.constant 0 : index
    %593 = vector.load %arg26[%c0_209, %c0_210] : memref<1x32xf32, #tpu.memory_space<vmem>>, vector<1x32xf32>
    %594 = arith.mulf %592, %592 : vector<8x32xf32>
    %cst_211 = arith.constant dense<0.000000e+00> : vector<8xf32>
    %595 = vector.multi_reduction <add>, %594, %cst_211 [1] : vector<8x32xf32> to vector<8xf32>
    %596 = vector.shape_cast %595 : vector<8xf32> to vector<8x1xf32>
    %cst_212 = arith.constant 3.200000e+01 : f32
    %597 = vector.broadcast %cst_212 : f32 to vector<8x1xf32>
    %598 = arith.divf %596, %597 : vector<8x1xf32>
    %cst_213 = arith.constant 9.99999997E-7 : f32
    %599 = vector.broadcast %cst_213 : f32 to vector<8x1xf32>
    %600 = arith.addf %598, %599 : vector<8x1xf32>
    %601 = math.rsqrt %600 : vector<8x1xf32>
    %602 = vector.broadcast %601 : vector<8x1xf32> to vector<8x32xf32>
    %603 = arith.mulf %592, %602 : vector<8x32xf32>
    %604 = vector.broadcast %593 : vector<1x32xf32> to vector<8x32xf32>
    %605 = arith.mulf %603, %604 : vector<8x32xf32>
    %606 = vector.extract_strided_slice %605 {offsets = [3, 0], sizes = [1, 32], strides = [1, 1]} : vector<8x32xf32> to vector<1x32xf32>
    %607 = vector.extract_strided_slice %605 {offsets = [7, 0], sizes = [1, 32], strides = [1, 1]} : vector<8x32xf32> to vector<1x32xf32>
    %608 = tpu.concatenate %606, %607 in 0 : vector<1x32xf32>, vector<1x32xf32> -> vector<2x32xf32>
    %c0_214 = arith.constant 0 : index
    %c0_215 = arith.constant 0 : index
    %609 = vector.load %arg27[%c0_214, %c0_215] : memref<32x64xf32, #tpu.memory_space<vmem>>, vector<32x64xf32>
    %cst_216 = arith.constant dense<0.000000e+00> : vector<2x64xf32>
    %610 = tpu.matmul %608, %609, %cst_216 {dimension_numbers = #tpu.dot_dimension_numbers<[1], [0], [0], [1], [0, 0, 1, 1], [], []>} : vector<2x32xf32>, vector<32x64xf32>, vector<2x64xf32> -> vector<2x64xf32>
    %c0_217 = arith.constant 0 : index
    %c0_218 = arith.constant 0 : index
    %611 = vector.load %arg28[%c0_217, %c0_218] : memref<1x64xf32, #tpu.memory_space<vmem>>, vector<1x64xf32>
    %612 = vector.broadcast %611 : vector<1x64xf32> to vector<2x64xf32>
    %613 = arith.addf %610, %612 : vector<2x64xf32>
    %cst_219 = arith.constant dense<0xFF800000> : vector<2xf32>
    %614 = vector.multi_reduction <maximumf>, %613, %cst_219 [1] : vector<2x64xf32> to vector<2xf32>
    %615 = vector.shape_cast %614 : vector<2xf32> to vector<2x1xf32>
    %616 = tpu.iota {dimensions = array<i32: 1>} : vector<2x64xi32>
    %617 = vector.broadcast %615 : vector<2x1xf32> to vector<2x64xf32>
    %618 = arith.cmpf oeq, %613, %617 : vector<2x64xf32>
    %c64_i32 = arith.constant 64 : i32
    %619 = vector.broadcast %c64_i32 : i32 to vector<2x64xi32>
    %620 = arith.select %618, %616, %619 : vector<2x64xi1>, vector<2x64xi32>
    %cst_220 = arith.constant dense<2147483647> : vector<2xi32>
    %621 = vector.multi_reduction <minsi>, %620, %cst_220 [1] : vector<2x64xi32> to vector<2xi32>
    %622 = vector.shape_cast %621 : vector<2xi32> to vector<2x1xi32>
    %c0_221 = arith.constant 0 : index
    %c0_222 = arith.constant 0 : index
    %623 = vector.load %arg29[%c0_221, %c0_222] : memref<2x1xi32, #tpu.memory_space<vmem>>, vector<2x1xi32>
    tpu.vector_store %arg29[%c0_221, %c0_222], %622 {strides = array<i32>} : memref<2x1xi32, #tpu.memory_space<vmem>>, vector<2x1xi32>,
    return
  }
}

</mosaic_0001>

<bundles_post_ra>
// kernel: blip2_generate.3
= control target key start
LH: loop header
LB: loop body
LE: loop exit
PB: predicated region body
PF: predicated region fallthrough
CT: control target
= control target key end

     0   :  { %v2350_v0 = vmov 0.0|0.0   ;;  %vm92_vm0 = vcmask 523264   ;;  %vm170_vm1 = vcmask 1043456   ;;  %vm175_vm2 = vcmask 261120   ;;  %s2357_s30 = smov 56   ;;  %s2363_s20 = smov 40   ;;  %s2854_s1 = inlined_call_operand.vmem [shape: f32[192,32], index: 1, kind: input, shape index: {}]   ;;  %s2855_s0 = inlined_call_operand.vmem [shape: f32[8,192], index: 0, kind: input, shape index: {}]   ;;  %s2856_s3 = inlined_call_operand.vmem [shape: f32[4,32], index: 3, kind: input, shape index: {}]   ;;  %s2857_s2 = inlined_call_operand.vmem [shape: f32[1,32], index: 2, kind: input, shape index: {}]   ;;  %s2858_s6 = inlined_call_operand.vmem [shape: f32[32,96], index: 6, kind: input, shape index: {}]   ;;  %s2859_s4 = inlined_call_operand.vmem [shape: f32[1,32], index: 4, kind: input, shape index: {}]   ;;  %s2860_s5 = inlined_call_operand.vmem [shape: f32[1,32], index: 5, kind: input, shape index: {}]   ;;  %s2861_s7 = inlined_call_operand.vmem [shape: f32[1,96], index: 7, kind: input, shape index: {}]   ;;  %s2862_s8 = inlined_call_operand.vmem [shape: f32[32,32], index: 8, kind: input, shape index: {}]   ;;  %s2863_s9 = inlined_call_operand.vmem [shape: f32[1,32], index: 9, kind: input, shape index: {}]   ;;  %s2864_s12 = inlined_call_operand.vmem [shape: f32[32,64], index: 12, kind: input, shape index: {}]   ;;  %s2865_s10 = inlined_call_operand.vmem [shape: f32[1,32], index: 10, kind: input, shape index: {}]   ;;  %s2866_s11 = inlined_call_operand.vmem [shape: f32[1,32], index: 11, kind: input, shape index: {}]   ;;  %s2867_s14 = inlined_call_operand.vmem [shape: f32[64,32], index: 14, kind: input, shape index: {}]   ;;  %s2868_s13 = inlined_call_operand.vmem [shape: f32[1,64], index: 13, kind: input, shape index: {}]   ;;  %s2869_s15 = inlined_call_operand.vmem [shape: f32[1,32], index: 15, kind: input, shape index: {}]   ;;  %s2870_s16 = inlined_call_operand.vmem [shape: f32[1,32], index: 16, kind: input, shape index: {}]   ;;  %s2871_s17 = inlined_call_operand.vmem [shape: f32[1,32], index: 17, kind: input, shape index: {}]   ;;  %s2872_s18 = inlined_call_operand.vmem [shape: f32[8,32], index: 18, kind: output, shape index: {}]  }
   0x1   :  { %2875 = sst [smem:[#allocation2_spill]] %s2854_s1  ;;  %2227 = vmatprep.subr.bf16.mxu0 %v2350_v0  ;;  %2263 = vmatprep.subr.bf16.mxu1 %v2350_v0  ;;  %v1991_v41 = vld [vmem:[%s2857_s2] ss:$0 sm:$0xff]  ;;  %v205_v54 = vld [vmem:[%s2858_s6 + $0x8] sm:$0xff]  ;;  %v206_v55 = vld [vmem:[%s2858_s6 + $0x10] sm:$0xff]  ;;  %vm2351_vm3 = vmmov 0  }
   0x2   :  { %2876 = sst [smem:[#allocation3_spill]] %s2855_s0  ;;  %s2878_s29 = sld [smem:[#allocation2_spill]]  ;;  %v204_v53 = vld [vmem:[%s2858_s6] sm:$0xff]  ;;  %v2352_v56 = vmov 0.0   ;;  %v207_v58 = vld [vmem:[%s2858_s6 + $0x18] sm:$0xff]  ;;  %vm296_vm4 = vcmask 64512  }
   0x3   :  { %2877 = sst [smem:[#allocation4_spill]] %s2856_s3  ;;  %s2879_s19 = sld [smem:[#allocation3_spill]]  ;;  %2103 = vmatprep.mubr.msk.f32.mxu1 %vm2351_vm3, %v2352_v56  ;;  %v2264_v57 = vpack.c.bf16 %v205_v54, %v204_v53  ;;  %v2267_v59 = vpack.c.bf16 %v207_v58, %v206_v55  ;;  %vm372_vm5 = vcmask 27648   ;;  %vm386_vm6 = vcmask 31744  }
   0x4   :  { %s2880_s28 = sld [smem:[#allocation4_spill]]  ;;  %s2358_s1 = smov 80   ;;  %vm976_vm7 = vcmask 130048   ;;  %vm978_vm8 = vcmask 195584  }
   0x5   :  { %2265 = vmatpush3.bf16.msra.mxu1 %v2264_v57  ;;  %s2359_s2 = smov 112   ;;  %s2362_s0 = smov 104  }
   0x6   :  { %2266 = vmatprep.subr.bf16.mxu1 %v2350_v0  ;;  %s2364_s21 = smov 8  }
   0x8   :  { %v61_v1 = vld [vmem:[%s2878_s29] sm:$0xff]  ;;  %v62_v2 = vld [vmem:[%s2878_s29 + $0x8] sm:$0xff]  ;;  %v63_v3 = vld [vmem:[%s2878_s29 + $0x10] sm:$0xff] }
   0x9   :  { %v2228_v4 = vpack.c.bf16 %v62_v2, %v61_v1  ;;  %v64_v5 = vld [vmem:[%s2878_s29 + $0x18] sm:$0xff]  ;;  %v65_v7 = vld [vmem:[%s2878_s29 + $0x20] sm:$0xff]  ;;  %v66_v8 = vld [vmem:[%s2878_s29 + $0x28] sm:$0xff]  ;;  %2268 = vmatpush3.bf16.msra.mxu1 %v2267_v59 }
   0xa   :  { %v2231_v6 = vpack.c.bf16 %v64_v5, %v63_v3  ;;  %v2234_v9 = vpack.c.bf16 %v66_v8, %v65_v7  ;;  %v67_v10 = vld [vmem:[%s2878_s29 + $0x30] sm:$0xff]  ;;  %v68_v11 = vld [vmem:[%s2878_s29 + $0x38] sm:$0xff]  ;;  %v60_v12 = vld [vmem:[%s2879_s19 + $0x8] sm:$0xff]  ;;  %2106 = vmatprep.subr.mxu1 %v2352_v56 }
   0xb   :  { %2229 = vmatpush1.bf16.msra.mxu0 %v2228_v4  ;;  %1992 = vmatprep.mubr.msk.f32.mxu0 %vm92_vm0, %v60_v12  ;;  %v2237_v13 = vpack.c.bf16 %v68_v11, %v67_v10  ;;  %v69_v14 = vld [vmem:[%s2878_s29 + $0x40] sm:$0xff]  ;;  %v70_v15 = vld [vmem:[%s2878_s29 + $0x48] sm:$0xff]  ;;  %v71_v17 = vld [vmem:[%s2878_s29 + $0x50] sm:$0xff] }
   0xc   :  { %2230 = vmatprep.subr.bf16.mxu0 %v2350_v0  ;;  %v2240_v16 = vpack.c.bf16 %v70_v15, %v69_v14  ;;  %v72_v18 = vld [vmem:[%s2878_s29 + $0x58] sm:$0xff]  ;;  %v73_v20 = vld [vmem:[%s2878_s29 + $0x60] sm:$0xff]  ;;  %v74_v21 = vld [vmem:[%s2878_s29 + $0x68] sm:$0xff] }
   0xd   :  { %v2243_v19 = vpack.c.bf16 %v72_v18, %v71_v17  ;;  %v2246_v22 = vpack.c.bf16 %v74_v21, %v73_v20  ;;  %v75_v23 = vld [vmem:[%s2878_s29 + $0x70] sm:$0xff]  ;;  %v76_v24 = vld [vmem:[%s2878_s29 + $0x78] sm:$0xff]  ;;  %v77_v26 = vld [vmem:[%s2878_s29 + $0x80] sm:$0xff] }
   0xe   :  { %v2249_v25 = vpack.c.bf16 %v76_v24, %v75_v23  ;;  %v78_v27 = vld [vmem:[%s2878_s29 + $0x88] sm:$0xff]  ;;  %v79_v29 = vld [vmem:[%s2878_s29 + $0x90] sm:$0xff]  ;;  %v80_v30 = vld [vmem:[%s2878_s29 + $0x98] sm:$0xff] }
   0xf   :  { %2232 = vmatpush1.bf16.msra.mxu0 %v2231_v6  ;;  %v2252_v28 = vpack.c.bf16 %v78_v27, %v77_v26  ;;  %v2255_v31 = vpack.c.bf16 %v80_v30, %v79_v29  ;;  %v81_v32 = vld [vmem:[%s2878_s29 + $0xa0] sm:$0xff]  ;;  %v82_v33 = vld [vmem:[%s2878_s29 + $0xa8] sm:$0xff]  ;;  %v83_v35 = vld [vmem:[%s2878_s29 + $0xb0] sm:$0xff] }
  0x10   :  { %2233 = vmatprep.subr.bf16.mxu0 %v2350_v0  ;;  %v2258_v34 = vpack.c.bf16 %v82_v33, %v81_v32  ;;  %v84_v36 = vld [vmem:[%s2878_s29 + $0xb8] sm:$0xff]  ;;  %v59_v38 = vld [vmem:[%s2879_s19] sm:$0xff]  ;;  %s2360_s29 = smov 48   ;;  %s2361_s19 = smov 72  }
  0x11   :  { %v2261_v37 = vpack.c.bf16 %v84_v36, %v83_v35  ;;  %v166_v39 = vld [vmem:[%s2880_s28] sm:$0xf]  ;;  %s2355_s28 = smov 88  }
  0x12   :  { %v168_v40 = vrot.slane %v166_v39, 4  ;;  %v1993_v1 = vld [vmem:[%s2859_s4] ss:$0 sm:$0xff]  ;;  %s2353_s4 = smov 64  }
  0x13   :  { %2235 = vmatpush1.bf16.msra.mxu0 %v2234_v9  ;;  %v1994_v3 = vld [vmem:[%s2860_s5] ss:$0 sm:$0xff]  ;;  %s2354_s5 = smov 96  }
  0x14   :  { %2236 = vmatprep.subr.bf16.mxu0 %v2350_v0  ;;  %v171_v43 = vsel %vm170_vm1, %v166_v39, %v168_v40  ;;  %v1995_v6 = vld [vmem:[%s2861_s7] ss:$0 sm:$0xff]  ;;  %s2356_s7 = smov 120  }
  0x17   :  { %2238 = vmatpush1.bf16.msra.mxu0 %v2237_v13 }
  0x18   :  { %2239 = vmatprep.subr.bf16.mxu0 %v2350_v0 }
  0x1b   :  { %2241 = vmatpush1.bf16.msra.mxu0 %v2240_v16 }
  0x1c   :  { %2242 = vmatprep.subr.bf16.mxu0 %v2350_v0 }
  0x1f   :  { %2244 = vmatpush1.bf16.msra.mxu0 %v2243_v19 }
  0x20   :  { %2245 = vmatprep.subr.bf16.mxu0 %v2350_v0 }
  0x23   :  { %2247 = vmatpush1.bf16.msra.mxu0 %v2246_v22 }
  0x24   :  { %2248 = vmatprep.subr.bf16.mxu0 %v2350_v0 }
  0x27   :  { %2250 = vmatpush1.bf16.msra.mxu0 %v2249_v25 }
  0x28   :  { %2251 = vmatprep.subr.bf16.mxu0 %v2350_v0 }
  0x2b   :  { %2253 = vmatpush1.bf16.msra.mxu0 %v2252_v28 }
  0x2c   :  { %2254 = vmatprep.subr.bf16.mxu0 %v2350_v0 }
  0x2f   :  { %2256 = vmatpush1.bf16.msra.mxu0 %v2255_v31 }
  0x30   :  { %2257 = vmatprep.subr.bf16.mxu0 %v2350_v0 }
  0x33   :  { %2259 = vmatpush1.bf16.msra.mxu0 %v2258_v34 }
  0x34   :  { %2260 = vmatprep.subr.bf16.mxu0 %v2350_v0 }
  0x37   :  { %2262 = vmatpush1.bf16.msra.mxu0 %v2261_v37 }
  0x38   :  { %2156 = vmatprep.subr.mxu0 %v2352_v56 }
  0x3a   :  { %161 = vmatmul.mubr.f32.vlgmr.msra.gmra.mrb[0].mxu0 %v59_v38 }
  0x3b   :  { %2158 = vmatprep.mubr.msk.f32.mxu0 %vm2351_vm3, %v2352_v56 }
 0x10d   :  { %v162_v42 = vpop.f32.mrb[0].mxu0 }
 0x10e   :  { %v163_v44 = vadd.f32 %v1991_v41, %v162_v42  ;;  %v164_v45 = vpop.f32.mrb[1].mxu0 }
 0x110   :  { %v2561_v46 = vadd.f32 %v171_v43, %v163_v44 }
 0x112   :  { %v176_v47 = vsel %vm175_vm2, %v2561_v46, 0.0 }
 0x113   :  { %177 = vadd.xlane.f32.xlu0 %v176_v47 }
 0x1a0   :  { %v178_v48 = vpop.xlane.xlu0 %177 }
 0x1a1   :  { %v180_v49 = vmul.f32 0.03125, %v178_v48 }
 0x1a3   :  { %v181_v50 = vsub.f32 %v2561_v46, %v180_v49 }
 0x1a5   :  { %v182_v51 = vmul.f32 %v181_v50, %v181_v50 }
 0x1a7   :  { %v183_v52 = vsel %vm175_vm2, %v182_v51, 0.0 }
 0x1a8   :  { %184 = vadd.xlane.f32.xlu0 %v183_v52 }
 0x235   :  { %v185_v60 = vpop.xlane.xlu0 %184 }
 0x236   :  { %v186_v61 = vmul.f32 0.03125, %v185_v60 }
 0x238   :  { %v187_v62 = vadd.f32 1e-05, %v186_v61 }
 0x23a   :  { %2310 = vrsqrt.f32 %v187_v62 }
 0x244   :  { %v2311_v63 = vpop.eup %2310 }
 0x245   :  { %v189_v2 = vmul.f32 %v2311_v63, %v181_v50 }
 0x247   :  { %v196_v4 = vmul.f32 %v1993_v1, %v189_v2 }
 0x249   :  { %v203_v5 = vadd.f32 %v1994_v3, %v196_v4 }
 0x24b   :  { %2104 = vmatmul.mubr.msk.f32.vlgmr.msra.gmra.mrb[0].mxu1 %vm175_vm2, %v203_v5 }
 0x24c   :  { %2108 = vmatprep.mubr.msk.f32.mxu1 %vm2351_vm3, %v2352_v56 }
 0x31e   :  { %v289_v7 = vpop.f32.mrb[0].mxu1 }
 0x31f   :  { %v2598_v8 = vadd.f32 %v1995_v6, %v289_v7  ;;  %v2105_v9 = vpop.f32.mrb[1].mxu1 }
 0x321   :  { %384 = vrot.lane.b32.xlu0 %v2598_v8, %s2353_s4  ;;  %294 = vrot.lane.b32.xlu1 %v2598_v8, %s2354_s5  ;;  %v2671_v5 = vrot.slane %v2598_v8, 4 }
 0x325   :  { %464 = vrot.lane.b32.xlu0 %v2598_v8, %s2355_s28 }
 0x393   :  { %v295_v10 = vpop.permute.xlu1 %294  ;;  %v385_v11 = vpop.permute.xlu0 %384 }
 0x394   :  { %2107 = vmatpush3.xpose.msk.msra.mxu1 %vm296_vm4, %v295_v10 }
 0x395   :  { %2111 = vmatprep.subr.mxu1 %v2352_v56 }
 0x397   :  { %2109 = vmatmul.mubr.msk.f32.vlgmr.msra.gmra.mrb[2].mxu1 %vm296_vm4, %v2598_v8  ;;  %v465_v21 = vpop.permute.xlu0 %464 }
 0x398   :  { %2112 = vmatpush3.msk.msra.mxu1 %vm170_vm1, %v385_v11  ;;  %2113 = vmatprep.mubr.msk.f32.mxu1 %vm2351_vm3, %v2352_v56 }
 0x399   :  { %2116 = vmatprep.subr.mxu1 %v2352_v56 }
 0x46a   :  { %v367_v12 = vpop.f32.mrb[2].mxu1 }
 0x46b   :  { %v371_v13 = vmul.f32 0.35355338, %v367_v12  ;;  %v2110_v14 = vpop.f32.mrb[3].mxu1 }
 0x46d   :  { %v373_v15 = vsel %vm372_vm5, %v371_v13, -inf }
 0x46e   :  { %374 = vmax.xlane.f32.xlu1 %v373_v15 }
 0x4fb   :  { %v375_v16 = vpop.xlane.xlu1 %374 }
 0x4fc   :  { %v376_v17 = vsub.f32 %v371_v13, %v375_v16 }
 0x4fe   :  { %v377_v18 = vmul.f32 1.442695, %v376_v17 }
 0x500   :  { %2312 = vpow2.f32 %v377_v18 }
 0x50a   :  { %v2313_v19 = vpop.eup %2312 }
 0x50b   :  { %v379_v20 = vsel %vm372_vm5, %v2313_v19, 0.0 }
 0x50c   :  { %380 = vadd.xlane.f32.xlu0 %v379_v20 }
 0x522   :  { %462 = vrot.lane.b32.xlu0 %v2598_v8, %s2356_s7 }
 0x599   :  { %v381_v22 = vpop.xlane.xlu0 %380 }
 0x59a   :  { %2314 = vrcp.f32 %v381_v22 }
 0x59d   :  { %v463_v25 = vpop.permute.xlu0 %462 }
 0x5a4   :  { %v2315_v23 = vpop.eup %2314 }
 0x5a5   :  { %v383_v24 = vmul.f32 %v2315_v23, %v2313_v19 }
 0x5a7   :  { %2114 = vmatmul.mubr.msk.f32.vlgmr.msra.gmra.mrb[4].mxu1 %vm386_vm6, %v383_v24 }
 0x5a8   :  { %2117 = vmatpush3.xpose.msk.msra.mxu1 %vm296_vm4, %v465_v21  ;;  %2118 = vmatprep.mubr.msk.f32.mxu1 %vm2351_vm3, %v2352_v56 }
 0x5a9   :  { %2121 = vmatprep.subr.mxu1 %v2352_v56 }
 0x5ab   :  { %2119 = vmatmul.mubr.msk.f32.vlgmr.msra.gmra.mrb[6].mxu1 %vm296_vm4, %v463_v25 }
 0x5ac   :  { %2123 = vmatprep.mubr.msk.f32.mxu1 %vm2351_vm3, %v2352_v56 }
 0x67a   :  { %v2626_v26 = vpop.f32.mrb[4].mxu1 }
 0x67b   :  { %v2115_v27 = vpop.f32.mrb[5].mxu1 }
 0x67e   :  { %v536_v28 = vpop.f32.mrb[6].mxu1 }
 0x67f   :  { %v540_v29 = vmul.f32 0.35355338, %v536_v28  ;;  %v2120_v30 = vpop.f32.mrb[7].mxu1 }
 0x681   :  { %v541_v31 = vsel %vm372_vm5, %v540_v29, -inf }
 0x682   :  { %542 = vmax.xlane.f32.xlu1 %v541_v31 }
 0x693   :  { %552 = vrot.lane.b32.xlu1 %v2598_v8, %s2357_s30 }
 0x697   :  { %631 = vrot.lane.b32.xlu1 %v2598_v8, %s2358_s1 }
 0x69b   :  { %629 = vrot.lane.b32.xlu1 %v2598_v8, %s2359_s2 }
 0x70f   :  { %v543_v32 = vpop.xlane.xlu1 %542 }
 0x710   :  { %v544_v33 = vsub.f32 %v540_v29, %v543_v32 }
 0x712   :  { %v545_v34 = vmul.f32 1.442695, %v544_v33 }
 0x713   :  { %v553_v35 = vpop.permute.xlu1 %552 }
 0x714   :  { %2316 = vpow2.f32 %v545_v34  ;;  %2122 = vmatpush3.msk.msra.mxu1 %vm170_vm1, %v553_v35 }
 0x715   :  { %2126 = vmatprep.subr.mxu1 %v2352_v56 }
 0x717   :  { %v632_v40 = vpop.permute.xlu1 %631 }
 0x71b   :  { %v630_v42 = vpop.permute.xlu1 %629 }
 0x71e   :  { %v2317_v36 = vpop.eup %2316 }
 0x71f   :  { %v547_v37 = vsel %vm372_vm5, %v2317_v36, 0.0 }
 0x720   :  { %548 = vadd.xlane.f32.xlu0 %v547_v37 }
 0x736   :  { %719 = vrot.lane.b32.xlu0 %v2598_v8, %s2360_s29 }
 0x73a   :  { %798 = vrot.lane.b32.xlu0 %v2598_v8, %s2361_s19 }
 0x7ad   :  { %v549_v38 = vpop.xlane.xlu0 %548 }
 0x7ae   :  { %2318 = vrcp.f32 %v549_v38 }
 0x7b1   :  { %v720_v43 = vpop.permute.xlu0 %719 }
 0x7b5   :  { %v799_v57 = vpop.permute.xlu0 %798 }
 0x7b8   :  { %v2319_v39 = vpop.eup %2318 }
 0x7b9   :  { %v551_v41 = vmul.f32 %v2319_v39, %v2317_v36 }
 0x7bb   :  { %2124 = vmatmul.mubr.msk.f32.vlgmr.msra.gmra.mrb[8].mxu1 %vm386_vm6, %v551_v41 }
 0x7bc   :  { %2127 = vmatpush3.xpose.msk.msra.mxu1 %vm296_vm4, %v632_v40  ;;  %2128 = vmatprep.mubr.msk.f32.mxu1 %vm2351_vm3, %v2352_v56 }
 0x7bd   :  { %2131 = vmatprep.subr.mxu1 %v2352_v56 }
 0x7bf   :  { %2129 = vmatmul.mubr.msk.f32.vlgmr.msra.gmra.mrb[10].mxu1 %vm296_vm4, %v630_v42 }
 0x7c0   :  { %2132 = vmatpush3.msk.msra.mxu1 %vm170_vm1, %v720_v43  ;;  %2133 = vmatprep.mubr.msk.f32.mxu1 %vm2351_vm3, %v2352_v56 }
 0x7c1   :  { %2136 = vmatprep.subr.mxu1 %v2352_v56 }
 0x88e   :  { %v2652_v44 = vpop.f32.mrb[8].mxu1 }
 0x88f   :  { %v2125_v45 = vpop.f32.mrb[9].mxu1 }
 0x892   :  { %v703_v47 = vpop.f32.mrb[10].mxu1 }
 0x893   :  { %v707_v48 = vmul.f32 0.35355338, %v703_v47  ;;  %v2130_v49 = vpop.f32.mrb[11].mxu1 }
 0x895   :  { %v708_v50 = vsel %vm372_vm5, %v707_v48, -inf }
 0x896   :  { %709 = vmax.xlane.f32.xlu1 %v708_v50 }
 0x923   :  { %v710_v51 = vpop.xlane.xlu1 %709 }
 0x924   :  { %v711_v52 = vsub.f32 %v707_v48, %v710_v51 }
 0x926   :  { %v712_v53 = vmul.f32 1.442695, %v711_v52 }
 0x928   :  { %2320 = vpow2.f32 %v712_v53 }
 0x932   :  { %v2321_v54 = vpop.eup %2320 }
 0x933   :  { %v714_v55 = vsel %vm372_vm5, %v2321_v54, 0.0 }
 0x934   :  { %715 = vadd.xlane.f32.xlu0 %v714_v55 }
 0x94a   :  { %796 = vrot.lane.b32.xlu0 %v2598_v8, %s2362_s0 }
 0x9c1   :  { %v716_v58 = vpop.xlane.xlu0 %715 }
 0x9c2   :  { %2322 = vrcp.f32 %v716_v58 }
 0x9c5   :  { %v797_v61 = vpop.permute.xlu0 %796 }
 0x9cc   :  { %v2323_v59 = vpop.eup %2322 }
 0x9cd   :  { %v718_v60 = vmul.f32 %v2323_v59, %v2321_v54 }
 0x9cf   :  { %2134 = vmatmul.mubr.msk.f32.vlgmr.msra.gmra.mrb[12].mxu1 %vm386_vm6, %v718_v60 }
 0x9d0   :  { %2137 = vmatpush3.xpose.msk.msra.mxu1 %vm296_vm4, %v799_v57  ;;  %2138 = vmatprep.mubr.msk.f32.mxu1 %vm2351_vm3, %v2352_v56 }
 0x9d1   :  { %2141 = vmatprep.subr.mxu1 %v2352_v56 }
 0x9d3   :  { %2139 = vmatmul.mubr.msk.f32.vlgmr.msra.gmra.mrb[14].mxu1 %vm296_vm4, %v797_v61 }
 0x9d4   :  { %2143 = vmatprep.mubr.msk.f32.mxu1 %vm2351_vm3, %v2352_v56 }
 0xaa2   :  { %v2665_v62 = vpop.f32.mrb[12].mxu1 }
 0xaa3   :  { %v2135_v63 = vpop.f32.mrb[13].mxu1 }
 0xaa6   :  { %v870_v1 = vpop.f32.mrb[14].mxu1 }
 0xaa7   :  { %v874_v2 = vmul.f32 0.35355338, %v870_v1  ;;  %v2140_v3 = vpop.f32.mrb[15].mxu1 }
 0xaa9   :  { %v875_v4 = vsel %vm372_vm5, %v874_v2, -inf }
 0xaaa   :  { %876 = vmax.xlane.f32.xlu1 %v875_v4 }
 0xabb   :  { %886 = vrot.lane.b32.xlu1 %v2598_v8, %s2363_s20 }
 0xabf   :  { %981 = vrot.lane.b32.xlu1 %v2671_v5, %s2354_s5  ;;  %s2366_s5 = smov 24  }
 0xac3   :  { %1148 = vrot.lane.b32.xlu1 %v2671_v5, %s2355_s28 }
 0xac7   :  { %1146 = vrot.lane.b32.xlu1 %v2671_v5, %s2356_s7 }
 0xacb   :  { %1313 = vrot.lane.b32.xlu1 %v2671_v5, %s2359_s2 }
 0xacf   :  { %1482 = vrot.lane.b32.xlu1 %v2671_v5, %s2361_s19 }
 0xad3   :  { %1480 = vrot.lane.b32.xlu1 %v2671_v5, %s2362_s0 }
 0xb37   :  { %v877_v6 = vpop.xlane.xlu1 %876 }
 0xb38   :  { %v878_v7 = vsub.f32 %v874_v2, %v877_v6 }
 0xb3a   :  { %v879_v8 = vmul.f32 1.442695, %v878_v7 }
 0xb3b   :  { %v887_v9 = vpop.permute.xlu1 %886 }
 0xb3c   :  { %2324 = vpow2.f32 %v879_v8  ;;  %2142 = vmatpush3.msk.msra.mxu1 %vm170_vm1, %v887_v9 }
 0xb3d   :  { %2146 = vmatprep.subr.mxu1 %v2352_v56 }
 0xb3f   :  { %v982_v10 = vpop.permute.xlu1 %981 }
 0xb43   :  { %v1149_v11 = vpop.permute.xlu1 %1148 }
 0xb44   :  { %2157 = vmatpush3.xpose.msk.msra.mxu0 %vm296_vm4, %v1149_v11 }
 0xb45   :  { %2166 = vmatprep.subr.mxu0 %v2352_v56 }
 0xb46   :  { %v2325_v12 = vpop.eup %2324 }
 0xb47   :  { %v1147_v13 = vpop.permute.xlu1 %1146  ;;  %v881_v14 = vsel %vm372_vm5, %v2325_v12, 0.0 }
 0xb48   :  { %882 = vadd.xlane.f32.xlu0 %v881_v14  ;;  %2159 = vmatmul.mubr.msk.f32.vlgmr.msra.gmra.mrb[2].mxu0 %vm296_vm4, %v1147_v13 }
 0xb49   :  { %2168 = vmatprep.mubr.msk.f32.mxu0 %vm2351_vm3, %v2352_v56 }
 0xb4b   :  { %v1314_v15 = vpop.permute.xlu1 %1313 }
 0xb4f   :  { %v1483_v18 = vpop.permute.xlu1 %1482 }
 0xb53   :  { %v1481_v20 = vpop.permute.xlu1 %1480 }
 0xb5e   :  { %1315 = vrot.lane.b32.xlu0 %v2671_v5, %s2358_s1 }
 0xbd5   :  { %v883_v16 = vpop.xlane.xlu0 %882 }
 0xbd6   :  { %2326 = vrcp.f32 %v883_v16 }
 0xbd9   :  { %v1316_v17 = vpop.permute.xlu0 %1315 }
 0xbda   :  { %2167 = vmatpush3.xpose.msk.msra.mxu0 %vm296_vm4, %v1316_v17  ;;  %v209_v17 = vld [vmem:[%s2862_s8] sm:$0xff] }
 0xbdb   :  { %2176 = vmatprep.subr.mxu0 %v2352_v56 }
 0xbdd   :  { %2169 = vmatmul.mubr.msk.f32.vlgmr.msra.gmra.mrb[4].mxu0 %vm296_vm4, %v1314_v15 }
 0xbde   :  { %2177 = vmatpush3.xpose.msk.msra.mxu0 %vm296_vm4, %v1483_v18  ;;  %2178 = vmatprep.mubr.msk.f32.mxu0 %vm2351_vm3, %v2352_v56  ;;  %v210_v18 = vld [vmem:[%s2862_s8 + $0x8] sm:$0xff] }
 0xbdf   :  { %2281 = vmatprep.subr.bf16.mxu0 %v2350_v0 }
 0xbe0   :  { %v2327_v19 = vpop.eup %2326 }
 0xbe1   :  { %v885_v21 = vmul.f32 %v2327_v19, %v2325_v12  ;;  %2179 = vmatmul.mubr.msk.f32.vlgmr.msra.gmra.mrb[6].mxu0 %vm296_vm4, %v1481_v20  ;;  %v2270_v19 = vpack.c.bf16 %v210_v18, %v209_v17  ;;  %v1786_v17 = vld [vmem:[%s2867_s14 + $0x30] sm:$0xff]  ;;  %v1787_v18 = vld [vmem:[%s2867_s14 + $0x38] sm:$0xff] }
 0xbe2   :  { %2224 = vmatprep.mubr.msk.f32.mxu0 %vm2351_vm3, %v2352_v56 }
 0xbe3   :  { %2144 = vmatmul.mubr.msk.f32.vlgmr.msra.gmra.mrb[16].mxu1 %vm386_vm6, %v885_v21 }
 0xbe4   :  { %2147 = vmatpush3.xpose.msk.msra.mxu1 %vm296_vm4, %v982_v10  ;;  %2148 = vmatprep.mubr.msk.f32.mxu1 %vm2351_vm3, %v2352_v56 }
 0xbe5   :  { %2151 = vmatprep.subr.mxu1 %v2352_v56 }
 0xbe7   :  { %2149 = vmatmul.mubr.msk.f32.vlgmr.msra.gmra.mrb[18].mxu1 %vm296_vm4, %v2671_v5 }
 0xbe8   :  { %2153 = vmatprep.mubr.msk.f32.mxu1 %vm2351_vm3, %v2352_v56 }
 0xc1b   :  { %v1220_v22 = vpop.f32.mrb[2].mxu0 }
 0xc1c   :  { %v1224_v23 = vmul.f32 0.35355338, %v1220_v22  ;;  %v2160_v24 = vpop.f32.mrb[3].mxu0  ;;  %v211_v22 = vld [vmem:[%s2862_s8 + $0x10] sm:$0xff] }
 0xc1e   :  { %v1225_v25 = vsel %vm372_vm5, %v1224_v23, -inf }
 0xc1f   :  { %1226 = vmax.xlane.f32.xlu0 %v1225_v25 }
 0xcac   :  { %v1227_v28 = vpop.xlane.xlu0 %1226 }
 0xcad   :  { %v1228_v30 = vsub.f32 %v1224_v23, %v1227_v28  ;;  %v212_v23 = vld [vmem:[%s2862_s8 + $0x18] sm:$0xff] }
 0xcae   :  { %v2273_v24 = vpack.c.bf16 %v212_v23, %v211_v22 }
 0xcaf   :  { %v1229_v35 = vmul.f32 1.442695, %v1228_v30 }
 0xcb0   :  { %v1387_v27 = vpop.f32.mrb[4].mxu0 }
 0xcb1   :  { %v2170_v29 = vpop.f32.mrb[5].mxu0  ;;  %2328 = vpow2.f32 %v1229_v35  ;;  %v1391_v39 = vmul.f32 0.35355338, %v1387_v27 }
 0xcb3   :  { %v1392_v42 = vsel %vm372_vm5, %v1391_v39, -inf }
 0xcb4   :  { %v1554_v31 = vpop.f32.mrb[6].mxu0 }
 0xcb5   :  { %v2180_v32 = vpop.f32.mrb[7].mxu0  ;;  %v1558_v41 = vmul.f32 0.35355338, %v1554_v31 }
 0xcb6   :  { %v2714_v33 = vpop.f32.mrb[16].mxu1 }
 0xcb7   :  { %v2145_v34 = vpop.f32.mrb[17].mxu1  ;;  %v1559_v43 = vsel %vm372_vm5, %v1558_v41, -inf }
 0xcba   :  { %v1053_v36 = vpop.f32.mrb[18].mxu1 }
 0xcbb   :  { %v1057_v37 = vmul.f32 0.35355338, %v1053_v36  ;;  %v2150_v38 = vpop.f32.mrb[19].mxu1  ;;  %v2329_v45 = vpop.eup %2328 }
 0xcbc   :  { %v1231_v47 = vsel %vm372_vm5, %v2329_v45, 0.0 }
 0xcbd   :  { %v1058_v40 = vsel %vm372_vm5, %v1057_v37, -inf }
 0xcbe   :  { %1059 = vmax.xlane.f32.xlu1 %v1058_v40 }
 0xcc2   :  { %1393 = vmax.xlane.f32.xlu1 %v1392_v42 }
 0xcc6   :  { %1560 = vmax.xlane.f32.xlu1 %v1559_v43 }
 0xcca   :  { %1232 = vadd.xlane.f32.xlu1 %v1231_v47  ;;  %v2029_v47 = vld [vmem:[%s2863_s9] ss:$0 sm:$0xff] }
 0xd4b   :  { %v1060_v48 = vpop.xlane.xlu1 %1059 }
 0xd4c   :  { %v1061_v49 = vsub.f32 %v1057_v37, %v1060_v48 }
 0xd4e   :  { %v1062_v52 = vmul.f32 1.442695, %v1061_v49 }
 0xd4f   :  { %v1394_v50 = vpop.xlane.xlu1 %1393 }
 0xd50   :  { %v1395_v51 = vsub.f32 %v1391_v39, %v1394_v50 }
 0xd52   :  { %v1396_v53 = vmul.f32 1.442695, %v1395_v51 }
 0xd53   :  { %v1561_v54 = vpop.xlane.xlu1 %1560 }
 0xd54   :  { %2330 = vpow2.f32 %v1396_v53  ;;  %v1562_v55 = vsub.f32 %v1558_v41, %v1561_v54 }
 0xd55   :  { %2332 = vpow2.f32 %v1062_v52 }
 0xd56   :  { %v1563_v57 = vmul.f32 1.442695, %v1562_v55 }
 0xd57   :  { %v1233_v3 = vpop.xlane.xlu1 %1232 }
 0xd58   :  { %2334 = vpow2.f32 %v1563_v57  ;;  %v1775_v57 = vld [vmem:[%s2864_s12] sm:$0xff] }
 0xd5e   :  { %v2331_v58 = vpop.eup %2330 }
 0xd5f   :  { %v1398_v59 = vsel %vm372_vm5, %v2331_v58, 0.0  ;;  %v2333_v60 = vpop.eup %2332 }
 0xd60   :  { %1399 = vadd.xlane.f32.xlu0 %v1398_v59  ;;  %v1064_v63 = vsel %vm372_vm5, %v2333_v60, 0.0  ;;  %v1777_v59 = vld [vmem:[%s2864_s12 + $0x10] sm:$0xff] }
 0xd62   :  { %v2335_v61 = vpop.eup %2334 }
 0xd63   :  { %v1565_v1 = vsel %vm372_vm5, %v2335_v61, 0.0 }
 0xd64   :  { %1065 = vadd.xlane.f32.xlu0 %v1064_v63  ;;  %1566 = vadd.xlane.f32.xlu1 %v1565_v1 }
 0xd75   :  { %1236 = vrot.lane.b32.xlu1 %v2671_v5, %s2357_s30 }
 0xd79   :  { %1403 = vrot.lane.b32.xlu1 %v2671_v5, %s2360_s29 }
 0xd7a   :  { %1069 = vrot.lane.b32.xlu0 %v2671_v5, %s2353_s4  ;;  %s2365_s4 = smov 16  }
 0xd7d   :  { %964 = vrot.lane.b32.xlu1 %v2652_v44, %s2364_s21 }
 0xd7e   :  { %1570 = vrot.lane.b32.xlu0 %v2671_v5, %s2363_s20 }
 0xded   :  { %v1400_v2 = vpop.xlane.xlu0 %1399 }
 0xdf1   :  { %v1066_v4 = vpop.xlane.xlu0 %1065  ;;  %v1567_v7 = vpop.xlane.xlu1 %1566 }
 0xdf2   :  { %2336 = vrcp.f32 %v1066_v4  ;;  %v2031_v4 = vld [vmem:[%s2865_s10] ss:$0 sm:$0xff] }
 0xdf3   :  { %2338 = vrcp.f32 %v1233_v3 }
 0xdf4   :  { %2340 = vrcp.f32 %v1400_v2 }
 0xdf5   :  { %v1070_v6 = vpop.permute.xlu0 %1069  ;;  %2342 = vrcp.f32 %v1567_v7  ;;  %v1237_v10 = vpop.permute.xlu1 %1236  ;;  %v2032_v7 = vld [vmem:[%s2866_s11] ss:$0 sm:$0xff] }
 0xdf6   :  { %2152 = vmatpush3.msk.msra.mxu1 %vm170_vm1, %v1070_v6 }
 0xdf7   :  { %2161 = vmatprep.subr.mxu1 %v2352_v56 }
 0xdf9   :  { %v1404_v12 = vpop.permute.xlu1 %1403  ;;  %v1571_v15 = vpop.permute.xlu0 %1570 }
 0xdfc   :  { %v2337_v8 = vpop.eup %2336 }
 0xdfd   :  { %v1068_v9 = vmul.f32 %v2337_v8, %v2333_v60  ;;  %v2339_v44 = vpop.eup %2338  ;;  %v965_v32 = vpop.permute.xlu1 %964  ;;  %v1778_v60 = vld [vmem:[%s2864_s12 + $0x18] sm:$0xff] }
 0xdfe   :  { %v1235_v5 = vmul.f32 %v2339_v44, %v2329_v45  ;;  %v2341_v11 = vpop.eup %2340  ;;  %v1781_v44 = vld [vmem:[%s2867_s14 + $0x8] sm:$0xff] }
 0xdff   :  { %2154 = vmatmul.mubr.msk.f32.vlgmr.msra.gmra.mrb[20].mxu1 %vm386_vm6, %v1068_v9  ;;  %v1402_v13 = vmul.f32 %v2341_v11, %v2331_v58  ;;  %v2343_v14 = vpop.eup %2342  ;;  %v1782_v11 = vld [vmem:[%s2867_s14 + $0x10] sm:$0xff] }
 0xe00   :  { %2162 = vmatpush3.msk.msra.mxu1 %vm170_vm1, %v1237_v10  ;;  %2163 = vmatprep.mubr.msk.f32.mxu1 %vm2351_vm3, %v2352_v56  ;;  %v1569_v16 = vmul.f32 %v2343_v14, %v2335_v61  ;;  %v2279_v61 = vpack.c.bf16 %v1778_v60, %v1777_v59  ;;  %v1780_v10 = vld [vmem:[%s2867_s14] sm:$0xff] }
 0xe01   :  { %2171 = vmatprep.subr.mxu1 %v2352_v56  ;;  %v1784_v14 = vld [vmem:[%s2867_s14 + $0x20] sm:$0xff] }
 0xe03   :  { %2164 = vmatmul.mubr.msk.f32.vlgmr.msra.gmra.mrb[22].mxu1 %vm386_vm6, %v1235_v5  ;;  %v2282_v5 = vpack.c.bf16 %v1781_v44, %v1780_v10 }
 0xe04   :  { %2172 = vmatpush3.msk.msra.mxu1 %vm170_vm1, %v1404_v12  ;;  %2173 = vmatprep.mubr.msk.f32.mxu1 %vm2351_vm3, %v2352_v56  ;;  %v1783_v12 = vld [vmem:[%s2867_s14 + $0x18] sm:$0xff] }
 0xe05   :  { %2181 = vmatprep.subr.mxu1 %v2352_v56  ;;  %2283 = vmatpush3.bf16.msra.mxu0 %v2282_v5 }
 0xe06   :  { %2284 = vmatprep.subr.bf16.mxu0 %v2350_v0 }
 0xe07   :  { %2174 = vmatmul.mubr.msk.f32.vlgmr.msra.gmra.mrb[24].mxu1 %vm386_vm6, %v1402_v13  ;;  %v2285_v13 = vpack.c.bf16 %v1783_v12, %v1782_v11 }
 0xe08   :  { %2182 = vmatpush3.msk.msra.mxu1 %vm170_vm1, %v1571_v15  ;;  %2183 = vmatprep.mubr.msk.f32.mxu1 %vm2351_vm3, %v2352_v56  ;;  %v1785_v15 = vld [vmem:[%s2867_s14 + $0x28] sm:$0xff] }
 0xe09   :  { %2269 = vmatprep.subr.bf16.mxu1 %v2350_v0  ;;  %2286 = vmatpush3.bf16.msra.mxu0 %v2285_v13 }
 0xe0a   :  { %2287 = vmatprep.subr.bf16.mxu0 %v2350_v0 }
 0xe0b   :  { %2184 = vmatmul.mubr.msk.f32.vlgmr.msra.gmra.mrb[26].mxu1 %vm386_vm6, %v1569_v16  ;;  %v2288_v16 = vpack.c.bf16 %v1785_v15, %v1784_v14 }
 0xe0c   :  { %2194 = vmatprep.mubr.msk.f32.mxu1 %vm2351_vm3, %v2352_v56  ;;  %2271 = vmatpush3.bf16.msra.mxu1 %v2270_v19  ;;  %v2291_v19 = vpack.c.bf16 %v1787_v18, %v1786_v17 }
 0xe0d   :  { %2272 = vmatprep.subr.bf16.mxu1 %v2350_v0  ;;  %2289 = vmatpush3.bf16.msra.mxu0 %v2288_v16 }
 0xe0e   :  { %2290 = vmatprep.subr.bf16.mxu0 %v2350_v0 }
 0xe10   :  { %2274 = vmatpush3.bf16.msra.mxu1 %v2273_v24 }
 0xe11   :  { %2275 = vmatprep.subr.bf16.mxu1 %v2350_v0  ;;  %2292 = vmatpush3.bf16.msra.mxu0 %v2291_v19 }
 0xed2   :  { %v1142_v20 = vpop.f32.mrb[20].mxu1 }
 0xed3   :  { %v2155_v21 = vpop.f32.mrb[21].mxu1 }
 0xed6   :  { %v1309_v25 = vpop.f32.mrb[22].mxu1 }
 0xed7   :  { %1648 = vrot.lane.b32.xlu1 %v1309_v25, %s2364_s21  ;;  %v2165_v27 = vpop.f32.mrb[23].mxu1 }
 0xeda   :  { %v1476_v28 = vpop.f32.mrb[24].mxu1 }
 0xedb   :  { %968 = vrot.lane.b32.xlu1 %v2665_v62, %s2365_s4  ;;  %1652 = vrot.lane.b32.xlu0 %v1476_v28, %s2365_s4  ;;  %v2175_v29 = vpop.f32.mrb[25].mxu1  ;;  %v975_v62 = vsel %vm296_vm4, %v2626_v26, %v965_v32 }
 0xede   :  { %v1643_v30 = vpop.f32.mrb[26].mxu1 }
 0xedf   :  { %1656 = vrot.lane.b32.xlu0 %v1643_v30, %s2366_s5  ;;  %v2185_v31 = vpop.f32.mrb[27].mxu1 }
 0xee3   :  { %972 = vrot.lane.b32.xlu0 %v2714_v33, %s2366_s5 }
 0xf49   :  { %v1649_v34 = vpop.permute.xlu1 %1648 }
 0xf4a   :  { %v1659_v36 = vsel %vm296_vm4, %v1142_v20, %v1649_v34  ;;  %v2033_v20 = vld [vmem:[%s2868_s13] ss:$0 sm:$0xff] }
 0xf4b   :  { %v2035_v34 = vld [vmem:[%s2869_s15] ss:$0 sm:$0xff] }
 0xf4d   :  { %v1653_v35 = vpop.permute.xlu0 %1652  ;;  %v969_v39 = vpop.permute.xlu1 %968 }
 0xf4e   :  { %v1660_v37 = vsel %vm976_vm7, %v1659_v36, %v1653_v35  ;;  %v977_v41 = vsel %vm976_vm7, %v975_v62, %v969_v39 }
 0xf51   :  { %v1657_v38 = vpop.permute.xlu0 %1656 }
 0xf52   :  { %v1661_v40 = vsel %vm978_vm8, %v1660_v37, %v1657_v38 }
 0xf53   :  { %v1663_v42 = vrot.slane %v1661_v40, 4 }
 0xf55   :  { %v973_v43 = vpop.permute.xlu0 %972 }
 0xf56   :  { %v979_v45 = vsel %vm978_vm8, %v977_v41, %v973_v43 }
 0xf57   :  { %v1665_v33 = vsel %vm170_vm1, %v979_v45, %v1663_v42 }
 0xf58   :  { %2195 = vmatmul.mubr.msk.f32.vlgmr.msra.gmra.mrb[28].mxu1 %vm175_vm2, %v1665_v33 }
 0xf59   :  { %2205 = vmatprep.mubr.msk.f32.mxu1 %vm2351_vm3, %v2352_v56 }
0x102b   :  { %v1741_v48 = vpop.f32.mrb[28].mxu1 }
0x102c   :  { %v1742_v49 = vadd.f32 %v2029_v47, %v1741_v48  ;;  %v2196_v50 = vpop.f32.mrb[29].mxu1 }
0x102e   :  { %v2781_v26 = vadd.f32 %v1742_v49, %v2561_v46  ;;  %v1776_v46 = vld [vmem:[%s2864_s12 + $0x8] sm:$0xff]  ;;  %v2037_v49 = vld [vmem:[%s2870_s16] ss:$0 sm:$0xff] }
0x102f   :  { %v2276_v58 = vpack.c.bf16 %v1776_v46, %v1775_v57 }
0x1030   :  { %v1748_v51 = vsel %vm175_vm2, %v2781_v26, 0.0 }
0x1031   :  { %1749 = vadd.xlane.f32.xlu1 %v1748_v51  ;;  %2277 = vmatpush3.bf16.msra.mxu1 %v2276_v58 }
0x1032   :  { %2278 = vmatprep.subr.bf16.mxu1 %v2350_v0 }
0x1035   :  { %2280 = vmatpush3.bf16.msra.mxu1 %v2279_v61 }
0x10be   :  { %v1750_v52 = vpop.xlane.xlu1 %1749 }
0x10bf   :  { %v1751_v53 = vmul.f32 0.03125, %v1750_v52 }
0x10c1   :  { %v1752_v54 = vsub.f32 %v2781_v26, %v1751_v53 }
0x10c3   :  { %v1753_v55 = vmul.f32 %v1752_v54, %v1752_v54 }
0x10c5   :  { %v1754_v56 = vsel %vm175_vm2, %v1753_v55, 0.0 }
0x10c6   :  { %1755 = vadd.xlane.f32.xlu0 %v1754_v56 }
0x1153   :  { %v1756_v63 = vpop.xlane.xlu0 %1755 }
0x1154   :  { %v1757_v1 = vmul.f32 0.03125, %v1756_v63 }
0x1156   :  { %v1758_v2 = vadd.f32 1e-05, %v1757_v1 }
0x1158   :  { %2344 = vrsqrt.f32 %v1758_v2 }
0x1162   :  { %v2345_v3 = vpop.eup %2344 }
0x1163   :  { %v1760_v6 = vmul.f32 %v2345_v3, %v1752_v54 }
0x1165   :  { %v1767_v8 = vmul.f32 %v2031_v4, %v1760_v6 }
0x1167   :  { %v1774_v9 = vadd.f32 %v2032_v7, %v1767_v8 }
0x1169   :  { %2206 = vmatmul.mubr.msk.f32.vlgmr.msra.gmra.mrb[30].mxu1 %vm175_vm2, %v1774_v9 }
0x123c   :  { %v1864_v21 = vpop.f32.mrb[30].mxu1 }
0x123d   :  { %v1865_v22 = vadd.f32 %v2033_v20, %v1864_v21  ;;  %v2207_v23 = vpop.f32.mrb[31].mxu1 }
0x123f   :  { %v1868_v24 = vmul.f32 %v1865_v22, %v1865_v22 }
0x1241   :  { %v1869_v25 = vmul.f32 %v1868_v24, %v1865_v22 }
0x1243   :  { %v1870_v0 = vmul.f32 0.044715, %v1869_v25 }
0x1245   :  { %v1871_v27 = vadd.f32 %v1870_v0, %v1865_v22 }
0x1247   :  { %v1872_v28 = vmul.f32 0.7978846, %v1871_v27 }
0x1249   :  { %2346 = vtanh.f32 %v1872_v28 }
0x1253   :  { %v2347_v29 = vpop.eup %2346 }
0x1254   :  { %v1874_v30 = vadd.f32 1.0, %v2347_v29 }
0x1256   :  { %v1875_v31 = vmul.f32 0.5, %v1874_v30 }
0x1258   :  { %v1876_v32 = vmul.f32 %v1875_v31, %v1865_v22 }
0x125a   :  { %2225 = vmatmul.mubr.msk.f32.vlgmr.msra.gmra.mrb[8].mxu0 %vm92_vm0, %v1876_v32 }
0x132d   :  { %v1952_v35 = vpop.f32.mrb[8].mxu0 }
0x132e   :  { %v1953_v36 = vadd.f32 %v2035_v34, %v1952_v35  ;;  %v2226_v37 = vpop.f32.mrb[9].mxu0 }
0x1330   :  { %v1956_v38 = vadd.f32 %v1953_v36, %v2781_v26  ;;  %v2038_v26 = vld [vmem:[%s2871_s17] ss:$0 sm:$0xff] }
0x1332   :  { %v1959_v39 = vsel %vm175_vm2, %v1956_v38, 0.0 }
0x1333   :  { %1960 = vadd.xlane.f32.xlu0 %v1959_v39 }
0x13c0   :  { %v1961_v40 = vpop.xlane.xlu0 %1960 }
0x13c1   :  { %v1962_v62 = vmul.f32 0.03125, %v1961_v40 }
0x13c3   :  { %v1963_v41 = vsub.f32 %v1956_v38, %v1962_v62 }
0x13c5   :  { %v1964_v42 = vmul.f32 %v1963_v41, %v1963_v41 }
0x13c7   :  { %v1965_v43 = vsel %vm175_vm2, %v1964_v42, 0.0 }
0x13c8   :  { %1966 = vadd.xlane.f32.xlu1 %v1965_v43 }
0x1455   :  { %v1967_v45 = vpop.xlane.xlu1 %1966 }
0x1456   :  { %v1968_v33 = vmul.f32 0.03125, %v1967_v45 }
0x1458   :  { %v1969_v47 = vadd.f32 1e-05, %v1968_v33 }
0x145a   :  { %2348 = vrsqrt.f32 %v1969_v47 }
0x1464   :  { %v2349_v48 = vpop.eup %2348 }
0x1465   :  { %v1971_v50 = vmul.f32 %v2349_v48, %v1963_v41 }
0x1467   :  { %v1978_v51 = vmul.f32 %v2037_v49, %v1971_v50 }
0x1469   :  { %v1985_v52 = vadd.f32 %v2038_v26, %v1978_v51 }
0x146b   :  { %1986 = vst.msk [vmem:[%s2872_s18] sm:$0xff] %vm175_vm2, %v1985_v52 }

// kernel: blip2_generate.4
= control target key start
LH: loop header
LB: loop body
LE: loop exit
PB: predicated region body
PF: predicated region fallthrough
CT: control target
= control target key end

     0   :  { %s5203_s0 = inlined_call_operand.vmem [shape: f32[8,32], index: 0, kind: input, shape index: {}]   ;;  %s5204_s1 = inlined_call_operand.vmem [shape: f32[8,32], index: 1, kind: input, shape index: {}]   ;;  %s5205_s2 = inlined_call_operand.vmem [shape: f32[1,32], index: 2, kind: input, shape index: {}]   ;;  %s5206_s3 = inlined_call_operand.vmem [shape: f32[1,32], index: 3, kind: input, shape index: {}]   ;;  %s5207_s4 = inlined_call_operand.vmem [shape: f32[32,96], index: 4, kind: input, shape index: {}]   ;;  %s5208_s5 = inlined_call_operand.vmem [shape: f32[1,96], index: 5, kind: input, shape index: {}]   ;;  %s5209_s6 = inlined_call_operand.vmem [shape: f32[32,32], index: 6, kind: input, shape index: {}]   ;;  %s5210_s7 = inlined_call_operand.vmem [shape: f32[1,32], index: 7, kind: input, shape index: {}]   ;;  %s5211_s8 = inlined_call_operand.vmem [shape: f32[1,32], index: 8, kind: input, shape index: {}]   ;;  %s5212_s9 = inlined_call_operand.vmem [shape: f32[1,32], index: 9, kind: input, shape index: {}]   ;;  %s5213_s10 = inlined_call_operand.vmem [shape: f32[32,32], index: 10, kind: input, shape index: {}]   ;;  %s5214_s11 = inlined_call_operand.vmem [shape: f32[1,32], index: 11, kind: input, shape index: {}]   ;;  %s5215_s12 = inlined_call_operand.vmem [shape: f32[32,64], index: 12, kind: input, shape index: {}]   ;;  %s5216_s13 = inlined_call_operand.vmem [shape: f32[1,64], index: 13, kind: input, shape index: {}]   ;;  %s5217_s14 = inlined_call_operand.vmem [shape: f32[32,32], index: 14, kind: input, shape index: {}]   ;;  %s5218_s15 = inlined_call_operand.vmem [shape: f32[1,32], index: 15, kind: input, shape index: {}]   ;;  %s5219_s16 = inlined_call_operand.vmem [shape: f32[1,32], index: 16, kind: input, shape index: {}]   ;;  %s5220_s17 = inlined_call_operand.vmem [shape: f32[1,32], index: 17, kind: input, shape index: {}]   ;;  %s5221_s18 = inlined_call_operand.vmem [shape: f32[32,64], index: 18, kind: input, shape index: {}]   ;;  %s5222_s19 = inlined_call_operand.vmem [shape: f32[1,64], index: 19, kind: input, shape index: {}]   ;;  %s5223_s20 = inlined_call_operand.vmem [shape: f32[64,32], index: 20, kind: input, shape index: {}]   ;;  %s5224_s21 = inlined_call_operand.vmem [shape: f32[1,32], index: 21, kind: input, shape index: {}]   ;;  %s5225_s22 = inlined_call_operand.hbm [shape: f32[1,32], index: 22, kind: input, shape index: {}]   ;;  %s5226_s23 = inlined_call_operand.hbm [shape: f32[1,32], index: 23, kind: input, shape index: {}]   ;;  %s5227_s24 = inlined_call_operand.vmem [shape: f32[32,32], index: 24, kind: input, shape index: {}]   ;;  %s5228_s25 = inlined_call_operand.hbm [shape: f32[1,32], index: 25, kind: input, shape index: {}]   ;;  %s5229_s26 = inlined_call_operand.vmem [shape: f32[16,32], index: 26, kind: output, shape index: {}]  }
   0x1   :  { %5235 = sst [smem:[#allocation9_spill]] %s5203_s0 }
   0x2   :  { %5236 = sst [smem:[#allocation10_spill]] %s5204_s1 }
   0x3   :  { %5237 = sst [smem:[#allocation11_spill]] %s5205_s2 }
   0x4   :  { %5238 = sst [smem:[#allocation12_spill]] %s5206_s3 }
   0x5   :  { %5239 = sst [smem:[#allocation13_spill]] %s5207_s4 }
   0x6   :  { %5240 = sst [smem:[#allocation14_spill]] %s5208_s5 }
   0x7   :  { %5241 = sst [smem:[#allocation15_spill]] %s5209_s6 }
   0x8   :  { %5242 = sst [smem:[#allocation16_spill]] %s5210_s7 }
   0x9   :  { %5243 = sst [smem:[#allocation17_spill]] %s5211_s8 }
   0xa   :  { %5244 = sst [smem:[#allocation18_spill]] %s5212_s9 }
   0xb   :  { %5245 = sst [smem:[#allocation19_spill]] %s5213_s10 }
   0xc   :  { %31 = vsyncpa [#allocation3], 0 }
   0xd   :  { %32 = vsyncpa [#allocation5], 0  ;;  %s4468_s27 = smov [#allocation4]   ;;  %s4469_s7 = smov [#allocation2]  }
   0xe   :  { %s93_s3 = sshll.u32 %s4468_s27, 4  ;;  %s83_s28 = sshll.u32 %s4469_s7, 4  ;;  %s94_s3 = int_to_ptr.vmem [resolvable:$true] %s93_s3  ;;  %s84_s28 = int_to_ptr.vmem [resolvable:$true] %s83_s28 }
   0xf   :  { %s4398_s29 = scalar_lea.hbm %s5226_s23, 16 }
  0x10   :  { %p4399_p0 = scmp.ne.s32.totalorder %s5226_s23, %s4398_s29  ;;  %p4402_p1 = scmp.lt.u32.totalorder %s4398_s29, %s5226_s23 }
  0x12   :  { %p4404_p2 = pnand %p4402_p1, %p4399_p0 }
  0x14   :  { %4407 = shalt.err (!%p4404_p2)
}
  0x15   :  { %s4408_s5 = scalar_lea.vmem %s94_s3, 16  ;;  %s4412_s10 = scalar_lea.vmem %s94_s3, 32 }
  0x16   :  { %p4409_p3 = scmp.ne.s32.totalorder %s94_s3, %s4408_s5  ;;  %p4413_p4 = scmp.lt.s32.totalorder %s94_s3, %s94_s3 }
  0x17   :  { %p4414_p5 = scmp.lt.s32.totalorder %s4412_s10, %s4408_s5 }
  0x19   :  { %p4415_p6 = por %p4414_p5, %p4413_p4 }
  0x1b   :  { %p4416_p7 = pnand %p4415_p6, %p4409_p3 }
  0x1d   :  { %4419 = shalt.err (!%p4416_p7)
}
  0x1e   :  { %96 = dma.hbm_to_vmem [thread:$0]  %s5226_s23, 16, %s94_s3, [#allocation5]  }
  0x1f   :  { %s4420_s8 = scalar_lea.hbm %s5225_s22, 16 }
  0x20   :  { %p4421_p8 = scmp.ne.s32.totalorder %s5225_s22, %s4420_s8  ;;  %p4424_p9 = scmp.lt.u32.totalorder %s4420_s8, %s5225_s22 }
  0x22   :  { %p4426_p10 = pnand %p4424_p9, %p4421_p8 }
  0x24   :  { %4429 = shalt.err (!%p4426_p10)
}
  0x25   :  { %s4430_s30 = scalar_lea.vmem %s84_s28, 16  ;;  %s4434_s2 = scalar_lea.vmem %s84_s28, 32 }
  0x26   :  { %p4431_p11 = scmp.ne.s32.totalorder %s84_s28, %s4430_s30  ;;  %p4435_p12 = scmp.lt.s32.totalorder %s84_s28, %s84_s28 }
  0x27   :  { %p4436_p13 = scmp.lt.s32.totalorder %s4434_s2, %s4430_s30 }
  0x29   :  { %p4437_p0 = por %p4436_p13, %p4435_p12 }
  0x2b   :  { %p4438_p1 = pnand %p4437_p0, %p4431_p11 }
  0x2d   :  { %4441 = shalt.err (!%p4438_p1)
}
  0x2e   :  { %86 = dma.hbm_to_vmem [thread:$0]  %s5225_s22, 16, %s84_s28, [#allocation3]  }
  0x2f   :  { %s4470_s5 = smov [#allocation6]   ;;  %s4442_s27 = scalar_lea.hbm %s5228_s25, 16 }
  0x30   :  { %s105_s10 = sshll.u32 %s4470_s5, 4  ;;  %p4443_p2 = scmp.ne.s32.totalorder %s5228_s25, %s4442_s27  ;;  %s106_s10 = int_to_ptr.vmem [resolvable:$true] %s105_s10 }
  0x31   :  { %p4446_p3 = scmp.lt.u32.totalorder %s4442_s27, %s5228_s25 }
  0x33   :  { %p4448_p4 = pnand %p4446_p3, %p4443_p2 }
  0x35   :  { %4451 = shalt.err (!%p4448_p4)
}
  0x36   :  { %s4452_s0 = scalar_lea.vmem %s106_s10, 16  ;;  %s4456_s22 = scalar_lea.vmem %s106_s10, 32 }
  0x37   :  { %p4453_p5 = scmp.ne.s32.totalorder %s106_s10, %s4452_s0  ;;  %p4457_p6 = scmp.lt.s32.totalorder %s106_s10, %s106_s10 }
  0x38   :  { %p4458_p7 = scmp.lt.s32.totalorder %s4456_s22, %s4452_s0 }
  0x3a   :  { %p4459_p8 = por %p4458_p7, %p4457_p6 }
  0x3c   :  { %p4460_p9 = pnand %p4459_p8, %p4453_p5 }
  0x3e   :  { %4463 = shalt.err (!%p4460_p9)
}
  0x3f   :  { %108 = dma.hbm_to_vmem [thread:$0]  %s5228_s25, 16, %s106_s10, [#allocation5]  }
  0x40   :  { %4464 = dma.done.wait [#allocation3], 16  }
  0x41   :  { %4465 = vsyncadd [#allocation3], 4294967280 }
  0x42   :  { %4466 = dma.done.wait [#allocation5], 32  }
  0x43   :  { %4467 = vsyncadd [#allocation5], 4294967264  ;;  %vm122_vm0 = vcmask 261120   ;;  %s5246_s23 = sld [smem:[#allocation10_spill]]  ;;  %s5247_s5 = sld [smem:[#allocation13_spill]]  ;;  %v4471_v22 = vmov 0.0  }
  0x44   :  { %s5248_s0 = sld [smem:[#allocation11_spill]]  ;;  %s5249_s9 = sld [smem:[#allocation12_spill]]  ;;  %3981 = vmatprep.subr.mxu1 %v4471_v22  ;;  %vm4472_vm1 = vmmov 0   ;;  %vm248_vm2 = vcmask 64512   ;;  %vm922_vm3 = vcmask 130048   ;;  %vm924_vm4 = vcmask 195584  }
  0x45   :  { %3983 = vmatprep.mubr.msk.f32.mxu1 %vm4472_vm1, %v4471_v22  ;;  %s4473_s25 = smov 64   ;;  %s4474_s3 = smov 96   ;;  %vm1995_vm5 = vcmask 31744   ;;  %vm2012_vm6 = vcmask 1043456   ;;  %vm3540_vm7 = vcmask 523264  }
  0x46   :  { %s4476_s10 = smov 120   ;;  %s4477_s6 = smov 80  }
  0x47   :  { %s4478_s1 = smov 72   ;;  %s4479_s27 = smov 112  }
  0x48   :  { %s4480_s7 = smov 104   ;;  %s4481_s8 = smov 56  }
  0x49   :  { %v4662_v0 = vld [vmem:[%s5246_s23] sm:$0xff]  ;;  %v152_v8 = vld [vmem:[%s5247_s5 + $0x8] sm:$0xff]  ;;  %v153_v9 = vld [vmem:[%s5247_s5 + $0x10] sm:$0xff]  ;;  %s5250_s23 = sld [smem:[#allocation14_spill]]  ;;  %s4482_s4 = smov 40  }
  0x4a   :  { %v123_v1 = vsel %vm122_vm0, %v4662_v0, 0.0  ;;  %v151_v7 = vld [vmem:[%s5247_s5] sm:$0xff]  ;;  %v154_v11 = vld [vmem:[%s5247_s5 + $0x18] sm:$0xff]  ;;  %s4475_s5 = smov 88   ;;  %s4483_s29 = smov 48  }
  0x4b   :  { %124 = vadd.xlane.f32.xlu0 %v123_v1  ;;  %v4226_v10 = vpack.c.bf16 %v152_v8, %v151_v7  ;;  %v4230_v12 = vpack.c.bf16 %v154_v11, %v153_v9  ;;  %v3768_v17 = vld [vmem:[%s5248_s0] ss:$0 sm:$0xff]  ;;  %s4484_s0 = smov 8   ;;  %s5233_s22 = smov 24  }
  0x4c   :  { %v3769_v19 = vld [vmem:[%s5249_s9] ss:$0 sm:$0xff]  ;;  %s5251_s9 = sld [smem:[#allocation15_spill]]  ;;  %s5252_s30 = sld [smem:[#allocation16_spill]] }
  0x4d   :  { %4227 = vmatprep.subr.bf16.mxu0 %v4226_v10  ;;  %s5254_s28 = sld [smem:[#allocation19_spill]] }
  0x4e   :  { %4229 = vmatpush3.bf16.msra.mxu0 %v4226_v10 }
  0x4f   :  { %4231 = vmatprep.subr.bf16.mxu0 %v4230_v12  ;;  %v3770_v23 = vld [vmem:[%s5250_s23] ss:$0 sm:$0xff]  ;;  %s4485_s23 = smov 16  }
  0x52   :  { %4233 = vmatpush3.bf16.msra.mxu0 %v4230_v12 }
  0x53   :  { %4001 = vmatprep.subr.mxu0 %v4471_v22 }
  0xd8   :  { %v125_v2 = vpop.xlane.xlu0 %124 }
  0xd9   :  { %v127_v3 = vmul.f32 0.03125, %v125_v2 }
  0xdb   :  { %v128_v4 = vsub.f32 %v4662_v0, %v127_v3 }
  0xdd   :  { %v129_v5 = vmul.f32 %v128_v4, %v128_v4 }
  0xdf   :  { %v130_v6 = vsel %vm122_vm0, %v129_v5, 0.0 }
  0xe0   :  { %131 = vadd.xlane.f32.xlu0 %v130_v6 }
 0x16d   :  { %v132_v13 = vpop.xlane.xlu0 %131 }
 0x16e   :  { %v133_v14 = vmul.f32 0.03125, %v132_v13 }
 0x170   :  { %v134_v15 = vadd.f32 1e-12, %v133_v14 }
 0x172   :  { %4316 = vrsqrt.f32 %v134_v15 }
 0x17c   :  { %v4317_v16 = vpop.eup %4316 }
 0x17d   :  { %v136_v18 = vmul.f32 %v4317_v16, %v128_v4 }
 0x17f   :  { %v143_v20 = vmul.f32 %v3768_v17, %v136_v18 }
 0x181   :  { %v150_v21 = vadd.f32 %v3769_v19, %v143_v20 }
 0x183   :  { %3978 = vmatprep.mubr.msk.f32.mxu0 %vm122_vm0, %v150_v21 }
 0x184   :  { %3979 = vmatmul.mubr.msk.f32.vlgmr.msra.gmra.mrb[0].mxu0 %vm122_vm0, %v150_v21 }
 0x185   :  { %4003 = vmatprep.mubr.msk.f32.mxu0 %vm4472_vm1, %v4471_v22 }
 0x257   :  { %v3980_v24 = vpop.f32.mrb[0].mxu0 }
 0x258   :  { %v4697_v25 = vadd.f32 %v3980_v24, %v3770_v23  ;;  %v236_v26 = vpop.f32.mrb[1].mxu0 }
 0x259   :  { %v4699_v27 = vadd.f32 %v3770_v23, %v236_v26 }
 0x25b   :  { %335 = vrot.lane.b32.xlu0 %v4699_v27, %s4473_s25  ;;  %246 = vrot.lane.b32.xlu1 %v4699_v27, %s4474_s3 }
 0x25f   :  { %413 = vrot.lane.b32.xlu0 %v4699_v27, %s4475_s5 }
 0x263   :  { %411 = vrot.lane.b32.xlu0 %v4699_v27, %s4476_s10 }
 0x2cd   :  { %v247_v28 = vpop.permute.xlu1 %246  ;;  %v336_v29 = vpop.permute.xlu0 %335 }
 0x2ce   :  { %3982 = vmatpush3.xpose.msk.msra.mxu1 %vm248_vm2, %v247_v28 }
 0x2cf   :  { %3986 = vmatprep.subr.mxu1 %v4471_v22 }
 0x2d1   :  { %3984 = vmatmul.mubr.msk.f32.vlgmr.msra.gmra.mrb[0].mxu1 %vm248_vm2, %v4699_v27  ;;  %v414_v40 = vpop.permute.xlu0 %413 }
 0x2d2   :  { %3987 = vmatpush3.msra.mxu1 %v336_v29  ;;  %3988 = vmatprep.mubr.msk.f32.mxu1 %vm4472_vm1, %v4471_v22 }
 0x2d3   :  { %3991 = vmatprep.subr.mxu1 %v4471_v22 }
 0x2d5   :  { %v412_v41 = vpop.permute.xlu0 %411 }
 0x3a4   :  { %v319_v30 = vpop.f32.mrb[0].mxu1 }
 0x3a5   :  { %v323_v31 = vmul.f32 0.35355338, %v319_v30  ;;  %v3985_v32 = vpop.f32.mrb[1].mxu1 }
 0x3a7   :  { %v324_v33 = vsel %vm248_vm2, %v323_v31, -inf }
 0x3a8   :  { %325 = vmax.xlane.f32.xlu1 %v324_v33 }
 0x3b9   :  { %579 = vrot.lane.b32.xlu1 %v4699_v27, %s4477_s6 }
 0x3bd   :  { %1093 = vrot.lane.b32.xlu1 %v4697_v25, %s4475_s5 }
 0x3c1   :  { %1259 = vrot.lane.b32.xlu1 %v4697_v25, %s4477_s6 }
 0x3c5   :  { %1425 = vrot.lane.b32.xlu1 %v4697_v25, %s4478_s1 }
 0x435   :  { %v326_v34 = vpop.xlane.xlu1 %325 }
 0x436   :  { %v327_v35 = vsub.f32 %v323_v31, %v326_v34 }
 0x438   :  { %v328_v36 = vmul.f32 1.442695, %v327_v35 }
 0x439   :  { %v580_v37 = vpop.permute.xlu1 %579 }
 0x43a   :  { %4318 = vpow2.f32 %v328_v36  ;;  %4002 = vmatpush3.xpose.msk.msra.mxu0 %vm248_vm2, %v580_v37 }
 0x43b   :  { %4011 = vmatprep.subr.mxu0 %v4471_v22 }
 0x43d   :  { %v1094_v48 = vpop.permute.xlu1 %1093 }
 0x441   :  { %v1260_v51 = vpop.permute.xlu1 %1259 }
 0x444   :  { %v4319_v38 = vpop.eup %4318 }
 0x445   :  { %v330_v39 = vsel %vm248_vm2, %v4319_v38, 0.0  ;;  %v1426_v53 = vpop.permute.xlu1 %1425 }
 0x446   :  { %331 = vadd.xlane.f32.xlu0 %v330_v39 }
 0x45c   :  { %577 = vrot.lane.b32.xlu0 %v4699_v27, %s4479_s27 }
 0x460   :  { %745 = vrot.lane.b32.xlu0 %v4699_v27, %s4478_s1 }
 0x464   :  { %743 = vrot.lane.b32.xlu0 %v4699_v27, %s4480_s7 }
 0x468   :  { %927 = vrot.lane.b32.xlu0 %v4697_v25, %s4474_s3 }
 0x46c   :  { %1091 = vrot.lane.b32.xlu0 %v4697_v25, %s4476_s10 }
 0x470   :  { %1257 = vrot.lane.b32.xlu0 %v4697_v25, %s4479_s27 }
 0x474   :  { %1423 = vrot.lane.b32.xlu0 %v4697_v25, %s4480_s7 }
 0x4d3   :  { %v332_v42 = vpop.xlane.xlu0 %331 }
 0x4d4   :  { %4320 = vrcp.f32 %v332_v42 }
 0x4d7   :  { %v578_v43 = vpop.permute.xlu0 %577 }
 0x4d8   :  { %4004 = vmatmul.mubr.msk.f32.vlgmr.msra.gmra.mrb[2].mxu0 %vm248_vm2, %v578_v43 }
 0x4d9   :  { %4013 = vmatprep.mubr.msk.f32.mxu0 %vm4472_vm1, %v4471_v22 }
 0x4db   :  { %v746_v44 = vpop.permute.xlu0 %745 }
 0x4dc   :  { %4012 = vmatpush3.xpose.msk.msra.mxu0 %vm248_vm2, %v746_v44 }
 0x4dd   :  { %4021 = vmatprep.subr.mxu0 %v4471_v22 }
 0x4de   :  { %v4321_v45 = vpop.eup %4320 }
 0x4df   :  { %v334_v46 = vmul.f32 %v4321_v45, %v4319_v38  ;;  %v744_v47 = vpop.permute.xlu0 %743 }
 0x4e0   :  { %4014 = vmatmul.mubr.msk.f32.vlgmr.msra.gmra.mrb[4].mxu0 %vm248_vm2, %v744_v47 }
 0x4e1   :  { %3989 = vmatmul.mubr.msk.f32.vlgmr.msra.gmra.mrb[2].mxu1 %vm248_vm2, %v334_v46  ;;  %4023 = vmatprep.mubr.msk.f32.mxu0 %vm4472_vm1, %v4471_v22 }
 0x4e2   :  { %3992 = vmatpush3.xpose.msk.msra.mxu1 %vm248_vm2, %v414_v40  ;;  %3993 = vmatprep.mubr.msk.f32.mxu1 %vm4472_vm1, %v4471_v22 }
 0x4e3   :  { %v928_v49 = vpop.permute.xlu0 %927  ;;  %3996 = vmatprep.subr.mxu1 %v4471_v22 }
 0x4e4   :  { %4022 = vmatpush3.xpose.msk.msra.mxu0 %vm248_vm2, %v928_v49 }
 0x4e5   :  { %3994 = vmatmul.mubr.msk.f32.vlgmr.msra.gmra.mrb[4].mxu1 %vm248_vm2, %v412_v41  ;;  %4031 = vmatprep.subr.mxu0 %v4471_v22 }
 0x4e6   :  { %3998 = vmatprep.mubr.msk.f32.mxu1 %vm4472_vm1, %v4471_v22 }
 0x4e7   :  { %v1092_v50 = vpop.permute.xlu0 %1091  ;;  %4024 = vmatmul.mubr.msk.f32.vlgmr.msra.gmra.mrb[6].mxu0 %vm248_vm2, %v4697_v25 }
 0x4e8   :  { %4032 = vmatpush3.xpose.msk.msra.mxu0 %vm248_vm2, %v1094_v48  ;;  %4033 = vmatprep.mubr.msk.f32.mxu0 %vm4472_vm1, %v4471_v22 }
 0x4e9   :  { %4041 = vmatprep.subr.mxu0 %v4471_v22 }
 0x4eb   :  { %4034 = vmatmul.mubr.msk.f32.vlgmr.msra.gmra.mrb[8].mxu0 %vm248_vm2, %v1092_v50  ;;  %v1258_v52 = vpop.permute.xlu0 %1257 }
 0x4ec   :  { %4042 = vmatpush3.xpose.msk.msra.mxu0 %vm248_vm2, %v1260_v51  ;;  %4043 = vmatprep.mubr.msk.f32.mxu0 %vm4472_vm1, %v4471_v22 }
 0x4ed   :  { %4051 = vmatprep.subr.mxu0 %v4471_v22 }
 0x4ef   :  { %4044 = vmatmul.mubr.msk.f32.vlgmr.msra.gmra.mrb[10].mxu0 %vm248_vm2, %v1258_v52  ;;  %v1424_v54 = vpop.permute.xlu0 %1423 }
 0x4f0   :  { %4052 = vmatpush3.xpose.msk.msra.mxu0 %vm248_vm2, %v1426_v53  ;;  %4053 = vmatprep.mubr.msk.f32.mxu0 %vm4472_vm1, %v4471_v22 }
 0x4f3   :  { %4054 = vmatmul.mubr.msk.f32.vlgmr.msra.gmra.mrb[12].mxu0 %vm248_vm2, %v1424_v54 }
 0x5ab   :  { %v651_v55 = vpop.f32.mrb[2].mxu0 }
 0x5ac   :  { %v655_v56 = vmul.f32 0.35355338, %v651_v55  ;;  %v4005_v57 = vpop.f32.mrb[3].mxu0 }
 0x5ae   :  { %v656_v58 = vsel %vm248_vm2, %v655_v56, -inf }
 0x5af   :  { %657 = vmax.xlane.f32.xlu0 %v656_v58 }
 0x5b3   :  { %v817_v59 = vpop.f32.mrb[4].mxu0 }
 0x5b4   :  { %v821_v60 = vmul.f32 0.35355338, %v817_v59  ;;  %v4777_v61 = vpop.f32.mrb[2].mxu1  ;;  %v4015_v62 = vpop.f32.mrb[5].mxu0 }
 0x5b5   :  { %v3990_v63 = vpop.f32.mrb[3].mxu1 }
 0x5b6   :  { %v822_v1 = vsel %vm248_vm2, %v821_v60, -inf }
 0x5b7   :  { %823 = vmax.xlane.f32.xlu0 %v822_v1 }
 0x5b8   :  { %v485_v2 = vpop.f32.mrb[4].mxu1 }
 0x5b9   :  { %v489_v3 = vmul.f32 0.35355338, %v485_v2  ;;  %v3995_v4 = vpop.f32.mrb[5].mxu1 }
 0x5ba   :  { %v999_v5 = vpop.f32.mrb[6].mxu0 }
 0x5bb   :  { %v1003_v6 = vmul.f32 0.35355338, %v999_v5  ;;  %v4025_v7 = vpop.f32.mrb[7].mxu0  ;;  %v490_v8 = vsel %vm248_vm2, %v489_v3, -inf }
 0x5bc   :  { %491 = vmax.xlane.f32.xlu1 %v490_v8 }
 0x5bd   :  { %v1004_v9 = vsel %vm248_vm2, %v1003_v6, -inf }
 0x5be   :  { %1005 = vmax.xlane.f32.xlu0 %v1004_v9  ;;  %v1165_v10 = vpop.f32.mrb[8].mxu0 }
 0x5bf   :  { %v1169_v11 = vmul.f32 0.35355338, %v1165_v10  ;;  %v4035_v12 = vpop.f32.mrb[9].mxu0 }
 0x5c1   :  { %v1170_v13 = vsel %vm248_vm2, %v1169_v11, -inf }
 0x5c2   :  { %v1331_v14 = vpop.f32.mrb[10].mxu0  ;;  %1171 = vmax.xlane.f32.xlu1 %v1170_v13 }
 0x5c3   :  { %v1335_v15 = vmul.f32 0.35355338, %v1331_v14  ;;  %v4045_v16 = vpop.f32.mrb[11].mxu0 }
 0x5c5   :  { %v1336_v17 = vsel %vm248_vm2, %v1335_v15, -inf }
 0x5c6   :  { %1337 = vmax.xlane.f32.xlu0 %v1336_v17  ;;  %v1497_v18 = vpop.f32.mrb[12].mxu0 }
 0x5c7   :  { %v1501_v19 = vmul.f32 0.35355338, %v1497_v18  ;;  %v4055_v20 = vpop.f32.mrb[13].mxu0 }
 0x5c9   :  { %v1502_v21 = vsel %vm248_vm2, %v1501_v19, -inf }
 0x5ca   :  { %1503 = vmax.xlane.f32.xlu1 %v1502_v21 }
 0x63c   :  { %v658_v23 = vpop.xlane.xlu0 %657 }
 0x63d   :  { %v659_v24 = vsub.f32 %v655_v56, %v658_v23 }
 0x63f   :  { %v660_v26 = vmul.f32 1.442695, %v659_v24 }
 0x641   :  { %4322 = vpow2.f32 %v660_v26 }
 0x644   :  { %v824_v28 = vpop.xlane.xlu0 %823 }
 0x645   :  { %v825_v29 = vsub.f32 %v821_v60, %v824_v28 }
 0x647   :  { %v826_v30 = vmul.f32 1.442695, %v825_v29  ;;  %v156_v29 = vld [vmem:[%s5251_s9] sm:$0xff] }
 0x649   :  { %4324 = vpow2.f32 %v826_v30  ;;  %v492_v32 = vpop.xlane.xlu1 %491  ;;  %v157_v30 = vld [vmem:[%s5251_s9 + $0x8] sm:$0xff] }
 0x64a   :  { %v493_v44 = vsub.f32 %v489_v3, %v492_v32  ;;  %v4234_v32 = vpack.c.bf16 %v157_v30, %v156_v29 }
 0x64b   :  { %v4785_v31 = vpop.eup %4322  ;;  %v1006_v33 = vpop.xlane.xlu0 %1005 }
 0x64c   :  { %v1007_v34 = vsub.f32 %v1003_v6, %v1006_v33  ;;  %v662_v35 = vsel %vm248_vm2, %v4785_v31, 0.0  ;;  %v494_v49 = vmul.f32 1.442695, %v493_v44  ;;  %4235 = vmatprep.subr.bf16.mxu0 %v4234_v32 }
 0x64d   :  { %663 = vadd.xlane.f32.xlu1 %v662_v35  ;;  %4237 = vmatpush3.bf16.msra.mxu0 %v4234_v32  ;;  %v159_v35 = vld [vmem:[%s5251_s9 + $0x18] sm:$0xff] }
 0x64e   :  { %v1008_v36 = vmul.f32 1.442695, %v1007_v34  ;;  %v158_v34 = vld [vmem:[%s5251_s9 + $0x10] sm:$0xff]  ;;  %s5256_s9 = sld [smem:[#allocation18_spill]] }
 0x64f   :  { %v1172_v37 = vpop.xlane.xlu1 %1171 }
 0x650   :  { %4326 = vpow2.f32 %v1008_v36  ;;  %v1173_v38 = vsub.f32 %v1169_v11, %v1172_v37  ;;  %v4238_v37 = vpack.c.bf16 %v159_v35, %v158_v34 }
 0x652   :  { %v1174_v39 = vmul.f32 1.442695, %v1173_v38  ;;  %4239 = vmatprep.subr.bf16.mxu0 %v4238_v37 }
 0x653   :  { %v4789_v40 = vpop.eup %4324  ;;  %v1338_v41 = vpop.xlane.xlu0 %1337  ;;  %4241 = vmatpush3.bf16.msra.mxu0 %v4238_v37 }
 0x654   :  { %4328 = vpow2.f32 %v1174_v39  ;;  %v1339_v42 = vsub.f32 %v1335_v15, %v1338_v41  ;;  %v828_v43 = vsel %vm248_vm2, %v4789_v40, 0.0 }
 0x655   :  { %829 = vadd.xlane.f32.xlu0 %v828_v43 }
 0x656   :  { %v1340_v45 = vmul.f32 1.442695, %v1339_v42 }
 0x657   :  { %v1504_v46 = vpop.xlane.xlu1 %1503 }
 0x658   :  { %4330 = vpow2.f32 %v1340_v45  ;;  %v1505_v47 = vsub.f32 %v1501_v19, %v1504_v46 }
 0x65a   :  { %v4793_v48 = vpop.eup %4326  ;;  %v1506_v50 = vmul.f32 1.442695, %v1505_v47 }
 0x65b   :  { %v1010_v51 = vsel %vm248_vm2, %v4793_v48, 0.0 }
 0x65c   :  { %4332 = vpow2.f32 %v1506_v50  ;;  %1011 = vadd.xlane.f32.xlu1 %v1010_v51 }
 0x65d   :  { %4334 = vpow2.f32 %v494_v49 }
 0x65e   :  { %v4797_v52 = vpop.eup %4328 }
 0x65f   :  { %v1176_v53 = vsel %vm248_vm2, %v4797_v52, 0.0 }
 0x660   :  { %1177 = vadd.xlane.f32.xlu0 %v1176_v53 }
 0x662   :  { %v4801_v54 = vpop.eup %4330 }
 0x663   :  { %v1342_v55 = vsel %vm248_vm2, %v4801_v54, 0.0 }
 0x664   :  { %1343 = vadd.xlane.f32.xlu1 %v1342_v55 }
 0x666   :  { %v4805_v56 = vpop.eup %4332 }
 0x667   :  { %v1508_v57 = vsel %vm248_vm2, %v4805_v56, 0.0  ;;  %v4335_v58 = vpop.eup %4334 }
 0x668   :  { %1509 = vadd.xlane.f32.xlu0 %v1508_v57  ;;  %v496_v59 = vsel %vm248_vm2, %v4335_v58, 0.0 }
 0x66c   :  { %497 = vadd.xlane.f32.xlu0 %v496_v59 }
 0x675   :  { %501 = vrot.lane.b32.xlu1 %v4699_v27, %s4481_s8 }
 0x679   :  { %833 = vrot.lane.b32.xlu1 %v4699_v27, %s4482_s4 }
 0x67d   :  { %1015 = vrot.lane.b32.xlu1 %v4697_v25, %s4473_s25 }
 0x681   :  { %1181 = vrot.lane.b32.xlu1 %v4697_v25, %s4481_s8  ;;  %s5253_s8 = sld [smem:[#allocation9_spill]] }
 0x682   :  { %667 = vrot.lane.b32.xlu0 %v4699_v27, %s4483_s29 }
 0x685   :  { %1513 = vrot.lane.b32.xlu1 %v4697_v25, %s4482_s4  ;;  %s5255_s4 = sld [smem:[#allocation17_spill]] }
 0x686   :  { %1347 = vrot.lane.b32.xlu0 %v4697_v25, %s4483_s29 }
 0x6da   :  { %v664_v60 = vpop.xlane.xlu1 %663 }
 0x6e2   :  { %v830_v62 = vpop.xlane.xlu0 %829 }
 0x6e9   :  { %v1012_v63 = vpop.xlane.xlu1 %1011 }
 0x6ed   :  { %v1178_v1 = vpop.xlane.xlu0 %1177 }
 0x6f1   :  { %v1344_v2 = vpop.xlane.xlu1 %1343 }
 0x6f5   :  { %v1510_v3 = vpop.xlane.xlu0 %1509  ;;  %v502_v4 = vpop.permute.xlu1 %501 }
 0x6f6   :  { %3997 = vmatpush3.msra.mxu1 %v502_v4 }
 0x6f7   :  { %4006 = vmatprep.subr.mxu1 %v4471_v22 }
 0x6f9   :  { %v498_v5 = vpop.xlane.xlu0 %497  ;;  %v834_v8 = vpop.permute.xlu1 %833 }
 0x6fa   :  { %4336 = vrcp.f32 %v498_v5 }
 0x6fb   :  { %4338 = vrcp.f32 %v664_v60 }
 0x6fc   :  { %4340 = vrcp.f32 %v830_v62 }
 0x6fd   :  { %4342 = vrcp.f32 %v1012_v63  ;;  %v668_v25 = vpop.permute.xlu0 %667  ;;  %v1016_v12 = vpop.permute.xlu1 %1015 }
 0x6fe   :  { %4344 = vrcp.f32 %v1178_v1 }
 0x6ff   :  { %4346 = vrcp.f32 %v1344_v2 }
 0x700   :  { %4348 = vrcp.f32 %v1510_v3 }
 0x701   :  { %v1182_v16 = vpop.permute.xlu1 %1181  ;;  %v1348_v19 = vpop.permute.xlu0 %1347 }
 0x704   :  { %v4337_v6 = vpop.eup %4336 }
 0x705   :  { %v500_v27 = vmul.f32 %v4337_v6, %v4335_v58  ;;  %v4339_v7 = vpop.eup %4338  ;;  %v1514_v23 = vpop.permute.xlu1 %1513 }
 0x706   :  { %v666_v9 = vmul.f32 %v4339_v7, %v4785_v31  ;;  %v4341_v10 = vpop.eup %4340 }
 0x707   :  { %3999 = vmatmul.mubr.msk.f32.vlgmr.msra.gmra.mrb[6].mxu1 %vm248_vm2, %v500_v27  ;;  %v832_v11 = vmul.f32 %v4341_v10, %v4789_v40  ;;  %v4343_v13 = vpop.eup %4342 }
 0x708   :  { %4007 = vmatpush3.msra.mxu1 %v668_v25  ;;  %4008 = vmatprep.mubr.msk.f32.mxu1 %vm4472_vm1, %v4471_v22  ;;  %v1014_v14 = vmul.f32 %v4343_v13, %v4793_v48  ;;  %v4345_v15 = vpop.eup %4344  ;;  %v1743_v13 = vld [vmem:[%s5215_s12 + $0x8] sm:$0xff] }
 0x709   :  { %4016 = vmatprep.subr.mxu1 %v4471_v22  ;;  %v1180_v17 = vmul.f32 %v4345_v15, %v4797_v52  ;;  %v4347_v18 = vpop.eup %4346  ;;  %v4487_v15 = vmov 0.0|0.0  }
 0x70a   :  { %v1346_v20 = vmul.f32 %v4347_v18, %v4801_v54  ;;  %v4349_v21 = vpop.eup %4348  ;;  %4250 = vmatprep.subr.bf16.mxu0 %v4487_v15 }
 0x70b   :  { %4009 = vmatmul.mubr.msk.f32.vlgmr.msra.gmra.mrb[8].mxu1 %vm248_vm2, %v666_v9  ;;  %v1512_v24 = vmul.f32 %v4349_v21, %v4805_v56  ;;  %v1738_v21 = vld [vmem:[%s5254_s28 + $0x8] sm:$0xff] }
 0x70c   :  { %4017 = vmatpush3.msra.mxu1 %v834_v8  ;;  %4018 = vmatprep.mubr.msk.f32.mxu1 %vm4472_vm1, %v4471_v22 }
 0x70d   :  { %4026 = vmatprep.subr.mxu1 %v4471_v22 }
 0x70f   :  { %4019 = vmatmul.mubr.msk.f32.vlgmr.msra.gmra.mrb[10].mxu1 %vm248_vm2, %v832_v11 }
 0x710   :  { %4027 = vmatpush3.msra.mxu1 %v1016_v12  ;;  %4028 = vmatprep.mubr.msk.f32.mxu1 %vm4472_vm1, %v4471_v22  ;;  %v1742_v12 = vld [vmem:[%s5215_s12] sm:$0xff] }
 0x711   :  { %4036 = vmatprep.subr.mxu1 %v4471_v22 }
 0x713   :  { %4029 = vmatmul.mubr.msk.f32.vlgmr.msra.gmra.mrb[12].mxu1 %vm248_vm2, %v1014_v14  ;;  %v4251_v14 = vpack.c.bf16 %v1743_v13, %v1742_v12 }
 0x714   :  { %4037 = vmatpush3.msra.mxu1 %v1182_v16  ;;  %4038 = vmatprep.mubr.msk.f32.mxu1 %vm4472_vm1, %v4471_v22  ;;  %v1744_v16 = vld [vmem:[%s5215_s12 + $0x10] sm:$0xff] }
 0x715   :  { %4046 = vmatprep.subr.mxu1 %v4471_v22 }
 0x717   :  { %4039 = vmatmul.mubr.msk.f32.vlgmr.msra.gmra.mrb[14].mxu1 %vm248_vm2, %v1180_v17  ;;  %v1745_v17 = vld [vmem:[%s5215_s12 + $0x18] sm:$0xff] }
 0x718   :  { %4047 = vmatpush3.msra.mxu1 %v1348_v19  ;;  %4048 = vmatprep.mubr.msk.f32.mxu1 %vm4472_vm1, %v4471_v22  ;;  %v4254_v18 = vpack.c.bf16 %v1745_v17, %v1744_v16  ;;  %v118_v19 = vld [vmem:[%s5253_s8] sm:$0xff] }
 0x719   :  { %4056 = vmatprep.subr.mxu1 %v4471_v22 }
 0x71b   :  { %4049 = vmatmul.mubr.msk.f32.vlgmr.msra.gmra.mrb[16].mxu1 %vm248_vm2, %v1346_v20  ;;  %v1737_v20 = vld [vmem:[%s5254_s28] sm:$0xff] }
 0x71c   :  { %4057 = vmatpush3.msra.mxu1 %v1514_v23  ;;  %4058 = vmatprep.mubr.msk.f32.mxu1 %vm4472_vm1, %v4471_v22  ;;  %v4242_v23 = vpack.c.bf16 %v1738_v21, %v1737_v20 }
 0x71e   :  { %4243 = vmatprep.subr.bf16.mxu1 %v4242_v23 }
 0x71f   :  { %4059 = vmatmul.mubr.msk.f32.vlgmr.msra.gmra.mrb[18].mxu1 %vm248_vm2, %v1512_v24  ;;  %v1739_v24 = vld [vmem:[%s5254_s28 + $0x10] sm:$0xff] }
 0x720   :  { %4245 = vmatpush3.bf16.msra.mxu1 %v4242_v23 }
 0x7da   :  { %v573_v26 = vpop.f32.mrb[6].mxu1 }
 0x7db   :  { %910 = vrot.lane.b32.xlu0 %v573_v26, %s4484_s0  ;;  %v4000_v28 = vpop.f32.mrb[7].mxu1  ;;  %v1740_v26 = vld [vmem:[%s5254_s28 + $0x18] sm:$0xff] }
 0x7dc   :  { %v4246_v28 = vpack.c.bf16 %v1740_v26, %v1739_v24 }
 0x7de   :  { %v739_v31 = vpop.f32.mrb[8].mxu1  ;;  %4247 = vmatprep.subr.bf16.mxu1 %v4246_v28 }
 0x7df   :  { %914 = vrot.lane.b32.xlu1 %v739_v31, %s4485_s23  ;;  %v4010_v33 = vpop.f32.mrb[9].mxu1  ;;  %4249 = vmatpush3.bf16.msra.mxu1 %v4246_v28 }
 0x7e0   :  { %4094 = vmatprep.subr.mxu1 %v4471_v22 }
 0x7e2   :  { %v905_v36 = vpop.f32.mrb[10].mxu1 }
 0x7e3   :  { %918 = vrot.lane.b32.xlu1 %v905_v36, %s5233_s22  ;;  %v4020_v38 = vpop.f32.mrb[11].mxu1  ;;  %v3800_v36 = vld [vmem:[%s5255_s4] ss:$0 sm:$0xff] }
 0x7e4   :  { %v3801_v38 = vld [vmem:[%s5256_s9] ss:$0 sm:$0xff] }
 0x7e6   :  { %v1087_v39 = vpop.f32.mrb[12].mxu1 }
 0x7e7   :  { %v4030_v40 = vpop.f32.mrb[13].mxu1 }
 0x7ea   :  { %v1253_v41 = vpop.f32.mrb[14].mxu1 }
 0x7eb   :  { %1590 = vrot.lane.b32.xlu0 %v1253_v41, %s4484_s0  ;;  %v4040_v42 = vpop.f32.mrb[15].mxu1 }
 0x7ee   :  { %v1419_v43 = vpop.f32.mrb[16].mxu1 }
 0x7ef   :  { %1594 = vrot.lane.b32.xlu0 %v1419_v43, %s4485_s23  ;;  %v4050_v44 = vpop.f32.mrb[17].mxu1 }
 0x7f2   :  { %v1585_v45 = vpop.f32.mrb[18].mxu1 }
 0x7f3   :  { %1598 = vrot.lane.b32.xlu1 %v1585_v45, %s5233_s22  ;;  %v4060_v46 = vpop.f32.mrb[19].mxu1  ;;  %v3805_v45 = vld [vmem:[%s5216_s13] ss:$0 sm:$0xff] }
 0x84d   :  { %v911_v47 = vpop.permute.xlu0 %910 }
 0x84e   :  { %v921_v49 = vsel %vm248_vm2, %v4777_v61, %v911_v47  ;;  %v3797_v61 = vld [vmem:[%s5252_s30] ss:$0 sm:$0xff] }
 0x851   :  { %v915_v48 = vpop.permute.xlu1 %914 }
 0x852   :  { %v923_v50 = vsel %vm922_vm3, %v921_v49, %v915_v48 }
 0x855   :  { %v919_v51 = vpop.permute.xlu1 %918 }
 0x856   :  { %v925_v52 = vsel %vm924_vm4, %v923_v50, %v919_v51  ;;  %v3802_v51 = vld [vmem:[%s5214_s11] ss:$0 sm:$0xff]  ;;  %s5257_s11 = smov 24  }
 0x857   :  { %4069 = vmatprep.mubr.msk.f32.mxu0 %vm122_vm0, %v925_v52 }
 0x85d   :  { %v1591_v53 = vpop.permute.xlu0 %1590 }
 0x85e   :  { %v1601_v55 = vsel %vm248_vm2, %v1087_v39, %v1591_v53 }
 0x861   :  { %v1595_v54 = vpop.permute.xlu0 %1594 }
 0x862   :  { %v1602_v56 = vsel %vm922_vm3, %v1601_v55, %v1595_v54 }
 0x865   :  { %v1599_v57 = vpop.permute.xlu1 %1598 }
 0x866   :  { %v1603_v58 = vsel %vm924_vm4, %v1602_v56, %v1599_v57 }
 0x867   :  { %4070 = vmatmul.mubr.msk.f32.vlgmr.msra.gmra.mrb[14].mxu0 %vm122_vm0, %v1603_v58 }
 0x868   :  { %4091 = vmatprep.mubr.msk.f32.mxu0 %vm4472_vm1, %v4471_v22  ;;  %4252 = vmatpush3.bf16.msra.mxu0 %v4251_v14 }
 0x869   :  { %4253 = vmatprep.subr.bf16.mxu0 %v4487_v15 }
 0x86c   :  { %4255 = vmatpush3.bf16.msra.mxu0 %v4254_v18 }
 0x86d   :  { %4104 = vmatprep.subr.mxu0 %v4471_v22 }
 0x86f   :  { %4092 = vmatmul.mubr.msk.f32.vlgmr.msra.gmra.mrb[16].mxu0 %vm122_vm0, %v118_v19 }
 0x870   :  { %4106 = vmatprep.mubr.msk.f32.mxu0 %vm4472_vm1, %v4471_v22 }
 0x93a   :  { %v4071_v59 = vpop.f32.mrb[14].mxu0 }
 0x93b   :  { %v1688_v60 = vadd.f32 %v4071_v59, %v3797_v61  ;;  %v1682_v62 = vpop.f32.mrb[15].mxu0 }
 0x93c   :  { %v1683_v63 = vadd.f32 %v3797_v61, %v1682_v62 }
 0x93d   :  { %v4882_v1 = vadd.f32 %v1688_v60, %v4662_v0 }
 0x93e   :  { %v4885_v2 = vadd.f32 %v1683_v63, %v4662_v0 }
 0x93f   :  { %v1698_v3 = vsel %vm122_vm0, %v4882_v1, 0.0 }
 0x940   :  { %1699 = vadd.xlane.f32.xlu1 %v1698_v3  ;;  %v1695_v4 = vsel %vm122_vm0, %v4885_v2, 0.0 }
 0x941   :  { %1696 = vadd.xlane.f32.xlu0 %v1695_v4 }
 0x942   :  { %v1914_v46 = vpop.f32.mrb[16].mxu0 }
 0x943   :  { %v4940_v47 = vadd.f32 %v3805_v45, %v1914_v46  ;;  %v4093_v48 = vpop.f32.mrb[17].mxu0 }
 0x945   :  { %v4952_v49 = vrot.slane %v4940_v47, 4 }
 0x951   :  { %2254 = vrot.lane.b32.xlu1 %v4940_v47, %s4479_s27 }
 0x9cd   :  { %v1700_v5 = vpop.xlane.xlu1 %1699 }
 0x9ce   :  { %v1702_v6 = vmul.f32 0.03125, %v1700_v5  ;;  %v1697_v27 = vpop.xlane.xlu0 %1696 }
 0x9cf   :  { %v1701_v7 = vmul.f32 0.03125, %v1697_v27 }
 0x9d0   :  { %v1704_v8 = vsub.f32 %v4882_v1, %v1702_v6 }
 0x9d1   :  { %v1703_v25 = vsub.f32 %v4885_v2, %v1701_v7  ;;  %v2255_v56 = vpop.permute.xlu1 %2254 }
 0x9d2   :  { %v1706_v10 = vmul.f32 %v1704_v8, %v1704_v8 }
 0x9d3   :  { %v1705_v9 = vmul.f32 %v1703_v25, %v1703_v25 }
 0x9d4   :  { %v1710_v11 = vsel %vm122_vm0, %v1706_v10, 0.0 }
 0x9d5   :  { %v1707_v0 = vsel %vm122_vm0, %v1705_v9, 0.0 }
 0x9d6   :  { %1708 = vadd.xlane.f32.xlu0 %v1707_v0 }
 0x9da   :  { %1711 = vadd.xlane.f32.xlu0 %v1710_v11 }
 0x9f0   :  { %2087 = vrot.lane.b32.xlu0 %v4940_v47, %s4476_s10 }
 0x9f4   :  { %2421 = vrot.lane.b32.xlu0 %v4940_v47, %s4480_s7 }
 0x9f8   :  { %2768 = vrot.lane.b32.xlu0 %v4952_v49, %s4476_s10 }
 0x9fc   :  { %2935 = vrot.lane.b32.xlu0 %v4952_v49, %s4479_s27 }
 0xa00   :  { %3102 = vrot.lane.b32.xlu0 %v4952_v49, %s4480_s7 }
 0xa63   :  { %v1709_v29 = vpop.xlane.xlu0 %1708 }
 0xa64   :  { %v1713_v30 = vmul.f32 0.03125, %v1709_v29 }
 0xa66   :  { %v1715_v31 = vadd.f32 1e-12, %v1713_v30 }
 0xa67   :  { %v1712_v32 = vpop.xlane.xlu0 %1711 }
 0xa68   :  { %4350 = vrsqrt.f32 %v1715_v31  ;;  %v1714_v33 = vmul.f32 0.03125, %v1712_v32 }
 0xa6a   :  { %v1716_v34 = vadd.f32 1e-12, %v1714_v33 }
 0xa6b   :  { %v2088_v50 = vpop.permute.xlu0 %2087 }
 0xa6c   :  { %4352 = vrsqrt.f32 %v1716_v34  ;;  %4105 = vmatpush3.xpose.msk.msra.mxu0 %vm248_vm2, %v2088_v50 }
 0xa6d   :  { %4114 = vmatprep.subr.mxu0 %v4471_v22 }
 0xa6f   :  { %v2422_v58 = vpop.permute.xlu0 %2421 }
 0xa72   :  { %v4351_v35 = vpop.eup %4350 }
 0xa73   :  { %v1719_v37 = vmul.f32 %v4351_v35, %v1703_v25  ;;  %v2769_v60 = vpop.permute.xlu0 %2768 }
 0xa75   :  { %v1727_v39 = vmul.f32 %v3800_v36, %v1719_v37 }
 0xa76   :  { %v4353_v40 = vpop.eup %4352 }
 0xa77   :  { %v1720_v41 = vmul.f32 %v4353_v40, %v1704_v8  ;;  %v1735_v42 = vadd.f32 %v3801_v38, %v1727_v39  ;;  %v2936_v63 = vpop.permute.xlu0 %2935 }
 0xa79   :  { %v1728_v43 = vmul.f32 %v3800_v36, %v1720_v41  ;;  %4080 = vmatprep.mubr.msk.f32.mxu1 %vm122_vm0, %v1735_v42 }
 0xa7b   :  { %v1736_v44 = vadd.f32 %v3801_v38, %v1728_v43  ;;  %v3103_v4 = vpop.permute.xlu0 %3102 }
 0xa7d   :  { %4081 = vmatmul.mubr.msk.f32.vlgmr.msra.gmra.mrb[20].mxu1 %vm122_vm0, %v1736_v44 }
 0xa7e   :  { %4096 = vmatprep.mubr.msk.f32.mxu1 %vm4472_vm1, %v4471_v22  ;;  %4095 = vmatpush3.xpose.msk.msra.mxu1 %vm248_vm2, %v4940_v47 }
 0xa7f   :  { %4099 = vmatprep.subr.mxu1 %v4471_v22 }
 0xb50   :  { %v4082_v52 = vpop.f32.mrb[20].mxu1 }
 0xb51   :  { %v1830_v53 = vpop.f32.mrb[21].mxu1  ;;  %v1836_v55 = vadd.f32 %v4082_v52, %v3802_v51 }
 0xb52   :  { %v1831_v54 = vadd.f32 %v3802_v51, %v1830_v53 }
 0xb54   :  { %2085 = vrot.lane.b32.xlu1 %v1831_v54, %s4476_s10  ;;  %4097 = vmatmul.mubr.msk.f32.vlgmr.msra.gmra.mrb[22].mxu1 %vm248_vm2, %v1831_v54 }
 0xb55   :  { %4101 = vmatprep.mubr.msk.f32.mxu1 %vm4472_vm1, %v4471_v22 }
 0xb58   :  { %2252 = vrot.lane.b32.xlu1 %v1831_v54, %s4479_s27 }
 0xb5c   :  { %2419 = vrot.lane.b32.xlu1 %v1831_v54, %s4480_s7 }
 0xb60   :  { %2766 = vrot.lane.b32.xlu1 %v1836_v55, %s4476_s10 }
 0xb64   :  { %2933 = vrot.lane.b32.xlu1 %v1836_v55, %s4479_s27 }
 0xb68   :  { %3100 = vrot.lane.b32.xlu1 %v1836_v55, %s4480_s7 }
 0xbc6   :  { %v2086_v57 = vpop.permute.xlu1 %2085 }
 0xbc7   :  { %4107 = vmatmul.mubr.msk.f32.vlgmr.msra.gmra.mrb[18].mxu0 %vm248_vm2, %v2086_v57 }
 0xbc8   :  { %4115 = vmatpush3.xpose.msk.msra.mxu0 %vm248_vm2, %v2255_v56  ;;  %4116 = vmatprep.mubr.msk.f32.mxu0 %vm4472_vm1, %v4471_v22 }
 0xbc9   :  { %4124 = vmatprep.subr.mxu0 %v4471_v22 }
 0xbca   :  { %v2253_v61 = vpop.permute.xlu1 %2252 }
 0xbcb   :  { %4117 = vmatmul.mubr.msk.f32.vlgmr.msra.gmra.mrb[20].mxu0 %vm248_vm2, %v2253_v61 }
 0xbcc   :  { %4125 = vmatpush3.xpose.msk.msra.mxu0 %vm248_vm2, %v2422_v58  ;;  %4126 = vmatprep.mubr.msk.f32.mxu0 %vm4472_vm1, %v4471_v22 }
 0xbcd   :  { %4134 = vmatprep.subr.mxu0 %v4471_v22 }
 0xbce   :  { %v2420_v59 = vpop.permute.xlu1 %2419 }
 0xbcf   :  { %4127 = vmatmul.mubr.msk.f32.vlgmr.msra.gmra.mrb[22].mxu0 %vm248_vm2, %v2420_v59 }
 0xbd0   :  { %4135 = vmatpush3.xpose.msk.msra.mxu0 %vm248_vm2, %v4952_v49  ;;  %4136 = vmatprep.mubr.msk.f32.mxu0 %vm4472_vm1, %v4471_v22 }
 0xbd1   :  { %4144 = vmatprep.subr.mxu0 %v4471_v22 }
 0xbd2   :  { %v2767_v62 = vpop.permute.xlu1 %2766 }
 0xbd3   :  { %4137 = vmatmul.mubr.msk.f32.vlgmr.msra.gmra.mrb[24].mxu0 %vm248_vm2, %v1836_v55 }
 0xbd4   :  { %4145 = vmatpush3.xpose.msk.msra.mxu0 %vm248_vm2, %v2769_v60  ;;  %4146 = vmatprep.mubr.msk.f32.mxu0 %vm4472_vm1, %v4471_v22 }
 0xbd5   :  { %4154 = vmatprep.subr.mxu0 %v4471_v22 }
 0xbd6   :  { %v2934_v3 = vpop.permute.xlu1 %2933 }
 0xbd7   :  { %4147 = vmatmul.mubr.msk.f32.vlgmr.msra.gmra.mrb[26].mxu0 %vm248_vm2, %v2767_v62 }
 0xbd8   :  { %4155 = vmatpush3.xpose.msk.msra.mxu0 %vm248_vm2, %v2936_v63  ;;  %4156 = vmatprep.mubr.msk.f32.mxu0 %vm4472_vm1, %v4471_v22 }
 0xbd9   :  { %4164 = vmatprep.subr.mxu0 %v4471_v22 }
 0xbda   :  { %v3101_v5 = vpop.permute.xlu1 %3100 }
 0xbdb   :  { %4157 = vmatmul.mubr.msk.f32.vlgmr.msra.gmra.mrb[28].mxu0 %vm248_vm2, %v2934_v3 }
 0xbdc   :  { %4165 = vmatpush3.xpose.msk.msra.mxu0 %vm248_vm2, %v3103_v4  ;;  %4166 = vmatprep.mubr.msk.f32.mxu0 %vm4472_vm1, %v4471_v22 }
 0xbdf   :  { %4167 = vmatmul.mubr.msk.f32.vlgmr.msra.gmra.mrb[30].mxu0 %vm248_vm2, %v3101_v5 }
 0xc27   :  { %v1990_v6 = vpop.f32.mrb[22].mxu1 }
 0xc28   :  { %v1994_v27 = vmul.f32 0.35355338, %v1990_v6  ;;  %v4098_v7 = vpop.f32.mrb[23].mxu1 }
 0xc2a   :  { %v1996_v8 = vsel %vm1995_vm5, %v1994_v27, -inf }
 0xc2b   :  { %1997 = vmax.xlane.f32.xlu0 %v1996_v8 }
 0xc9a   :  { %v2159_v25 = vpop.f32.mrb[18].mxu0 }
 0xc9b   :  { %v2163_v9 = vmul.f32 0.35355338, %v2159_v25  ;;  %v4108_v0 = vpop.f32.mrb[19].mxu0 }
 0xc9d   :  { %v2164_v10 = vsel %vm1995_vm5, %v2163_v9, -inf }
 0xc9e   :  { %2165 = vmax.xlane.f32.xlu1 %v2164_v10  ;;  %v2326_v11 = vpop.f32.mrb[20].mxu0 }
 0xc9f   :  { %v2330_v12 = vmul.f32 0.35355338, %v2326_v11  ;;  %v4118_v13 = vpop.f32.mrb[21].mxu0 }
 0xca1   :  { %v2331_v14 = vsel %vm1995_vm5, %v2330_v12, -inf }
 0xca2   :  { %2332 = vmax.xlane.f32.xlu0 %v2331_v14  ;;  %v2493_v15 = vpop.f32.mrb[22].mxu0 }
 0xca3   :  { %v2497_v16 = vmul.f32 0.35355338, %v2493_v15  ;;  %v4128_v17 = vpop.f32.mrb[23].mxu0 }
 0xca5   :  { %v2498_v18 = vsel %vm1995_vm5, %v2497_v16, -inf }
 0xca6   :  { %2499 = vmax.xlane.f32.xlu0 %v2498_v18  ;;  %v2673_v19 = vpop.f32.mrb[24].mxu0 }
 0xca7   :  { %v2677_v20 = vmul.f32 0.35355338, %v2673_v19  ;;  %v4138_v21 = vpop.f32.mrb[25].mxu0 }
 0xca9   :  { %v2678_v23 = vsel %vm1995_vm5, %v2677_v20, -inf }
 0xcaa   :  { %2679 = vmax.xlane.f32.xlu0 %v2678_v23  ;;  %v2840_v24 = vpop.f32.mrb[26].mxu0 }
 0xcab   :  { %v5010_v26 = vmul.f32 0.35355338, %v2840_v24  ;;  %v4148_v28 = vpop.f32.mrb[27].mxu0 }
 0xcad   :  { %v2845_v29 = vsel %vm1995_vm5, %v5010_v26, -inf }
 0xcae   :  { %2846 = vmax.xlane.f32.xlu1 %v2845_v29  ;;  %v3007_v30 = vpop.f32.mrb[28].mxu0 }
 0xcaf   :  { %v3011_v31 = vmul.f32 0.35355338, %v3007_v30  ;;  %v4158_v32 = vpop.f32.mrb[29].mxu0 }
 0xcb1   :  { %v3012_v33 = vsel %vm1995_vm5, %v3011_v31, -inf }
 0xcb2   :  { %3013 = vmax.xlane.f32.xlu0 %v3012_v33  ;;  %v3174_v34 = vpop.f32.mrb[30].mxu0 }
 0xcb3   :  { %v4168_v35 = vpop.f32.mrb[31].mxu0  ;;  %v3178_v41 = vmul.f32 0.35355338, %v3174_v34 }
 0xcb5   :  { %v3179_v42 = vsel %vm1995_vm5, %v3178_v41, -inf }
 0xcb8   :  { %v1998_v36 = vpop.xlane.xlu0 %1997 }
 0xcb9   :  { %v1999_v37 = vsub.f32 %v1994_v27, %v1998_v36 }
 0xcbb   :  { %v2000_v38 = vmul.f32 1.442695, %v1999_v37 }
 0xcbd   :  { %4354 = vpow2.f32 %v2000_v38 }
 0xcbf   :  { %2007 = vrot.lane.b32.xlu1 %v4940_v47, %s4474_s3 }
 0xcc7   :  { %v4355_v39 = vpop.eup %4354 }
 0xcc8   :  { %v2002_v40 = vsel %vm1995_vm5, %v4355_v39, 0.0 }
 0xcc9   :  { %2003 = vadd.xlane.f32.xlu0 %v2002_v40 }
 0xcdf   :  { %2175 = vrot.lane.b32.xlu0 %v4940_v47, %s4475_s5 }
 0xce3   :  { %3180 = vmax.xlane.f32.xlu1 %v3179_v42 }
 0xcf4   :  { %2342 = vrot.lane.b32.xlu1 %v4940_v47, %s4477_s6 }
 0xcf8   :  { %2509 = vrot.lane.b32.xlu1 %v4940_v47, %s4478_s1 }
 0xcfc   :  { %2689 = vrot.lane.b32.xlu1 %v4952_v49, %s4474_s3 }
 0xd2b   :  { %v2166_v43 = vpop.xlane.xlu1 %2165 }
 0xd2c   :  { %v2167_v44 = vsub.f32 %v2163_v9, %v2166_v43 }
 0xd2e   :  { %v2168_v45 = vmul.f32 1.442695, %v2167_v44 }
 0xd2f   :  { %v2333_v46 = vpop.xlane.xlu0 %2332 }
 0xd30   :  { %4356 = vpow2.f32 %v2168_v45  ;;  %v2334_v48 = vsub.f32 %v2330_v12, %v2333_v46 }
 0xd32   :  { %v2335_v50 = vmul.f32 1.442695, %v2334_v48 }
 0xd33   :  { %v2500_v51 = vpop.xlane.xlu0 %2499 }
 0xd34   :  { %4358 = vpow2.f32 %v2335_v50  ;;  %v2501_v52 = vsub.f32 %v2497_v16, %v2500_v51 }
 0xd36   :  { %v2502_v53 = vmul.f32 1.442695, %v2501_v52 }
 0xd37   :  { %v2680_v54 = vpop.xlane.xlu0 %2679 }
 0xd38   :  { %4360 = vpow2.f32 %v2502_v53  ;;  %v2681_v55 = vsub.f32 %v2677_v20, %v2680_v54 }
 0xd3a   :  { %v4357_v56 = vpop.eup %4356  ;;  %v2682_v57 = vmul.f32 1.442695, %v2681_v55 }
 0xd3b   :  { %v2847_v47 = vpop.xlane.xlu1 %2846  ;;  %v2170_v58 = vsel %vm1995_vm5, %v4357_v56, 0.0 }
 0xd3c   :  { %4362 = vpow2.f32 %v2682_v57  ;;  %2171 = vadd.xlane.f32.xlu1 %v2170_v58  ;;  %v2848_v10 = vsub.f32 %v5010_v26, %v2847_v47 }
 0xd3e   :  { %v4359_v61 = vpop.eup %4358  ;;  %v2849_v12 = vmul.f32 1.442695, %v2848_v10 }
 0xd3f   :  { %v2008_v59 = vpop.permute.xlu1 %2007  ;;  %v3014_v60 = vpop.xlane.xlu0 %3013  ;;  %v2337_v62 = vsel %vm1995_vm5, %v4359_v61, 0.0 }
 0xd40   :  { %v3015_v63 = vsub.f32 %v3011_v31, %v3014_v60  ;;  %4100 = vmatpush3.msk.msra.mxu1 %vm2012_vm6, %v2008_v59  ;;  %2338 = vadd.xlane.f32.xlu0 %v2337_v62  ;;  %v1748_v59 = vld [vmem:[%s5217_s14 + $0x8] sm:$0xff]  ;;  %v1749_v62 = vld [vmem:[%s5217_s14 + $0x10] sm:$0xff] }
 0xd41   :  { %4109 = vmatprep.subr.mxu1 %v4471_v22 }
 0xd42   :  { %v4361_v3 = vpop.eup %4360  ;;  %v3016_v4 = vmul.f32 1.442695, %v3015_v63  ;;  %v1750_v63 = vld [vmem:[%s5217_s14 + $0x18] sm:$0xff] }
 0xd43   :  { %v2504_v5 = vsel %vm1995_vm5, %v4361_v3, 0.0 }
 0xd44   :  { %4364 = vpow2.f32 %v3016_v4  ;;  %2505 = vadd.xlane.f32.xlu1 %v2504_v5 }
 0xd46   :  { %v4363_v6 = vpop.eup %4362 }
 0xd47   :  { %v2684_v27 = vsel %vm1995_vm5, %v4363_v6, 0.0 }
 0xd48   :  { %2685 = vadd.xlane.f32.xlu0 %v2684_v27 }
 0xd4e   :  { %v5033_v7 = vpop.eup %4364 }
 0xd4f   :  { %v3018_v8 = vsel %vm1995_vm5, %v5033_v7, 0.0 }
 0xd50   :  { %3019 = vadd.xlane.f32.xlu0 %v3018_v8 }
 0xd55   :  { %2856 = vrot.lane.b32.xlu1 %v4952_v49, %s4475_s5 }
 0xd56   :  { %v2004_v25 = vpop.xlane.xlu0 %2003 }
 0xd57   :  { %4366 = vrcp.f32 %v2004_v25 }
 0xd58   :  { %4368 = vpow2.f32 %v2849_v12 }
 0xd5a   :  { %v2176_v11 = vpop.permute.xlu0 %2175 }
 0xd61   :  { %v4367_v9 = vpop.eup %4366 }
 0xd62   :  { %v2006_v0 = vmul.f32 %v4367_v9, %v4355_v39  ;;  %v4369_v16 = vpop.eup %4368 }
 0xd63   :  { %v2851_v17 = vsel %vm1995_vm5, %v4369_v16, 0.0 }
 0xd64   :  { %4102 = vmatmul.mubr.msk.f32.vlgmr.msra.gmra.mrb[24].mxu1 %vm1995_vm5, %v2006_v0 }
 0xd65   :  { %4110 = vmatpush3.msk.msra.mxu1 %vm2012_vm6, %v2176_v11  ;;  %4111 = vmatprep.mubr.msk.f32.mxu1 %vm4472_vm1, %v4471_v22 }
 0xd66   :  { %4119 = vmatprep.subr.mxu1 %v4471_v22 }
 0xd70   :  { %v3181_v13 = vpop.xlane.xlu1 %3180 }
 0xd71   :  { %v3182_v14 = vsub.f32 %v3178_v41, %v3181_v13 }
 0xd73   :  { %v3183_v15 = vmul.f32 1.442695, %v3182_v14 }
 0xd74   :  { %v2343_v20 = vpop.permute.xlu1 %2342 }
 0xd75   :  { %4370 = vpow2.f32 %v3183_v15 }
 0xd78   :  { %v2510_v21 = vpop.permute.xlu1 %2509 }
 0xd79   :  { %2852 = vadd.xlane.f32.xlu1 %v2851_v17 }
 0xd7c   :  { %v2690_v23 = vpop.permute.xlu1 %2689 }
 0xd7f   :  { %v4371_v18 = vpop.eup %4370 }
 0xd80   :  { %v3185_v19 = vsel %vm1995_vm5, %v4371_v18, 0.0 }
 0xd81   :  { %3186 = vadd.xlane.f32.xlu0 %v3185_v19  ;;  %v3839_v19 = vld [vmem:[%s5218_s15] ss:$0 sm:$0xff] }
 0xd8a   :  { %3190 = vrot.lane.b32.xlu1 %v4952_v49, %s4478_s1 }
 0xd97   :  { %3023 = vrot.lane.b32.xlu0 %v4952_v49, %s4477_s6 }
 0xdc9   :  { %v2172_v24 = vpop.xlane.xlu1 %2171 }
 0xdca   :  { %4372 = vrcp.f32 %v2172_v24 }
 0xdcd   :  { %v2339_v26 = vpop.xlane.xlu0 %2338 }
 0xdce   :  { %4374 = vrcp.f32 %v2339_v26 }
 0xdd1   :  { %v2506_v28 = vpop.xlane.xlu1 %2505 }
 0xdd2   :  { %4376 = vrcp.f32 %v2506_v28 }
 0xdd4   :  { %v4373_v29 = vpop.eup %4372 }
 0xdd5   :  { %v2174_v30 = vmul.f32 %v4373_v29, %v4357_v56  ;;  %v2686_v31 = vpop.xlane.xlu0 %2685  ;;  %v2857_v37 = vpop.permute.xlu1 %2856 }
 0xdd6   :  { %4378 = vrcp.f32 %v2686_v31 }
 0xdd7   :  { %4112 = vmatmul.mubr.msk.f32.vlgmr.msra.gmra.mrb[26].mxu1 %vm1995_vm5, %v2174_v30 }
 0xdd8   :  { %v4375_v32 = vpop.eup %4374  ;;  %4120 = vmatpush3.msk.msra.mxu1 %vm2012_vm6, %v2343_v20  ;;  %4121 = vmatprep.mubr.msk.f32.mxu1 %vm4472_vm1, %v4471_v22 }
 0xdd9   :  { %v2341_v49 = vmul.f32 %v4375_v32, %v4359_v61  ;;  %4129 = vmatprep.subr.mxu1 %v4471_v22 }
 0xddb   :  { %4122 = vmatmul.mubr.msk.f32.vlgmr.msra.gmra.mrb[28].mxu1 %vm1995_vm5, %v2341_v49 }
 0xddc   :  { %v4377_v33 = vpop.eup %4376  ;;  %4130 = vmatpush3.msk.msra.mxu1 %vm2012_vm6, %v2510_v21  ;;  %4131 = vmatprep.mubr.msk.f32.mxu1 %vm4472_vm1, %v4471_v22 }
 0xddd   :  { %v2508_v34 = vmul.f32 %v4377_v33, %v4361_v3  ;;  %4139 = vmatprep.subr.mxu1 %v4471_v22  ;;  %v3020_v38 = vpop.xlane.xlu0 %3019  ;;  %v4260_v3 = vpack.c.bf16 %v1750_v63, %v1749_v62  ;;  %v3422_v63 = vld [vmem:[%s5223_s20 + $0x10] sm:$0xff] }
 0xddf   :  { %4132 = vmatmul.mubr.msk.f32.vlgmr.msra.gmra.mrb[30].mxu1 %vm1995_vm5, %v2508_v34 }
 0xde0   :  { %v4379_v35 = vpop.eup %4378  ;;  %4140 = vmatpush3.msk.msra.mxu1 %vm2012_vm6, %v2690_v23  ;;  %4141 = vmatprep.mubr.msk.f32.mxu1 %vm4472_vm1, %v4471_v22 }
 0xde1   :  { %v2688_v36 = vmul.f32 %v4379_v35, %v4363_v6  ;;  %4149 = vmatprep.subr.mxu1 %v4471_v22 }
 0xde3   :  { %4142 = vmatmul.mubr.msk.f32.vlgmr.msra.gmra.mrb[32].mxu1 %vm1995_vm5, %v2688_v36 }
 0xde4   :  { %4150 = vmatpush3.msk.msra.mxu1 %vm2012_vm6, %v2857_v37  ;;  %4151 = vmatprep.mubr.msk.f32.mxu1 %vm4472_vm1, %v4471_v22 }
 0xde5   :  { %4159 = vmatprep.subr.mxu1 %v4471_v22 }
 0xe06   :  { %v2853_v39 = vpop.xlane.xlu1 %2852 }
 0xe07   :  { %4380 = vrcp.f32 %v2853_v39  ;;  %v3416_v39 = vld [vmem:[%s5221_s18 + $0x8] sm:$0xff] }
 0xe08   :  { %4382 = vrcp.f32 %v3020_v38  ;;  %v3415_v38 = vld [vmem:[%s5221_s18] sm:$0xff] }
 0xe0a   :  { %v3191_v46 = vpop.permute.xlu1 %3190 }
 0xe0e   :  { %v3187_v40 = vpop.xlane.xlu0 %3186 }
 0xe0f   :  { %4384 = vrcp.f32 %v3187_v40  ;;  %v4264_v40 = vpack.c.bf16 %v3416_v39, %v3415_v38 }
 0xe11   :  { %v4381_v41 = vpop.eup %4380 }
 0xe12   :  { %v2855_v42 = vmul.f32 %v4381_v41, %v4369_v16  ;;  %v3024_v43 = vpop.permute.xlu0 %3023  ;;  %v4383_v44 = vpop.eup %4382  ;;  %v3417_v41 = vld [vmem:[%s5221_s18 + $0x10] sm:$0xff] }
 0xe13   :  { %v3022_v45 = vmul.f32 %v4383_v44, %v5033_v7 }
 0xe14   :  { %4152 = vmatmul.mubr.msk.f32.vlgmr.msra.gmra.mrb[34].mxu1 %vm1995_vm5, %v2855_v42  ;;  %v3418_v42 = vld [vmem:[%s5221_s18 + $0x18] sm:$0xff] }
 0xe15   :  { %4160 = vmatpush3.msk.msra.mxu1 %vm2012_vm6, %v3024_v43  ;;  %4161 = vmatprep.mubr.msk.f32.mxu1 %vm4472_vm1, %v4471_v22  ;;  %v4268_v43 = vpack.c.bf16 %v3418_v42, %v3417_v41 }
 0xe16   :  { %4169 = vmatprep.subr.mxu1 %v4471_v22 }
 0xe18   :  { %4162 = vmatmul.mubr.msk.f32.vlgmr.msra.gmra.mrb[36].mxu1 %vm1995_vm5, %v3022_v45 }
 0xe19   :  { %v4385_v48 = vpop.eup %4384  ;;  %4170 = vmatpush3.msk.msra.mxu1 %vm2012_vm6, %v3191_v46  ;;  %4171 = vmatprep.mubr.msk.f32.mxu1 %vm4472_vm1, %v4471_v22  ;;  %v1747_v22 = vld [vmem:[%s5217_s14] sm:$0xff] }
 0xe1a   :  { %v3189_v50 = vmul.f32 %v4385_v48, %v4371_v18  ;;  %v4256_v60 = vpack.c.bf16 %v1748_v59, %v1747_v22  ;;  %4265 = vmatprep.subr.bf16.mxu1 %v4264_v40  ;;  %v3420_v59 = vld [vmem:[%s5223_s20] sm:$0xff] }
 0xe1c   :  { %4172 = vmatmul.mubr.msk.f32.vlgmr.msra.gmra.mrb[38].mxu1 %vm1995_vm5, %v3189_v50  ;;  %4257 = vmatprep.subr.bf16.mxu0 %v4256_v60 }
 0xe1d   :  { %4259 = vmatpush3.bf16.msra.mxu0 %v4256_v60  ;;  %4267 = vmatpush3.bf16.msra.mxu1 %v4264_v40  ;;  %v3421_v60 = vld [vmem:[%s5223_s20 + $0x8] sm:$0xff] }
 0xe1e   :  { %4261 = vmatprep.subr.bf16.mxu0 %v4260_v3  ;;  %4269 = vmatprep.subr.bf16.mxu1 %v4268_v43  ;;  %v4272_v62 = vpack.c.bf16 %v3421_v60, %v3420_v59 }
 0xe21   :  { %4263 = vmatpush3.bf16.msra.mxu0 %v4260_v3  ;;  %4271 = vmatpush3.bf16.msra.mxu1 %v4268_v43  ;;  %v3423_v3 = vld [vmem:[%s5223_s20 + $0x18] sm:$0xff] }
 0xe22   :  { %4273 = vmatprep.subr.bf16.mxu0 %v4272_v62 }
 0xe37   :  { %v2081_v51 = vpop.f32.mrb[24].mxu1 }
 0xe38   :  { %v4103_v52 = vpop.f32.mrb[25].mxu1 }
 0xeaa   :  { %v2248_v53 = vpop.f32.mrb[26].mxu1 }
 0xeab   :  { %2587 = vrot.lane.b32.xlu0 %v2248_v53, %s4484_s0  ;;  %v4113_v54 = vpop.f32.mrb[27].mxu1  ;;  %v3842_v53 = vld [vmem:[%s5219_s16] ss:$0 sm:$0xff] }
 0xeae   :  { %v2415_v55 = vpop.f32.mrb[28].mxu1 }
 0xeaf   :  { %2591 = vrot.lane.b32.xlu1 %v2415_v55, %s4485_s23  ;;  %v4123_v56 = vpop.f32.mrb[29].mxu1  ;;  %v3843_v55 = vld [vmem:[%s5220_s17] ss:$0 sm:$0xff] }
 0xeb2   :  { %v2582_v57 = vpop.f32.mrb[30].mxu1 }
 0xeb3   :  { %2595 = vrot.lane.b32.xlu1 %v2582_v57, %s5257_s11  ;;  %v4133_v47 = vpop.f32.mrb[31].mxu1 }
 0xeb6   :  { %v2762_v58 = vpop.f32.mrb[32].mxu1 }
 0xeb7   :  { %v4143_v61 = vpop.f32.mrb[33].mxu1 }
 0xee7   :  { %v2929_v4 = vpop.f32.mrb[34].mxu1 }
 0xee8   :  { %3268 = vrot.lane.b32.xlu0 %v2929_v4, %s4484_s0  ;;  %v4153_v5 = vpop.f32.mrb[35].mxu1  ;;  %v4276_v4 = vpack.c.bf16 %v3423_v3, %v3422_v63  ;;  %v3850_v63 = vld [vmem:[#allocation2] ss:$0 sm:$0xff] }
 0xee9   :  { %v3424_v5 = vld [vmem:[%s5223_s20 + $0x20] sm:$0xff] }
 0xeeb   :  { %v3096_v6 = vpop.f32.mrb[36].mxu1 }
 0xeec   :  { %3272 = vrot.lane.b32.xlu0 %v3096_v6, %s4485_s23  ;;  %v4163_v27 = vpop.f32.mrb[37].mxu1  ;;  %v3425_v6 = vld [vmem:[%s5223_s20 + $0x28] sm:$0xff] }
 0xeed   :  { %v4280_v27 = vpack.c.bf16 %v3425_v6, %v3424_v5  ;;  %v3851_v6 = vld [vmem:[#allocation4] ss:$0 sm:$0xff] }
 0xeef   :  { %v3263_v7 = vpop.f32.mrb[38].mxu1 }
 0xef0   :  { %3276 = vrot.lane.b32.xlu1 %v3263_v7, %s5257_s11  ;;  %v4173_v8 = vpop.f32.mrb[39].mxu1  ;;  %v3426_v7 = vld [vmem:[%s5223_s20 + $0x30] sm:$0xff] }
 0xef1   :  { %v3427_v8 = vld [vmem:[%s5223_s20 + $0x38] sm:$0xff] }
 0xf1d   :  { %v2588_v25 = vpop.permute.xlu0 %2587 }
 0xf1e   :  { %v2598_v0 = vsel %vm248_vm2, %v2081_v51, %v2588_v25  ;;  %v4284_v25 = vpack.c.bf16 %v3427_v8, %v3426_v7 }
 0xf21   :  { %v2592_v9 = vpop.permute.xlu1 %2591 }
 0xf22   :  { %v2599_v10 = vsel %vm922_vm3, %v2598_v0, %v2592_v9  ;;  %v3844_v9 = vld [vmem:[%s5222_s19] ss:$0 sm:$0xff] }
 0xf25   :  { %v2596_v11 = vpop.permute.xlu1 %2595 }
 0xf26   :  { %v2600_v12 = vsel %vm924_vm4, %v2599_v10, %v2596_v11 }
 0xf27   :  { %4182 = vmatprep.mubr.msk.f32.mxu0 %vm122_vm0, %v2600_v12 }
 0xf5a   :  { %v3269_v13 = vpop.permute.xlu0 %3268 }
 0xf5b   :  { %v3279_v15 = vsel %vm248_vm2, %v2762_v58, %v3269_v13 }
 0xf5e   :  { %v3273_v14 = vpop.permute.xlu0 %3272 }
 0xf5f   :  { %v3280_v16 = vsel %vm922_vm3, %v3279_v15, %v3273_v14 }
 0xf62   :  { %v3277_v17 = vpop.permute.xlu1 %3276 }
 0xf63   :  { %v3281_v18 = vsel %vm924_vm4, %v3280_v16, %v3277_v17 }
 0xf64   :  { %4183 = vmatmul.mubr.msk.f32.vlgmr.msra.gmra.mrb[32].mxu0 %vm122_vm0, %v3281_v18 }
 0xf65   :  { %4275 = vmatpush3.bf16.msra.mxu0 %v4272_v62 }
 0xf66   :  { %4277 = vmatprep.subr.bf16.mxu0 %v4276_v4 }
 0xf69   :  { %4279 = vmatpush3.bf16.msra.mxu0 %v4276_v4 }
 0xf6a   :  { %4281 = vmatprep.subr.bf16.mxu0 %v4280_v27 }
 0xf6d   :  { %4283 = vmatpush3.bf16.msra.mxu0 %v4280_v27 }
 0xf6e   :  { %4285 = vmatprep.subr.bf16.mxu0 %v4284_v25 }
 0xf71   :  { %4287 = vmatpush3.bf16.msra.mxu0 %v4284_v25 }
0x1037   :  { %v4184_v20 = vpop.f32.mrb[32].mxu0 }
0x1038   :  { %v3366_v21 = vadd.f32 %v4184_v20, %v3839_v19  ;;  %v3360_v23 = vpop.f32.mrb[33].mxu0 }
0x1039   :  { %v3361_v24 = vadd.f32 %v3839_v19, %v3360_v23 }
0x103a   :  { %v5112_v26 = vadd.f32 %v3366_v21, %v4882_v1 }
0x103b   :  { %v5115_v28 = vadd.f32 %v3361_v24, %v4885_v2 }
0x103c   :  { %v3376_v29 = vsel %vm122_vm0, %v5112_v26, 0.0 }
0x103d   :  { %3377 = vadd.xlane.f32.xlu1 %v3376_v29  ;;  %v3373_v30 = vsel %vm122_vm0, %v5115_v28, 0.0 }
0x103e   :  { %3374 = vadd.xlane.f32.xlu0 %v3373_v30 }
0x10ca   :  { %v3378_v31 = vpop.xlane.xlu1 %3377 }
0x10cb   :  { %v3380_v32 = vmul.f32 0.03125, %v3378_v31  ;;  %v3375_v49 = vpop.xlane.xlu0 %3374 }
0x10cc   :  { %v3379_v33 = vmul.f32 0.03125, %v3375_v49 }
0x10cd   :  { %v3382_v34 = vsub.f32 %v5112_v26, %v3380_v32 }
0x10ce   :  { %v3381_v1 = vsub.f32 %v5115_v28, %v3379_v33 }
0x10cf   :  { %v3384_v36 = vmul.f32 %v3382_v34, %v3382_v34 }
0x10d0   :  { %v3383_v35 = vmul.f32 %v3381_v1, %v3381_v1 }
0x10d1   :  { %v3388_v37 = vsel %vm122_vm0, %v3384_v36, 0.0 }
0x10d2   :  { %v3385_v2 = vsel %vm122_vm0, %v3383_v35, 0.0 }
0x10d3   :  { %3386 = vadd.xlane.f32.xlu0 %v3385_v2 }
0x10d7   :  { %3389 = vadd.xlane.f32.xlu0 %v3388_v37 }
0x1160   :  { %v3387_v44 = vpop.xlane.xlu0 %3386 }
0x1161   :  { %v3391_v45 = vmul.f32 0.03125, %v3387_v44 }
0x1163   :  { %v3393_v46 = vadd.f32 1e-12, %v3391_v45 }
0x1164   :  { %v3390_v48 = vpop.xlane.xlu0 %3389 }
0x1165   :  { %4386 = vrsqrt.f32 %v3393_v46  ;;  %v3392_v50 = vmul.f32 0.03125, %v3390_v48 }
0x1167   :  { %v3394_v51 = vadd.f32 1e-12, %v3392_v50 }
0x1169   :  { %4388 = vrsqrt.f32 %v3394_v51 }
0x116f   :  { %v4387_v52 = vpop.eup %4386 }
0x1170   :  { %v3397_v54 = vmul.f32 %v4387_v52, %v3381_v1  ;;  %v3847_v1 = vld [vmem:[%s5224_s21] ss:$0 sm:$0xff] }
0x1172   :  { %v3405_v56 = vmul.f32 %v3842_v53, %v3397_v54 }
0x1173   :  { %v4389_v57 = vpop.eup %4388 }
0x1174   :  { %v3398_v47 = vmul.f32 %v4389_v57, %v3382_v34  ;;  %v3413_v58 = vadd.f32 %v3843_v55, %v3405_v56  ;;  %v3671_v56 = vld [vmem:[%s5227_s24 + $0x18] sm:$0xff] }
0x1176   :  { %v3406_v61 = vmul.f32 %v3842_v53, %v3398_v47  ;;  %4193 = vmatprep.mubr.msk.f32.mxu1 %vm122_vm0, %v3413_v58  ;;  %v3669_v53 = vld [vmem:[%s5227_s24 + $0x8] sm:$0xff] }
0x1178   :  { %v3414_v22 = vadd.f32 %v3843_v55, %v3406_v61  ;;  %v3670_v55 = vld [vmem:[%s5227_s24 + $0x10] sm:$0xff] }
0x1179   :  { %v4292_v57 = vpack.c.bf16 %v3671_v56, %v3670_v55 }
0x117a   :  { %4194 = vmatmul.mubr.msk.f32.vlgmr.msra.gmra.mrb[40].mxu1 %vm122_vm0, %v3414_v22 }
0x124d   :  { %v4195_v0 = vpop.f32.mrb[40].mxu1 }
0x124e   :  { %v3513_v10 = vadd.f32 %v4195_v0, %v3844_v9  ;;  %v3507_v11 = vpop.f32.mrb[41].mxu1 }
0x124f   :  { %v3508_v12 = vadd.f32 %v3844_v9, %v3507_v11  ;;  %v3852_v9 = vld [vmem:[#allocation6] ss:$0 sm:$0xff] }
0x1250   :  { %v3517_v13 = vmul.f32 %v3513_v10, %v3513_v10 }
0x1251   :  { %v3516_v14 = vmul.f32 %v3508_v12, %v3508_v12 }
0x1252   :  { %v3519_v15 = vmul.f32 %v3517_v13, %v3513_v10 }
0x1253   :  { %v3518_v16 = vmul.f32 %v3516_v14, %v3508_v12 }
0x1254   :  { %v3521_v17 = vmul.f32 0.044715, %v3519_v15 }
0x1255   :  { %v3520_v18 = vmul.f32 0.044715, %v3518_v16 }
0x1256   :  { %v3523_v19 = vadd.f32 %v3521_v17, %v3513_v10 }
0x1257   :  { %v3522_v20 = vadd.f32 %v3520_v18, %v3508_v12 }
0x1258   :  { %v3525_v21 = vmul.f32 0.7978846, %v3523_v19 }
0x1259   :  { %v3524_v23 = vmul.f32 0.7978846, %v3522_v20 }
0x125a   :  { %4390 = vtanh.f32 %v3525_v21 }
0x125b   :  { %4392 = vtanh.f32 %v3524_v23 }
0x1264   :  { %v4391_v24 = vpop.eup %4390 }
0x1265   :  { %v4393_v29 = vpop.eup %4392  ;;  %v3529_v30 = vadd.f32 1.0, %v4391_v24 }
0x1266   :  { %v3528_v31 = vadd.f32 1.0, %v4393_v29 }
0x1267   :  { %v3531_v32 = vmul.f32 0.5, %v3529_v30 }
0x1268   :  { %v3530_v49 = vmul.f32 0.5, %v3528_v31 }
0x1269   :  { %v3533_v34 = vmul.f32 %v3531_v32, %v3513_v10 }
0x126a   :  { %v3532_v33 = vmul.f32 %v3530_v49, %v3508_v12 }
0x126c   :  { %4212 = vmatprep.mubr.msk.f32.mxu0 %vm3540_vm7, %v3532_v33 }
0x126d   :  { %4213 = vmatmul.mubr.msk.f32.vlgmr.msra.gmra.mrb[34].mxu0 %vm3540_vm7, %v3533_v34 }
0x1340   :  { %v4214_v35 = vpop.f32.mrb[34].mxu0 }
0x1341   :  { %v3619_v2 = vadd.f32 %v4214_v35, %v3847_v1  ;;  %v3613_v36 = vpop.f32.mrb[35].mxu0 }
0x1342   :  { %v3614_v37 = vadd.f32 %v3847_v1, %v3613_v36 }
0x1343   :  { %v3623_v38 = vadd.f32 %v3619_v2, %v5112_v26 }
0x1344   :  { %v3622_v39 = vadd.f32 %v3614_v37, %v5115_v28  ;;  %v3668_v28 = vld [vmem:[%s5227_s24] sm:$0xff] }
0x1345   :  { %v3629_v40 = vsel %vm122_vm0, %v3623_v38, 0.0  ;;  %v4288_v54 = vpack.c.bf16 %v3669_v53, %v3668_v28 }
0x1346   :  { %3630 = vadd.xlane.f32.xlu1 %v3629_v40  ;;  %v3626_v41 = vsel %vm122_vm0, %v3622_v39, 0.0 }
0x1347   :  { %3627 = vadd.xlane.f32.xlu0 %v3626_v41  ;;  %4289 = vmatprep.subr.bf16.mxu1 %v4288_v54 }
0x1348   :  { %4291 = vmatpush3.bf16.msra.mxu1 %v4288_v54 }
0x1349   :  { %4293 = vmatprep.subr.bf16.mxu1 %v4292_v57 }
0x134c   :  { %4295 = vmatpush3.bf16.msra.mxu1 %v4292_v57 }
0x13d3   :  { %v3631_v42 = vpop.xlane.xlu1 %3630 }
0x13d4   :  { %v3633_v43 = vmul.f32 0.03125, %v3631_v42  ;;  %v3628_v44 = vpop.xlane.xlu0 %3627 }
0x13d5   :  { %v3632_v45 = vmul.f32 0.03125, %v3628_v44 }
0x13d6   :  { %v3635_v46 = vsub.f32 %v3623_v38, %v3633_v43 }
0x13d7   :  { %v3634_v48 = vsub.f32 %v3622_v39, %v3632_v45 }
0x13d8   :  { %v3637_v50 = vmul.f32 %v3635_v46, %v3635_v46 }
0x13d9   :  { %v3636_v51 = vmul.f32 %v3634_v48, %v3634_v48 }
0x13da   :  { %v3641_v52 = vsel %vm122_vm0, %v3637_v50, 0.0 }
0x13db   :  { %3642 = vadd.xlane.f32.xlu1 %v3641_v52  ;;  %v3638_v26 = vsel %vm122_vm0, %v3636_v51, 0.0 }
0x13dc   :  { %3639 = vadd.xlane.f32.xlu0 %v3638_v26 }
0x1468   :  { %v3643_v47 = vpop.xlane.xlu1 %3642 }
0x1469   :  { %v3645_v58 = vmul.f32 0.03125, %v3643_v47  ;;  %v3640_v61 = vpop.xlane.xlu0 %3639 }
0x146a   :  { %v3644_v22 = vmul.f32 0.03125, %v3640_v61 }
0x146b   :  { %v3647_v59 = vadd.f32 1e-12, %v3645_v58 }
0x146c   :  { %v3646_v60 = vadd.f32 1e-12, %v3644_v22 }
0x146d   :  { %4394 = vrsqrt.f32 %v3647_v59 }
0x146e   :  { %4396 = vrsqrt.f32 %v3646_v60 }
0x1477   :  { %v4395_v62 = vpop.eup %4394 }
0x1478   :  { %v4397_v3 = vpop.eup %4396  ;;  %v3651_v4 = vmul.f32 %v4395_v62, %v3635_v46 }
0x1479   :  { %v3650_v5 = vmul.f32 %v4397_v3, %v3634_v48 }
0x147a   :  { %v3659_v27 = vmul.f32 %v3850_v63, %v3651_v4 }
0x147b   :  { %v3658_v7 = vmul.f32 %v3850_v63, %v3650_v5 }
0x147c   :  { %v3667_v25 = vadd.f32 %v3851_v6, %v3659_v27 }
0x147d   :  { %v3666_v8 = vadd.f32 %v3851_v6, %v3658_v7 }
0x147f   :  { %4223 = vmatprep.mubr.msk.f32.mxu1 %vm122_vm0, %v3666_v8 }
0x1480   :  { %4224 = vmatmul.mubr.msk.f32.vlgmr.msra.gmra.mrb[42].mxu1 %vm122_vm0, %v3667_v25 }
0x1553   :  { %v4225_v0 = vpop.f32.mrb[42].mxu1 }
0x1554   :  { %v3757_v10 = vadd.f32 %v4225_v0, %v3852_v9  ;;  %v3751_v11 = vpop.f32.mrb[43].mxu1 }
0x1555   :  { %v3752_v12 = vadd.f32 %v3852_v9, %v3751_v11 }
0x1556   :  { %3761 = vst.msk [vmem:[%s5229_s26 + $0x8] sm:$0xff] %vm122_vm0, %v3757_v10 }
0x1557   :  { %3760 = vst.msk [vmem:[%s5229_s26] sm:$0xff] %vm122_vm0, %v3752_v12 }
0x1558   :  { %3766 = vsyncpa [#allocation3], 1 }
0x1559   :  { %3767 = vsyncpa [#allocation5], 1 }

// kernel: blip2_generate.5
= control target key start
LH: loop header
LB: loop body
LE: loop exit
PB: predicated region body
PF: predicated region fallthrough
CT: control target
= control target key end

     0   :  { %s7607_s6 = smov 1   ;;  %s7608_s10 = smov 2   ;;  %s8732_s0 = inlined_call_operand.smem [shape: u32[30], index: -1, kind: input, shape index: {}] }
   0x1   :  { %s7666_s5 = sld [smem:[%s8732_s0]]   ;;  %s7609_s14 = smov 3  }
   0x2   :  { %s7671_s9 = sld [smem:[%s8732_s0 + %s7607_s6]]   ;;  %s7610_s18 = smov 4  }
   0x3   :  { %s7676_s13 = sld [smem:[%s8732_s0 + %s7608_s10]]   ;;  %s7611_s22 = smov 5  }
   0x4   :  { %s7681_s17 = sld [smem:[%s8732_s0 + %s7609_s14]]   ;;  %s7612_s26 = smov 6  }
   0x5   :  { %s7686_s21 = sld [smem:[%s8732_s0 + %s7610_s18]]   ;;  %s7613_s30 = smov 7  }
   0x6   :  { %s7691_s25 = sld [smem:[%s8732_s0 + %s7611_s22]]   ;;  %s7614_s4 = smov 8  }
   0x7   :  { %s7696_s29 = sld [smem:[%s8732_s0 + %s7612_s26]]   ;;  %s7615_s10 = smov 9  }
   0x8   :  { %s7701_s3 = sld [smem:[%s8732_s0 + %s7613_s30]]   ;;  %s7616_s15 = smov 10  }
   0x9   :  { %s7706_s8 = sld [smem:[%s8732_s0 + %s7614_s4]]   ;;  %s7617_s20 = smov 11  }
   0xa   :  { %s7711_s14 = sld [smem:[%s8732_s0 + %s7615_s10]]   ;;  %s7618_s26 = smov 12  }
   0xb   :  { %s7716_s19 = sld [smem:[%s8732_s0 + %s7616_s15]]   ;;  %s7619_s1 = smov 13  }
   0xc   :  { %s7721_s24 = sld [smem:[%s8732_s0 + %s7617_s20]]   ;;  %s7620_s7 = smov 14  }
   0xd   :  { %s7726_s30 = sld [smem:[%s8732_s0 + %s7618_s26]]   ;;  %s7621_s15 = smov 15  }
   0xe   :  { %s7731_s6 = sld [smem:[%s8732_s0 + %s7619_s1]]   ;;  %s7622_s22 = smov 16  }
   0xf   :  { %s7736_s12 = sld [smem:[%s8732_s0 + %s7620_s7]]   ;;  %s7623_s28 = smov 17  }
  0x10   :  { %8740 = sst [smem:[#allocation12_spill]] %s7711_s14  ;;  %s7624_s7 = smov 18  }
  0x11   :  { %8741 = sst [smem:[#allocation13_spill]] %s7716_s19 }
  0x12   :  { %s7741_s20 = sld [smem:[%s8732_s0 + %s7621_s15]]   ;;  %s7625_s15 = smov 19  }
  0x13   :  { %s7746_s27 = sld [smem:[%s8732_s0 + %s7622_s22]]   ;;  %s7626_s22 = smov 20  }
  0x14   :  { %s7751_s4 = sld [smem:[%s8732_s0 + %s7623_s28]]   ;;  %s7627_s28 = smov 21  }
  0x15   :  { %8742 = sst [smem:[#allocation14_spill]] %s7736_s12 }
  0x16   :  { %s7756_s19 = sld [smem:[%s8732_s0 + %s7624_s7]]   ;;  %s7628_s7 = smov 22  }
  0x18   :  { %8743 = sst [smem:[#allocation15_spill]] %s7741_s20 }
  0x19   :  { %8744 = sst [smem:[#allocation16_spill]] %s7746_s27 }
  0x1a   :  { %8745 = sst [smem:[#allocation17_spill]] %s7751_s4 }
  0x1b   :  { %s7761_s20 = sld [smem:[%s8732_s0 + %s7625_s15]]   ;;  %s7629_s15 = smov 23  }
  0x1c   :  { %8746 = sst [smem:[#allocation18_spill]] %s7756_s19 }
  0x1d   :  { %s7766_s27 = sld [smem:[%s8732_s0 + %s7626_s22]]   ;;  %s7630_s22 = smov 24  }
  0x1e   :  { %s7771_s4 = sld [smem:[%s8732_s0 + %s7627_s28]]   ;;  %s7631_s28 = smov 25  }
  0x1f   :  { %s7776_s19 = sld [smem:[%s8732_s0 + %s7628_s7]]   ;;  %s7632_s7 = smov 26  }
  0x20   :  { %s7796_s12 = sld [smem:[%s8732_s0 + %s7632_s7]]  }
  0x21   :  { %8747 = sst [smem:[#allocation19_spill]] %s7761_s20 }
  0x22   :  { %s7781_s20 = sld [smem:[%s8732_s0 + %s7629_s15]]   ;;  %s7633_s15 = smov 27  }
  0x23   :  { %8748 = sst [smem:[#allocation20_spill]] %s7766_s27 }
  0x24   :  { %8749 = sst [smem:[#allocation21_spill]] %s7771_s4 }
  0x25   :  { %s7786_s27 = sld [smem:[%s8732_s0 + %s7630_s22]]   ;;  %s7634_s22 = smov 28  }
  0x26   :  { %s7791_s4 = sld [smem:[%s8732_s0 + %s7631_s28]]   ;;  %s7635_s28 = smov 29  }
  0x27   :  { %s7801_s14 = sld [smem:[%s8732_s0 + %s7633_s15]]  }
  0x2b   :  { %8750 = sst [smem:[#allocation22_spill]] %s7786_s27 }
  0x2c   :  { %8751 = sst [smem:[#allocation23_spill]] %s7791_s4 }
  0x2d   :  { %s7806_s27 = sld [smem:[%s8732_s0 + %s7634_s22]]  }
  0x2e   :  { %s7811_s4 = sld [smem:[%s8732_s0 + %s7635_s28]]  }
  0x2f   :  { %64 = vsyncpa [#allocation3], 0 }
  0x30   :  { %65 = vsyncpa [#allocation5], 0 }
  0x31   :  { %66 = vsyncpa [#allocation8], 0  ;;  %s7636_s7 = smov [#allocation4]   ;;  %s7637_s11 = smov [#allocation2]  }
  0x32   :  { %s127_s10 = sshll.u32 %s7636_s7, 4  ;;  %s117_s15 = sshll.u32 %s7637_s11, 4  ;;  %s128_s10 = int_to_ptr.vmem [resolvable:$true] %s127_s10  ;;  %s118_s15 = int_to_ptr.vmem [resolvable:$true] %s117_s15 }
  0x33   :  { %s7513_s16 = scalar_lea.hbm %s7781_s20, 16 }
  0x34   :  { %p7514_p0 = scmp.ne.s32.totalorder %s7781_s20, %s7513_s16  ;;  %p7517_p1 = scmp.lt.u32.totalorder %s7513_s16, %s7781_s20 }
  0x36   :  { %p7519_p2 = pnand %p7517_p1, %p7514_p0 }
  0x38   :  { %7522 = shalt.err (!%p7519_p2)
}
  0x39   :  { %s7523_s18 = scalar_lea.vmem %s128_s10, 16  ;;  %s7527_s0 = scalar_lea.vmem %s128_s10, 32 }
  0x3a   :  { %p7524_p3 = scmp.ne.s32.totalorder %s128_s10, %s7523_s18  ;;  %p7528_p4 = scmp.lt.s32.totalorder %s128_s10, %s128_s10 }
  0x3b   :  { %p7529_p5 = scmp.lt.s32.totalorder %s7527_s0, %s7523_s18 }
  0x3d   :  { %p7530_p6 = por %p7529_p5, %p7528_p4 }
  0x3f   :  { %p7531_p7 = pnand %p7530_p6, %p7524_p3 }
  0x41   :  { %7534 = shalt.err (!%p7531_p7)
}
  0x42   :  { %130 = dma.hbm_to_vmem [thread:$0]  %s7781_s20, 16, %s128_s10, [#allocation5]  }
  0x43   :  { %s7535_s22 = scalar_lea.hbm %s7776_s19, 16 }
  0x44   :  { %p7536_p8 = scmp.ne.s32.totalorder %s7776_s19, %s7535_s22  ;;  %p7539_p9 = scmp.lt.u32.totalorder %s7535_s22, %s7776_s19 }
  0x46   :  { %p7541_p10 = pnand %p7539_p9, %p7536_p8 }
  0x48   :  { %7544 = shalt.err (!%p7541_p10)
}
  0x49   :  { %s7545_s23 = scalar_lea.vmem %s118_s15, 16  ;;  %s7549_s26 = scalar_lea.vmem %s118_s15, 32 }
  0x4a   :  { %p7546_p11 = scmp.ne.s32.totalorder %s118_s15, %s7545_s23  ;;  %p7550_p12 = scmp.lt.s32.totalorder %s118_s15, %s118_s15 }
  0x4b   :  { %p7551_p13 = scmp.lt.s32.totalorder %s7549_s26, %s7545_s23 }
  0x4d   :  { %p7552_p0 = por %p7551_p13, %p7550_p12 }
  0x4f   :  { %p7553_p1 = pnand %p7552_p0, %p7546_p11 }
  0x51   :  { %7556 = shalt.err (!%p7553_p1)
}
  0x52   :  { %120 = dma.hbm_to_vmem [thread:$0]  %s7776_s19, 16, %s118_s15, [#allocation3]  }
  0x53   :  { %s7638_s28 = smov [#allocation6]   ;;  %s7639_s1 = smov [#allocation7]  }
  0x54   :  { %s141_s20 = sshll.u32 %s7638_s28, 4  ;;  %s153_s2 = sshll.u32 %s7639_s1, 4  ;;  %s142_s20 = int_to_ptr.vmem [resolvable:$true] %s141_s20  ;;  %s154_s2 = int_to_ptr.vmem [resolvable:$true] %s153_s2 }
  0x55   :  { %s7557_s7 = scalar_lea.hbm %s7796_s12, 16 }
  0x56   :  { %p7558_p2 = scmp.ne.s32.totalorder %s7796_s12, %s7557_s7  ;;  %p7561_p3 = scmp.lt.u32.totalorder %s7557_s7, %s7796_s12 }
  0x58   :  { %p7563_p4 = pnand %p7561_p3, %p7558_p2 }
  0x5a   :  { %7566 = shalt.err (!%p7563_p4)
}
  0x5b   :  { %s7567_s10 = scalar_lea.vmem %s142_s20, 16  ;;  %s7571_s11 = scalar_lea.vmem %s142_s20, 32 }
  0x5c   :  { %p7568_p5 = scmp.ne.s32.totalorder %s142_s20, %s7567_s10  ;;  %p7572_p6 = scmp.lt.s32.totalorder %s142_s20, %s142_s20 }
  0x5d   :  { %p7573_p7 = scmp.lt.s32.totalorder %s7571_s11, %s7567_s10 }
  0x5f   :  { %p7574_p8 = por %p7573_p7, %p7572_p6 }
  0x61   :  { %p7575_p9 = pnand %p7574_p8, %p7568_p5 }
  0x63   :  { %7578 = shalt.err (!%p7575_p9)
}
  0x64   :  { %144 = dma.hbm_to_vmem [thread:$0]  %s7796_s12, 16, %s142_s20, [#allocation5]  }
  0x65   :  { %s7579_s19 = scalar_lea.hbm %s7806_s27, 16 }
  0x66   :  { %p7580_p10 = scmp.ne.s32.totalorder %s7806_s27, %s7579_s19  ;;  %p7583_p11 = scmp.lt.u32.totalorder %s7579_s19, %s7806_s27 }
  0x68   :  { %p7585_p12 = pnand %p7583_p11, %p7580_p10 }
  0x6a   :  { %7588 = shalt.err (!%p7585_p12)
}
  0x6b   :  { %s7589_s15 = scalar_lea.vmem %s154_s2, 16  ;;  %s7593_s16 = scalar_lea.vmem %s154_s2, 32 }
  0x6c   :  { %p7590_p13 = scmp.ne.s32.totalorder %s154_s2, %s7589_s15  ;;  %p7594_p0 = scmp.lt.s32.totalorder %s154_s2, %s154_s2 }
  0x6d   :  { %p7595_p1 = scmp.lt.s32.totalorder %s7593_s16, %s7589_s15 }
  0x6f   :  { %p7596_p2 = por %p7595_p1, %p7594_p0 }
  0x71   :  { %p7597_p3 = pnand %p7596_p2, %p7590_p13 }
  0x73   :  { %7600 = shalt.err (!%p7597_p3)
}
  0x74   :  { %156 = dma.hbm_to_vmem [thread:$0]  %s7806_s27, 16, %s154_s2, [#allocation8]  }
  0x75   :  { %7601 = dma.done.wait [#allocation3], 16  }
  0x76   :  { %7602 = vsyncadd [#allocation3], 4294967280 }
  0x77   :  { %7603 = dma.done.wait [#allocation5], 32  }
  0x78   :  { %7604 = vsyncadd [#allocation5], 4294967264 }
  0x79   :  { %7605 = dma.done.wait [#allocation8], 16  }
  0x7a   :  { %7606 = vsyncadd [#allocation8], 4294967280  ;;  %v169_v0 = vld [vmem:[%s7666_s5] sm:$0xff]  ;;  %vm178_vm0 = vcmask 261120   ;;  %v170_v1 = vld [vmem:[%s7666_s5 + $0x8] sm:$0xff]  ;;  %vm337_vm1 = vcmask 64512  }
  0x7b   :  { %v174_v2 = vmul.f32 %v169_v0, %v169_v0  ;;  %v175_v3 = vmul.f32 %v170_v1, %v170_v1  ;;  %v218_v6 = vld [vmem:[%s7681_s17] sm:$0xff]  ;;  %v219_v7 = vld [vmem:[%s7681_s17 + $0x8] sm:$0xff]  ;;  %v220_v8 = vld [vmem:[%s7681_s17 + $0x10] sm:$0xff]  ;;  %s7643_s12 = smov 80   ;;  %s7644_s27 = smov 112   ;;  %vm421_vm3 = vcmask 130048  }
  0x7c   :  { %v6906_v9 = vpack.c.bf16 %v219_v7, %v218_v6  ;;  %v221_v10 = vld [vmem:[%s7681_s17 + $0x18] sm:$0xff]  ;;  %v171_v12 = vld [vmem:[%s7666_s5 + $0x10] sm:$0xff]  ;;  %v6058_v25 = vld [vmem:[%s7676_s13] ss:$0 sm:$0xff]  ;;  %s7640_s13 = smov 88   ;;  %s7641_s17 = smov 96  }
  0x7d   :  { %v179_v4 = vsel %vm178_vm0, %v174_v2, 0.0  ;;  %v182_v5 = vsel %vm178_vm0, %v175_v3, 0.0  ;;  %v6910_v11 = vpack.c.bf16 %v221_v10, %v220_v8  ;;  %v172_v13 = vld [vmem:[%s7666_s5 + $0x18] sm:$0xff]  ;;  %v176_v14 = vmul.f32 %v171_v12, %v171_v12  ;;  %v7847_v43 = vld [vmem:[%s7686_s21] ss:$0 sm:$0xff]  ;;  %s7642_s21 = smov 120   ;;  %vm7877_vm2 = vmpackc.low %vm337_vm1, %vm337_vm1 }
  0x7e   :  { %180 = vadd.xlane.f32.xlu0 %v179_v4  ;;  %6907 = vmatprep.subr.bf16.mxu0 %v6906_v9  ;;  %v177_v15 = vmul.f32 %v172_v13, %v172_v13  ;;  %s7645_s18 = smov 64   ;;  %s7646_s0 = smov 48   ;;  %vm1159_vm4 = vcmask 195584   ;;  %vm7656_vm5 = vmmov 0   ;;  %vm2305_vm6 = vcmask 523264  }
  0x7f   :  { %6909 = vmatpush3.bf16.msra.mxu0 %v6906_v9  ;;  %v185_v16 = vsel %vm178_vm0, %v176_v14, 0.0  ;;  %s7647_s22 = smov 72   ;;  %s7648_s23 = smov 56   ;;  %vm2639_vm8 = vcmask 27648   ;;  %vm2657_vm9 = vcmask 1043456   ;;  %vm2653_vm10 = vcmask 31744  }
  0x80   :  { %6911 = vmatprep.subr.bf16.mxu0 %v6910_v11  ;;  %186 = vadd.xlane.f32.xlu1 %v185_v16  ;;  %v188_v17 = vsel %vm178_vm0, %v177_v15, 0.0  ;;  %s7649_s26 = smov 104   ;;  %s7650_s28 = smov 40   ;;  %vm4297_vm11 = vcmask 125952   ;;  %vm5913_vm12 = vcmask 1040384   ;;  %vm5999_vm13 = vcmask 517120  }
  0x81   :  { %s7651_s20 = smov 8   ;;  %s7652_s1 = smov 16  }
  0x82   :  { %183 = vadd.xlane.f32.xlu0 %v182_v5  ;;  %s7653_s2 = smov 24   ;;  %s8763_s7 = sld [smem:[#allocation21_spill]] }
  0x83   :  { %6913 = vmatpush3.bf16.msra.mxu0 %v6910_v11  ;;  %s8764_s10 = sld [smem:[#allocation22_spill]]  ;;  %s8765_s11 = sld [smem:[#allocation23_spill]] }
  0x84   :  { %189 = vadd.xlane.f32.xlu1 %v188_v17 }
 0x10b   :  { %v181_v18 = vpop.xlane.xlu0 %180 }
 0x10c   :  { %v192_v19 = vmul.f32 0.03125, %v181_v18 }
 0x10d   :  { %v187_v31 = vpop.xlane.xlu1 %186 }
 0x10e   :  { %v196_v20 = vadd.f32 1e-06, %v192_v19  ;;  %v194_v33 = vmul.f32 0.03125, %v187_v31 }
 0x10f   :  { %v184_v21 = vpop.xlane.xlu0 %183 }
 0x110   :  { %7339 = vrsqrt.f32 %v196_v20  ;;  %v193_v22 = vmul.f32 0.03125, %v184_v21  ;;  %v198_v35 = vadd.f32 1e-06, %v194_v33 }
 0x111   :  { %v190_v32 = vpop.xlane.xlu1 %189 }
 0x112   :  { %v197_v23 = vadd.f32 1e-06, %v193_v22  ;;  %v195_v34 = vmul.f32 0.03125, %v190_v32 }
 0x114   :  { %7341 = vrsqrt.f32 %v197_v23  ;;  %v199_v36 = vadd.f32 1e-06, %v195_v34 }
 0x115   :  { %7343 = vrsqrt.f32 %v198_v35 }
 0x116   :  { %7345 = vrsqrt.f32 %v199_v36 }
 0x11a   :  { %v7340_v24 = vpop.eup %7339 }
 0x11b   :  { %v204_v26 = vmul.f32 %v7340_v24, %v169_v0 }
 0x11d   :  { %v214_v27 = vmul.f32 %v6058_v25, %v204_v26 }
 0x11e   :  { %v7342_v28 = vpop.eup %7341 }
 0x11f   :  { %6447 = vmatprep.mubr.msk.f32.mxu0 %vm178_vm0, %v214_v27  ;;  %v205_v29 = vmul.f32 %v7342_v28, %v170_v1  ;;  %v7344_v37 = vpop.eup %7343 }
 0x120   :  { %v7346_v38 = vpop.eup %7345  ;;  %v206_v39 = vmul.f32 %v7344_v37, %v171_v12 }
 0x121   :  { %v215_v30 = vmul.f32 %v6058_v25, %v205_v29  ;;  %v207_v40 = vmul.f32 %v7346_v38, %v172_v13 }
 0x122   :  { %v216_v41 = vmul.f32 %v6058_v25, %v206_v39 }
 0x123   :  { %6448 = vmatmul.mubr.msk.f32.vlgmr.msra.gmra.mrb[0].mxu0 %vm178_vm0, %v215_v30  ;;  %v217_v42 = vmul.f32 %v6058_v25, %v207_v40 }
 0x124   :  { %6450 = vmatprep.mubr.msk.f32.mxu0 %vm178_vm0, %v216_v41 }
 0x127   :  { %6451 = vmatmul.mubr.msk.f32.gmra.mrb[2].mxu0 %vm178_vm0, %v217_v42 }
 0x1f6   :  { %v6449_v44 = vpop.f32.mrb[0].mxu0 }
 0x1f7   :  { %v7850_v45 = vadd.f32 %v6449_v44, %v7847_v43  ;;  %v312_v46 = vpop.f32.mrb[1].mxu0 }
 0x1f8   :  { %v7853_v47 = vadd.f32 %v7847_v43, %v312_v46 }
 0x1fa   :  { %6457 = vmatprep.mubr.msk.f32.mxu1 %vm337_vm1, %v7853_v47  ;;  %v7859_v48 = vpack.i.bf16 %v7850_v45, %v7853_v47  ;;  %v7899_v2 = vpop.f32.mrb[2].mxu0 }
 0x1fb   :  { %v7901_v3 = vpop.f32.mrb[3].mxu0 }
 0x1fc   :  { %7195 = vrot.lane.b32.xlu1 %v7859_v48, %s7640_s13  ;;  %7190 = vrot.lane.b32.xlu0 %v7859_v48, %s7641_s17 }
 0x200   :  { %531 = vrot.lane.b32.xlu1 %v7853_v47, %s7642_s21  ;;  %533 = vrot.lane.b32.xlu0 %v7850_v45, %s7642_s21 }
 0x204   :  { %7200 = vrot.lane.b32.xlu1 %v7859_v48, %s7643_s12  ;;  %733 = vrot.lane.b32.xlu0 %v7850_v45, %s7644_s27 }
 0x208   :  { %731 = vrot.lane.b32.xlu1 %v7853_v47, %s7644_s27 }
 0x26e   :  { %v7196_v49 = vpop.permute.xlu1 %7195  ;;  %v7191_v50 = vpop.permute.xlu0 %7190 }
 0x26f   :  { %v7198_v51 = vunpack.i.h.bf16 %v7196_v49  ;;  %v7197_v52 = vunpack.i.l.bf16 %v7196_v49  ;;  %v7193_v53 = vunpack.i.h.bf16 %v7191_v50  ;;  %v7192_v54 = vunpack.i.l.bf16 %v7191_v50 }
 0x271   :  { %v6924_v56 = vpack.c.bf16 %v7198_v51, %v7197_v52  ;;  %v6914_v57 = vpack.c.bf16 %v7193_v53, %v7192_v54 }
 0x272   :  { %v532_v58 = vpop.permute.xlu1 %531  ;;  %v534_v0 = vpop.permute.xlu0 %533 }
 0x273   :  { %6916 = vmatprep.subr.msk.bf16.mxu1 %vm7877_vm2, %v6914_v57  ;;  %6926 = vmatprep.subr.msk.bf16.mxu0 %vm7877_vm2, %v6924_v56 }
 0x274   :  { %6471 = vmatprep.mubr.msk.f32.mxu0 %vm337_vm1, %v532_v58  ;;  %6919 = vmatpush3.bf16.xpose.msk.msra.mxu1 %vm7877_vm2, %v6914_v57 }
 0x275   :  { %6929 = vmatpush3.bf16.xpose.msk.msra.mxu0 %vm7877_vm2, %v6924_v56 }
 0x276   :  { %v7201_v59 = vpop.permute.xlu1 %7200  ;;  %v734_v1 = vpop.permute.xlu0 %733 }
 0x277   :  { %v7203_v60 = vunpack.i.h.bf16 %v7201_v59  ;;  %v7202_v61 = vunpack.i.l.bf16 %v7201_v59 }
 0x279   :  { %v6934_v62 = vpack.c.bf16 %v7203_v60, %v7202_v61 }
 0x27a   :  { %v732_v63 = vpop.permute.xlu1 %731 }
 0x27b   :  { %6458 = vmatmul.mubr.msk.f32.vlgmr.msra.gmra.mrb[0].mxu1 %vm337_vm1, %v7850_v45  ;;  %6936 = vmatprep.subr.msk.bf16.mxu0 %vm7877_vm2, %v6934_v62 }
 0x27c   :  { %6472 = vmatmul.mubr.msk.f32.vlgmr.msra.gmra.mrb[4].mxu0 %vm337_vm1, %v534_v0 }
 0x27d   :  { %6939 = vmatpush3.bf16.xpose.msk.msra.mxu0 %vm7877_vm2, %v6934_v62  ;;  %6485 = vmatprep.mubr.msk.f32.mxu0 %vm337_vm1, %v732_v63 }
 0x284   :  { %6486 = vmatmul.mubr.msk.f32.vlgmr.msra.gmra.mrb[6].mxu0 %vm337_vm1, %v734_v1 }
 0x34e   :  { %v6459_v4 = vpop.f32.mrb[0].mxu1 }
 0x34f   :  { %v6473_v5 = vpop.f32.mrb[4].mxu0  ;;  %v412_v6 = vpop.f32.mrb[1].mxu1  ;;  %v425_v7 = vsel %vm421_vm3, %v6459_v4, -inf }
 0x350   :  { %v613_v8 = vpop.f32.mrb[5].mxu0  ;;  %426 = vmax.xlane.f32.xlu0 %v425_v7  ;;  %v422_v9 = vsel %vm421_vm3, %v412_v6, -inf  ;;  %v625_v12 = vsel %vm421_vm3, %v6473_v5, -inf }
 0x351   :  { %423 = vmax.xlane.f32.xlu1 %v422_v9  ;;  %v622_v10 = vsel %vm421_vm3, %v613_v8, -inf }
 0x354   :  { %623 = vmax.xlane.f32.xlu0 %v622_v10 }
 0x357   :  { %v6487_v11 = vpop.f32.mrb[6].mxu0 }
 0x358   :  { %v813_v13 = vpop.f32.mrb[7].mxu0  ;;  %626 = vmax.xlane.f32.xlu0 %v625_v12  ;;  %v825_v15 = vsel %vm421_vm3, %v6487_v11, -inf }
 0x359   :  { %v822_v14 = vsel %vm421_vm3, %v813_v13, -inf }
 0x35a   :  { %823 = vmax.xlane.f32.xlu1 %v822_v14 }
 0x35c   :  { %826 = vmax.xlane.f32.xlu0 %v825_v15 }
 0x36b   :  { %7205 = vrot.lane.b32.xlu1 %v7859_v48, %s7645_s18 }
 0x3dd   :  { %v427_v16 = vpop.xlane.xlu0 %426 }
 0x3de   :  { %v429_v17 = vsub.f32 %v6459_v4, %v427_v16  ;;  %v424_v18 = vpop.xlane.xlu1 %423 }
 0x3df   :  { %v428_v19 = vsub.f32 %v412_v6, %v424_v18 }
 0x3e0   :  { %v432_v20 = vmul.f32 1.442695, %v429_v17 }
 0x3e1   :  { %v430_v21 = vmul.f32 1.442695, %v428_v19  ;;  %v624_v22 = vpop.xlane.xlu0 %623 }
 0x3e2   :  { %7347 = vpow2.f32 %v432_v20  ;;  %v628_v23 = vsub.f32 %v613_v8, %v624_v22 }
 0x3e3   :  { %7349 = vpow2.f32 %v430_v21 }
 0x3e4   :  { %v630_v24 = vmul.f32 1.442695, %v628_v23 }
 0x3e5   :  { %v627_v25 = vpop.xlane.xlu0 %626 }
 0x3e6   :  { %7351 = vpow2.f32 %v630_v24  ;;  %v629_v26 = vsub.f32 %v6473_v5, %v627_v25 }
 0x3e7   :  { %v824_v27 = vpop.xlane.xlu1 %823 }
 0x3e8   :  { %v632_v28 = vmul.f32 1.442695, %v629_v26  ;;  %v828_v50 = vsub.f32 %v813_v13, %v824_v27 }
 0x3e9   :  { %v827_v29 = vpop.xlane.xlu0 %826 }
 0x3ea   :  { %7353 = vpow2.f32 %v632_v28  ;;  %v829_v30 = vsub.f32 %v6487_v11, %v827_v29  ;;  %v830_v51 = vmul.f32 1.442695, %v828_v50  ;;  %v7959_v50 = vadd.f32 %v7899_v2, %v7847_v43 }
 0x3eb   :  { %v7206_v31 = vpop.permute.xlu1 %7205 }
 0x3ec   :  { %v7348_v32 = vpop.eup %7347  ;;  %v832_v33 = vmul.f32 1.442695, %v829_v30  ;;  %v7208_v34 = vunpack.i.h.bf16 %v7206_v31  ;;  %v7207_v35 = vunpack.i.l.bf16 %v7206_v31 }
 0x3ed   :  { %v7350_v36 = vpop.eup %7349  ;;  %v437_v37 = vsel %vm421_vm3, %v7348_v32, 0.0 }
 0x3ee   :  { %7355 = vpow2.f32 %v832_v33  ;;  %438 = vadd.xlane.f32.xlu0 %v437_v37  ;;  %v434_v38 = vsel %vm421_vm3, %v7350_v36, 0.0  ;;  %v6920_v39 = vpack.c.bf16 %v7208_v34, %v7207_v35 }
 0x3ef   :  { %435 = vadd.xlane.f32.xlu1 %v434_v38  ;;  %7357 = vpow2.f32 %v830_v51  ;;  %v7963_v51 = vadd.f32 %v7847_v43, %v7901_v3 }
 0x3f0   :  { %v7352_v40 = vpop.eup %7351  ;;  %6921 = vmatprep.subr.bf16.mxu1 %v6920_v39 }
 0x3f1   :  { %6923 = vmatpush3.bf16.msra.mxu1 %v6920_v39  ;;  %v634_v41 = vsel %vm421_vm3, %v7352_v40, 0.0 }
 0x3f3   :  { %635 = vadd.xlane.f32.xlu1 %v634_v41 }
 0x3f4   :  { %v7354_v42 = vpop.eup %7353 }
 0x3f5   :  { %v637_v44 = vsel %vm421_vm3, %v7354_v42, 0.0 }
 0x3f6   :  { %638 = vadd.xlane.f32.xlu0 %v637_v44 }
 0x3f8   :  { %v7356_v46 = vpop.eup %7355 }
 0x3f9   :  { %v837_v49 = vsel %vm421_vm3, %v7356_v46, 0.0  ;;  %v7358_v52 = vpop.eup %7357 }
 0x3fa   :  { %838 = vadd.xlane.f32.xlu0 %v837_v49  ;;  %v834_v53 = vsel %vm421_vm3, %v7358_v52, 0.0 }
 0x404   :  { %7215 = vrot.lane.b32.xlu1 %v7859_v48, %s7646_s0 }
 0x408   :  { %7220 = vrot.lane.b32.xlu1 %v7859_v48, %s7647_s22 }
 0x410   :  { %7210 = vrot.lane.b32.xlu0 %v7859_v48, %s7648_s23 }
 0x414   :  { %933 = vrot.lane.b32.xlu0 %v7850_v45, %s7649_s26 }
 0x42c   :  { %835 = vadd.xlane.f32.xlu1 %v834_v53 }
 0x43d   :  { %931 = vrot.lane.b32.xlu1 %v7853_v47, %s7649_s26 }
 0x47b   :  { %v439_v54 = vpop.xlane.xlu0 %438 }
 0x47c   :  { %7359 = vrcp.f32 %v439_v54  ;;  %v436_v56 = vpop.xlane.xlu1 %435 }
 0x47d   :  { %7361 = vrcp.f32 %v436_v56 }
 0x480   :  { %v636_v57 = vpop.xlane.xlu1 %635 }
 0x481   :  { %7363 = vrcp.f32 %v636_v57 }
 0x483   :  { %v639_v58 = vpop.xlane.xlu0 %638 }
 0x484   :  { %7365 = vrcp.f32 %v639_v58  ;;  %v7216_v60 = vpop.permute.xlu1 %7215 }
 0x485   :  { %v7218_v1 = vunpack.i.h.bf16 %v7216_v60  ;;  %v7217_v47 = vunpack.i.l.bf16 %v7216_v60 }
 0x486   :  { %v7360_v59 = vpop.eup %7359 }
 0x487   :  { %v7362_v45 = vpop.eup %7361  ;;  %v839_v61 = vpop.xlane.xlu0 %838  ;;  %v443_v63 = vmul.f32 %v7360_v59, %v7348_v32  ;;  %v6940_v13 = vpack.c.bf16 %v7218_v1, %v7217_v47 }
 0x488   :  { %v441_v62 = vmul.f32 %v7362_v45, %v7350_v36  ;;  %v7221_v8 = vpop.permute.xlu1 %7220  ;;  %7367 = vrcp.f32 %v839_v61 }
 0x489   :  { %v7223_v11 = vunpack.i.h.bf16 %v7221_v8  ;;  %v7222_v12 = vunpack.i.l.bf16 %v7221_v8 }
 0x48a   :  { %6464 = vmatprep.mubr.msk.f32.mxu1 %vm421_vm3, %v441_v62 }
 0x48b   :  { %v7364_v0 = vpop.eup %7363  ;;  %v7211_v4 = vpop.permute.xlu0 %7210  ;;  %6465 = vmatmul.mubr.msk.f32.vlgmr.msra.gmra.mrb[2].mxu1 %vm421_vm3, %v443_v63  ;;  %v6944_v15 = vpack.c.bf16 %v7223_v11, %v7222_v12 }
 0x48c   :  { %v7213_v5 = vunpack.i.h.bf16 %v7211_v4  ;;  %v7212_v6 = vunpack.i.l.bf16 %v7211_v4  ;;  %v641_v7 = vmul.f32 %v7364_v0, %v7352_v40 }
 0x48e   :  { %6478 = vmatprep.mubr.msk.f32.mxu1 %vm421_vm3, %v641_v7  ;;  %v6930_v9 = vpack.c.bf16 %v7213_v5, %v7212_v6  ;;  %v7366_v10 = vpop.eup %7365 }
 0x48f   :  { %v643_v14 = vmul.f32 %v7366_v10, %v7354_v42  ;;  %v934_v22 = vpop.permute.xlu0 %933 }
 0x490   :  { %6931 = vmatprep.subr.bf16.mxu1 %v6930_v9 }
 0x491   :  { %6933 = vmatpush3.bf16.msra.mxu1 %v6930_v9 }
 0x492   :  { %6941 = vmatprep.subr.bf16.mxu1 %v6940_v13  ;;  %v7368_v17 = vpop.eup %7367 }
 0x493   :  { %v843_v20 = vmul.f32 %v7368_v17, %v7356_v46 }
 0x494   :  { %6479 = vmatmul.mubr.msk.f32.vlgmr.msra.gmra.mrb[4].mxu1 %vm421_vm3, %v643_v14 }
 0x495   :  { %6943 = vmatpush3.bf16.msra.mxu1 %v6940_v13 }
 0x496   :  { %6946 = vmatprep.subr.msk.bf16.mxu1 %vm7877_vm2, %v6944_v15 }
 0x4b9   :  { %v836_v16 = vpop.xlane.xlu1 %835 }
 0x4ba   :  { %7369 = vrcp.f32 %v836_v16 }
 0x4bd   :  { %v932_v21 = vpop.permute.xlu1 %931 }
 0x4c4   :  { %v7370_v18 = vpop.eup %7369 }
 0x4c5   :  { %v841_v19 = vmul.f32 %v7370_v18, %v7358_v52  ;;  %v7967_v52 = vpack.i.bf16 %v7959_v50, %v7963_v51 }
 0x4c7   :  { %6492 = vmatprep.mubr.msk.f32.mxu1 %vm421_vm3, %v841_v19 }
 0x4c8   :  { %6493 = vmatmul.mubr.msk.f32.vlgmr.msra.gmra.mrb[6].mxu1 %vm421_vm3, %v843_v20 }
 0x4c9   :  { %6949 = vmatpush3.bf16.xpose.msk.msra.mxu1 %vm7877_vm2, %v6944_v15  ;;  %6499 = vmatprep.mubr.msk.f32.mxu1 %vm337_vm1, %v932_v21 }
 0x4d0   :  { %6500 = vmatmul.mubr.msk.f32.vlgmr.msra.gmra.mrb[8].mxu1 %vm337_vm1, %v934_v22 }
 0x55e   :  { %v7939_v23 = vpop.f32.mrb[2].mxu1 }
 0x55f   :  { %v7941_v24 = vpop.f32.mrb[3].mxu1 }
 0x567   :  { %v7943_v25 = vpop.f32.mrb[4].mxu1 }
 0x568   :  { %v7945_v26 = vpop.f32.mrb[5].mxu1 }
 0x59b   :  { %v7947_v27 = vpop.f32.mrb[6].mxu1 }
 0x59c   :  { %v7949_v28 = vpop.f32.mrb[7].mxu1 }
 0x5a3   :  { %v6501_v29 = vpop.f32.mrb[8].mxu1 }
 0x5a4   :  { %v1013_v30 = vpop.f32.mrb[9].mxu1  ;;  %v1025_v31 = vsel %vm421_vm3, %v6501_v29, -inf }
 0x5a5   :  { %1026 = vmax.xlane.f32.xlu0 %v1025_v31  ;;  %v1022_v32 = vsel %vm421_vm3, %v1013_v30, -inf }
 0x5a6   :  { %1023 = vmax.xlane.f32.xlu1 %v1022_v32 }
 0x5b7   :  { %7225 = vrot.lane.b32.xlu1 %v7859_v48, %s7650_s28 }
 0x632   :  { %v1027_v33 = vpop.xlane.xlu0 %1026 }
 0x633   :  { %v1029_v34 = vsub.f32 %v6501_v29, %v1027_v33  ;;  %v1024_v35 = vpop.xlane.xlu1 %1023 }
 0x634   :  { %v1028_v36 = vsub.f32 %v1013_v30, %v1024_v35 }
 0x635   :  { %v1032_v37 = vmul.f32 1.442695, %v1029_v34 }
 0x636   :  { %v1030_v38 = vmul.f32 1.442695, %v1028_v36 }
 0x637   :  { %7371 = vpow2.f32 %v1032_v37  ;;  %v7226_v39 = vpop.permute.xlu1 %7225 }
 0x638   :  { %v7228_v40 = vunpack.i.h.bf16 %v7226_v39  ;;  %v7227_v41 = vunpack.i.l.bf16 %v7226_v39  ;;  %7373 = vpow2.f32 %v1030_v38 }
 0x63a   :  { %v6950_v42 = vpack.c.bf16 %v7228_v40, %v7227_v41 }
 0x63c   :  { %6951 = vmatprep.subr.bf16.mxu0 %v6950_v42 }
 0x63d   :  { %6953 = vmatpush3.bf16.msra.mxu0 %v6950_v42 }
 0x641   :  { %v7372_v44 = vpop.eup %7371 }
 0x642   :  { %v1037_v46 = vsel %vm421_vm3, %v7372_v44, 0.0  ;;  %v7374_v49 = vpop.eup %7373 }
 0x643   :  { %1038 = vadd.xlane.f32.xlu0 %v1037_v46  ;;  %v1034_v48 = vsel %vm421_vm3, %v7374_v49, 0.0 }
 0x647   :  { %1035 = vadd.xlane.f32.xlu0 %v1034_v48 }
 0x65d   :  { %7230 = vrot.lane.b32.xlu0 %v7967_v52, %s7641_s17 }
 0x6d0   :  { %v1039_v53 = vpop.xlane.xlu0 %1038 }
 0x6d1   :  { %7375 = vrcp.f32 %v1039_v53 }
 0x6d4   :  { %v1036_v54 = vpop.xlane.xlu0 %1035 }
 0x6d5   :  { %7377 = vrcp.f32 %v1036_v54 }
 0x6d8   :  { %v7231_v56 = vpop.permute.xlu0 %7230 }
 0x6d9   :  { %v7233_v57 = vunpack.i.h.bf16 %v7231_v56  ;;  %v7232_v58 = vunpack.i.l.bf16 %v7231_v56 }
 0x6db   :  { %v6954_v2 = vpack.c.bf16 %v7233_v57, %v7232_v58  ;;  %v7376_v43 = vpop.eup %7375 }
 0x6dc   :  { %v1043_v45 = vmul.f32 %v7376_v43, %v7372_v44 }
 0x6dd   :  { %6956 = vmatprep.subr.msk.bf16.mxu0 %vm7877_vm2, %v6954_v2 }
 0x6df   :  { %v7378_v3 = vpop.eup %7377 }
 0x6e0   :  { %v1041_v59 = vmul.f32 %v7378_v3, %v7374_v49 }
 0x6e2   :  { %6506 = vmatprep.mubr.msk.f32.mxu0 %vm421_vm3, %v1041_v59 }
 0x6e3   :  { %6507 = vmatmul.mubr.msk.f32.vlgmr.msra.gmra.mrb[8].mxu0 %vm421_vm3, %v1043_v45 }
 0x6e4   :  { %6959 = vmatpush3.bf16.xpose.msk.msra.mxu0 %vm7877_vm2, %v6954_v2  ;;  %6513 = vmatprep.mubr.msk.f32.mxu0 %vm337_vm1, %v7963_v51 }
 0x6eb   :  { %6514 = vmatmul.mubr.msk.f32.vlgmr.msra.gmra.mrb[10].mxu0 %vm337_vm1, %v7959_v50 }
 0x7b6   :  { %v7981_v60 = vpop.f32.mrb[8].mxu0 }
 0x7b7   :  { %v7983_v61 = vpop.f32.mrb[9].mxu0 }
 0x7be   :  { %v6515_v62 = vpop.f32.mrb[10].mxu0 }
 0x7bf   :  { %v1242_v63 = vpop.f32.mrb[11].mxu0  ;;  %v1254_v0 = vsel %vm421_vm3, %v6515_v62, -inf }
 0x7c0   :  { %1255 = vmax.xlane.f32.xlu0 %v1254_v0  ;;  %v1251_v1 = vsel %vm421_vm3, %v1242_v63, -inf }
 0x7c1   :  { %1252 = vmax.xlane.f32.xlu1 %v1251_v1 }
 0x7d2   :  { %7235 = vrot.lane.b32.xlu1 %v7967_v52, %s7645_s18 }
 0x7d6   :  { %1360 = vrot.lane.b32.xlu1 %v7963_v51, %s7642_s21 }
 0x84d   :  { %v1256_v4 = vpop.xlane.xlu0 %1255 }
 0x84e   :  { %v1258_v47 = vsub.f32 %v6515_v62, %v1256_v4  ;;  %v1253_v5 = vpop.xlane.xlu1 %1252 }
 0x84f   :  { %v1257_v6 = vsub.f32 %v1242_v63, %v1253_v5 }
 0x850   :  { %v1261_v7 = vmul.f32 1.442695, %v1258_v47 }
 0x851   :  { %v1259_v8 = vmul.f32 1.442695, %v1257_v6 }
 0x852   :  { %7379 = vpow2.f32 %v1261_v7  ;;  %v7236_v9 = vpop.permute.xlu1 %7235 }
 0x853   :  { %7381 = vpow2.f32 %v1259_v8  ;;  %v7238_v10 = vunpack.i.h.bf16 %v7236_v9  ;;  %v7237_v11 = vunpack.i.l.bf16 %v7236_v9 }
 0x855   :  { %v6960_v12 = vpack.c.bf16 %v7238_v10, %v7237_v11 }
 0x856   :  { %v1361_v17 = vpop.permute.xlu1 %1360 }
 0x857   :  { %6961 = vmatprep.subr.bf16.mxu1 %v6960_v12 }
 0x858   :  { %6963 = vmatpush3.bf16.msra.mxu1 %v6960_v12 }
 0x85c   :  { %v7380_v13 = vpop.eup %7379 }
 0x85d   :  { %v7382_v14 = vpop.eup %7381  ;;  %v1266_v15 = vsel %vm421_vm3, %v7380_v13, 0.0 }
 0x85e   :  { %1267 = vadd.xlane.f32.xlu0 %v1266_v15  ;;  %v1263_v16 = vsel %vm421_vm3, %v7382_v14, 0.0 }
 0x85f   :  { %1264 = vadd.xlane.f32.xlu1 %v1263_v16 }
 0x870   :  { %1362 = vrot.lane.b32.xlu1 %v7959_v50, %s7642_s21 }
 0x874   :  { %7240 = vrot.lane.b32.xlu0 %v7967_v52, %s7640_s13 }
 0x8eb   :  { %v1268_v18 = vpop.xlane.xlu0 %1267 }
 0x8ec   :  { %7383 = vrcp.f32 %v1268_v18  ;;  %v1265_v19 = vpop.xlane.xlu1 %1264 }
 0x8ed   :  { %7385 = vrcp.f32 %v1265_v19 }
 0x8ef   :  { %v7241_v20 = vpop.permute.xlu0 %7240 }
 0x8f0   :  { %v7243_v21 = vunpack.i.h.bf16 %v7241_v20  ;;  %v7242_v22 = vunpack.i.l.bf16 %v7241_v20  ;;  %v1363_v34 = vpop.permute.xlu1 %1362 }
 0x8f2   :  { %v6964_v29 = vpack.c.bf16 %v7243_v21, %v7242_v22 }
 0x8f4   :  { %6966 = vmatprep.subr.msk.bf16.mxu1 %vm7877_vm2, %v6964_v29 }
 0x8f6   :  { %v7384_v30 = vpop.eup %7383 }
 0x8f7   :  { %v7386_v31 = vpop.eup %7385  ;;  %v1272_v33 = vmul.f32 %v7384_v30, %v7380_v13 }
 0x8f8   :  { %v1270_v32 = vmul.f32 %v7386_v31, %v7382_v14 }
 0x8fa   :  { %6520 = vmatprep.mubr.msk.f32.mxu1 %vm421_vm3, %v1270_v32 }
 0x8fb   :  { %6521 = vmatmul.mubr.msk.f32.vlgmr.msra.gmra.mrb[10].mxu1 %vm421_vm3, %v1272_v33 }
 0x8fc   :  { %6969 = vmatpush3.bf16.xpose.msk.msra.mxu1 %vm7877_vm2, %v6964_v29  ;;  %6527 = vmatprep.mubr.msk.f32.mxu1 %vm337_vm1, %v1361_v17 }
 0x903   :  { %6528 = vmatmul.mubr.msk.f32.vlgmr.msra.gmra.mrb[12].mxu1 %vm337_vm1, %v1363_v34 }
 0x9ce   :  { %v8005_v35 = vpop.f32.mrb[10].mxu1 }
 0x9cf   :  { %v8007_v36 = vpop.f32.mrb[11].mxu1 }
 0x9d6   :  { %v6529_v37 = vpop.f32.mrb[12].mxu1 }
 0x9d7   :  { %v1442_v38 = vpop.f32.mrb[13].mxu1  ;;  %v1454_v39 = vsel %vm421_vm3, %v6529_v37, -inf }
 0x9d8   :  { %1455 = vmax.xlane.f32.xlu0 %v1454_v39  ;;  %v1451_v40 = vsel %vm421_vm3, %v1442_v38, -inf }
 0x9d9   :  { %1452 = vmax.xlane.f32.xlu1 %v1451_v40 }
 0x9ea   :  { %7245 = vrot.lane.b32.xlu1 %v7967_v52, %s7648_s23 }
 0x9ee   :  { %1560 = vrot.lane.b32.xlu1 %v7963_v51, %s7644_s27 }
 0x9f2   :  { %1562 = vrot.lane.b32.xlu1 %v7959_v50, %s7644_s27 }
 0xa65   :  { %v1456_v41 = vpop.xlane.xlu0 %1455 }
 0xa66   :  { %v1458_v42 = vsub.f32 %v6529_v37, %v1456_v41  ;;  %v1453_v44 = vpop.xlane.xlu1 %1452 }
 0xa67   :  { %v1457_v46 = vsub.f32 %v1442_v38, %v1453_v44 }
 0xa68   :  { %v1461_v49 = vmul.f32 1.442695, %v1458_v42 }
 0xa69   :  { %v1459_v48 = vmul.f32 1.442695, %v1457_v46 }
 0xa6a   :  { %7387 = vpow2.f32 %v1461_v49  ;;  %v7246_v53 = vpop.permute.xlu1 %7245 }
 0xa6b   :  { %v7248_v54 = vunpack.i.h.bf16 %v7246_v53  ;;  %v7247_v56 = vunpack.i.l.bf16 %v7246_v53  ;;  %7389 = vpow2.f32 %v1459_v48 }
 0xa6d   :  { %v6970_v57 = vpack.c.bf16 %v7248_v54, %v7247_v56 }
 0xa6e   :  { %v1561_v7 = vpop.permute.xlu1 %1560 }
 0xa6f   :  { %6971 = vmatprep.subr.bf16.mxu0 %v6970_v57 }
 0xa70   :  { %6973 = vmatpush3.bf16.msra.mxu0 %v6970_v57 }
 0xa72   :  { %v1563_v8 = vpop.permute.xlu1 %1562 }
 0xa74   :  { %v7388_v58 = vpop.eup %7387 }
 0xa75   :  { %v1466_v2 = vsel %vm421_vm3, %v7388_v58, 0.0  ;;  %v7390_v43 = vpop.eup %7389 }
 0xa76   :  { %1467 = vadd.xlane.f32.xlu0 %v1466_v2  ;;  %v1463_v3 = vsel %vm421_vm3, %v7390_v43, 0.0 }
 0xa7a   :  { %1464 = vadd.xlane.f32.xlu0 %v1463_v3 }
 0xa90   :  { %7250 = vrot.lane.b32.xlu0 %v7967_v52, %s7643_s12 }
 0xb03   :  { %v1468_v59 = vpop.xlane.xlu0 %1467 }
 0xb04   :  { %7391 = vrcp.f32 %v1468_v59 }
 0xb07   :  { %v1465_v45 = vpop.xlane.xlu0 %1464 }
 0xb08   :  { %7393 = vrcp.f32 %v1465_v45 }
 0xb0b   :  { %v7251_v62 = vpop.permute.xlu0 %7250 }
 0xb0c   :  { %v7253_v63 = vunpack.i.h.bf16 %v7251_v62  ;;  %v7252_v0 = vunpack.i.l.bf16 %v7251_v62 }
 0xb0e   :  { %v6974_v1 = vpack.c.bf16 %v7253_v63, %v7252_v0  ;;  %v7392_v4 = vpop.eup %7391 }
 0xb0f   :  { %v1472_v6 = vmul.f32 %v7392_v4, %v7388_v58 }
 0xb10   :  { %6976 = vmatprep.subr.msk.bf16.mxu0 %vm7877_vm2, %v6974_v1 }
 0xb12   :  { %v7394_v47 = vpop.eup %7393 }
 0xb13   :  { %v1470_v5 = vmul.f32 %v7394_v47, %v7390_v43  ;;  %v223_v47 = vld [vmem:[%s7691_s25] sm:$0xff] }
 0xb15   :  { %6534 = vmatprep.mubr.msk.f32.mxu0 %vm421_vm3, %v1470_v5  ;;  %v224_v5 = vld [vmem:[%s7691_s25 + $0x8] sm:$0xff] }
 0xb16   :  { %6535 = vmatmul.mubr.msk.f32.vlgmr.msra.gmra.mrb[12].mxu0 %vm421_vm3, %v1472_v6  ;;  %v6994_v6 = vpack.c.bf16 %v224_v5, %v223_v47  ;;  %v6117_v5 = vld [vmem:[%s7701_s3] ss:$0 sm:$0xff]  ;;  %s8758_s3 = sld [smem:[#allocation15_spill]] }
 0xb17   :  { %6979 = vmatpush3.bf16.xpose.msk.msra.mxu0 %vm7877_vm2, %v6974_v1  ;;  %6541 = vmatprep.mubr.msk.f32.mxu0 %vm337_vm1, %v1561_v7 }
 0xb1e   :  { %6542 = vmatmul.mubr.msk.f32.vlgmr.msra.gmra.mrb[14].mxu0 %vm337_vm1, %v1563_v8 }
 0xbe9   :  { %v8029_v9 = vpop.f32.mrb[12].mxu0 }
 0xbea   :  { %v8031_v10 = vpop.f32.mrb[13].mxu0 }
 0xbf1   :  { %v6543_v11 = vpop.f32.mrb[14].mxu0 }
 0xbf2   :  { %v1642_v12 = vpop.f32.mrb[15].mxu0  ;;  %v1654_v13 = vsel %vm421_vm3, %v6543_v11, -inf }
 0xbf3   :  { %1655 = vmax.xlane.f32.xlu0 %v1654_v13  ;;  %v1651_v14 = vsel %vm421_vm3, %v1642_v12, -inf }
 0xbf4   :  { %1652 = vmax.xlane.f32.xlu1 %v1651_v14  ;;  %v225_v14 = vld [vmem:[%s7691_s25 + $0x10] sm:$0xff] }
 0xc05   :  { %7255 = vrot.lane.b32.xlu1 %v7967_v52, %s7646_s0 }
 0xc09   :  { %1760 = vrot.lane.b32.xlu1 %v7963_v51, %s7649_s26 }
 0xc0d   :  { %1762 = vrot.lane.b32.xlu1 %v7959_v50, %s7649_s26 }
 0xc80   :  { %v1656_v15 = vpop.xlane.xlu0 %1655 }
 0xc81   :  { %v1658_v16 = vsub.f32 %v6543_v11, %v1656_v15  ;;  %v1653_v17 = vpop.xlane.xlu1 %1652  ;;  %v226_v15 = vld [vmem:[%s7691_s25 + $0x18] sm:$0xff]  ;;  %s8756_s25 = sld [smem:[#allocation19_spill]] }
 0xc82   :  { %v1657_v18 = vsub.f32 %v1642_v12, %v1653_v17 }
 0xc83   :  { %v1661_v19 = vmul.f32 1.442695, %v1658_v16 }
 0xc84   :  { %v1659_v20 = vmul.f32 1.442695, %v1657_v18 }
 0xc85   :  { %7395 = vpow2.f32 %v1661_v19  ;;  %v7256_v21 = vpop.permute.xlu1 %7255  ;;  %v6998_v19 = vpack.c.bf16 %v226_v15, %v225_v14  ;;  %v7511_v15 = vld [vmem:[%s7666_s5 + $0x18] sm:$0xff] }
 0xc86   :  { %v7258_v22 = vunpack.i.h.bf16 %v7256_v21  ;;  %v7257_v29 = vunpack.i.l.bf16 %v7256_v21  ;;  %7397 = vpow2.f32 %v1659_v20 }
 0xc88   :  { %v6980_v30 = vpack.c.bf16 %v7258_v22, %v7257_v29 }
 0xc89   :  { %v1761_v49 = vpop.permute.xlu1 %1760 }
 0xc8a   :  { %6981 = vmatprep.subr.bf16.mxu1 %v6980_v30 }
 0xc8b   :  { %6983 = vmatpush3.bf16.msra.mxu1 %v6980_v30 }
 0xc8d   :  { %v1763_v48 = vpop.permute.xlu1 %1762 }
 0xc8f   :  { %v7396_v31 = vpop.eup %7395 }
 0xc90   :  { %v1666_v51 = vsel %vm421_vm3, %v7396_v31, 0.0  ;;  %v7398_v32 = vpop.eup %7397 }
 0xc91   :  { %1667 = vadd.xlane.f32.xlu0 %v1666_v51  ;;  %v1663_v50 = vsel %vm421_vm3, %v7398_v32, 0.0 }
 0xc95   :  { %1664 = vadd.xlane.f32.xlu0 %v1663_v50 }
 0xcab   :  { %7260 = vrot.lane.b32.xlu0 %v7967_v52, %s7647_s22 }
 0xd1e   :  { %v1668_v33 = vpop.xlane.xlu0 %1667 }
 0xd1f   :  { %7399 = vrcp.f32 %v1668_v33  ;;  %v6112_v33 = vld [vmem:[%s7696_s29] ss:$0 sm:$0xff]  ;;  %s8757_s29 = sld [smem:[#allocation13_spill]] }
 0xd22   :  { %v1665_v34 = vpop.xlane.xlu0 %1664 }
 0xd23   :  { %7401 = vrcp.f32 %v1665_v34 }
 0xd26   :  { %v7261_v37 = vpop.permute.xlu0 %7260 }
 0xd27   :  { %v7263_v38 = vunpack.i.h.bf16 %v7261_v37  ;;  %v7262_v39 = vunpack.i.l.bf16 %v7261_v37  ;;  %v7509_v37 = vld [vmem:[%s7666_s5] sm:$0xff] }
 0xd29   :  { %v6984_v40 = vpack.c.bf16 %v7263_v38, %v7262_v39  ;;  %v7400_v41 = vpop.eup %7399  ;;  %v7510_v39 = vld [vmem:[%s7666_s5 + $0x8] sm:$0xff] }
 0xd2a   :  { %v1672_v46 = vmul.f32 %v7400_v41, %v7396_v31 }
 0xd2b   :  { %6986 = vmatprep.subr.msk.bf16.mxu1 %vm7877_vm2, %v6984_v40 }
 0xd2d   :  { %v7402_v42 = vpop.eup %7401 }
 0xd2e   :  { %v1670_v44 = vmul.f32 %v7402_v42, %v7398_v32 }
 0xd30   :  { %6548 = vmatprep.mubr.msk.f32.mxu1 %vm421_vm3, %v1670_v44 }
 0xd31   :  { %6549 = vmatmul.mubr.msk.f32.vlgmr.msra.gmra.mrb[14].mxu1 %vm421_vm3, %v1672_v46 }
 0xd32   :  { %6989 = vmatpush3.bf16.xpose.msk.msra.mxu1 %vm7877_vm2, %v6984_v40  ;;  %6555 = vmatprep.mubr.msk.f32.mxu1 %vm337_vm1, %v1761_v49  ;;  %v2140_v49 = vld [vmem:[%s7706_s8] sm:$0xff] }
 0xd39   :  { %6556 = vmatmul.mubr.msk.f32.vlgmr.msra.gmra.mrb[16].mxu1 %vm337_vm1, %v1763_v48  ;;  %v2141_v48 = vld [vmem:[%s7706_s8 + $0x8] sm:$0xff] }
 0xe04   :  { %v6550_v53 = vpop.f32.mrb[14].mxu1 }
 0xe05   :  { %v1751_v54 = vpop.f32.mrb[15].mxu1 }
 0xe0c   :  { %v6557_v56 = vpop.f32.mrb[16].mxu1 }
 0xe0d   :  { %v1842_v57 = vpop.f32.mrb[17].mxu1  ;;  %v1854_v58 = vsel %vm421_vm3, %v6557_v56, -inf }
 0xe0e   :  { %1855 = vmax.xlane.f32.xlu0 %v1854_v58  ;;  %v1851_v2 = vsel %vm421_vm3, %v1842_v57, -inf }
 0xe0f   :  { %1852 = vmax.xlane.f32.xlu1 %v1851_v2 }
 0xe20   :  { %7265 = vrot.lane.b32.xlu1 %v7967_v52, %s7650_s28 }
 0xe24   :  { %1135 = vrot.lane.b32.xlu1 %v7943_v25, %s7651_s20 }
 0xe28   :  { %1141 = vrot.lane.b32.xlu1 %v7949_v28, %s7652_s1 }
 0xe2c   :  { %1143 = vrot.lane.b32.xlu1 %v7947_v27, %s7652_s1 }
 0xe30   :  { %1151 = vrot.lane.b32.xlu1 %v7981_v60, %s7653_s2 }
 0xe34   :  { %1964 = vrot.lane.b32.xlu1 %v8029_v9, %s7651_s20 }
 0xe38   :  { %1972 = vrot.lane.b32.xlu1 %v6550_v53, %s7652_s1  ;;  %v7002_v53 = vpack.c.bf16 %v2141_v48, %v2140_v49 }
 0xe3a   :  { %7003 = vmatprep.subr.bf16.mxu1 %v7002_v53 }
 0xe3b   :  { %7005 = vmatpush3.bf16.msra.mxu1 %v7002_v53 }
 0xe9b   :  { %v1856_v52 = vpop.xlane.xlu0 %1855 }
 0xe9c   :  { %v1858_v43 = vsub.f32 %v6557_v56, %v1856_v52  ;;  %v1853_v3 = vpop.xlane.xlu1 %1852  ;;  %v2143_v56 = vld [vmem:[%s7706_s8 + $0x18] sm:$0xff] }
 0xe9d   :  { %v1857_v25 = vsub.f32 %v1842_v57, %v1853_v3 }
 0xe9e   :  { %v1861_v59 = vmul.f32 1.442695, %v1858_v43 }
 0xe9f   :  { %v1859_v45 = vmul.f32 1.442695, %v1857_v25 }
 0xea0   :  { %v7266_v28 = vpop.permute.xlu1 %7265 }
 0xea1   :  { %7403 = vpow2.f32 %v1859_v45  ;;  %v7268_v27 = vunpack.i.h.bf16 %v7266_v28  ;;  %v7267_v62 = vunpack.i.l.bf16 %v7266_v28 }
 0xea2   :  { %7405 = vpow2.f32 %v1861_v59 }
 0xea3   :  { %v6990_v63 = vpack.c.bf16 %v7268_v27, %v7267_v62 }
 0xea4   :  { %v1136_v8 = vpop.permute.xlu1 %1135 }
 0xea5   :  { %6991 = vmatprep.subr.bf16.mxu0 %v6990_v63  ;;  %v1156_v22 = vsel %vm337_vm1, %v7939_v23, %v1136_v8 }
 0xea6   :  { %6993 = vmatpush3.bf16.msra.mxu0 %v6990_v63 }
 0xea7   :  { %6995 = vmatprep.subr.bf16.mxu0 %v6994_v6 }
 0xea8   :  { %v1142_v11 = vpop.permute.xlu1 %1141 }
 0xeab   :  { %v7404_v60 = vpop.eup %7403 }
 0xeac   :  { %v1863_v0 = vsel %vm421_vm3, %v7404_v60, 0.0  ;;  %v7406_v1 = vpop.eup %7405  ;;  %v1144_v17 = vpop.permute.xlu1 %1143 }
 0xead   :  { %1864 = vadd.xlane.f32.xlu0 %v1863_v0  ;;  %v1866_v4 = vsel %vm421_vm3, %v7406_v1, 0.0  ;;  %v1158_v29 = vsel %vm421_vm3, %v1156_v22, %v1144_v17 }
 0xeb1   :  { %1867 = vadd.xlane.f32.xlu0 %v1866_v4 }
 0xec7   :  { %1133 = vrot.lane.b32.xlu0 %v7945_v26, %s7651_s20 }
 0xecb   :  { %1149 = vrot.lane.b32.xlu0 %v7983_v61, %s7653_s2 }
 0xecf   :  { %1962 = vrot.lane.b32.xlu0 %v8031_v10, %s7651_s20 }
 0xed3   :  { %1970 = vrot.lane.b32.xlu0 %v1751_v54, %s7652_s1  ;;  %v2142_v54 = vld [vmem:[%s7706_s8 + $0x10] sm:$0xff]  ;;  %s8759_s8 = sld [smem:[#allocation17_spill]] }
 0xed4   :  { %v7006_v57 = vpack.c.bf16 %v2143_v56, %v2142_v54 }
 0xed6   :  { %7007 = vmatprep.subr.bf16.mxu1 %v7006_v57 }
 0xed7   :  { %7009 = vmatpush3.bf16.msra.mxu1 %v7006_v57 }
 0xf3a   :  { %v1865_v7 = vpop.xlane.xlu0 %1864 }
 0xf3b   :  { %7407 = vrcp.f32 %v1865_v7 }
 0xf3e   :  { %v1868_v9 = vpop.xlane.xlu0 %1867 }
 0xf3f   :  { %7409 = vrcp.f32 %v1868_v9 }
 0xf42   :  { %v1134_v26 = vpop.permute.xlu0 %1133 }
 0xf43   :  { %v1155_v61 = vsel %vm337_vm1, %v7941_v24, %v1134_v26  ;;  %v1152_v24 = vpop.permute.xlu1 %1151 }
 0xf44   :  { %v1157_v20 = vsel %vm421_vm3, %v1155_v61, %v1142_v11  ;;  %v1161_v30 = vsel %vm1159_vm4, %v1158_v29, %v1152_v24  ;;  %v2467_v29 = vld [vmem:[%s7726_s30] sm:$0xff] }
 0xf45   :  { %v7408_v12 = vpop.eup %7407 }
 0xf46   :  { %v1870_v13 = vmul.f32 %v7408_v12, %v7404_v60  ;;  %v1150_v10 = vpop.permute.xlu0 %1149 }
 0xf47   :  { %v1160_v21 = vsel %vm1159_vm4, %v1157_v20, %v1150_v10  ;;  %v1965_v58 = vpop.permute.xlu1 %1964 }
 0xf48   :  { %6562 = vmatprep.mubr.msk.f32.mxu0 %vm421_vm3, %v1870_v13  ;;  %v1985_v59 = vsel %vm337_vm1, %v8005_v35, %v1965_v58 }
 0xf49   :  { %v7410_v16 = vpop.eup %7409 }
 0xf4a   :  { %v1872_v18 = vmul.f32 %v7410_v16, %v7406_v1  ;;  %v1963_v2 = vpop.permute.xlu0 %1962  ;;  %v7512_v16 = vld [vmem:[%s7666_s5 + $0x10] sm:$0xff]  ;;  %s8754_s5 = sld [smem:[#allocation12_spill]] }
 0xf4b   :  { %v1973_v52 = vpop.permute.xlu1 %1972  ;;  %v1984_v3 = vsel %vm337_vm1, %v8007_v36, %v1963_v2 }
 0xf4c   :  { %6563 = vmatmul.mubr.msk.f32.vlgmr.msra.gmra.mrb[16].mxu0 %vm421_vm3, %v1872_v18  ;;  %v1987_v27 = vsel %vm421_vm3, %v1985_v59, %v1973_v52  ;;  %v8136_v18 = vld [vmem:[%s7671_s9] sm:$0xff]  ;;  %s8755_s9 = sld [smem:[#allocation14_spill]] }
 0xf4d   :  { %6997 = vmatpush3.bf16.msra.mxu0 %v6994_v6  ;;  %6573 = vmatprep.mubr.msk.f32.mxu0 %vm178_vm0, %v1160_v21  ;;  %v2452_v21 = vmul.f32 %v8136_v18, %v8136_v18 }
 0xf4e   :  { %6999 = vmatprep.subr.bf16.mxu0 %v6998_v19  ;;  %v1971_v43 = vpop.permute.xlu0 %1970 }
 0xf4f   :  { %v1986_v45 = vsel %vm421_vm3, %v1984_v3, %v1971_v43  ;;  %v2453_v22 = vsel %vm178_vm0, %v2452_v21, 0.0 }
 0xf51   :  { %7001 = vmatpush3.bf16.msra.mxu0 %v6998_v19 }
 0xf54   :  { %6574 = vmatmul.mubr.msk.f32.vlgmr.msra.gmra.mrb[18].mxu0 %vm178_vm0, %v1161_v30  ;;  %v2468_v30 = vld [vmem:[%s7726_s30 + $0x8] sm:$0xff] }
0x101f   :  { %v6564_v31 = vpop.f32.mrb[16].mxu0 }
0x1020   :  { %1980 = vrot.lane.b32.xlu1 %v6564_v31, %s7653_s2  ;;  %v1951_v51 = vpop.f32.mrb[17].mxu0  ;;  %v7027_v31 = vpack.c.bf16 %v2468_v30, %v2467_v29 }
0x1021   :  { %1978 = vrot.lane.b32.xlu0 %v1951_v51, %s7653_s2  ;;  %v7654_v51 = vmov 0.0|0.0  }
0x1022   :  { %7026 = vmatprep.subr.bf16.mxu1 %v7654_v51 }
0x1027   :  { %v6575_v32 = vpop.f32.mrb[18].mxu0 }
0x1028   :  { %v2074_v50 = vpop.f32.mrb[19].mxu0  ;;  %v2080_v34 = vadd.f32 %v6575_v32, %v6112_v33  ;;  %v2469_v32 = vld [vmem:[%s7726_s30 + $0x10] sm:$0xff] }
0x1029   :  { %v2075_v23 = vadd.f32 %v6112_v33, %v2074_v50  ;;  %v2470_v50 = vld [vmem:[%s7726_s30 + $0x18] sm:$0xff]  ;;  %s8761_s30 = sld [smem:[#allocation16_spill]] }
0x102a   :  { %v8100_v40 = vadd.f32 %v7510_v39, %v2080_v34 }
0x102b   :  { %v8097_v38 = vadd.f32 %v7509_v37, %v2075_v23  ;;  %v7655_v23 = vmov 0.0  }
0x102c   :  { %v2099_v44 = vmul.f32 %v8100_v40, %v8100_v40 }
0x102d   :  { %v2098_v41 = vmul.f32 %v8097_v38, %v8097_v38 }
0x102e   :  { %v2105_v46 = vsel %vm178_vm0, %v2099_v44, 0.0 }
0x102f   :  { %v2102_v42 = vsel %vm178_vm0, %v2098_v41, 0.0 }
0x1040   :  { %2103 = vadd.xlane.f32.xlu0 %v2102_v42 }
0x1044   :  { %2106 = vadd.xlane.f32.xlu1 %v2105_v46 }
0x1092   :  { %v1981_v25 = vpop.permute.xlu1 %1980 }
0x1093   :  { %v1979_v28 = vpop.permute.xlu0 %1978  ;;  %v1989_v63 = vsel %vm1159_vm4, %v1987_v27, %v1981_v25  ;;  %v6127_v25 = vld [vmem:[%s7721_s24] ss:$0 sm:$0xff]  ;;  %s8760_s24 = sld [smem:[#allocation20_spill]] }
0x1094   :  { %v1988_v62 = vsel %vm1159_vm4, %v1986_v45, %v1979_v28 }
0x1095   :  { %6576 = vmatprep.mubr.msk.f32.mxu0 %vm178_vm0, %v1988_v62  ;;  %v6128_v62 = vld [vmem:[%s7731_s6] ss:$0 sm:$0xff]  ;;  %s8762_s6 = sld [smem:[#allocation18_spill]] }
0x1096   :  { %6577 = vmatmul.mubr.msk.f32.gmra.mrb[20].mxu0 %vm178_vm0, %v1989_v63 }
0x10cd   :  { %v2104_v60 = vpop.xlane.xlu0 %2103 }
0x10ce   :  { %v2114_v36 = vmul.f32 0.03125, %v2104_v60 }
0x10d0   :  { %v2118_v0 = vadd.f32 1e-06, %v2114_v36 }
0x10d1   :  { %v2107_v1 = vpop.xlane.xlu1 %2106 }
0x10d2   :  { %7411 = vrsqrt.f32 %v2118_v0  ;;  %v2115_v35 = vmul.f32 0.03125, %v2107_v1 }
0x10d4   :  { %v2119_v4 = vadd.f32 1e-06, %v2115_v35 }
0x10d6   :  { %7413 = vrsqrt.f32 %v2119_v4 }
0x10dc   :  { %v7412_v47 = vpop.eup %7411 }
0x10dd   :  { %v2126_v6 = vmul.f32 %v7412_v47, %v8097_v38 }
0x10df   :  { %v2136_v7 = vmul.f32 %v6117_v5, %v2126_v6 }
0x10e0   :  { %v7414_v8 = vpop.eup %7413 }
0x10e1   :  { %v2127_v9 = vmul.f32 %v7414_v8, %v8100_v40  ;;  %6587 = vmatprep.mubr.msk.f32.mxu1 %vm178_vm0, %v2136_v7 }
0x10e3   :  { %v2137_v26 = vmul.f32 %v6117_v5, %v2127_v9 }
0x10e5   :  { %6588 = vmatmul.mubr.msk.f32.vlgmr.msra.gmra.mrb[18].mxu1 %vm178_vm0, %v2137_v26 }
0x10e6   :  { %7028 = vmatpush3.bf16.msra.mxu1 %v7027_v31  ;;  %v7657_v31 = vmov -1e+30  }
0x10e7   :  { %7029 = vmatprep.subr.bf16.mxu1 %v7654_v51 }
0x1169   :  { %v6578_v11 = vpop.f32.mrb[20].mxu0 }
0x116a   :  { %v2090_v12 = vadd.f32 %v6578_v11, %v6112_v33  ;;  %v2084_v13 = vpop.f32.mrb[21].mxu0 }
0x116b   :  { %v2085_v14 = vadd.f32 %v6112_v33, %v2084_v13  ;;  %v7030_v33 = vpack.c.bf16 %v2470_v50, %v2469_v32 }
0x116c   :  { %v8128_v61 = vadd.f32 %v7511_v15, %v2090_v12 }
0x116d   :  { %v8131_v10 = vadd.f32 %v7512_v16, %v2085_v14  ;;  %7031 = vmatpush3.bf16.msra.mxu1 %v7030_v33 }
0x116e   :  { %v2101_v20 = vmul.f32 %v8128_v61, %v8128_v61  ;;  %6626 = vmatprep.subr.mxu1 %v7655_v23 }
0x116f   :  { %v2100_v17 = vmul.f32 %v8131_v10, %v8131_v10 }
0x1170   :  { %v2111_v24 = vsel %vm178_vm0, %v2101_v20, 0.0 }
0x1171   :  { %v2108_v19 = vsel %vm178_vm0, %v2100_v17, 0.0 }
0x1172   :  { %2109 = vadd.xlane.f32.xlu0 %v2108_v19 }
0x1176   :  { %2112 = vadd.xlane.f32.xlu0 %v2111_v24 }
0x117a   :  { %2454 = vadd.xlane.f32.xlu0 %v2453_v22  ;;  %v2556_v22 = vlaneseq }
0x117c   :  { %v2557_v29 = vshrl.u32 %v2556_v22, 7  ;;  %v8231_v30 = vand.u32 127, %v2556_v22 }
0x117e   :  { %vm2560_vm7 = vcmp.le.s32.totalorder %v8231_v30, %v2557_v29 }
0x117f   :  { %v8234_v32 = vsel %vm2560_vm7, 0.0, %v7657_v31 }
0x11b8   :  { %v8152_v34 = vpop.f32.mrb[18].mxu1 }
0x11b9   :  { %v8154_v37 = vpop.f32.mrb[19].mxu1 }
0x11ba   :  { %v2249_v1 = vmul.f32 %v8154_v37, %v8154_v37 }
0x11bc   :  { %v2253_v4 = vmul.f32 %v2249_v1, %v8154_v37 }
0x11ff   :  { %v2110_v39 = vpop.xlane.xlu0 %2109 }
0x1200   :  { %v2116_v41 = vmul.f32 0.03125, %v2110_v39 }
0x1202   :  { %v2120_v42 = vadd.f32 1e-06, %v2116_v41 }
0x1203   :  { %v2113_v44 = vpop.xlane.xlu0 %2112 }
0x1204   :  { %7415 = vrsqrt.f32 %v2120_v42  ;;  %v2117_v46 = vmul.f32 0.03125, %v2113_v44 }
0x1206   :  { %v2121_v49 = vadd.f32 1e-06, %v2117_v46 }
0x1207   :  { %v2455_v48 = vpop.xlane.xlu0 %2454 }
0x1208   :  { %7417 = vrsqrt.f32 %v2121_v49  ;;  %v2456_v53 = vmul.f32 0.03125, %v2455_v48  ;;  %v2144_v48 = vld [vmem:[%s8754_s5] sm:$0xff] }
0x120a   :  { %v2457_v54 = vadd.f32 1e-06, %v2456_v53  ;;  %v2145_v53 = vld [vmem:[%s8754_s5 + $0x8] sm:$0xff] }
0x120c   :  { %7419 = vrsqrt.f32 %v2457_v54  ;;  %v7010_v54 = vpack.c.bf16 %v2145_v53, %v2144_v48 }
0x120e   :  { %v7416_v56 = vpop.eup %7415  ;;  %7011 = vmatprep.subr.bf16.mxu0 %v7010_v54 }
0x120f   :  { %v2128_v57 = vmul.f32 %v7416_v56, %v8131_v10  ;;  %7013 = vmatpush3.bf16.msra.mxu0 %v7010_v54  ;;  %v2146_v56 = vld [vmem:[%s8754_s5 + $0x10] sm:$0xff] }
0x1211   :  { %v2138_v58 = vmul.f32 %v6117_v5, %v2128_v57  ;;  %v2147_v57 = vld [vmem:[%s8754_s5 + $0x18] sm:$0xff] }
0x1212   :  { %v7418_v2 = vpop.eup %7417 }
0x1213   :  { %6590 = vmatprep.mubr.msk.f32.mxu1 %vm178_vm0, %v2138_v58  ;;  %v2129_v52 = vmul.f32 %v7418_v2, %v8128_v61  ;;  %v7014_v58 = vpack.c.bf16 %v2147_v57, %v2146_v56  ;;  %v2148_v2 = vld [vmem:[%s8754_s5 + $0x20] sm:$0xff] }
0x1215   :  { %v2139_v43 = vmul.f32 %v6117_v5, %v2129_v52  ;;  %v2257_v5 = vmul.f32 0.044715, %v2253_v4  ;;  %7015 = vmatprep.subr.bf16.mxu0 %v7014_v58  ;;  %v2149_v52 = vld [vmem:[%s8754_s5 + $0x28] sm:$0xff] }
0x1216   :  { %v7420_v3 = vpop.eup %7419  ;;  %7017 = vmatpush3.bf16.msra.mxu0 %v7014_v58 }
0x1217   :  { %v2459_v59 = vmul.f32 %v7420_v3, %v8136_v18  ;;  %6591 = vmatmul.mubr.msk.f32.gmra.mrb[20].mxu1 %vm178_vm0, %v2139_v43  ;;  %v2261_v7 = vadd.f32 %v2257_v5, %v8154_v37  ;;  %v7018_v43 = vpack.c.bf16 %v2149_v52, %v2148_v2  ;;  %v2150_v3 = vld [vmem:[%s8754_s5 + $0x30] sm:$0xff] }
0x1218   :  { %6623 = vmatprep.mubr.msk.f32.mxu1 %vm7656_vm5, %v7655_v23 }
0x1219   :  { %v2466_v45 = vmul.f32 %v6127_v25, %v2459_v59  ;;  %v2265_v9 = vmul.f32 0.7978846, %v2261_v7  ;;  %7019 = vmatprep.subr.bf16.mxu0 %v7018_v43  ;;  %v2151_v25 = vld [vmem:[%s8754_s5 + $0x38] sm:$0xff] }
0x121a   :  { %7021 = vmatpush3.bf16.msra.mxu0 %v7018_v43  ;;  %v7022_v59 = vpack.c.bf16 %v2151_v25, %v2150_v3 }
0x121b   :  { %6624 = vmatmul.mubr.msk.f32.vlgmr.msra.gmra.mrb[22].mxu1 %vm178_vm0, %v2466_v45  ;;  %7421 = vtanh.f32 %v2265_v9  ;;  %v2250_v45 = vmul.f32 %v8152_v34, %v8152_v34 }
0x121c   :  { %6628 = vmatprep.mubr.msk.f32.mxu1 %vm7656_vm5, %v7655_v23  ;;  %7023 = vmatprep.subr.bf16.mxu0 %v7022_v59 }
0x121e   :  { %7025 = vmatpush3.bf16.msra.mxu0 %v7022_v59 }
0x121f   :  { %6641 = vmatprep.subr.mxu0 %v7655_v23 }
0x1225   :  { %v7422_v13 = vpop.eup %7421 }
0x1226   :  { %v2273_v15 = vadd.f32 1.0, %v7422_v13 }
0x1228   :  { %v2277_v17 = vmul.f32 0.5, %v2273_v15 }
0x122a   :  { %v2281_v20 = vmul.f32 %v2277_v17, %v8154_v37 }
0x12ea   :  { %v8167_v28 = vpop.f32.mrb[20].mxu1 }
0x12eb   :  { %v8169_v27 = vpop.f32.mrb[21].mxu1 }
0x12ee   :  { %v2552_v63 = vpop.f32.mrb[22].mxu1 }
0x12ef   :  { %v8172_v60 = vadd.f32 %v6128_v62, %v2552_v63  ;;  %v6625_v36 = vpop.f32.mrb[23].mxu1  ;;  %v2251_v62 = vmul.f32 %v8169_v27, %v8169_v27  ;;  %v2254_v63 = vmul.f32 %v8152_v34, %v2250_v45 }
0x12f1   :  { %2563 = vrot.lane.b32.xlu1 %v8172_v60, %s7641_s17  ;;  %v8187_v0 = vrot.slane %v8172_v60, 4  ;;  %v2255_v36 = vmul.f32 %v2251_v62, %v8169_v27  ;;  %v2258_v1 = vmul.f32 0.044715, %v2254_v63 }
0x12f3   :  { %v2262_v4 = vadd.f32 %v8152_v34, %v2258_v1 }
0x12f5   :  { %2732 = vrot.lane.b32.xlu1 %v8172_v60, %s7640_s13  ;;  %v2266_v7 = vmul.f32 0.7978846, %v2262_v4 }
0x12f9   :  { %2730 = vrot.lane.b32.xlu1 %v8172_v60, %s7642_s21 }
0x12fd   :  { %2898 = vrot.lane.b32.xlu1 %v8172_v60, %s7643_s12 }
0x1301   :  { %2896 = vrot.lane.b32.xlu1 %v8172_v60, %s7644_s27 }
0x1305   :  { %3064 = vrot.lane.b32.xlu1 %v8172_v60, %s7647_s22 }
0x1309   :  { %3244 = vrot.lane.b32.xlu1 %v8187_v0, %s7641_s17 }
0x130d   :  { %3408 = vrot.lane.b32.xlu1 %v8187_v0, %s7642_s21 }
0x1311   :  { %3574 = vrot.lane.b32.xlu1 %v8187_v0, %s7644_s27 }
0x1315   :  { %3740 = vrot.lane.b32.xlu1 %v8187_v0, %s7649_s26 }
0x1319   :  { %2289 = vrot.lane.b32.xlu1 %v8154_v37, %s7645_s18 }
0x131d   :  { %2293 = vrot.lane.b32.xlu1 %v8169_v27, %s7645_s18 }
0x1363   :  { %v2564_v35 = vpop.permute.xlu1 %2563 }
0x1364   :  { %6627 = vmatpush3.xpose.msk.msra.mxu1 %vm337_vm1, %v2564_v35  ;;  %v2259_v35 = vmul.f32 0.044715, %v2255_v36 }
0x1365   :  { %6631 = vmatprep.subr.mxu1 %v7655_v23 }
0x1366   :  { %v2263_v5 = vadd.f32 %v2259_v35, %v8169_v27 }
0x1367   :  { %6629 = vmatmul.mubr.msk.f32.vlgmr.msra.gmra.mrb[24].mxu1 %vm337_vm1, %v8172_v60  ;;  %v8208_v47 = vpop.permute.xlu1 %2732 }
0x1368   :  { %6633 = vmatprep.mubr.msk.f32.mxu1 %vm7656_vm5, %v7655_v23  ;;  %v2267_v9 = vmul.f32 0.7978846, %v2263_v5 }
0x136b   :  { %v8212_v6 = vpop.permute.xlu1 %2730 }
0x136f   :  { %v8215_v8 = vpop.permute.xlu1 %2898 }
0x1373   :  { %v8217_v26 = vpop.permute.xlu1 %2896 }
0x1377   :  { %v8219_v11 = vpop.permute.xlu1 %3064 }
0x137b   :  { %v8221_v12 = vpop.permute.xlu1 %3244 }
0x137f   :  { %v8223_v14 = vpop.permute.xlu1 %3408 }
0x1383   :  { %v8225_v16 = vpop.permute.xlu1 %3574 }
0x1387   :  { %v8227_v19 = vpop.permute.xlu1 %3740 }
0x138b   :  { %v2290_v21 = vpop.permute.xlu1 %2289 }
0x138c   :  { %v2301_v24 = vmul.f32 %v2290_v21, %v2281_v20 }
0x138e   :  { %6609 = vmatprep.mubr.msk.f32.mxu0 %vm2305_vm6, %v2301_v24 }
0x143a   :  { %v2635_v50 = vpop.f32.mrb[24].mxu1 }
0x143b   :  { %v2636_v33 = vadd.f32 %v2635_v50, %v8234_v32  ;;  %v6630_v37 = vpop.f32.mrb[25].mxu1 }
0x143d   :  { %v2640_v39 = vsel %vm2639_vm8, %v2636_v33, -inf }
0x143e   :  { %2641 = vmax.xlane.f32.xlu0 %v2640_v39 }
0x14cb   :  { %v2642_v41 = vpop.xlane.xlu0 %2641 }
0x14cc   :  { %v2643_v42 = vsub.f32 %v2636_v33, %v2642_v41  ;;  %v2294_v41 = vpop.permute.xlu1 %2293 }
0x14ce   :  { %v2644_v44 = vmul.f32 1.442695, %v2643_v42 }
0x14d0   :  { %7423 = vpow2.f32 %v2644_v44 }
0x14da   :  { %v7424_v46 = vpop.eup %7423 }
0x14db   :  { %v2646_v49 = vsel %vm2639_vm8, %v7424_v46, 0.0 }
0x14dc   :  { %2647 = vadd.xlane.f32.xlu0 %v2646_v49 }
0x14f2   :  { %2651 = vrot.lane.b32.xlu0 %v8172_v60, %s7645_s18 }
0x14f6   :  { %3062 = vrot.lane.b32.xlu0 %v8172_v60, %s7649_s26 }
0x14fa   :  { %3410 = vrot.lane.b32.xlu0 %v8187_v0, %s7640_s13 }
0x14fe   :  { %3576 = vrot.lane.b32.xlu0 %v8187_v0, %s7643_s12 }
0x1502   :  { %3742 = vrot.lane.b32.xlu0 %v8187_v0, %s7647_s22 }
0x1506   :  { %2291 = vrot.lane.b32.xlu0 %v8152_v34, %s7645_s18 }
0x1569   :  { %v2648_v13 = vpop.xlane.xlu0 %2647 }
0x156a   :  { %7425 = vrcp.f32 %v2648_v13 }
0x156b   :  { %7427 = vtanh.f32 %v2266_v7 }
0x156c   :  { %7429 = vtanh.f32 %v2267_v9 }
0x156d   :  { %v2652_v15 = vpop.permute.xlu0 %2651 }
0x156e   :  { %6632 = vmatpush3.msk.msra.mxu1 %vm2657_vm9, %v2652_v15  ;;  %v2252_v15 = vmul.f32 %v8167_v28, %v8167_v28 }
0x156f   :  { %6636 = vmatprep.subr.mxu1 %v7655_v23 }
0x1571   :  { %v3063_v17 = vpop.permute.xlu0 %3062 }
0x1574   :  { %v7426_v20 = vpop.eup %7425 }
0x1575   :  { %v7428_v21 = vpop.eup %7427  ;;  %v2650_v24 = vmul.f32 %v7426_v20, %v7424_v46  ;;  %v3411_v22 = vpop.permute.xlu0 %3410 }
0x1576   :  { %v7430_v29 = vpop.eup %7429  ;;  %v2274_v31 = vadd.f32 1.0, %v7428_v21 }
0x1577   :  { %6634 = vmatmul.mubr.msk.f32.vlgmr.msra.gmra.mrb[26].mxu1 %vm2653_vm10, %v2650_v24  ;;  %v2275_v50 = vadd.f32 1.0, %v7430_v29 }
0x1578   :  { %6637 = vmatpush3.xpose.msk.msra.mxu1 %vm337_vm1, %v8208_v47  ;;  %6638 = vmatprep.mubr.msk.f32.mxu1 %vm7656_vm5, %v7655_v23  ;;  %v2278_v37 = vmul.f32 0.5, %v2274_v31 }
0x1579   :  { %v3577_v33 = vpop.permute.xlu0 %3576  ;;  %6646 = vmatprep.subr.mxu1 %v7655_v23  ;;  %v2279_v39 = vmul.f32 0.5, %v2275_v50 }
0x157b   :  { %6639 = vmatmul.mubr.msk.f32.vlgmr.msra.gmra.mrb[28].mxu1 %vm337_vm1, %v8212_v6  ;;  %v2282_v6 = vmul.f32 %v8152_v34, %v2278_v37 }
0x157c   :  { %6647 = vmatpush3.xpose.msk.msra.mxu1 %vm337_vm1, %v8215_v8  ;;  %6648 = vmatprep.mubr.msk.f32.mxu1 %vm7656_vm5, %v7655_v23  ;;  %v2283_v8 = vmul.f32 %v2279_v39, %v8169_v27 }
0x157d   :  { %v3743_v47 = vpop.permute.xlu0 %3742  ;;  %6656 = vmatprep.subr.mxu1 %v7655_v23 }
0x157e   :  { %v2303_v46 = vmul.f32 %v2294_v41, %v2283_v8 }
0x157f   :  { %6649 = vmatmul.mubr.msk.f32.vlgmr.msra.gmra.mrb[30].mxu1 %vm337_vm1, %v8217_v26 }
0x1580   :  { %6657 = vmatpush3.xpose.msk.msra.mxu1 %vm337_vm1, %v8219_v11  ;;  %6658 = vmatprep.mubr.msk.f32.mxu1 %vm7656_vm5, %v7655_v23 }
0x1581   :  { %v2292_v42 = vpop.permute.xlu0 %2291  ;;  %6666 = vmatprep.subr.mxu1 %v7655_v23 }
0x1582   :  { %v2302_v44 = vmul.f32 %v2292_v42, %v2282_v6 }
0x1583   :  { %6659 = vmatmul.mubr.msk.f32.vlgmr.msra.gmra.mrb[32].mxu1 %vm337_vm1, %v3063_v17  ;;  %v2256_v17 = vmul.f32 %v8167_v28, %v2252_v15 }
0x1584   :  { %6667 = vmatpush3.xpose.msk.msra.mxu1 %vm337_vm1, %v8221_v12  ;;  %6610 = vmatmul.mubr.msk.f32.vlgmr.msra.gmra.mrb[22].mxu0 %vm2305_vm6, %v2302_v44 }
0x1585   :  { %6612 = vmatprep.mubr.msk.f32.mxu0 %vm2305_vm6, %v2303_v46  ;;  %6668 = vmatprep.mubr.msk.f32.mxu1 %vm7656_vm5, %v7655_v23  ;;  %v2260_v20 = vmul.f32 0.044715, %v2256_v17 }
0x1586   :  { %6676 = vmatprep.subr.mxu1 %v7655_v23 }
0x1587   :  { %6669 = vmatmul.mubr.msk.f32.vlgmr.msra.gmra.mrb[34].mxu1 %vm337_vm1, %v8187_v0  ;;  %v2264_v21 = vadd.f32 %v8167_v28, %v2260_v20 }
0x1588   :  { %6677 = vmatpush3.xpose.msk.msra.mxu1 %vm337_vm1, %v3411_v22  ;;  %6678 = vmatprep.mubr.msk.f32.mxu1 %vm7656_vm5, %v7655_v23 }
0x1589   :  { %6686 = vmatprep.subr.mxu1 %v7655_v23  ;;  %v2268_v22 = vmul.f32 0.7978846, %v2264_v21 }
0x158b   :  { %6679 = vmatmul.mubr.msk.f32.vlgmr.msra.gmra.mrb[36].mxu1 %vm337_vm1, %v8223_v14 }
0x158c   :  { %6687 = vmatpush3.xpose.msk.msra.mxu1 %vm337_vm1, %v3577_v33  ;;  %6688 = vmatprep.mubr.msk.f32.mxu1 %vm7656_vm5, %v7655_v23 }
0x158d   :  { %6696 = vmatprep.subr.mxu1 %v7655_v23 }
0x158f   :  { %6689 = vmatmul.mubr.msk.f32.vlgmr.msra.gmra.mrb[38].mxu1 %vm337_vm1, %v8225_v16 }
0x1590   :  { %6697 = vmatpush3.xpose.msk.msra.mxu1 %vm337_vm1, %v3743_v47  ;;  %6698 = vmatprep.mubr.msk.f32.mxu1 %vm7656_vm5, %v7655_v23 }
0x1591   :  { %7032 = vmatprep.subr.bf16.mxu1 %v7654_v51 }
0x1593   :  { %6699 = vmatmul.mubr.msk.f32.vlgmr.msra.gmra.mrb[40].mxu1 %vm337_vm1, %v8227_v19 }
0x1594   :  { %6714 = vmatprep.mubr.msk.f32.mxu1 %vm7656_vm5, %v7655_v23 }
0x164a   :  { %v8322_v34 = vpop.f32.mrb[26].mxu1 }
0x164b   :  { %v6635_v27 = vpop.f32.mrb[27].mxu1 }
0x164e   :  { %v2804_v26 = vpop.f32.mrb[28].mxu1 }
0x164f   :  { %v2805_v11 = vadd.f32 %v2804_v26, %v8234_v32  ;;  %v6640_v12 = vpop.f32.mrb[29].mxu1 }
0x1651   :  { %v2808_v14 = vsel %vm2639_vm8, %v2805_v11, -inf }
0x1652   :  { %2809 = vmax.xlane.f32.xlu0 %v2808_v14  ;;  %v2970_v16 = vpop.f32.mrb[30].mxu1 }
0x1653   :  { %v2971_v49 = vadd.f32 %v2970_v16, %v8234_v32  ;;  %v6650_v48 = vpop.f32.mrb[31].mxu1 }
0x1655   :  { %v2974_v53 = vsel %vm2639_vm8, %v2971_v49, -inf }
0x1656   :  { %2975 = vmax.xlane.f32.xlu1 %v2974_v53  ;;  %v3136_v19 = vpop.f32.mrb[32].mxu1 }
0x1657   :  { %v8329_v54 = vadd.f32 %v3136_v19, %v8234_v32  ;;  %v8331_v56 = vpop.f32.mrb[22].mxu0  ;;  %v6660_v57 = vpop.f32.mrb[33].mxu1 }
0x1658   :  { %v8333_v58 = vpop.f32.mrb[23].mxu0 }
0x1659   :  { %v3140_v2 = vsel %vm2639_vm8, %v8329_v54, -inf }
0x165a   :  { %3141 = vmax.xlane.f32.xlu0 %v3140_v2  ;;  %v3316_v52 = vpop.f32.mrb[34].mxu1 }
0x165b   :  { %v8338_v43 = vadd.f32 %v3316_v52, %v8234_v32  ;;  %v6670_v3 = vpop.f32.mrb[35].mxu1 }
0x165d   :  { %v3320_v25 = vsel %vm2639_vm8, %v8338_v43, -inf }
0x165e   :  { %3321 = vmax.xlane.f32.xlu0 %v3320_v25  ;;  %v3482_v59 = vpop.f32.mrb[36].mxu1 }
0x165f   :  { %v8343_v45 = vadd.f32 %v3482_v59, %v8234_v32  ;;  %v6680_v62 = vpop.f32.mrb[37].mxu1 }
0x1661   :  { %v3486_v63 = vsel %vm2639_vm8, %v8343_v45, -inf }
0x1662   :  { %3487 = vmax.xlane.f32.xlu0 %v3486_v63  ;;  %v3648_v36 = vpop.f32.mrb[38].mxu1 }
0x1663   :  { %v3649_v1 = vadd.f32 %v3648_v36, %v8234_v32  ;;  %v6690_v35 = vpop.f32.mrb[39].mxu1 }
0x1665   :  { %v3652_v4 = vsel %vm2639_vm8, %v3649_v1, -inf }
0x1666   :  { %3653 = vmax.xlane.f32.xlu1 %v3652_v4  ;;  %v3814_v5 = vpop.f32.mrb[40].mxu1 }
0x1667   :  { %v3815_v7 = vadd.f32 %v3814_v5, %v8234_v32  ;;  %v6700_v9 = vpop.f32.mrb[41].mxu1 }
0x1669   :  { %v3818_v13 = vsel %vm2639_vm8, %v3815_v7, -inf }
0x166a   :  { %3819 = vmax.xlane.f32.xlu0 %v3818_v13 }
0x1677   :  { %2819 = vrot.lane.b32.xlu1 %v8172_v60, %s7648_s23 }
0x1680   :  { %2295 = vrot.lane.b32.xlu0 %v8167_v28, %s7645_s18 }
0x16df   :  { %v2810_v24 = vpop.xlane.xlu0 %2809 }
0x16e0   :  { %v2811_v32 = vsub.f32 %v2805_v11, %v2810_v24 }
0x16e2   :  { %v2812_v29 = vmul.f32 1.442695, %v2811_v32 }
0x16e3   :  { %v2976_v31 = vpop.xlane.xlu1 %2975 }
0x16e4   :  { %7431 = vpow2.f32 %v2812_v29  ;;  %v2977_v50 = vsub.f32 %v2971_v49, %v2976_v31 }
0x16e5   :  { %7433 = vtanh.f32 %v2268_v22 }
0x16e6   :  { %v2978_v33 = vmul.f32 1.442695, %v2977_v50 }
0x16e7   :  { %v3142_v37 = vpop.xlane.xlu0 %3141 }
0x16e8   :  { %7435 = vpow2.f32 %v2978_v33  ;;  %v3143_v48 = vsub.f32 %v8329_v54, %v3142_v37 }
0x16ea   :  { %v3144_v57 = vmul.f32 1.442695, %v3143_v48 }
0x16eb   :  { %v3322_v39 = vpop.xlane.xlu0 %3321 }
0x16ee   :  { %v7432_v47 = vpop.eup %7431 }
0x16ef   :  { %v7434_v41 = vpop.eup %7433  ;;  %v2814_v6 = vsel %vm2639_vm8, %v7432_v47, 0.0  ;;  %v3488_v44 = vpop.xlane.xlu0 %3487 }
0x16f0   :  { %2815 = vadd.xlane.f32.xlu1 %v2814_v6  ;;  %v2276_v42 = vadd.f32 1.0, %v7434_v41  ;;  %v3489_v19 = vsub.f32 %v8343_v45, %v3488_v44 }
0x16f2   :  { %v8360_v8 = vpop.eup %7435  ;;  %v2280_v26 = vmul.f32 0.5, %v2276_v42  ;;  %v3490_v52 = vmul.f32 1.442695, %v3489_v19  ;;  %v2473_v19 = vld [vmem:[%s8755_s9 + $0x8] sm:$0xff] }
0x16f3   :  { %v3654_v46 = vpop.xlane.xlu1 %3653  ;;  %v2980_v27 = vsel %vm2639_vm8, %v8360_v8, 0.0 }
0x16f4   :  { %2981 = vadd.xlane.f32.xlu0 %v2980_v27  ;;  %v2284_v14 = vmul.f32 %v8167_v28, %v2280_v26  ;;  %v3323_v28 = vsub.f32 %v8338_v43, %v3322_v39  ;;  %v3655_v2 = vsub.f32 %v3649_v1, %v3654_v46 }
0x16f6   :  { %v3324_v53 = vmul.f32 1.442695, %v3323_v28  ;;  %v3656_v25 = vmul.f32 1.442695, %v3655_v2 }
0x16f7   :  { %v2820_v11 = vpop.permute.xlu1 %2819  ;;  %v3820_v12 = vpop.xlane.xlu0 %3819 }
0x16f8   :  { %6642 = vmatpush3.msk.msra.mxu0 %vm2657_vm9, %v2820_v11  ;;  %7437 = vpow2.f32 %v3324_v53  ;;  %v3821_v3 = vsub.f32 %v3815_v7, %v3820_v12  ;;  %v2472_v53 = vld [vmem:[%s8755_s9] sm:$0xff] }
0x16f9   :  { %6651 = vmatprep.subr.mxu0 %v7655_v23  ;;  %7439 = vpow2.f32 %v3144_v57  ;;  %v7033_v2 = vpack.c.bf16 %v2473_v19, %v2472_v53  ;;  %v6162_v53 = vld [vmem:[%s8758_s3] ss:$0 sm:$0xff] }
0x16fa   :  { %7441 = vpow2.f32 %v3490_v52  ;;  %v3822_v59 = vmul.f32 1.442695, %v3821_v3 }
0x16fb   :  { %v2296_v16 = vpop.permute.xlu0 %2295  ;;  %7443 = vpow2.f32 %v3656_v25  ;;  %7034 = vmatpush3.bf16.msra.mxu1 %v7033_v2  ;;  %v2474_v25 = vld [vmem:[%s8755_s9 + $0x10] sm:$0xff] }
0x16fc   :  { %v2304_v49 = vmul.f32 %v2296_v16, %v2284_v14  ;;  %7445 = vpow2.f32 %v3822_v59  ;;  %7035 = vmatprep.subr.bf16.mxu1 %v7654_v51  ;;  %v2475_v59 = vld [vmem:[%s8755_s9 + $0x18] sm:$0xff] }
0x16fe   :  { %6613 = vmatmul.mubr.msk.f32.gmra.mrb[24].mxu0 %vm2305_vm6, %v2304_v49 }
0x16ff   :  { %6643 = vmatprep.mubr.msk.f32.mxu0 %vm7656_vm5, %v7655_v23 }
0x1701   :  { %3151 = vrot.lane.b32.xlu1 %v8172_v60, %s7650_s28 }
0x1702   :  { %v7438_v62 = vpop.eup %7437 }
0x1703   :  { %v3326_v43 = vsel %vm2639_vm8, %v7438_v62, 0.0 }
0x1705   :  { %3331 = vrot.lane.b32.xlu1 %v8187_v0, %s7645_s18 }
0x1709   :  { %3497 = vrot.lane.b32.xlu1 %v8187_v0, %s7648_s23 }
0x170a   :  { %2985 = vrot.lane.b32.xlu0 %v8172_v60, %s7646_s0  ;;  %v7440_v60 = vpop.eup %7439 }
0x170b   :  { %v7442_v63 = vpop.eup %7441  ;;  %v3146_v45 = vsel %vm2639_vm8, %v7440_v60, 0.0 }
0x170c   :  { %v7444_v54 = vpop.eup %7443  ;;  %v3492_v36 = vsel %vm2639_vm8, %v7442_v63, 0.0 }
0x170d   :  { %v8384_v1 = vpop.eup %7445  ;;  %v3658_v35 = vsel %vm2639_vm8, %v7444_v54, 0.0 }
0x170e   :  { %v3824_v4 = vsel %vm2639_vm8, %v8384_v1, 0.0 }
0x1729   :  { %3327 = vadd.xlane.f32.xlu0 %v3326_v43 }
0x172d   :  { %3147 = vadd.xlane.f32.xlu1 %v3146_v45  ;;  %3493 = vadd.xlane.f32.xlu0 %v3492_v36 }
0x1731   :  { %3659 = vadd.xlane.f32.xlu1 %v3658_v35  ;;  %3825 = vadd.xlane.f32.xlu0 %v3824_v4  ;;  %v2404_v35 = vadd.f32 %v8331_v56, %v8100_v40  ;;  %v4026_v40 = vld [vmem:[%s8756_s25] sm:$0xff]  ;;  %v4027_v56 = vld [vmem:[%s8756_s25 + $0x8] sm:$0xff] }
0x1742   :  { %3663 = vrot.lane.b32.xlu1 %v8187_v0, %s7646_s0 }
0x1747   :  { %3829 = vrot.lane.b32.xlu0 %v8187_v0, %s7650_s28 }
0x177d   :  { %v2816_v5 = vpop.xlane.xlu1 %2815 }
0x177e   :  { %7447 = vrcp.f32 %v2816_v5 }
0x1781   :  { %v2982_v7 = vpop.xlane.xlu0 %2981  ;;  %v3152_v0 = vpop.permute.xlu1 %3151 }
0x1782   :  { %7449 = vrcp.f32 %v2982_v7  ;;  %v2409_v7 = vmul.f32 %v2404_v35, %v2404_v35 }
0x1785   :  { %v2986_v15 = vpop.permute.xlu0 %2985  ;;  %v3332_v21 = vpop.permute.xlu1 %3331 }
0x1788   :  { %v7448_v9 = vpop.eup %7447 }
0x1789   :  { %v2818_v13 = vmul.f32 %v7448_v9, %v7432_v47  ;;  %v3498_v24 = vpop.permute.xlu1 %3497 }
0x178b   :  { %6644 = vmatmul.mubr.msk.f32.vlgmr.msra.gmra.mrb[26].mxu0 %vm2653_vm10, %v2818_v13 }
0x178c   :  { %v7450_v17 = vpop.eup %7449  ;;  %6652 = vmatpush3.msk.msra.mxu0 %vm2657_vm9, %v2986_v15  ;;  %6653 = vmatprep.mubr.msk.f32.mxu0 %vm7656_vm5, %v7655_v23  ;;  %v2415_v15 = vsel %vm178_vm0, %v2409_v7, 0.0 }
0x178d   :  { %v2984_v20 = vmul.f32 %v7450_v17, %v8360_v8  ;;  %6661 = vmatprep.subr.mxu0 %v7655_v23 }
0x178f   :  { %6654 = vmatmul.mubr.msk.f32.vlgmr.msra.gmra.mrb[28].mxu0 %vm2653_vm10, %v2984_v20 }
0x1790   :  { %6662 = vmatpush3.msk.msra.mxu0 %vm2657_vm9, %v3152_v0  ;;  %6663 = vmatprep.mubr.msk.f32.mxu0 %vm7656_vm5, %v7655_v23 }
0x1791   :  { %6671 = vmatprep.subr.mxu0 %v7655_v23 }
0x17b6   :  { %v3328_v32 = vpop.xlane.xlu0 %3327 }
0x17ba   :  { %v3148_v22 = vpop.xlane.xlu1 %3147  ;;  %v3494_v29 = vpop.xlane.xlu0 %3493 }
0x17bb   :  { %7451 = vrcp.f32 %v3148_v22 }
0x17bc   :  { %7453 = vrcp.f32 %v3328_v32 }
0x17bd   :  { %7455 = vrcp.f32 %v3494_v29  ;;  %v4028_v29 = vld [vmem:[%s8756_s25 + $0x10] sm:$0xff] }
0x17be   :  { %v3660_v31 = vpop.xlane.xlu1 %3659  ;;  %v3826_v37 = vpop.xlane.xlu0 %3825 }
0x17bf   :  { %7457 = vrcp.f32 %v3660_v31  ;;  %v4029_v31 = vld [vmem:[%s8756_s25 + $0x18] sm:$0xff] }
0x17c0   :  { %7459 = vrcp.f32 %v3826_v37 }
0x17c2   :  { %v3664_v42 = vpop.permute.xlu1 %3663  ;;  %v3830_v11 = vpop.permute.xlu0 %3829 }
0x17c5   :  { %v7452_v50 = vpop.eup %7451 }
0x17c6   :  { %v3150_v33 = vmul.f32 %v7452_v50, %v7440_v60  ;;  %v7454_v39 = vpop.eup %7453 }
0x17c7   :  { %v3330_v47 = vmul.f32 %v7454_v39, %v7438_v62  ;;  %v7456_v41 = vpop.eup %7455  ;;  %v7036_v62 = vpack.c.bf16 %v2475_v59, %v2474_v25 }
0x17c8   :  { %6664 = vmatmul.mubr.msk.f32.vlgmr.msra.gmra.mrb[30].mxu0 %vm2653_vm10, %v3150_v33  ;;  %v3496_v6 = vmul.f32 %v7456_v41, %v7442_v63  ;;  %v7048_v41 = vpack.c.bf16 %v4029_v31, %v4028_v29 }
0x17c9   :  { %6672 = vmatpush3.msk.msra.mxu0 %vm2657_vm9, %v3332_v21  ;;  %6673 = vmatprep.mubr.msk.f32.mxu0 %vm7656_vm5, %v7655_v23  ;;  %v7458_v8 = vpop.eup %7457 }
0x17ca   :  { %6681 = vmatprep.subr.mxu0 %v7655_v23  ;;  %v3662_v46 = vmul.f32 %v7458_v8, %v7444_v54  ;;  %v7460_v26 = vpop.eup %7459  ;;  %7037 = vmatpush3.bf16.msra.mxu1 %v7036_v62 }
0x17cb   :  { %v3828_v12 = vmul.f32 %v7460_v26, %v8384_v1  ;;  %v2403_v1 = vadd.f32 %v8333_v58, %v8097_v38  ;;  %v7044_v58 = vpack.c.bf16 %v4027_v56, %v4026_v40 }
0x17cc   :  { %6674 = vmatmul.mubr.msk.f32.vlgmr.msra.gmra.mrb[32].mxu0 %vm2653_vm10, %v3330_v47 }
0x17cd   :  { %6682 = vmatpush3.msk.msra.mxu0 %vm2657_vm9, %v3498_v24  ;;  %6683 = vmatprep.mubr.msk.f32.mxu0 %vm7656_vm5, %v7655_v23  ;;  %v2408_v4 = vmul.f32 %v2403_v1, %v2403_v1 }
0x17ce   :  { %6691 = vmatprep.subr.mxu0 %v7655_v23  ;;  %7045 = vmatprep.subr.bf16.mxu1 %v7044_v58 }
0x17cf   :  { %v2412_v13 = vsel %vm178_vm0, %v2408_v4, 0.0 }
0x17d0   :  { %6684 = vmatmul.mubr.msk.f32.vlgmr.msra.gmra.mrb[34].mxu0 %vm2653_vm10, %v3496_v6 }
0x17d1   :  { %6692 = vmatpush3.msk.msra.mxu0 %vm2657_vm9, %v3664_v42  ;;  %v6614_v44 = vpop.f32.mrb[24].mxu0  ;;  %6693 = vmatprep.mubr.msk.f32.mxu0 %vm7656_vm5, %v7655_v23 }
0x17d2   :  { %v8418_v27 = vpop.f32.mrb[25].mxu0  ;;  %6701 = vmatprep.subr.mxu0 %v7655_v23  ;;  %v8446_v5 = vadd.f32 %v6614_v44, %v8128_v61 }
0x17d4   :  { %6694 = vmatmul.mubr.msk.f32.vlgmr.msra.gmra.mrb[36].mxu0 %vm2653_vm10, %v3662_v46  ;;  %v2411_v9 = vmul.f32 %v8446_v5, %v8446_v5 }
0x17d5   :  { %6702 = vmatpush3.msk.msra.mxu0 %vm2657_vm9, %v3830_v11  ;;  %6703 = vmatprep.mubr.msk.f32.mxu0 %vm7656_vm5, %v7655_v23 }
0x17d6   :  { %7038 = vmatprep.subr.bf16.mxu0 %v7654_v51  ;;  %v2421_v38 = vsel %vm178_vm0, %v2411_v9, 0.0 }
0x17d8   :  { %6704 = vmatmul.mubr.msk.f32.vlgmr.msra.gmra.mrb[38].mxu0 %vm2653_vm10, %v3828_v12  ;;  %v8468_v12 = vld [vmem:[%s8757_s29] ss:$0 sm:$0xff] }
0x17d9   :  { %6725 = vmatprep.mubr.msk.f32.mxu0 %vm7656_vm5, %v7655_v23 }
0x185e   :  { %v2892_v14 = vpop.f32.mrb[26].mxu0 }
0x185f   :  { %3229 = vrot.lane.b32.xlu1 %v2892_v14, %s7651_s20  ;;  %v6645_v16 = vpop.f32.mrb[27].mxu0 }
0x1862   :  { %v3058_v49 = vpop.f32.mrb[28].mxu0 }
0x1863   :  { %v6655_v28 = vpop.f32.mrb[29].mxu0 }
0x189b   :  { %v3224_v48 = vpop.f32.mrb[30].mxu0 }
0x189c   :  { %v6665_v57 = vpop.f32.mrb[31].mxu0 }
0x189f   :  { %v3404_v52 = vpop.f32.mrb[32].mxu0 }
0x18a0   :  { %v6675_v3 = vpop.f32.mrb[33].mxu0 }
0x18a3   :  { %v3570_v60 = vpop.f32.mrb[34].mxu0 }
0x18a4   :  { %3907 = vrot.lane.b32.xlu1 %v3570_v60, %s7651_s20  ;;  %v6685_v43 = vpop.f32.mrb[35].mxu0 }
0x18a5   :  { %v4021_v43 = vld [vmem:[%s8759_s8] sm:$0xff] }
0x18a7   :  { %v3736_v63 = vpop.f32.mrb[36].mxu0 }
0x18a8   :  { %3233 = vrot.lane.b32.xlu1 %v3058_v49, %s7652_s1  ;;  %3911 = vrot.lane.b32.xlu0 %v3736_v63, %s7652_s1  ;;  %v6695_v54 = vpop.f32.mrb[37].mxu0  ;;  %v4022_v63 = vld [vmem:[%s8759_s8 + $0x8] sm:$0xff] }
0x18a9   :  { %v7039_v54 = vpack.c.bf16 %v4022_v63, %v4021_v43 }
0x18ab   :  { %v3902_v45 = vpop.f32.mrb[38].mxu0  ;;  %7040 = vmatpush3.bf16.msra.mxu0 %v7039_v54 }
0x18ac   :  { %3915 = vrot.lane.b32.xlu0 %v3902_v45, %s7653_s2  ;;  %v6705_v36 = vpop.f32.mrb[39].mxu0  ;;  %7041 = vmatprep.subr.bf16.mxu0 %v7654_v51  ;;  %v6167_v45 = vld [vmem:[%s8760_s24] ss:$0 sm:$0xff] }
0x18b0   :  { %3237 = vrot.lane.b32.xlu0 %v3224_v48, %s7653_s2 }
0x18cc   :  { %2413 = vadd.xlane.f32.xlu1 %v2412_v13 }
0x18cf   :  { %2416 = vadd.xlane.f32.xlu0 %v2415_v15 }
0x18d0   :  { %2422 = vadd.xlane.f32.xlu1 %v2421_v38 }
0x18d1   :  { %v3230_v61 = vpop.permute.xlu1 %3229 }
0x18d2   :  { %v3240_v50 = vsel %vm337_vm1, %v8322_v34, %v3230_v61 }
0x1916   :  { %v3908_v17 = vpop.permute.xlu1 %3907 }
0x1917   :  { %v3918_v0 = vsel %vm337_vm1, %v3404_v52, %v3908_v17  ;;  %v2405_v52 = vadd.f32 %v8418_v27, %v8131_v10  ;;  %v4023_v10 = vld [vmem:[%s8759_s8 + $0x10] sm:$0xff] }
0x1919   :  { %v2410_v59 = vmul.f32 %v2405_v52, %v2405_v52 }
0x191a   :  { %v3912_v20 = vpop.permute.xlu0 %3911  ;;  %v3234_v32 = vpop.permute.xlu1 %3233 }
0x191b   :  { %v3919_v21 = vsel %vm421_vm3, %v3918_v0, %v3912_v20  ;;  %v3241_v33 = vsel %vm421_vm3, %v3240_v50, %v3234_v32  ;;  %v2418_v60 = vsel %vm178_vm0, %v2410_v59, 0.0 }
0x191e   :  { %v3916_v24 = vpop.permute.xlu0 %3915 }
0x191f   :  { %v3920_v22 = vsel %vm1159_vm4, %v3919_v21, %v3916_v24  ;;  %v6164_v21 = vld [vmem:[%s8761_s30] ss:$0 sm:$0xff] }
0x1920   :  { %v3922_v37 = vrot.slane %v3920_v22, 4 }
0x1922   :  { %v3238_v39 = vpop.permute.xlu0 %3237 }
0x1923   :  { %v3242_v47 = vsel %vm1159_vm4, %v3241_v33, %v3238_v39 }
0x1924   :  { %v3924_v6 = vsel %vm2657_vm9, %v3242_v47, %v3922_v37 }
0x1925   :  { %6715 = vmatmul.mubr.msk.f32.vlgmr.msra.gmra.mrb[42].mxu1 %vm178_vm0, %v3924_v6  ;;  %v6165_v6 = vld [vmem:[%s8762_s6] ss:$0 sm:$0xff] }
0x1926   :  { %7047 = vmatpush3.bf16.msra.mxu1 %v7044_v58 }
0x1927   :  { %7049 = vmatprep.subr.bf16.mxu1 %v7048_v41 }
0x192a   :  { %7051 = vmatpush3.bf16.msra.mxu1 %v7048_v41 }
0x192b   :  { %7059 = vmatprep.subr.bf16.mxu1 %v7654_v51 }
0x1959   :  { %v2414_v8 = vpop.xlane.xlu1 %2413 }
0x195a   :  { %v2424_v42 = vmul.f32 0.03125, %v2414_v8 }
0x195c   :  { %v2428_v34 = vadd.f32 1e-06, %v2424_v42  ;;  %v2417_v44 = vpop.xlane.xlu0 %2416 }
0x195d   :  { %v2425_v46 = vmul.f32 0.03125, %v2417_v44  ;;  %v2423_v13 = vpop.xlane.xlu1 %2422 }
0x195e   :  { %7461 = vrsqrt.f32 %v2428_v34  ;;  %v2427_v15 = vmul.f32 0.03125, %v2423_v13 }
0x195f   :  { %v2429_v26 = vadd.f32 1e-06, %v2425_v46 }
0x1960   :  { %v2431_v56 = vadd.f32 1e-06, %v2427_v15 }
0x1961   :  { %7463 = vrsqrt.f32 %v2429_v26 }
0x1968   :  { %v7462_v11 = vpop.eup %7461 }
0x1969   :  { %v2436_v14 = vmul.f32 %v7462_v11, %v2403_v1 }
0x196b   :  { %v7464_v16 = vpop.eup %7463  ;;  %v2446_v49 = vmul.f32 %v8468_v12, %v2436_v14 }
0x196c   :  { %v2437_v28 = vmul.f32 %v7464_v16, %v2404_v35 }
0x196d   :  { %6736 = vmatprep.mubr.msk.f32.mxu1 %vm178_vm0, %v2446_v49 }
0x196e   :  { %v2447_v48 = vmul.f32 %v8468_v12, %v2437_v28 }
0x1970   :  { %6737 = vmatmul.mubr.msk.f32.vlgmr.msra.gmra.mrb[44].mxu1 %vm178_vm0, %v2447_v48 }
0x19f8   :  { %v4000_v19 = vpop.f32.mrb[42].mxu1 }
0x19f9   :  { %v4001_v57 = vadd.f32 %v6162_v53, %v4000_v19  ;;  %v6716_v2 = vpop.f32.mrb[43].mxu1 }
0x19fb   :  { %v8478_v3 = vadd.f32 %v4001_v57, %v8136_v18  ;;  %v4024_v18 = vld [vmem:[%s8759_s8 + $0x18] sm:$0xff] }
0x19fc   :  { %v7042_v27 = vpack.c.bf16 %v4024_v18, %v4023_v10 }
0x19fd   :  { %v4006_v25 = vmul.f32 %v8478_v3, %v8478_v3 }
0x19fe   :  { %7043 = vmatpush3.bf16.msra.mxu0 %v7042_v27 }
0x19ff   :  { %v4007_v62 = vsel %vm178_vm0, %v4006_v25, 0.0  ;;  %7052 = vmatprep.subr.bf16.mxu0 %v7654_v51 }
0x1a00   :  { %4008 = vadd.xlane.f32.xlu0 %v4007_v62 }
0x1a04   :  { %2419 = vadd.xlane.f32.xlu0 %v2418_v60 }
0x1a43   :  { %v6738_v36 = vpop.f32.mrb[44].mxu1 }
0x1a44   :  { %v4205_v1 = vadd.f32 %v6738_v36, %v6167_v45  ;;  %v4199_v35 = vpop.f32.mrb[45].mxu1 }
0x1a45   :  { %v4200_v4 = vadd.f32 %v6167_v45, %v4199_v35 }
0x1a47   :  { %v8491_v7 = vpack.i.bf16 %v4205_v1, %v4200_v4  ;;  %v7053_v9 = vpack.c.bf16 %v4205_v1, %v4200_v4 }
0x1a49   :  { %7270 = vrot.lane.b32.xlu0 %v8491_v7, %s7642_s21 }
0x1a8d   :  { %v4009_v38 = vpop.xlane.xlu0 %4008 }
0x1a8e   :  { %v4010_v40 = vmul.f32 0.03125, %v4009_v38 }
0x1a90   :  { %v4011_v58 = vadd.f32 1e-06, %v4010_v40 }
0x1a91   :  { %v2420_v61 = vpop.xlane.xlu0 %2419 }
0x1a92   :  { %7465 = vrsqrt.f32 %v4011_v58  ;;  %v2426_v17 = vmul.f32 0.03125, %v2420_v61 }
0x1a93   :  { %7467 = vrsqrt.f32 %v2431_v56 }
0x1a94   :  { %v2430_v20 = vadd.f32 1e-06, %v2426_v17 }
0x1a96   :  { %7469 = vrsqrt.f32 %v2430_v20 }
0x1a9c   :  { %v7466_v0 = vpop.eup %7465 }
0x1a9d   :  { %v7468_v24 = vpop.eup %7467  ;;  %v4013_v32 = vmul.f32 %v7466_v0, %v8478_v3 }
0x1a9e   :  { %v2439_v31 = vmul.f32 %v7468_v24, %v8446_v5 }
0x1a9f   :  { %v4020_v22 = vmul.f32 %v6164_v21, %v4013_v32 }
0x1aa0   :  { %v7470_v29 = vpop.eup %7469  ;;  %v2449_v37 = vmul.f32 %v8468_v12, %v2439_v31 }
0x1aa1   :  { %6726 = vmatmul.mubr.msk.f32.vlgmr.msra.gmra.mrb[40].mxu0 %vm178_vm0, %v4020_v22  ;;  %v2438_v50 = vmul.f32 %v7470_v29, %v2405_v52 }
0x1aa2   :  { %7055 = vmatpush3.bf16.xpose.msk.msra.mxu0 %vm7877_vm2, %v7053_v9  ;;  %6746 = vmatprep.mubr.msk.f32.mxu0 %vm7656_vm5, %v7655_v23 }
0x1aa3   :  { %v2448_v33 = vmul.f32 %v8468_v12, %v2438_v50  ;;  %7056 = vmatprep.subr.bf16.mxu0 %v7654_v51 }
0x1aa5   :  { %6739 = vmatprep.mubr.msk.f32.mxu1 %vm178_vm0, %v2448_v33 }
0x1aa6   :  { %6740 = vmatmul.mubr.msk.f32.gmra.mrb[46].mxu1 %vm178_vm0, %v2449_v37 }
0x1aa7   :  { %6760 = vmatprep.mubr.msk.f32.mxu1 %vm7656_vm5, %v7655_v23 }
0x1abb   :  { %v7271_v5 = vpop.permute.xlu0 %7270 }
0x1abc   :  { %v7273_v39 = vunpack.i.h.bf16 %v7271_v5  ;;  %v7272_v47 = vunpack.i.l.bf16 %v7271_v5 }
0x1abe   :  { %v7060_v41 = vpack.c.bf16 %v7273_v39, %v7272_v47 }
0x1ac0   :  { %7062 = vmatpush3.bf16.xpose.msk.msra.mxu1 %vm7877_vm2, %v7060_v41 }
0x1ac1   :  { %7066 = vmatprep.subr.bf16.mxu1 %v7654_v51 }
0x1b74   :  { %v4111_v8 = vpop.f32.mrb[40].mxu0 }
0x1b75   :  { %v8514_v42 = vadd.f32 %v6165_v6, %v4111_v8  ;;  %v6727_v34 = vpop.f32.mrb[41].mxu0 }
0x1b77   :  { %4388 = vrot.lane.b32.xlu1 %v8514_v42, %s7642_s21  ;;  %6747 = vmatmul.mubr.msk.f32.vlgmr.msra.gmra.mrb[42].mxu0 %vm337_vm1, %v8514_v42 }
0x1b78   :  { %6753 = vmatprep.mubr.msk.f32.mxu0 %vm7656_vm5, %v7655_v23 }
0x1b79   :  { %v6741_v44 = vpop.f32.mrb[46].mxu1 }
0x1b7a   :  { %v8522_v46 = vadd.f32 %v6741_v44, %v6167_v45  ;;  %v4209_v26 = vpop.f32.mrb[47].mxu1 }
0x1b7b   :  { %v8524_v11 = vadd.f32 %v6167_v45, %v4209_v26  ;;  %7275 = vrot.lane.b32.xlu1 %v8491_v7, %s7644_s27 }
0x1b7d   :  { %v8530_v12 = vpack.i.bf16 %v8522_v46, %v8524_v11  ;;  %v7081_v14 = vpack.c.bf16 %v8522_v46, %v8524_v11 }
0x1b7f   :  { %4560 = vrot.lane.b32.xlu1 %v8514_v42, %s7644_s27 }
0x1be9   :  { %v4389_v16 = vpop.permute.xlu1 %4388 }
0x1bea   :  { %6761 = vmatmul.mubr.msk.f32.vlgmr.msra.gmra.mrb[48].mxu1 %vm337_vm1, %v4389_v16 }
0x1beb   :  { %6774 = vmatprep.mubr.msk.f32.mxu1 %vm7656_vm5, %v7655_v23 }
0x1bed   :  { %v7276_v49 = vpop.permute.xlu1 %7275 }
0x1bee   :  { %v7278_v28 = vunpack.i.h.bf16 %v7276_v49  ;;  %v7277_v48 = vunpack.i.l.bf16 %v7276_v49 }
0x1bf0   :  { %v7067_v53 = vpack.c.bf16 %v7278_v28, %v7277_v48 }
0x1bf1   :  { %v4561_v19 = vpop.permute.xlu1 %4560 }
0x1bf2   :  { %7069 = vmatpush3.bf16.xpose.msk.msra.mxu1 %vm7877_vm2, %v7067_v53 }
0x1bf3   :  { %7077 = vmatprep.subr.bf16.mxu1 %v7654_v51 }
0x1bf9   :  { %6775 = vmatmul.mubr.msk.f32.vlgmr.msra.gmra.mrb[50].mxu1 %vm337_vm1, %v4561_v19 }
0x1bfa   :  { %6795 = vmatprep.mubr.msk.f32.mxu1 %vm7656_vm5, %v7655_v23 }
0x1c4a   :  { %v4293_v57 = vpop.f32.mrb[42].mxu0 }
0x1c4b   :  { %v6748_v2 = vpop.f32.mrb[43].mxu0  ;;  %v4298_v52 = vsel %vm4297_vm11, %v4293_v57, -inf }
0x1c4c   :  { %4299 = vmax.xlane.f32.xlu0 %v4298_v52 }
0x1cbd   :  { %v4466_v25 = vpop.f32.mrb[48].mxu1 }
0x1cbe   :  { %v6762_v59 = vpop.f32.mrb[49].mxu1  ;;  %v4470_v62 = vsel %vm4297_vm11, %v4466_v25, -inf }
0x1cbf   :  { %4471 = vmax.xlane.f32.xlu1 %v4470_v62 }
0x1ccc   :  { %v4638_v60 = vpop.f32.mrb[50].mxu1 }
0x1ccd   :  { %v6776_v43 = vpop.f32.mrb[51].mxu1  ;;  %v4642_v63 = vsel %vm4297_vm11, %v4638_v60, -inf }
0x1cce   :  { %4643 = vmax.xlane.f32.xlu0 %v4642_v63 }
0x1cd0   :  { %7285 = vrot.lane.b32.xlu1 %v8491_v7, %s7640_s13 }
0x1cd4   :  { %7290 = vrot.lane.b32.xlu1 %v8491_v7, %s7643_s12 }
0x1cd9   :  { %v4300_v54 = vpop.xlane.xlu0 %4299 }
0x1cda   :  { %v4301_v10 = vsub.f32 %v4293_v57, %v4300_v54 }
0x1cdc   :  { %v4302_v18 = vmul.f32 1.442695, %v4301_v10 }
0x1cde   :  { %7471 = vpow2.f32 %v4302_v18  ;;  %v8592_v18 = vrot.slane %v8514_v42, 4 }
0x1ce8   :  { %v7472_v27 = vpop.eup %7471 }
0x1ce9   :  { %v4304_v45 = vsel %vm4297_vm11, %v7472_v27, 0.0 }
0x1cea   :  { %4305 = vadd.xlane.f32.xlu0 %v4304_v45 }
0x1d4c   :  { %v4472_v36 = vpop.xlane.xlu1 %4471 }
0x1d4d   :  { %v4473_v1 = vsub.f32 %v4466_v25, %v4472_v36 }
0x1d4f   :  { %v4474_v35 = vmul.f32 1.442695, %v4473_v1 }
0x1d50   :  { %v7286_v17 = vpop.permute.xlu1 %7285 }
0x1d51   :  { %7473 = vpow2.f32 %v4474_v35  ;;  %v7288_v32 = vunpack.i.h.bf16 %v7286_v17  ;;  %v7287_v22 = vunpack.i.l.bf16 %v7286_v17 }
0x1d53   :  { %v7064_v37 = vpack.c.bf16 %v7288_v32, %v7287_v22 }
0x1d54   :  { %v7291_v31 = vpop.permute.xlu1 %7290 }
0x1d55   :  { %v7293_v5 = vunpack.i.h.bf16 %v7291_v31  ;;  %v7292_v39 = vunpack.i.l.bf16 %v7291_v31 }
0x1d57   :  { %v7071_v41 = vpack.c.bf16 %v7293_v5, %v7292_v39 }
0x1d5b   :  { %v7474_v4 = vpop.eup %7473  ;;  %v4644_v9 = vpop.xlane.xlu0 %4643 }
0x1d5c   :  { %v4645_v13 = vsub.f32 %v4638_v60, %v4644_v9  ;;  %v4476_v15 = vsel %vm4297_vm11, %v7474_v4, 0.0 }
0x1d5d   :  { %4477 = vadd.xlane.f32.xlu0 %v4476_v15 }
0x1d5e   :  { %v4646_v38 = vmul.f32 1.442695, %v4645_v13 }
0x1d60   :  { %7475 = vpow2.f32 %v4646_v38 }
0x1d6a   :  { %v7476_v40 = vpop.eup %7475 }
0x1d6b   :  { %v4648_v56 = vsel %vm4297_vm11, %v7476_v40, 0.0 }
0x1d6c   :  { %4649 = vadd.xlane.f32.xlu1 %v4648_v56 }
0x1d73   :  { %7280 = vrot.lane.b32.xlu0 %v8491_v7, %s7641_s17 }
0x1d77   :  { %4732 = vrot.lane.b32.xlu0 %v8514_v42, %s7649_s26  ;;  %v4306_v58 = vpop.xlane.xlu0 %4305 }
0x1d78   :  { %7477 = vrcp.f32 %v4306_v58 }
0x1d7d   :  { %7295 = vrot.lane.b32.xlu1 %v8491_v7, %s7649_s26 }
0x1d82   :  { %v7478_v24 = vpop.eup %7477 }
0x1d83   :  { %v4308_v50 = vmul.f32 %v7478_v24, %v7472_v27 }
0x1dea   :  { %v4478_v61 = vpop.xlane.xlu0 %4477 }
0x1deb   :  { %7479 = vrcp.f32 %v4478_v61 }
0x1dee   :  { %v7281_v20 = vpop.permute.xlu0 %7280 }
0x1def   :  { %v7283_v0 = vunpack.i.h.bf16 %v7281_v20  ;;  %v7282_v21 = vunpack.i.l.bf16 %v7281_v20 }
0x1df1   :  { %v7057_v29 = vpack.c.bf16 %v7283_v0, %v7282_v21 }
0x1df2   :  { %v4733_v28 = vpop.permute.xlu0 %4732 }
0x1df3   :  { %7058 = vmatpush3.bf16.msra.mxu0 %v7057_v29 }
0x1df4   :  { %7063 = vmatprep.subr.bf16.mxu0 %v7654_v51 }
0x1df5   :  { %v7480_v33 = vpop.eup %7479 }
0x1df6   :  { %6754 = vmatmul.mubr.msk.f32.vlgmr.msra.gmra.mrb[44].mxu0 %vm421_vm3, %v4308_v50  ;;  %v4480_v47 = vmul.f32 %v7480_v33, %v7474_v4 }
0x1df7   :  { %7065 = vmatpush3.bf16.msra.mxu0 %v7064_v37  ;;  %6767 = vmatprep.mubr.msk.f32.mxu0 %vm7656_vm5, %v7655_v23 }
0x1df8   :  { %7070 = vmatprep.subr.bf16.mxu0 %v7654_v51 }
0x1df9   :  { %v4650_v6 = vpop.xlane.xlu1 %4649 }
0x1dfa   :  { %7481 = vrcp.f32 %v4650_v6  ;;  %6768 = vmatmul.mubr.msk.f32.vlgmr.msra.gmra.mrb[46].mxu0 %vm421_vm3, %v4480_v47 }
0x1dfb   :  { %7072 = vmatpush3.bf16.msra.mxu0 %v7071_v41  ;;  %6781 = vmatprep.mubr.msk.f32.mxu0 %vm7656_vm5, %v7655_v23 }
0x1dfc   :  { %7073 = vmatprep.subr.bf16.mxu0 %v7654_v51 }
0x1dfd   :  { %v7296_v8 = vpop.permute.xlu1 %7295 }
0x1dfe   :  { %v7298_v34 = vunpack.i.h.bf16 %v7296_v8  ;;  %v7297_v44 = vunpack.i.l.bf16 %v7296_v8 }
0x1e00   :  { %v7074_v49 = vpack.c.bf16 %v7298_v34, %v7297_v44 }
0x1e04   :  { %v7482_v26 = vpop.eup %7481 }
0x1e05   :  { %v4652_v16 = vmul.f32 %v7482_v26, %v7476_v40 }
0x1e07   :  { %6782 = vmatmul.mubr.msk.f32.vlgmr.msra.gmra.mrb[48].mxu0 %vm421_vm3, %v4652_v16 }
0x1e08   :  { %7076 = vmatpush3.bf16.xpose.msk.msra.mxu0 %vm7877_vm2, %v7074_v49  ;;  %6788 = vmatprep.mubr.msk.f32.mxu0 %vm7656_vm5, %v7655_v23 }
0x1e09   :  { %7084 = vmatprep.subr.bf16.mxu0 %v7654_v51 }
0x1e0f   :  { %6789 = vmatmul.mubr.msk.f32.vlgmr.msra.gmra.mrb[50].mxu0 %vm337_vm1, %v4733_v28 }
0x1e10   :  { %6809 = vmatprep.mubr.msk.f32.mxu0 %vm7656_vm5, %v7655_v23 }
0x1ec9   :  { %v8579_v48 = vpop.f32.mrb[44].mxu0 }
0x1eca   :  { %v6755_v53 = vpop.f32.mrb[45].mxu0 }
0x1ecd   :  { %v8581_v19 = vpop.f32.mrb[46].mxu0 }
0x1ece   :  { %v6769_v57 = vpop.f32.mrb[47].mxu0 }
0x1eda   :  { %v8583_v2 = vpop.f32.mrb[48].mxu0 }
0x1edb   :  { %v6783_v52 = vpop.f32.mrb[49].mxu0 }
0x1ee2   :  { %v4810_v25 = vpop.f32.mrb[50].mxu0 }
0x1ee3   :  { %v6790_v59 = vpop.f32.mrb[51].mxu0  ;;  %v4814_v62 = vsel %vm4297_vm11, %v4810_v25, -inf }
0x1ee4   :  { %4815 = vmax.xlane.f32.xlu1 %v4814_v62 }
0x1f71   :  { %v4816_v60 = vpop.xlane.xlu1 %4815 }
0x1f72   :  { %v4817_v43 = vsub.f32 %v4810_v25, %v4816_v60 }
0x1f74   :  { %v4818_v63 = vmul.f32 1.442695, %v4817_v43 }
0x1f76   :  { %7483 = vpow2.f32 %v4818_v63 }
0x1f80   :  { %v7484_v54 = vpop.eup %7483 }
0x1f81   :  { %v4820_v10 = vsel %vm4297_vm11, %v7484_v54, 0.0 }
0x1f82   :  { %4821 = vadd.xlane.f32.xlu0 %v4820_v10 }
0x1f98   :  { %7300 = vrot.lane.b32.xlu0 %v8491_v7, %s7647_s22 }
0x1f9c   :  { %7310 = vrot.lane.b32.xlu0 %v8530_v12, %s7642_s21 }
0x1fa0   :  { %5088 = vrot.lane.b32.xlu0 %v8592_v18, %s7642_s21 }
0x200f   :  { %v4822_v27 = vpop.xlane.xlu0 %4821 }
0x2010   :  { %7485 = vrcp.f32 %v4822_v27 }
0x2013   :  { %v7301_v45 = vpop.permute.xlu0 %7300 }
0x2014   :  { %v7303_v36 = vunpack.i.h.bf16 %v7301_v45  ;;  %v7302_v1 = vunpack.i.l.bf16 %v7301_v45 }
0x2016   :  { %v7078_v35 = vpack.c.bf16 %v7303_v36, %v7302_v1 }
0x2017   :  { %v7311_v21 = vpop.permute.xlu0 %7310 }
0x2018   :  { %7079 = vmatpush3.bf16.msra.mxu1 %v7078_v35  ;;  %v7313_v32 = vunpack.i.h.bf16 %v7311_v21  ;;  %v7312_v22 = vunpack.i.l.bf16 %v7311_v21 }
0x2019   :  { %7080 = vmatprep.subr.bf16.mxu1 %v7654_v51 }
0x201a   :  { %v7486_v4 = vpop.eup %7485  ;;  %v7088_v31 = vpack.c.bf16 %v7313_v32, %v7312_v22 }
0x201b   :  { %v4824_v7 = vmul.f32 %v7486_v4, %v7484_v54  ;;  %v5089_v50 = vpop.permute.xlu0 %5088 }
0x201d   :  { %6796 = vmatmul.mubr.msk.f32.vlgmr.msra.gmra.mrb[52].mxu1 %vm421_vm3, %v4824_v7 }
0x201e   :  { %6802 = vmatprep.mubr.msk.f32.mxu1 %vm7656_vm5, %v7655_v23 }
0x2021   :  { %7083 = vmatpush3.bf16.xpose.msk.msra.mxu1 %vm7877_vm2, %v7081_v14 }
0x2022   :  { %7091 = vmatprep.subr.bf16.mxu1 %v7654_v51 }
0x2028   :  { %6803 = vmatmul.mubr.msk.f32.vlgmr.msra.gmra.mrb[54].mxu1 %vm337_vm1, %v8592_v18 }
0x2029   :  { %6823 = vmatprep.mubr.msk.f32.mxu1 %vm7656_vm5, %v7655_v23 }
0x20f0   :  { %v8610_v42 = vpop.f32.mrb[52].mxu1 }
0x20f1   :  { %v6797_v9 = vpop.f32.mrb[53].mxu1 }
0x20fb   :  { %v4994_v13 = vpop.f32.mrb[54].mxu1 }
0x20fc   :  { %v6804_v15 = vpop.f32.mrb[55].mxu1  ;;  %v4998_v38 = vsel %vm4297_vm11, %v4994_v13, -inf }
0x20fd   :  { %4999 = vmax.xlane.f32.xlu1 %v4998_v38 }
0x218a   :  { %v5000_v46 = vpop.xlane.xlu1 %4999 }
0x218b   :  { %v5001_v11 = vsub.f32 %v4994_v13, %v5000_v46 }
0x218d   :  { %v5002_v40 = vmul.f32 1.442695, %v5001_v11 }
0x218f   :  { %7487 = vpow2.f32 %v5002_v40 }
0x2199   :  { %v7488_v14 = vpop.eup %7487 }
0x219a   :  { %v5004_v56 = vsel %vm4297_vm11, %v7488_v14, 0.0 }
0x219b   :  { %5005 = vadd.xlane.f32.xlu1 %v5004_v56 }
0x21ac   :  { %7305 = vrot.lane.b32.xlu1 %v8530_v12, %s7641_s17 }
0x2228   :  { %v5006_v58 = vpop.xlane.xlu1 %5005 }
0x2229   :  { %7489 = vrcp.f32 %v5006_v58 }
0x222c   :  { %v7306_v61 = vpop.permute.xlu1 %7305 }
0x222d   :  { %v7308_v17 = vunpack.i.h.bf16 %v7306_v61  ;;  %v7307_v20 = vunpack.i.l.bf16 %v7306_v61 }
0x222f   :  { %v7085_v0 = vpack.c.bf16 %v7308_v17, %v7307_v20 }
0x2231   :  { %7086 = vmatpush3.bf16.msra.mxu0 %v7085_v0 }
0x2232   :  { %7087 = vmatprep.subr.bf16.mxu0 %v7654_v51 }
0x2233   :  { %v7490_v24 = vpop.eup %7489 }
0x2234   :  { %v5008_v29 = vmul.f32 %v7490_v24, %v7488_v14 }
0x2236   :  { %6810 = vmatmul.mubr.msk.f32.vlgmr.msra.gmra.mrb[52].mxu0 %vm421_vm3, %v5008_v29 }
0x2237   :  { %6816 = vmatprep.mubr.msk.f32.mxu0 %vm7656_vm5, %v7655_v23 }
0x223a   :  { %7090 = vmatpush3.bf16.xpose.msk.msra.mxu0 %vm7877_vm2, %v7088_v31 }
0x223b   :  { %7098 = vmatprep.subr.bf16.mxu0 %v7654_v51 }
0x2241   :  { %6817 = vmatmul.mubr.msk.f32.vlgmr.msra.gmra.mrb[54].mxu0 %vm337_vm1, %v5089_v50 }
0x2242   :  { %6837 = vmatprep.mubr.msk.f32.mxu0 %vm7656_vm5, %v7655_v23 }
0x2309   :  { %v8626_v33 = vpop.f32.mrb[52].mxu0 }
0x230a   :  { %v6811_v37 = vpop.f32.mrb[53].mxu0 }
0x2314   :  { %v5166_v5 = vpop.f32.mrb[54].mxu0 }
0x2315   :  { %v6818_v39 = vpop.f32.mrb[55].mxu0  ;;  %v5170_v47 = vsel %vm4297_vm11, %v5166_v5, -inf }
0x2316   :  { %5171 = vmax.xlane.f32.xlu1 %v5170_v47 }
0x2327   :  { %7320 = vrot.lane.b32.xlu1 %v8530_v12, %s7644_s27 }
0x232b   :  { %5260 = vrot.lane.b32.xlu1 %v8592_v18, %s7644_s27 }
0x23a3   :  { %v5172_v41 = vpop.xlane.xlu1 %5171 }
0x23a4   :  { %v5173_v6 = vsub.f32 %v5166_v5, %v5172_v41 }
0x23a6   :  { %v5174_v8 = vmul.f32 1.442695, %v5173_v6 }
0x23a7   :  { %v7321_v57 = vpop.permute.xlu1 %7320 }
0x23a8   :  { %7491 = vpow2.f32 %v5174_v8  ;;  %v7323_v25 = vunpack.i.h.bf16 %v7321_v57  ;;  %v7322_v59 = vunpack.i.l.bf16 %v7321_v57  ;;  %v4033_v8 = vld [vmem:[%s8763_s7 + $0x10] sm:$0xff] }
0x23aa   :  { %v7095_v60 = vpack.c.bf16 %v7323_v25, %v7322_v59 }
0x23ab   :  { %v5261_v43 = vpop.permute.xlu1 %5260 }
0x23b2   :  { %v7492_v34 = vpop.eup %7491 }
0x23b3   :  { %v5176_v44 = vsel %vm4297_vm11, %v7492_v34, 0.0 }
0x23b4   :  { %5177 = vadd.xlane.f32.xlu0 %v5176_v44 }
0x23ca   :  { %7315 = vrot.lane.b32.xlu0 %v8530_v12, %s7640_s13 }
0x2441   :  { %v5178_v26 = vpop.xlane.xlu0 %5177 }
0x2442   :  { %7493 = vrcp.f32 %v5178_v26 }
0x2445   :  { %v7316_v16 = vpop.permute.xlu0 %7315 }
0x2446   :  { %v7318_v49 = vunpack.i.h.bf16 %v7316_v16  ;;  %v7317_v28 = vunpack.i.l.bf16 %v7316_v16 }
0x2448   :  { %v7092_v53 = vpack.c.bf16 %v7318_v49, %v7317_v28 }
0x244a   :  { %7093 = vmatpush3.bf16.msra.mxu1 %v7092_v53 }
0x244b   :  { %7094 = vmatprep.subr.bf16.mxu1 %v7654_v51 }
0x244c   :  { %v7494_v52 = vpop.eup %7493 }
0x244d   :  { %v5180_v62 = vmul.f32 %v7494_v52, %v7492_v34  ;;  %v4034_v34 = vld [vmem:[%s8763_s7 + $0x18] sm:$0xff] }
0x244e   :  { %v7112_v44 = vpack.c.bf16 %v4034_v34, %v4033_v8 }
0x244f   :  { %6824 = vmatmul.mubr.msk.f32.vlgmr.msra.gmra.mrb[56].mxu1 %vm421_vm3, %v5180_v62 }
0x2450   :  { %6830 = vmatprep.mubr.msk.f32.mxu1 %vm7656_vm5, %v7655_v23 }
0x2453   :  { %7097 = vmatpush3.bf16.xpose.msk.msra.mxu1 %vm7877_vm2, %v7095_v60 }
0x2454   :  { %7105 = vmatprep.subr.bf16.mxu1 %v7654_v51 }
0x245a   :  { %6831 = vmatmul.mubr.msk.f32.vlgmr.msra.gmra.mrb[58].mxu1 %vm337_vm1, %v5261_v43 }
0x245b   :  { %6851 = vmatprep.mubr.msk.f32.mxu1 %vm7656_vm5, %v7655_v23 }
0x2522   :  { %v5256_v63 = vpop.f32.mrb[56].mxu1 }
0x2523   :  { %v6825_v54 = vpop.f32.mrb[57].mxu1 }
0x252d   :  { %v5338_v10 = vpop.f32.mrb[58].mxu1 }
0x252e   :  { %v6832_v27 = vpop.f32.mrb[59].mxu1  ;;  %v5342_v45 = vsel %vm4297_vm11, %v5338_v10, -inf }
0x252f   :  { %5343 = vmax.xlane.f32.xlu0 %v5342_v45 }
0x2545   :  { %7325 = vrot.lane.b32.xlu0 %v8530_v12, %s7643_s12 }
0x2549   :  { %5432 = vrot.lane.b32.xlu0 %v8592_v18, %s7649_s26 }
0x25bc   :  { %v5344_v36 = vpop.xlane.xlu0 %5343 }
0x25bd   :  { %v5345_v1 = vsub.f32 %v5338_v10, %v5344_v36 }
0x25bf   :  { %v5346_v35 = vmul.f32 1.442695, %v5345_v1 }
0x25c0   :  { %v7326_v4 = vpop.permute.xlu0 %7325 }
0x25c1   :  { %7495 = vpow2.f32 %v5346_v35  ;;  %v7328_v7 = vunpack.i.h.bf16 %v7326_v4  ;;  %v7327_v9 = vunpack.i.l.bf16 %v7326_v4  ;;  %v5719_v4 = vld [vmem:[%s8764_s10] sm:$0xff] }
0x25c3   :  { %v7099_v13 = vpack.c.bf16 %v7328_v7, %v7327_v9  ;;  %v5720_v7 = vld [vmem:[%s8764_s10 + $0x8] sm:$0xff] }
0x25c4   :  { %v5433_v61 = vpop.permute.xlu0 %5432  ;;  %v7115_v9 = vpack.c.bf16 %v5720_v7, %v5719_v4 }
0x25c5   :  { %7100 = vmatpush3.bf16.msra.mxu0 %v7099_v13  ;;  %v5721_v13 = vld [vmem:[%s8764_s10 + $0x10] sm:$0xff] }
0x25c6   :  { %7101 = vmatprep.subr.bf16.mxu0 %v7654_v51 }
0x25cb   :  { %v7496_v15 = vpop.eup %7495 }
0x25cc   :  { %v5348_v38 = vsel %vm4297_vm11, %v7496_v15, 0.0 }
0x25cd   :  { %5349 = vadd.xlane.f32.xlu1 %v5348_v38 }
0x25de   :  { %7330 = vrot.lane.b32.xlu1 %v8530_v12, %s7649_s26 }
0x265a   :  { %v5350_v46 = vpop.xlane.xlu1 %5349 }
0x265b   :  { %7497 = vrcp.f32 %v5350_v46 }
0x265e   :  { %v7331_v18 = vpop.permute.xlu1 %7330 }
0x265f   :  { %v7333_v11 = vunpack.i.h.bf16 %v7331_v18  ;;  %v7332_v40 = vunpack.i.l.bf16 %v7331_v18 }
0x2661   :  { %v7102_v58 = vpack.c.bf16 %v7333_v11, %v7332_v40  ;;  %v6206_v40 = vld [vmem:[#allocation4] ss:$0 sm:$0xff] }
0x2665   :  { %v7498_v14 = vpop.eup %7497 }
0x2666   :  { %v5352_v56 = vmul.f32 %v7498_v14, %v7496_v15  ;;  %v5722_v15 = vld [vmem:[%s8764_s10 + $0x18] sm:$0xff] }
0x2667   :  { %v7118_v38 = vpack.c.bf16 %v5722_v15, %v5721_v13 }
0x2668   :  { %6838 = vmatmul.mubr.msk.f32.vlgmr.msra.gmra.mrb[56].mxu0 %vm421_vm3, %v5352_v56 }
0x2669   :  { %7104 = vmatpush3.bf16.xpose.msk.msra.mxu0 %vm7877_vm2, %v7102_v58  ;;  %6844 = vmatprep.mubr.msk.f32.mxu0 %vm7656_vm5, %v7655_v23  ;;  %v5723_v58 = vld [vmem:[%s8765_s11] sm:$0xff] }
0x266a   :  { %7114 = vmatprep.subr.bf16.mxu0 %v7654_v51 }
0x2670   :  { %6845 = vmatmul.mubr.msk.f32.vlgmr.msra.gmra.mrb[58].mxu0 %vm337_vm1, %v5433_v61  ;;  %v5724_v61 = vld [vmem:[%s8765_s11 + $0x8] sm:$0xff] }
0x2671   :  { %6873 = vmatprep.mubr.msk.f32.mxu0 %vm7656_vm5, %v7655_v23  ;;  %7116 = vmatpush3.bf16.msra.mxu0 %v7115_v9 }
0x2672   :  { %7117 = vmatprep.subr.bf16.mxu0 %v7654_v51 }
0x2675   :  { %7119 = vmatpush3.bf16.msra.mxu0 %v7118_v38 }
0x2676   :  { %7132 = vmatprep.subr.bf16.mxu0 %v7654_v51 }
0x273b   :  { %v5428_v17 = vpop.f32.mrb[56].mxu0 }
0x273c   :  { %v6839_v20 = vpop.f32.mrb[57].mxu0 }
0x273d   :  { %v7121_v20 = vpack.c.bf16 %v5724_v61, %v5723_v58 }
0x2743   :  { %v5510_v0 = vpop.f32.mrb[58].mxu0 }
0x2744   :  { %v6846_v21 = vpop.f32.mrb[59].mxu0  ;;  %v5514_v24 = vsel %vm4297_vm11, %v5510_v0, -inf }
0x2745   :  { %5515 = vmax.xlane.f32.xlu1 %v5514_v24  ;;  %v5727_v24 = vld [vmem:[%s8765_s11 + $0x20] sm:$0xff] }
0x2756   :  { %5605 = vrot.lane.b32.xlu1 %v5256_v63, %s7651_s20 }
0x275a   :  { %5609 = vrot.lane.b32.xlu1 %v5428_v17, %s7652_s1  ;;  %v5725_v17 = vld [vmem:[%s8765_s11 + $0x10] sm:$0xff] }
0x27d2   :  { %v5516_v55 = vpop.xlane.xlu1 %5515 }
0x27d3   :  { %v5517_v32 = vsub.f32 %v5510_v0, %v5516_v55  ;;  %v5726_v0 = vld [vmem:[%s8765_s11 + $0x18] sm:$0xff]  ;;  %v5728_v55 = vld [vmem:[%s8765_s11 + $0x28] sm:$0xff] }
0x27d4   :  { %v7124_v21 = vpack.c.bf16 %v5726_v0, %v5725_v17 }
0x27d5   :  { %v5518_v22 = vmul.f32 1.442695, %v5517_v32  ;;  %v7127_v32 = vpack.c.bf16 %v5728_v55, %v5727_v24 }
0x27d6   :  { %v5606_v49 = vpop.permute.xlu1 %5605 }
0x27d7   :  { %7499 = vpow2.f32 %v5518_v22  ;;  %v5616_v57 = vsel %vm337_vm1, %v8626_v33, %v5606_v49  ;;  %v6204_v33 = vld [vmem:[#allocation2] ss:$0 sm:$0xff]  ;;  %v5729_v22 = vld [vmem:[%s8765_s11 + $0x30] sm:$0xff] }
0x27da   :  { %v5610_v53 = vpop.permute.xlu1 %5609 }
0x27db   :  { %v5617_v52 = vsel %vm421_vm3, %v5616_v57, %v5610_v53  ;;  %v5915_v53 = vld [vmem:[%s7801_s14] sm:$0xff]  ;;  %v5916_v57 = vld [vmem:[%s7801_s14 + $0x8] sm:$0xff] }
0x27e1   :  { %v7500_v29 = vpop.eup %7499 }
0x27e2   :  { %v5520_v31 = vsel %vm4297_vm11, %v7500_v29, 0.0 }
0x27e3   :  { %5521 = vadd.xlane.f32.xlu0 %v5520_v31 }
0x27f9   :  { %7335 = vrot.lane.b32.xlu0 %v8530_v12, %s7647_s22 }
0x27fd   :  { %4905 = vrot.lane.b32.xlu0 %v8581_v19, %s7651_s20  ;;  %v4031_v19 = vld [vmem:[%s8763_s7] sm:$0xff] }
0x2801   :  { %4909 = vrot.lane.b32.xlu0 %v8583_v2, %s7652_s1  ;;  %v4032_v2 = vld [vmem:[%s8763_s7 + $0x8] sm:$0xff] }
0x2802   :  { %v7109_v6 = vpack.c.bf16 %v4032_v2, %v4031_v19 }
0x2870   :  { %v5522_v50 = vpop.xlane.xlu0 %5521 }
0x2871   :  { %7501 = vrcp.f32 %v5522_v50 }
0x2874   :  { %v7336_v37 = vpop.permute.xlu0 %7335 }
0x2875   :  { %v7338_v5 = vunpack.i.h.bf16 %v7336_v37  ;;  %v7337_v39 = vunpack.i.l.bf16 %v7336_v37 }
0x2877   :  { %v7106_v47 = vpack.c.bf16 %v7338_v5, %v7337_v39 }
0x2878   :  { %v4906_v28 = vpop.permute.xlu0 %4905 }
0x2879   :  { %7107 = vmatpush3.bf16.msra.mxu1 %v7106_v47  ;;  %v4916_v60 = vsel %vm337_vm1, %v8579_v48, %v4906_v28 }
0x287a   :  { %7108 = vmatprep.subr.bf16.mxu1 %v7654_v51 }
0x287b   :  { %v7502_v41 = vpop.eup %7501 }
0x287c   :  { %v5524_v12 = vmul.f32 %v7502_v41, %v7500_v29  ;;  %v4910_v59 = vpop.permute.xlu0 %4909  ;;  %v5730_v29 = vld [vmem:[%s8765_s11 + $0x38] sm:$0xff] }
0x287d   :  { %v4917_v43 = vsel %vm421_vm3, %v4916_v60, %v4910_v59  ;;  %v7130_v31 = vpack.c.bf16 %v5730_v29, %v5729_v22  ;;  %v5918_v59 = vld [vmem:[%s7801_s14 + $0x18] sm:$0xff] }
0x287e   :  { %6852 = vmatmul.mubr.msk.f32.vlgmr.msra.gmra.mrb[60].mxu1 %vm421_vm3, %v5524_v12 }
0x287f   :  { %6862 = vmatprep.mubr.msk.f32.mxu1 %vm7656_vm5, %v7655_v23  ;;  %7110 = vmatpush3.bf16.msra.mxu1 %v7109_v6 }
0x2880   :  { %7111 = vmatprep.subr.bf16.mxu1 %v7654_v51 }
0x2883   :  { %7113 = vmatpush3.bf16.msra.mxu1 %v7112_v44 }
0x2884   :  { %7120 = vmatprep.subr.bf16.mxu1 %v7654_v51 }
0x2951   :  { %v5600_v26 = vpop.f32.mrb[60].mxu1 }
0x2952   :  { %5613 = vrot.lane.b32.xlu1 %v5600_v26, %s7653_s2  ;;  %v6853_v16 = vpop.f32.mrb[61].mxu1 }
0x2956   :  { %4913 = vrot.lane.b32.xlu1 %v8610_v42, %s7653_s2 }
0x29c4   :  { %v5614_v25 = vpop.permute.xlu1 %5613 }
0x29c5   :  { %v5618_v62 = vsel %vm1159_vm4, %v5617_v52, %v5614_v25  ;;  %v7133_v52 = vpack.c.bf16 %v5916_v57, %v5915_v53  ;;  %v5917_v25 = vld [vmem:[%s7801_s14 + $0x10] sm:$0xff] }
0x29c6   :  { %v5620_v42 = vrot.slane %v5618_v62, 4  ;;  %v7136_v62 = vpack.c.bf16 %v5918_v59, %v5917_v25 }
0x29c8   :  { %v4914_v63 = vpop.permute.xlu1 %4913 }
0x29c9   :  { %v4918_v54 = vsel %vm1159_vm4, %v4917_v43, %v4914_v63 }
0x29ca   :  { %v5622_v10 = vsel %vm2657_vm9, %v4918_v54, %v5620_v42  ;;  %v6209_v54 = vld [vmem:[#allocation6] ss:$0 sm:$0xff] }
0x29cb   :  { %6863 = vmatmul.mubr.msk.f32.vlgmr.msra.gmra.mrb[62].mxu1 %vm178_vm0, %v5622_v10 }
0x29cc   :  { %6892 = vmatprep.mubr.msk.f32.mxu1 %vm7656_vm5, %v7655_v23  ;;  %7122 = vmatpush3.bf16.msra.mxu1 %v7121_v20 }
0x29cd   :  { %7123 = vmatprep.subr.bf16.mxu1 %v7654_v51 }
0x29d0   :  { %7125 = vmatpush3.bf16.msra.mxu1 %v7124_v21 }
0x29d1   :  { %7126 = vmatprep.subr.bf16.mxu1 %v7654_v51 }
0x29d4   :  { %7128 = vmatpush3.bf16.msra.mxu1 %v7127_v32 }
0x29d5   :  { %7129 = vmatprep.subr.bf16.mxu1 %v7654_v51 }
0x29d8   :  { %7131 = vmatpush3.bf16.msra.mxu1 %v7130_v31 }
0x2a9e   :  { %v5698_v27 = vpop.f32.mrb[62].mxu1 }
0x2a9f   :  { %v5699_v48 = vadd.f32 %v6204_v33, %v5698_v27  ;;  %v6864_v45 = vpop.f32.mrb[63].mxu1 }
0x2aa1   :  { %v5702_v36 = vadd.f32 %v5699_v48, %v8478_v3 }
0x2aa3   :  { %v5704_v1 = vmul.f32 %v5702_v36, %v5702_v36 }
0x2aa5   :  { %v5705_v35 = vsel %vm178_vm0, %v5704_v1, 0.0 }
0x2aa6   :  { %5706 = vadd.xlane.f32.xlu0 %v5705_v35 }
0x2b33   :  { %v5707_v3 = vpop.xlane.xlu0 %5706 }
0x2b34   :  { %v5708_v46 = vmul.f32 0.03125, %v5707_v3 }
0x2b36   :  { %v5709_v18 = vadd.f32 1e-06, %v5708_v46 }
0x2b38   :  { %7503 = vrsqrt.f32 %v5709_v18 }
0x2b42   :  { %v7504_v11 = vpop.eup %7503 }
0x2b43   :  { %v5711_v14 = vmul.f32 %v7504_v11, %v5702_v36 }
0x2b45   :  { %v5718_v56 = vmul.f32 %v6206_v40, %v5711_v14 }
0x2b47   :  { %6874 = vmatmul.mubr.msk.f32.vlgmr.msra.gmra.mrb[60].mxu0 %vm178_vm0, %v5718_v56 }
0x2b48   :  { %6903 = vmatprep.mubr.msk.f32.mxu0 %vm7656_vm5, %v7655_v23  ;;  %7134 = vmatpush3.bf16.msra.mxu0 %v7133_v52 }
0x2b49   :  { %7135 = vmatprep.subr.bf16.mxu0 %v7654_v51 }
0x2b4c   :  { %7137 = vmatpush3.bf16.msra.mxu0 %v7136_v62 }
0x2c1a   :  { %v5800_v23 = vpop.f32.mrb[60].mxu0 }
0x2c1b   :  { %5814 = vrot.lane.b32.xlu1 %v5800_v23, %s7645_s18  ;;  %v6875_v50 = vpop.f32.mrb[61].mxu0  ;;  %v5804_v37 = vmul.f32 %v5800_v23, %v5800_v23 }
0x2c1d   :  { %v5805_v5 = vmul.f32 %v5804_v37, %v5800_v23 }
0x2c1f   :  { %v5806_v39 = vmul.f32 0.044715, %v5805_v5 }
0x2c21   :  { %v5807_v47 = vadd.f32 %v5806_v39, %v5800_v23 }
0x2c23   :  { %v5808_v41 = vmul.f32 0.7978846, %v5807_v47 }
0x2c25   :  { %7505 = vtanh.f32 %v5808_v41 }
0x2c2f   :  { %v7506_v12 = vpop.eup %7505 }
0x2c30   :  { %v5810_v19 = vadd.f32 1.0, %v7506_v12 }
0x2c32   :  { %v5811_v2 = vmul.f32 0.5, %v5810_v19 }
0x2c34   :  { %v5812_v6 = vmul.f32 %v5811_v2, %v5800_v23 }
0x2c8d   :  { %v5815_v8 = vpop.permute.xlu1 %5814 }
0x2c8e   :  { %v5817_v34 = vmul.f32 %v5815_v8, %v5812_v6 }
0x2c90   :  { %6893 = vmatmul.mubr.msk.f32.vlgmr.msra.gmra.mrb[64].mxu1 %vm2305_vm6, %v5817_v34 }
0x2d63   :  { %v5887_v44 = vpop.f32.mrb[64].mxu1 }
0x2d64   :  { %v5891_v26 = vadd.f32 %v5887_v44, %v5702_v36  ;;  %v6894_v16 = vpop.f32.mrb[65].mxu1  ;;  %v6210_v36 = vld [vmem:[#allocation7] ss:$0 sm:$0xff] }
0x2d66   :  { %v5893_v49 = vmul.f32 %v5891_v26, %v5891_v26 }
0x2d68   :  { %v5894_v28 = vsel %vm178_vm0, %v5893_v49, 0.0 }
0x2d69   :  { %5895 = vadd.xlane.f32.xlu1 %v5894_v28 }
0x2df6   :  { %v5896_v60 = vpop.xlane.xlu1 %5895 }
0x2df7   :  { %v5897_v43 = vmul.f32 0.03125, %v5896_v60 }
0x2df9   :  { %v5898_v42 = vadd.f32 1e-06, %v5897_v43 }
0x2dfb   :  { %7507 = vrsqrt.f32 %v5898_v42 }
0x2e05   :  { %v7508_v63 = vpop.eup %7507 }
0x2e06   :  { %v5900_v10 = vmul.f32 %v7508_v63, %v5891_v26 }
0x2e08   :  { %v5907_v33 = vmul.f32 %v6209_v54, %v5900_v10 }
0x2e0a   :  { %v5909_v27 = vrot.slane %v5907_v33, 3  ;;  %v5911_v48 = vrot.slane %v5907_v33, 6 }
0x2e0c   :  { %v5914_v45 = vsel %vm5913_vm12, %v5909_v27, %v5911_v48 }
0x2e0d   :  { %6904 = vmatmul.mubr.msk.f32.vlgmr.msra.gmra.mrb[62].mxu0 %vm178_vm0, %v5914_v45  ;;  %vm6020_vm0 = vcmask 1024  }
0x2ee0   :  { %v5995_v1 = vpop.f32.mrb[62].mxu0 }
0x2ee1   :  { %v5996_v51 = vadd.f32 %v6210_v36, %v5995_v1  ;;  %v6905_v35 = vpop.f32.mrb[63].mxu0 }
0x2ee3   :  { %v6000_v4 = vsel %vm5999_vm13, %v5996_v51, -inf }
0x2ee4   :  { %6001 = vmax.xlane.f32.xlu0 %v6000_v4 }
0x2f71   :  { %v6002_v7 = vpop.xlane.xlu0 %6001 }
0x2f72   :  { %vm6003_vm14 = vcmp.eq.f32.partialorder %v5996_v51, %v6002_v7 }
0x2f73   :  { %v6004_v9 = vsel %vm6003_vm14, %v8231_v30, 64 }
0x2f74   :  { %v6005_v13 = vsel %vm5999_vm13, %v6004_v9, 2147483647 }
0x2f75   :  { %v6007_v15 = vshra.s32 %v6005_v13, 16  ;;  %v6006_v3 = vand.u32 65535, %v6005_v13 }
0x2f77   :  { %v6009_v38 = vcvt.s32.f32 %v6007_v15  ;;  %v6008_v18 = vcvt.s32.f32 %v6006_v3 }
0x2f79   :  { %6010 = vmin.xlane.f32.xlu0 %v6009_v38 }
0x3006   :  { %v6011_v46 = vpop.xlane.xlu0 %6010 }
0x3007   :  { %vm6012_vm15 = vcmp.eq.f32.partialorder %v6009_v38, %v6011_v46  ;;  %v6017_v40 = vcvt.f32.s32 %v6011_v46 }
0x3008   :  { %v6013_v11 = vsel %vm6012_vm15, %v6008_v18, inf }
0x3009   :  { %6014 = vmin.xlane.f32.xlu0 %v6013_v11  ;;  %v6018_v56 = vshll.u32 %v6017_v40, 16 }
0x3096   :  { %v6015_v14 = vpop.xlane.xlu0 %6014 }
0x3097   :  { %v6016_v58 = vcvt.f32.s32 %v6015_v14 }
0x3099   :  { %v6019_v61 = vadd.s32 %v6018_v56, %v6016_v58 }
0x309b   :  { %6021 = vst.msk [vmem:[%s7811_s4] sm:$0x3] %vm6020_vm0, %v6019_v61 }
0x309c   :  { %6026 = vsyncpa [#allocation3], 1 }
0x309d   :  { %6027 = vsyncpa [#allocation5], 1 }
0x309e   :  { %6028 = vsyncpa [#allocation8], 1 }

</bundles_post_ra>
